<compile_context>
chip_gen: v5e
topology: v5e:2x2
jax: 0.10.0
libtpu: 0.0.40
codegen_flags: <defaults>
</compile_context>

<pallas_src>
import math
from functools import partial

import jax
import jax.numpy as jnp
from jax.experimental import pallas as pl
from jax.experimental.pallas import tpu as pltpu

# ----------------------------- small config (structure matches module __init__) --------------
IMG_SIZE = 32
PATCH_SIZE = 8
IN_CHANS = 3
NUM_FRAMES = 4
T_PATCH_SIZE = 2
EMBED_DIM = 128            # lane-dense (multiple of 128)
DEPTH = 2
NUM_HEADS = 4              # head_dim = 32
DEC_EMBED_DIM = 128
DEC_DEPTH = 2
DEC_NUM_HEADS = 4
MLP_RATIO = 4.0
MASK_TYPE = "st"           # module default (False) raises NotImplementedError; 'st' is canonical
NORM_PIX_LOSS = False
LN_EPS = 1e-5              # nn.LayerNorm default eps

GRID = IMG_SIZE // PATCH_SIZE
T_GRID = NUM_FRAMES // T_PATCH_SIZE
NUM_PATCHES = T_GRID * GRID * GRID                               # t*h*w = 32
PATCH_DIM = T_PATCH_SIZE * PATCH_SIZE * PATCH_SIZE * IN_CHANS    # u*p*p*3 = 384
HIDDEN = int(EMBED_DIM * MLP_RATIO)
DEC_HIDDEN = int(DEC_EMBED_DIM * MLP_RATIO)

VMEM_LIMIT = 32 * 1024 * 1024

_BLOCK_KEYS = ("ln1_g", "ln1_b", "qkv_w", "qkv_b", "proj_w", "proj_b",
               "ln2_g", "ln2_b", "fc1_w", "fc1_b", "fc2_w", "fc2_b")


# ----------------------------- in-kernel math helpers ----------------------------------------
def _ln(x, g, b, eps=LN_EPS):
    mu = jnp.mean(x, axis=-1, keepdims=True)
    xc = x - mu
    var = jnp.mean(xc * xc, axis=-1, keepdims=True)
    return xc * jax.lax.rsqrt(var + eps) * g + b


def _gelu(x):
    # TODO(synk): tanh-approx GELU (EUP tanh) instead of nn.GELU's exact erf (≤~1e-3 abs diff).
    c = 0.7978845608028654  # sqrt(2/pi)
    return 0.5 * x * (1.0 + jnp.tanh(c * (x + 0.044715 * x * x * x)))


def _block_apply(x, p, num_heads):
    """One timm-style BlockAttn on x: (S, C) f32.  p = per-layer params (weights are bf16)."""
    (ln1_g, ln1_b, qkv_w, qkv_b, proj_w, proj_b,
     ln2_g, ln2_b, fc1_w, fc1_b, fc2_w, fc2_b) = p
    S, C = x.shape
    Dh = C // num_heads
    scale = Dh ** -0.5

    # ---- attention -------------------------------------------------------------------------
    h = _ln(x, ln1_g, ln1_b)
    qkv = jnp.dot(h.astype(jnp.bfloat16), qkv_w,
                  preferred_element_type=jnp.float32) + qkv_b                   # (S, 3C) f32
    # heads on a leading batch dim; scale folded into q
    q = (qkv[:, 0 * C:1 * C].reshape(S, num_heads, Dh).swapaxes(0, 1)) * scale  # (H, S, Dh)
    k = qkv[:, 1 * C:2 * C].reshape(S, num_heads, Dh).swapaxes(0, 1)
    v = qkv[:, 2 * C:3 * C].reshape(S, num_heads, Dh).swapaxes(0, 1)
    s = jnp.einsum("hqd,hkd->hqk", q.astype(jnp.bfloat16), k.astype(jnp.bfloat16),
                   preferred_element_type=jnp.float32)                          # (H, S, S)
    s = s - jnp.max(s, axis=-1, keepdims=True)
    e = jnp.exp(s)
    p_attn = e * pl.reciprocal(jnp.sum(e, axis=-1, keepdims=True), approx=True)
    ctx = jnp.einsum("hqk,hkd->hqd", p_attn.astype(jnp.bfloat16), v.astype(jnp.bfloat16),
                     preferred_element_type=jnp.float32)                        # (H, S, Dh)
    attn_out = ctx.swapaxes(0, 1).reshape(S, C)                                 # concat heads
    x = x + jnp.dot(attn_out.astype(jnp.bfloat16), proj_w,
                    preferred_element_type=jnp.float32) + proj_b

    # ---- MLP -------------------------------------------------------------------------------
    h2 = _ln(x, ln2_g, ln2_b)
    h2 = jnp.dot(h2.astype(jnp.bfloat16), fc1_w, preferred_element_type=jnp.float32) + fc1_b
    h2 = _gelu(h2)
    x = x + jnp.dot(h2.astype(jnp.bfloat16), fc2_w, preferred_element_type=jnp.float32) + fc2_b
    return x


# ----------------------------- Pallas kernels ------------------------------------------------
def _patch_embed_kernel(p_ref, w_ref, b_ref, pos_ref, o_ref):
    """Non-overlapping Conv3d == patchify (outside) + matmul; pos-embed add fused. Grid=(batch,)."""
    o_ref[0] = (jnp.dot(p_ref[0].astype(jnp.bfloat16), w_ref[...],
                        preferred_element_type=jnp.float32)
                + b_ref[...] + pos_ref[...])


def _encoder_kernel(x_ref,
                    ln1_g, ln1_b, qkv_w, qkv_b, proj_w, proj_b,
                    ln2_g, ln2_b, fc1_w, fc1_b, fc2_w, fc2_b,
                    norm_g, norm_b, dec_w, dec_b,
                    o_ref, x_scr, *, num_heads):
    """Grid=(batch, depth). One streamed encoder block per step; LN + decoder_embed on last."""
    d = pl.program_id(1)

    @pl.when(d == 0)
    def _():
        x_scr[...] = x_ref[0]

    blk = (ln1_g[0], ln1_b[0], qkv_w[0], qkv_b[0], proj_w[0], proj_b[0],
           ln2_g[0], ln2_b[0], fc1_w[0], fc1_b[0], fc2_w[0], fc2_b[0])
    x_scr[...] = _block_apply(x_scr[...], blk, num_heads)

    @pl.when(d == pl.num_programs(1) - 1)
    def _():
        y = _ln(x_scr[...], norm_g[...], norm_b[...])
        o_ref[0] = jnp.dot(y.astype(jnp.bfloat16), dec_w[...],
                           preferred_element_type=jnp.float32) + dec_b[...]


def _decoder_kernel(x_ref,
                    ln1_g, ln1_b, qkv_w, qkv_b, proj_w, proj_b,
                    ln2_g, ln2_b, fc1_w, fc1_b, fc2_w, fc2_b,
                    dn_g, dn_b, pred_w, pred_b, tgt_ref, mask_ref,
                    pred_ref, ltok_ref, x_scr, *, num_heads):
    """Grid=(batch, depth). One streamed decoder block per step; LN + pred + masked MSE on last."""
    d = pl.program_id(1)

    @pl.when(d == 0)
    def _():
        x_scr[...] = x_ref[0]

    blk = (ln1_g[0], ln1_b[0], qkv_w[0], qkv_b[0], proj_w[0], proj_b[0],
           ln2_g[0], ln2_b[0], fc1_w[0], fc1_b[0], fc2_w[0], fc2_b[0])
    x_scr[...] = _block_apply(x_scr[...], blk, num_heads)

    @pl.when(d == pl.num_programs(1) - 1)
    def _():
        y = _ln(x_scr[...], dn_g[...], dn_b[...])
        pr = jnp.dot(y.astype(jnp.bfloat16), pred_w[...],
                     preferred_element_type=jnp.float32) + pred_b[...]          # (L, PATCH_DIM)
        pred_ref[0] = pr
        diff = pr - tgt_ref[0]
        # per-token masked MSE; the final (sum / mask.sum) scalar reduce is tiny XLA glue outside
        ltok_ref[0] = jnp.mean(diff * diff, axis=-1, keepdims=True) * mask_ref[0]


# ----------------------------- wrappers -------------------------------------------------------
def _vit_cost(n, depth, s, c, hidden, heads, tail_out):
    dh = c // heads
    per_block = (2 * s * c * 3 * c + 4 * heads * s * s * dh
                 + 2 * s * c * c + 4 * s * c * hidden)
    flops = n * (depth * per_block + 2 * s * c * tail_out)
    trans = n * depth * (heads * s * s + s * hidden)
    byts = (n * s * (c + tail_out) * 4
            + depth * (3 * c * c + c * c + 2 * c * hidden) * 2)
    return pl.CostEstimate(flops=int(flops), transcendentals=int(trans), bytes_accessed=int(byts))


def _stacked_specs(blocks):
    # one layer's slab per depth step: block index (d, 0, 0) streams/double-buffers the weights
    return [pl.BlockSpec((1,) + tuple(blocks[k].shape[1:]), lambda b, d: (d, 0, 0))
            for k in _BLOCK_KEYS]


def _const2d_specs(arrs):
    return [pl.BlockSpec(a.shape, lambda b, d: (0, 0)) for a in arrs]


def patchify(imgs):
    """imgs (N,3,T,H,W) -> (N, t*h*w, u*p*p*3); per-patch feature order (u, p, q, c)."""
    N = imgs.shape[0]
    p, u = PATCH_SIZE, T_PATCH_SIZE
    t, h, w = T_GRID, GRID, GRID
    x = imgs.reshape(N, 3, t, u, h, p, w, p)
    x = jnp.einsum("nctuhpwq->nthwupqc", x)
    return x.reshape(N, t * h * w, u * p * p * 3)


def patch_embed_pos(params, patches):
    """PatchEmbed (Conv3d == patchify + matmul) + pos-embed add.  Grid over batch (parallel)."""
    N = patches.shape[0]
    return pl.pallas_call(
        _patch_embed_kernel,
        out_shape=jax.ShapeDtypeStruct((N, NUM_PATCHES, EMBED_DIM), jnp.float32),
        grid_spec=pltpu.PrefetchScalarGridSpec(
            num_scalar_prefetch=0,
            grid=(N,),
            in_specs=[
                pl.BlockSpec((1, NUM_PATCHES, PATCH_DIM), lambda b: (b, 0, 0)),
                pl.BlockSpec((PATCH_DIM, EMBED_DIM), lambda b: (0, 0)),
                pl.BlockSpec((1, EMBED_DIM), lambda b: (0, 0)),
                pl.BlockSpec((NUM_PATCHES, EMBED_DIM), lambda b: (0, 0)),
            ],
            out_specs=pl.BlockSpec((1, NUM_PATCHES, EMBED_DIM), lambda b: (b, 0, 0)),
        ),
        compiler_params=pltpu.CompilerParams(
            dimension_semantics=("parallel",), vmem_limit_bytes=VMEM_LIMIT),
    )(patches, params["patch_w"], params["patch_b"], params["pos_embed"])


def encoder_forward(params, x):
    """Streamed encoder blocks + final LN + decoder_embed.  x: (N, S_keep, EMBED_DIM) f32."""
    N, S, C = x.shape
    blocks = params["enc_blocks"]
    blk_args = [blocks[k] for k in _BLOCK_KEYS]
    blk_specs = _stacked_specs(blocks)
    tail_args = [params["norm_g"], params["norm_b"],
                 params["dec_embed_w"], params["dec_embed_b"]]
    tail_specs = _const2d_specs(tail_args)
    return pl.pallas_call(
        partial(_encoder_kernel, num_heads=NUM_HEADS),
        out_shape=jax.ShapeDtypeStruct((N, S, DEC_EMBED_DIM), jnp.float32),
        grid_spec=pltpu.PrefetchScalarGridSpec(
            num_scalar_prefetch=0,
            grid=(N, DEPTH),
            in_specs=[pl.BlockSpec((1, S, C), lambda b, d: (b, 0, 0))] + blk_specs + tail_specs,
            out_specs=pl.BlockSpec((1, S, DEC_EMBED_DIM), lambda b, d: (b, 0, 0)),
            scratch_shapes=[pltpu.VMEM((S, C), jnp.float32)],
        ),
        compiler_params=pltpu.CompilerParams(
            dimension_semantics=("parallel", "arbitrary"), vmem_limit_bytes=VMEM_LIMIT),
        cost_estimate=_vit_cost(N, DEPTH, S, C, HIDDEN, NUM_HEADS, DEC_EMBED_DIM),
    )(x, *blk_args, *tail_args)


def decoder_forward(params, x_dec, target, mask):
    """Streamed decoder blocks + LN + decoder_pred + per-token masked MSE.  x_dec: (N, L, C)."""
    N, L, C = x_dec.shape
    blocks = params["dec_blocks"]
    blk_args = [blocks[k] for k in _BLOCK_KEYS]
    blk_specs = _stacked_specs(blocks)
    tail_args = [params["dec_norm_g"], params["dec_norm_b"],
                 params["dec_pred_w"], params["dec_pred_b"]]
    tail_specs = _const2d_specs(tail_args)
    mask3 = mask.reshape(N, L, 1)
    pred, ltok = pl.pallas_call(
        partial(_decoder_kernel, num_heads=DEC_NUM_HEADS),
        out_shape=(jax.ShapeDtypeStruct((N, L, PATCH_DIM), jnp.float32),
                   jax.ShapeDtypeStruct((N, L, 1), jnp.float32)),
        grid_spec=pltpu.PrefetchScalarGridSpec(
            num_scalar_prefetch=0,
            grid=(N, DEC_DEPTH),
            in_specs=([pl.BlockSpec((1, L, C), lambda b, d: (b, 0, 0))]
                      + blk_specs + tail_specs
                      + [pl.BlockSpec((1, L, PATCH_DIM), lambda b, d: (b, 0, 0)),
                         pl.BlockSpec((1, L, 1), lambda b, d: (b, 0, 0))]),
            out_specs=(pl.BlockSpec((1, L, PATCH_DIM), lambda b, d: (b, 0, 0)),
                       pl.BlockSpec((1, L, 1), lambda b, d: (b, 0, 0))),
            scratch_shapes=[pltpu.VMEM((L, C), jnp.float32)],
        ),
        compiler_params=pltpu.CompilerParams(
            dimension_semantics=("parallel", "arbitrary"), vmem_limit_bytes=VMEM_LIMIT),
        cost_estimate=_vit_cost(N, DEC_DEPTH, L, C, DEC_HIDDEN, DEC_NUM_HEADS, PATCH_DIM),
    )(x_dec, *blk_args, *tail_args, target, mask3)
    return pred, ltok


def random_masking(rng, x, mask_ratio):
    N, L, D = x.shape
    len_keep = int(L * (1 - mask_ratio))
    noise = jax.random.uniform(rng, (N, L))
    ids_shuffle = jnp.argsort(noise, axis=1)
    ids_restore = jnp.argsort(ids_shuffle, axis=1)
    ids_keep = ids_shuffle[:, :len_keep]
    x_masked = jnp.take_along_axis(x, ids_keep[:, :, None], axis=1)
    mask = jnp.ones((N, L), jnp.float32).at[:, :len_keep].set(0.0)
    mask = jnp.take_along_axis(mask, ids_restore, axis=1)
    return x_masked, mask, ids_restore


@partial(jax.jit, static_argnames=("mask_ratio",))
def forward(params, imgs, index=None, mask_ratio=0.75, rng=None):
    del index  # unused, as in the reference forward()
    # patchify once; reused as the (equivalent) Conv3d patch-embed input AND the loss target
    target = patchify(imgs)                                     # (N, L, PATCH_DIM)
    # ---- encoder (mask_type == 'st') ----
    x = patch_embed_pos(params, target)                         # (N, L, C) with pos added
    x, mask, ids_restore = random_masking(rng, x, mask_ratio)   # keep (N, S_keep, C)
    latent_dec = encoder_forward(params, x)                     # blocks + norm + decoder_embed
    # ---- decoder token assembly (XLA glue under jit) ----
    # TODO(synk): fold the mask-token concat / unshuffle gather into the decoder pallas_call via
    # PrefetchScalarGridSpec(ids_restore) instead of take_along_axis between launches.
    N, n_keep, C = latent_dec.shape
    L = NUM_PATCHES
    mask_tokens = jnp.broadcast_to(params["mask_token"], (N, L - n_keep, C))
    x_ = jnp.concatenate([latent_dec, mask_tokens], axis=1)                 # (N, L, C)
    x_ = jnp.take_along_axis(x_, ids_restore[:, :, None], axis=1)           # unshuffle
    x_dec = x_ + params["dec_pos_embed"]
    # ---- decoder + loss (norm_pix_loss=False) ----
    pred, ltok = decoder_forward(params, x_dec, target, mask)
    loss = jnp.sum(ltok) / jnp.sum(mask)   # as in reference (no guard; mask_ratio=0 would be NaN)
    return loss, pred, mask


# ----------------------------- fixed 3D sin-cos positional embeddings ------------------------
def _sincos_1d(dim, pos):
    omega = 1.0 / (10000.0 ** (jnp.arange(dim // 2, dtype=jnp.float32) / (dim / 2.0)))
    out = pos[:, None] * omega[None, :]
    return jnp.concatenate([jnp.sin(out), jnp.cos(out)], axis=1)


def get_3d_sincos_pos_embed(embed_dim, grid_size, t_size):
    assert embed_dim % 4 == 0
    dim_t = embed_dim // 4
    dim_s = embed_dim - dim_t
    hh, ww = jnp.meshgrid(jnp.arange(grid_size, dtype=jnp.float32),
                          jnp.arange(grid_size, dtype=jnp.float32), indexing="ij")
    emb_s = jnp.concatenate([_sincos_1d(dim_s // 2, hh.reshape(-1)),
                             _sincos_1d(dim_s // 2, ww.reshape(-1))], axis=1)   # (H*W, dim_s)
    emb_t = _sincos_1d(dim_t, jnp.arange(t_size, dtype=jnp.float32))            # (T, dim_t)
    emb_t = jnp.repeat(emb_t[:, None, :], grid_size * grid_size, axis=1)
    emb_s = jnp.repeat(emb_s[None, :, :], t_size, axis=0)
    return jnp.concatenate([emb_t, emb_s], axis=-1).reshape(-1, embed_dim)      # (L, embed_dim)


# ----------------------------- deterministic parameter init ----------------------------------
def xavier_uniform(key, fan_in, fan_out):
    limit = math.sqrt(6.0 / (fan_in + fan_out))
    return jax.random.uniform(key, (fan_in, fan_out), jnp.float32, -limit, limit)


def init_block(key, dim, hidden):
    k = jax.random.split(key, 4)
    return {
        "ln1_g": jnp.ones((1, dim), jnp.float32), "ln1_b": jnp.zeros((1, dim), jnp.float32),
        "qkv_w": xavier_uniform(k[0], dim, 3 * dim).astype(jnp.bfloat16),
        "qkv_b": jnp.zeros((1, 3 * dim), jnp.float32),
        "proj_w": xavier_uniform(k[1], dim, dim).astype(jnp.bfloat16),
        "proj_b": jnp.zeros((1, dim), jnp.float32),
        "ln2_g": jnp.ones((1, dim), jnp.float32), "ln2_b": jnp.zeros((1, dim), jnp.float32),
        "fc1_w": xavier_uniform(k[2], dim, hidden).astype(jnp.bfloat16),
        "fc1_b": jnp.zeros((1, hidden), jnp.float32),
        "fc2_w": xavier_uniform(k[3], hidden, dim).astype(jnp.bfloat16),
        "fc2_b": jnp.zeros((1, dim), jnp.float32),
    }


def stack_blocks(blocks):
    return {k: jnp.stack([blk[k] for blk in blocks], axis=0) for k in _BLOCK_KEYS}


def init_params(key):
    keys = jax.random.split(key, 4 + DEPTH + DEC_DEPTH)
    p = {}
    # Conv3d patch-embed weight flattened to (u*p*p*c, E); xavier as in initialize_weights()
    p["patch_w"] = xavier_uniform(keys[0], PATCH_DIM, EMBED_DIM).astype(jnp.bfloat16)
    p["patch_b"] = jnp.zeros((1, EMBED_DIM), jnp.float32)
    p["pos_embed"] = get_3d_sincos_pos_embed(EMBED_DIM, GRID, T_GRID)            # fixed sin-cos
    p["dec_pos_embed"] = get_3d_sincos_pos_embed(DEC_EMBED_DIM, GRID, T_GRID)
    p["mask_token"] = 0.02 * jax.random.normal(keys[1], (1, 1, DEC_EMBED_DIM), jnp.float32)
    p["norm_g"] = jnp.ones((1, EMBED_DIM), jnp.float32)
    p["norm_b"] = jnp.zeros((1, EMBED_DIM), jnp.float32)
    p["dec_embed_w"] = xavier_uniform(keys[2], EMBED_DIM, DEC_EMBED_DIM).astype(jnp.bfloat16)
    p["dec_embed_b"] = jnp.zeros((1, DEC_EMBED_DIM), jnp.float32)
    p["dec_norm_g"] = jnp.ones((1, DEC_EMBED_DIM), jnp.float32)
    p["dec_norm_b"] = jnp.zeros((1, DEC_EMBED_DIM), jnp.float32)
    p["dec_pred_w"] = xavier_uniform(keys[3], DEC_EMBED_DIM, PATCH_DIM).astype(jnp.bfloat16)
    p["dec_pred_b"] = jnp.zeros((1, PATCH_DIM), jnp.float32)
    p["enc_blocks"] = stack_blocks(
        [init_block(keys[4 + i], EMBED_DIM, HIDDEN) for i in range(DEPTH)])
    p["dec_blocks"] = stack_blocks(
        [init_block(keys[4 + DEPTH + i], DEC_EMBED_DIM, DEC_HIDDEN) for i in range(DEC_DEPTH)])
    return p


if __name__ == "__main__":
    key = jax.random.PRNGKey(0)
    k_param, k_img, k_mask = jax.random.split(key, 3)
    params = init_params(k_param)
    imgs = jax.random.normal(k_img, (2, IN_CHANS, NUM_FRAMES, IMG_SIZE, IMG_SIZE), jnp.float32)

    loss, pred, mask = forward(params, imgs, index=None, mask_ratio=0.75, rng=k_mask)
    jax.block_until_ready((loss, pred, mask))

    assert loss.shape == ()
    assert pred.shape == (2, NUM_PATCHES, PATCH_DIM)
    assert mask.shape == (2, NUM_PATCHES)
    assert bool(jnp.isfinite(loss))
    print("KERNEL_OK")
</pallas_src>

<mosaic_0001>
module attributes {stable_mosaic.version = 11 : i64} {
  func.func @_patch_embed_kernel(%arg0: i32, %arg1: memref<1x32x384xf32, #tpu.memory_space<vmem>>, %arg2: memref<384x128xbf16, #tpu.memory_space<vmem>>, %arg3: memref<1x128xf32, #tpu.memory_space<vmem>>, %arg4: memref<32x128xf32, #tpu.memory_space<vmem>>, %arg5: memref<1x32x128xf32, #tpu.memory_space<vmem>>) attributes {dimension_semantics = [#tpu.dimension_semantics<parallel>], iteration_bounds = array<i64: 2>, scalar_prefetch = 0 : i64, scratch_operands = 0 : i64, tpu.core_type = #tpu.core_type<tc>, window_params = [{transform_indices = @transform_0, window_bounds = array<i64: 1, 32, 384>}, {pipeline_mode = #tpu.pipeline_mode<synchronous>, transform_indices = @transform_1, window_bounds = array<i64: 384, 128>}, {pipeline_mode = #tpu.pipeline_mode<synchronous>, transform_indices = @transform_2, window_bounds = array<i64: 1, 128>}, {pipeline_mode = #tpu.pipeline_mode<synchronous>, transform_indices = @transform_3, window_bounds = array<i64: 32, 128>}, {transform_indices = @transform_4, window_bounds = array<i64: 1, 32, 128>}]} {
    %c0 = arith.constant 0 : index
    %c0_0 = arith.constant 0 : index
    %c0_1 = arith.constant 0 : index
    %0 = vector.load %arg1[%c0, %c0_0, %c0_1] : memref<1x32x384xf32, #tpu.memory_space<vmem>>, vector<1x32x384xf32>
    %1 = vector.shape_cast %0 : vector<1x32x384xf32> to vector<32x384xf32>
    %2 = arith.truncf %1 : vector<32x384xf32> to vector<32x384xbf16>
    %c0_2 = arith.constant 0 : index
    %c0_3 = arith.constant 0 : index
    %3 = vector.load %arg2[%c0_2, %c0_3] : memref<384x128xbf16, #tpu.memory_space<vmem>>, vector<384x128xbf16>
    %cst = arith.constant dense<0.000000e+00> : vector<32x128xf32>
    %4 = tpu.matmul %2, %3, %cst {dimension_numbers = #tpu.dot_dimension_numbers<[1], [0], [0], [1], [0, 0, 1, 1], [], []>} : vector<32x384xbf16>, vector<384x128xbf16>, vector<32x128xf32> -> vector<32x128xf32>
    %c0_4 = arith.constant 0 : index
    %c0_5 = arith.constant 0 : index
    %5 = vector.load %arg3[%c0_4, %c0_5] : memref<1x128xf32, #tpu.memory_space<vmem>>, vector<1x128xf32>
    %6 = vector.broadcast %5 : vector<1x128xf32> to vector<32x128xf32>
    %7 = arith.addf %4, %6 : vector<32x128xf32>
    %c0_6 = arith.constant 0 : index
    %c0_7 = arith.constant 0 : index
    %8 = vector.load %arg4[%c0_6, %c0_7] : memref<32x128xf32, #tpu.memory_space<vmem>>, vector<32x128xf32>
    %9 = arith.addf %7, %8 : vector<32x128xf32>
    %c0_8 = arith.constant 0 : index
    %c0_9 = arith.constant 0 : index
    %c0_10 = arith.constant 0 : index
    %10 = vector.load %arg5[%c0_8, %c0_9, %c0_10] : memref<1x32x128xf32, #tpu.memory_space<vmem>>, vector<1x32x128xf32>
    %11 = vector.shape_cast %10 : vector<1x32x128xf32> to vector<32x128xf32>
    %12 = vector.shape_cast %9 : vector<32x128xf32> to vector<1x32x128xf32>
    tpu.vector_store %arg5[%c0_8, %c0_9, %c0_10], %12 {strides = array<i32>} : memref<1x32x128xf32, #tpu.memory_space<vmem>>, vector<1x32x128xf32>,
    return
  }
  func.func @transform_0(%arg0: i32) -> (i32, i32, i32) {
    %c0_i32 = arith.constant 0 : i32
    %c0_i32_0 = arith.constant 0 : i32
    %c0_i32_1 = arith.constant 0 : i32
    return %arg0, %c0_i32, %c0_i32_0 : i32, i32, i32
  }
  func.func @transform_1(%arg0: i32) -> (i32, i32) {
    %c0_i32 = arith.constant 0 : i32
    %c0_i32_0 = arith.constant 0 : i32
    %c0_i32_1 = arith.constant 0 : i32
    return %c0_i32, %c0_i32_0 : i32, i32
  }
  func.func @transform_2(%arg0: i32) -> (i32, i32) {
    %c0_i32 = arith.constant 0 : i32
    %c0_i32_0 = arith.constant 0 : i32
    %c0_i32_1 = arith.constant 0 : i32
    return %c0_i32, %c0_i32_0 : i32, i32
  }
  func.func @transform_3(%arg0: i32) -> (i32, i32) {
    %c0_i32 = arith.constant 0 : i32
    %c0_i32_0 = arith.constant 0 : i32
    %c0_i32_1 = arith.constant 0 : i32
    return %c0_i32, %c0_i32_0 : i32, i32
  }
  func.func @transform_4(%arg0: i32) -> (i32, i32, i32) {
    %c0_i32 = arith.constant 0 : i32
    %c0_i32_0 = arith.constant 0 : i32
    %c0_i32_1 = arith.constant 0 : i32
    return %arg0, %c0_i32, %c0_i32_0 : i32, i32, i32
  }
}

module attributes {stable_mosaic.version = 11 : i64} {
  func.func @_encoder_kernel(%arg0: i32, %arg1: i32, %arg2: memref<1x8x128xf32, #tpu.memory_space<vmem>>, %arg3: memref<1x1x128xf32, #tpu.memory_space<vmem>>, %arg4: memref<1x1x128xf32, #tpu.memory_space<vmem>>, %arg5: memref<1x128x384xbf16, #tpu.memory_space<vmem>>, %arg6: memref<1x1x384xf32, #tpu.memory_space<vmem>>, %arg7: memref<1x128x128xbf16, #tpu.memory_space<vmem>>, %arg8: memref<1x1x128xf32, #tpu.memory_space<vmem>>, %arg9: memref<1x1x128xf32, #tpu.memory_space<vmem>>, %arg10: memref<1x1x128xf32, #tpu.memory_space<vmem>>, %arg11: memref<1x128x512xbf16, #tpu.memory_space<vmem>>, %arg12: memref<1x1x512xf32, #tpu.memory_space<vmem>>, %arg13: memref<1x512x128xbf16, #tpu.memory_space<vmem>>, %arg14: memref<1x1x128xf32, #tpu.memory_space<vmem>>, %arg15: memref<1x128xf32, #tpu.memory_space<vmem>>, %arg16: memref<1x128xf32, #tpu.memory_space<vmem>>, %arg17: memref<128x128xbf16, #tpu.memory_space<vmem>>, %arg18: memref<1x128xf32, #tpu.memory_space<vmem>>, %arg19: memref<1x8x128xf32, #tpu.memory_space<vmem>>, %arg20: memref<8x128xf32, #tpu.memory_space<vmem>>) attributes {dimension_semantics = [#tpu.dimension_semantics<parallel>, #tpu.dimension_semantics<arbitrary>], iteration_bounds = array<i64: 2, 2>, scalar_prefetch = 0 : i64, scratch_operands = 1 : i64, tpu.core_type = #tpu.core_type<tc>, window_params = [{transform_indices = @transform_0, window_bounds = array<i64: 1, 8, 128>}, {transform_indices = @transform_1, window_bounds = array<i64: 1, 1, 128>}, {transform_indices = @transform_2, window_bounds = array<i64: 1, 1, 128>}, {transform_indices = @transform_3, window_bounds = array<i64: 1, 128, 384>}, {transform_indices = @transform_4, window_bounds = array<i64: 1, 1, 384>}, {transform_indices = @transform_5, window_bounds = array<i64: 1, 128, 128>}, {transform_indices = @transform_6, window_bounds = array<i64: 1, 1, 128>}, {transform_indices = @transform_7, window_bounds = array<i64: 1, 1, 128>}, {transform_indices = @transform_8, window_bounds = array<i64: 1, 1, 128>}, {transform_indices = @transform_9, window_bounds = array<i64: 1, 128, 512>}, {transform_indices = @transform_10, window_bounds = array<i64: 1, 1, 512>}, {transform_indices = @transform_11, window_bounds = array<i64: 1, 512, 128>}, {transform_indices = @transform_12, window_bounds = array<i64: 1, 1, 128>}, {pipeline_mode = #tpu.pipeline_mode<synchronous>, transform_indices = @transform_13, window_bounds = array<i64: 1, 128>}, {pipeline_mode = #tpu.pipeline_mode<synchronous>, transform_indices = @transform_14, window_bounds = array<i64: 1, 128>}, {pipeline_mode = #tpu.pipeline_mode<synchronous>, transform_indices = @transform_15, window_bounds = array<i64: 128, 128>}, {pipeline_mode = #tpu.pipeline_mode<synchronous>, transform_indices = @transform_16, window_bounds = array<i64: 1, 128>}, {transform_indices = @transform_17, window_bounds = array<i64: 1, 8, 128>}]} {
    %c0_i32 = arith.constant 0 : i32
    %0 = arith.cmpi eq, %arg1, %c0_i32 : i32
    %1 = arith.extui %0 : i1 to i32
    %c0_i32_0 = arith.constant 0 : i32
    %2 = arith.cmpi ne, %1, %c0_i32_0 : i32
    scf.if %2 {
      %c0_63 = arith.constant 0 : index
      %c0_64 = arith.constant 0 : index
      %c0_65 = arith.constant 0 : index
      %132 = vector.load %arg2[%c0_63, %c0_64, %c0_65] : memref<1x8x128xf32, #tpu.memory_space<vmem>>, vector<1x8x128xf32>
      %133 = vector.shape_cast %132 : vector<1x8x128xf32> to vector<8x128xf32>
      %c0_66 = arith.constant 0 : index
      %c0_67 = arith.constant 0 : index
      %134 = vector.load %arg20[%c0_66, %c0_67] : memref<8x128xf32, #tpu.memory_space<vmem>>, vector<8x128xf32>
      tpu.vector_store %arg20[%c0_66, %c0_67], %133 {strides = array<i32>} : memref<8x128xf32, #tpu.memory_space<vmem>>, vector<8x128xf32>,
    } else {
    }
    %c0 = arith.constant 0 : index
    %c0_1 = arith.constant 0 : index
    %c0_2 = arith.constant 0 : index
    %3 = vector.load %arg3[%c0, %c0_1, %c0_2] : memref<1x1x128xf32, #tpu.memory_space<vmem>>, vector<1x1x128xf32>
    %4 = vector.shape_cast %3 : vector<1x1x128xf32> to vector<1x128xf32>
    %c0_3 = arith.constant 0 : index
    %c0_4 = arith.constant 0 : index
    %c0_5 = arith.constant 0 : index
    %5 = vector.load %arg4[%c0_3, %c0_4, %c0_5] : memref<1x1x128xf32, #tpu.memory_space<vmem>>, vector<1x1x128xf32>
    %6 = vector.shape_cast %5 : vector<1x1x128xf32> to vector<1x128xf32>
    %c0_6 = arith.constant 0 : index
    %c0_7 = arith.constant 0 : index
    %c0_8 = arith.constant 0 : index
    %7 = vector.load %arg5[%c0_6, %c0_7, %c0_8] : memref<1x128x384xbf16, #tpu.memory_space<vmem>>, vector<1x128x384xbf16>
    %8 = vector.shape_cast %7 : vector<1x128x384xbf16> to vector<128x384xbf16>
    %c0_9 = arith.constant 0 : index
    %c0_10 = arith.constant 0 : index
    %c0_11 = arith.constant 0 : index
    %9 = vector.load %arg6[%c0_9, %c0_10, %c0_11] : memref<1x1x384xf32, #tpu.memory_space<vmem>>, vector<1x1x384xf32>
    %10 = vector.shape_cast %9 : vector<1x1x384xf32> to vector<1x384xf32>
    %c0_12 = arith.constant 0 : index
    %c0_13 = arith.constant 0 : index
    %c0_14 = arith.constant 0 : index
    %11 = vector.load %arg7[%c0_12, %c0_13, %c0_14] : memref<1x128x128xbf16, #tpu.memory_space<vmem>>, vector<1x128x128xbf16>
    %12 = vector.shape_cast %11 : vector<1x128x128xbf16> to vector<128x128xbf16>
    %c0_15 = arith.constant 0 : index
    %c0_16 = arith.constant 0 : index
    %c0_17 = arith.constant 0 : index
    %13 = vector.load %arg8[%c0_15, %c0_16, %c0_17] : memref<1x1x128xf32, #tpu.memory_space<vmem>>, vector<1x1x128xf32>
    %14 = vector.shape_cast %13 : vector<1x1x128xf32> to vector<1x128xf32>
    %c0_18 = arith.constant 0 : index
    %c0_19 = arith.constant 0 : index
    %c0_20 = arith.constant 0 : index
    %15 = vector.load %arg9[%c0_18, %c0_19, %c0_20] : memref<1x1x128xf32, #tpu.memory_space<vmem>>, vector<1x1x128xf32>
    %16 = vector.shape_cast %15 : vector<1x1x128xf32> to vector<1x128xf32>
    %c0_21 = arith.constant 0 : index
    %c0_22 = arith.constant 0 : index
    %c0_23 = arith.constant 0 : index
    %17 = vector.load %arg10[%c0_21, %c0_22, %c0_23] : memref<1x1x128xf32, #tpu.memory_space<vmem>>, vector<1x1x128xf32>
    %18 = vector.shape_cast %17 : vector<1x1x128xf32> to vector<1x128xf32>
    %c0_24 = arith.constant 0 : index
    %c0_25 = arith.constant 0 : index
    %c0_26 = arith.constant 0 : index
    %19 = vector.load %arg11[%c0_24, %c0_25, %c0_26] : memref<1x128x512xbf16, #tpu.memory_space<vmem>>, vector<1x128x512xbf16>
    %20 = vector.shape_cast %19 : vector<1x128x512xbf16> to vector<128x512xbf16>
    %c0_27 = arith.constant 0 : index
    %c0_28 = arith.constant 0 : index
    %c0_29 = arith.constant 0 : index
    %21 = vector.load %arg12[%c0_27, %c0_28, %c0_29] : memref<1x1x512xf32, #tpu.memory_space<vmem>>, vector<1x1x512xf32>
    %22 = vector.shape_cast %21 : vector<1x1x512xf32> to vector<1x512xf32>
    %c0_30 = arith.constant 0 : index
    %c0_31 = arith.constant 0 : index
    %c0_32 = arith.constant 0 : index
    %23 = vector.load %arg13[%c0_30, %c0_31, %c0_32] : memref<1x512x128xbf16, #tpu.memory_space<vmem>>, vector<1x512x128xbf16>
    %24 = vector.shape_cast %23 : vector<1x512x128xbf16> to vector<512x128xbf16>
    %c0_33 = arith.constant 0 : index
    %c0_34 = arith.constant 0 : index
    %c0_35 = arith.constant 0 : index
    %25 = vector.load %arg14[%c0_33, %c0_34, %c0_35] : memref<1x1x128xf32, #tpu.memory_space<vmem>>, vector<1x1x128xf32>
    %26 = vector.shape_cast %25 : vector<1x1x128xf32> to vector<1x128xf32>
    %c0_36 = arith.constant 0 : index
    %c0_37 = arith.constant 0 : index
    %27 = vector.load %arg20[%c0_36, %c0_37] : memref<8x128xf32, #tpu.memory_space<vmem>>, vector<8x128xf32>
    %cst = arith.constant dense<0.000000e+00> : vector<8xf32>
    %28 = vector.multi_reduction <add>, %27, %cst [1] : vector<8x128xf32> to vector<8xf32>
    %29 = vector.shape_cast %28 : vector<8xf32> to vector<8x1xf32>
    %cst_38 = arith.constant 1.280000e+02 : f32
    %30 = vector.broadcast %cst_38 : f32 to vector<8x1xf32>
    %31 = arith.divf %29, %30 : vector<8x1xf32>
    %32 = vector.broadcast %31 : vector<8x1xf32> to vector<8x128xf32>
    %33 = arith.subf %27, %32 : vector<8x128xf32>
    %34 = arith.mulf %33, %33 : vector<8x128xf32>
    %cst_39 = arith.constant dense<0.000000e+00> : vector<8xf32>
    %35 = vector.multi_reduction <add>, %34, %cst_39 [1] : vector<8x128xf32> to vector<8xf32>
    %36 = vector.shape_cast %35 : vector<8xf32> to vector<8x1xf32>
    %cst_40 = arith.constant 1.280000e+02 : f32
    %37 = vector.broadcast %cst_40 : f32 to vector<8x1xf32>
    %38 = arith.divf %36, %37 : vector<8x1xf32>
    %cst_41 = arith.constant 9.99999974E-6 : f32
    %39 = vector.broadcast %cst_41 : f32 to vector<8x1xf32>
    %40 = arith.addf %38, %39 : vector<8x1xf32>
    %41 = math.rsqrt %40 : vector<8x1xf32>
    %42 = vector.broadcast %41 : vector<8x1xf32> to vector<8x128xf32>
    %43 = arith.mulf %33, %42 : vector<8x128xf32>
    %44 = vector.broadcast %4 : vector<1x128xf32> to vector<8x128xf32>
    %45 = arith.mulf %43, %44 : vector<8x128xf32>
    %46 = vector.broadcast %6 : vector<1x128xf32> to vector<8x128xf32>
    %47 = arith.addf %45, %46 : vector<8x128xf32>
    %48 = arith.truncf %47 : vector<8x128xf32> to vector<8x128xbf16>
    %cst_42 = arith.constant dense<0.000000e+00> : vector<8x384xf32>
    %49 = tpu.matmul %48, %8, %cst_42 {dimension_numbers = #tpu.dot_dimension_numbers<[1], [0], [0], [1], [0, 0, 1, 1], [], []>} : vector<8x128xbf16>, vector<128x384xbf16>, vector<8x384xf32> -> vector<8x384xf32>
    %50 = vector.broadcast %10 : vector<1x384xf32> to vector<8x384xf32>
    %51 = arith.addf %49, %50 : vector<8x384xf32>
    %52 = vector.extract_strided_slice %51 {offsets = [0, 0], sizes = [8, 128], strides = [1, 1]} : vector<8x384xf32> to vector<8x128xf32>
    %53 = vector.shape_cast %52 : vector<8x128xf32> to vector<8x4x32xf32>
    %54 = tpu.transpose %53, [1, 0, 2] : vector<8x4x32xf32> -> vector<4x8x32xf32>
    %cst_43 = arith.constant 0.176776692 : f32
    %55 = vector.broadcast %cst_43 : f32 to vector<4x8x32xf32>
    %56 = arith.mulf %54, %55 : vector<4x8x32xf32>
    %57 = vector.extract_strided_slice %51 {offsets = [0, 128], sizes = [8, 128], strides = [1, 1]} : vector<8x384xf32> to vector<8x128xf32>
    %58 = vector.shape_cast %57 : vector<8x128xf32> to vector<8x4x32xf32>
    %59 = tpu.transpose %58, [1, 0, 2] : vector<8x4x32xf32> -> vector<4x8x32xf32>
    %60 = vector.extract_strided_slice %51 {offsets = [0, 256], sizes = [8, 128], strides = [1, 1]} : vector<8x384xf32> to vector<8x128xf32>
    %61 = vector.shape_cast %60 : vector<8x128xf32> to vector<8x4x32xf32>
    %62 = tpu.transpose %61, [1, 0, 2] : vector<8x4x32xf32> -> vector<4x8x32xf32>
    %63 = arith.truncf %56 : vector<4x8x32xf32> to vector<4x8x32xbf16>
    %64 = arith.truncf %59 : vector<4x8x32xf32> to vector<4x8x32xbf16>
    "tpu.trace_start"() <{level = 10 : i32, message = "hqd,hkd->hqk"}> : () -> ()
    %cst_44 = arith.constant dense<0.000000e+00> : vector<4x8x8xf32>
    %65 = tpu.matmul %63, %64, %cst_44 {dimension_numbers = #tpu.dot_dimension_numbers<[2], [2], [1], [1], [0, 0, 0, 1, 1, 1], [0], [0]>} : vector<4x8x32xbf16>, vector<4x8x32xbf16>, vector<4x8x8xf32> -> vector<4x8x8xf32>
    "tpu.trace_stop"() : () -> ()
    %cst_45 = arith.constant dense<0xFF800000> : vector<4x8xf32>
    %66 = vector.multi_reduction <maximumf>, %65, %cst_45 [2] : vector<4x8x8xf32> to vector<4x8xf32>
    %67 = vector.shape_cast %66 : vector<4x8xf32> to vector<4x8x1xf32>
    %68 = vector.broadcast %67 : vector<4x8x1xf32> to vector<4x8x8xf32>
    %69 = arith.subf %65, %68 : vector<4x8x8xf32>
    %70 = math.exp %69 : vector<4x8x8xf32>
    %cst_46 = arith.constant dense<0.000000e+00> : vector<4x8xf32>
    %71 = vector.multi_reduction <add>, %70, %cst_46 [2] : vector<4x8x8xf32> to vector<4x8xf32>
    %72 = vector.shape_cast %71 : vector<4x8xf32> to vector<4x8x1xf32>
    %73 = tpu.reciprocal %72 {approx = true} : vector<4x8x1xf32> -> vector<4x8x1xf32>
    %74 = vector.broadcast %73 : vector<4x8x1xf32> to vector<4x8x8xf32>
    %75 = arith.mulf %70, %74 : vector<4x8x8xf32>
    %76 = arith.truncf %75 : vector<4x8x8xf32> to vector<4x8x8xbf16>
    %77 = arith.truncf %62 : vector<4x8x32xf32> to vector<4x8x32xbf16>
    "tpu.trace_start"() <{level = 10 : i32, message = "hqk,hkd->hqd"}> : () -> ()
    %cst_47 = arith.constant dense<0.000000e+00> : vector<4x8x32xf32>
    %78 = tpu.matmul %76, %77, %cst_47 {dimension_numbers = #tpu.dot_dimension_numbers<[2], [1], [1], [2], [0, 0, 0, 1, 1, 2], [0], [0]>} : vector<4x8x8xbf16>, vector<4x8x32xbf16>, vector<4x8x32xf32> -> vector<4x8x32xf32>
    "tpu.trace_stop"() : () -> ()
    %79 = tpu.transpose %78, [1, 0, 2] : vector<4x8x32xf32> -> vector<8x4x32xf32>
    %80 = vector.shape_cast %79 : vector<8x4x32xf32> to vector<8x128xf32>
    %81 = arith.truncf %80 : vector<8x128xf32> to vector<8x128xbf16>
    %cst_48 = arith.constant dense<0.000000e+00> : vector<8x128xf32>
    %82 = tpu.matmul %81, %12, %cst_48 {dimension_numbers = #tpu.dot_dimension_numbers<[1], [0], [0], [1], [0, 0, 1, 1], [], []>} : vector<8x128xbf16>, vector<128x128xbf16>, vector<8x128xf32> -> vector<8x128xf32>
    %83 = arith.addf %27, %82 : vector<8x128xf32>
    %84 = vector.broadcast %14 : vector<1x128xf32> to vector<8x128xf32>
    %85 = arith.addf %83, %84 : vector<8x128xf32>
    %cst_49 = arith.constant dense<0.000000e+00> : vector<8xf32>
    %86 = vector.multi_reduction <add>, %85, %cst_49 [1] : vector<8x128xf32> to vector<8xf32>
    %87 = vector.shape_cast %86 : vector<8xf32> to vector<8x1xf32>
    %cst_50 = arith.constant 1.280000e+02 : f32
    %88 = vector.broadcast %cst_50 : f32 to vector<8x1xf32>
    %89 = arith.divf %87, %88 : vector<8x1xf32>
    %90 = vector.broadcast %89 : vector<8x1xf32> to vector<8x128xf32>
    %91 = arith.subf %85, %90 : vector<8x128xf32>
    %92 = arith.mulf %91, %91 : vector<8x128xf32>
    %cst_51 = arith.constant dense<0.000000e+00> : vector<8xf32>
    %93 = vector.multi_reduction <add>, %92, %cst_51 [1] : vector<8x128xf32> to vector<8xf32>
    %94 = vector.shape_cast %93 : vector<8xf32> to vector<8x1xf32>
    %cst_52 = arith.constant 1.280000e+02 : f32
    %95 = vector.broadcast %cst_52 : f32 to vector<8x1xf32>
    %96 = arith.divf %94, %95 : vector<8x1xf32>
    %cst_53 = arith.constant 9.99999974E-6 : f32
    %97 = vector.broadcast %cst_53 : f32 to vector<8x1xf32>
    %98 = arith.addf %96, %97 : vector<8x1xf32>
    %99 = math.rsqrt %98 : vector<8x1xf32>
    %100 = vector.broadcast %99 : vector<8x1xf32> to vector<8x128xf32>
    %101 = arith.mulf %91, %100 : vector<8x128xf32>
    %102 = vector.broadcast %16 : vector<1x128xf32> to vector<8x128xf32>
    %103 = arith.mulf %101, %102 : vector<8x128xf32>
    %104 = vector.broadcast %18 : vector<1x128xf32> to vector<8x128xf32>
    %105 = arith.addf %103, %104 : vector<8x128xf32>
    %106 = arith.truncf %105 : vector<8x128xf32> to vector<8x128xbf16>
    %cst_54 = arith.constant dense<0.000000e+00> : vector<8x512xf32>
    %107 = tpu.matmul %106, %20, %cst_54 {dimension_numbers = #tpu.dot_dimension_numbers<[1], [0], [0], [1], [0, 0, 1, 1], [], []>} : vector<8x128xbf16>, vector<128x512xbf16>, vector<8x512xf32> -> vector<8x512xf32>
    %108 = vector.broadcast %22 : vector<1x512xf32> to vector<8x512xf32>
    %109 = arith.addf %107, %108 : vector<8x512xf32>
    %cst_55 = arith.constant 5.000000e-01 : f32
    %110 = vector.broadcast %cst_55 : f32 to vector<8x512xf32>
    %111 = arith.mulf %110, %109 : vector<8x512xf32>
    %cst_56 = arith.constant 4.471500e-02 : f32
    %112 = vector.broadcast %cst_56 : f32 to vector<8x512xf32>
    %113 = arith.mulf %112, %109 : vector<8x512xf32>
    %114 = arith.mulf %113, %109 : vector<8x512xf32>
    %115 = arith.mulf %114, %109 : vector<8x512xf32>
    %116 = arith.addf %109, %115 : vector<8x512xf32>
    %cst_57 = arith.constant 0.797884583 : f32
    %117 = vector.broadcast %cst_57 : f32 to vector<8x512xf32>
    %118 = arith.mulf %117, %116 : vector<8x512xf32>
    %119 = math.tanh %118 : vector<8x512xf32>
    %cst_58 = arith.constant 1.000000e+00 : f32
    %120 = vector.broadcast %cst_58 : f32 to vector<8x512xf32>
    %121 = arith.addf %120, %119 : vector<8x512xf32>
    %122 = arith.mulf %111, %121 : vector<8x512xf32>
    %123 = arith.truncf %122 : vector<8x512xf32> to vector<8x512xbf16>
    %cst_59 = arith.constant dense<0.000000e+00> : vector<8x128xf32>
    %124 = tpu.matmul %123, %24, %cst_59 {dimension_numbers = #tpu.dot_dimension_numbers<[1], [0], [0], [1], [0, 0, 1, 1], [], []>} : vector<8x512xbf16>, vector<512x128xbf16>, vector<8x128xf32> -> vector<8x128xf32>
    %125 = arith.addf %85, %124 : vector<8x128xf32>
    %126 = vector.broadcast %26 : vector<1x128xf32> to vector<8x128xf32>
    %127 = arith.addf %125, %126 : vector<8x128xf32>
    %c0_60 = arith.constant 0 : index
    %c0_61 = arith.constant 0 : index
    %128 = vector.load %arg20[%c0_60, %c0_61] : memref<8x128xf32, #tpu.memory_space<vmem>>, vector<8x128xf32>
    tpu.vector_store %arg20[%c0_60, %c0_61], %127 {strides = array<i32>} : memref<8x128xf32, #tpu.memory_space<vmem>>, vector<8x128xf32>,
    %c1_i32 = arith.constant 1 : i32
    %129 = arith.cmpi eq, %arg1, %c1_i32 : i32
    %130 = arith.extui %129 : i1 to i32
    %c0_i32_62 = arith.constant 0 : i32
    %131 = arith.cmpi ne, %130, %c0_i32_62 : i32
    scf.if %131 {
      %c0_63 = arith.constant 0 : index
      %c0_64 = arith.constant 0 : index
      %132 = vector.load %arg20[%c0_63, %c0_64] : memref<8x128xf32, #tpu.memory_space<vmem>>, vector<8x128xf32>
      %c0_65 = arith.constant 0 : index
      %c0_66 = arith.constant 0 : index
      %133 = vector.load %arg15[%c0_65, %c0_66] : memref<1x128xf32, #tpu.memory_space<vmem>>, vector<1x128xf32>
      %c0_67 = arith.constant 0 : index
      %c0_68 = arith.constant 0 : index
      %134 = vector.load %arg16[%c0_67, %c0_68] : memref<1x128xf32, #tpu.memory_space<vmem>>, vector<1x128xf32>
      %cst_69 = arith.constant dense<0.000000e+00> : vector<8xf32>
      %135 = vector.multi_reduction <add>, %132, %cst_69 [1] : vector<8x128xf32> to vector<8xf32>
      %136 = vector.shape_cast %135 : vector<8xf32> to vector<8x1xf32>
      %cst_70 = arith.constant 1.280000e+02 : f32
      %137 = vector.broadcast %cst_70 : f32 to vector<8x1xf32>
      %138 = arith.divf %136, %137 : vector<8x1xf32>
      %139 = vector.broadcast %138 : vector<8x1xf32> to vector<8x128xf32>
      %140 = arith.subf %132, %139 : vector<8x128xf32>
      %141 = arith.mulf %140, %140 : vector<8x128xf32>
      %cst_71 = arith.constant dense<0.000000e+00> : vector<8xf32>
      %142 = vector.multi_reduction <add>, %141, %cst_71 [1] : vector<8x128xf32> to vector<8xf32>
      %143 = vector.shape_cast %142 : vector<8xf32> to vector<8x1xf32>
      %cst_72 = arith.constant 1.280000e+02 : f32
      %144 = vector.broadcast %cst_72 : f32 to vector<8x1xf32>
      %145 = arith.divf %143, %144 : vector<8x1xf32>
      %cst_73 = arith.constant 9.99999974E-6 : f32
      %146 = vector.broadcast %cst_73 : f32 to vector<8x1xf32>
      %147 = arith.addf %145, %146 : vector<8x1xf32>
      %148 = math.rsqrt %147 : vector<8x1xf32>
      %149 = vector.broadcast %148 : vector<8x1xf32> to vector<8x128xf32>
      %150 = arith.mulf %140, %149 : vector<8x128xf32>
      %151 = vector.broadcast %133 : vector<1x128xf32> to vector<8x128xf32>
      %152 = arith.mulf %150, %151 : vector<8x128xf32>
      %153 = vector.broadcast %134 : vector<1x128xf32> to vector<8x128xf32>
      %154 = arith.addf %152, %153 : vector<8x128xf32>
      %155 = arith.truncf %154 : vector<8x128xf32> to vector<8x128xbf16>
      %c0_74 = arith.constant 0 : index
      %c0_75 = arith.constant 0 : index
      %156 = vector.load %arg17[%c0_74, %c0_75] : memref<128x128xbf16, #tpu.memory_space<vmem>>, vector<128x128xbf16>
      %cst_76 = arith.constant dense<0.000000e+00> : vector<8x128xf32>
      %157 = tpu.matmul %155, %156, %cst_76 {dimension_numbers = #tpu.dot_dimension_numbers<[1], [0], [0], [1], [0, 0, 1, 1], [], []>} : vector<8x128xbf16>, vector<128x128xbf16>, vector<8x128xf32> -> vector<8x128xf32>
      %c0_77 = arith.constant 0 : index
      %c0_78 = arith.constant 0 : index
      %158 = vector.load %arg18[%c0_77, %c0_78] : memref<1x128xf32, #tpu.memory_space<vmem>>, vector<1x128xf32>
      %159 = vector.broadcast %158 : vector<1x128xf32> to vector<8x128xf32>
      %160 = arith.addf %157, %159 : vector<8x128xf32>
      %c0_79 = arith.constant 0 : index
      %c0_80 = arith.constant 0 : index
      %c0_81 = arith.constant 0 : index
      %161 = vector.load %arg19[%c0_79, %c0_80, %c0_81] : memref<1x8x128xf32, #tpu.memory_space<vmem>>, vector<1x8x128xf32>
      %162 = vector.shape_cast %161 : vector<1x8x128xf32> to vector<8x128xf32>
      %163 = vector.shape_cast %160 : vector<8x128xf32> to vector<1x8x128xf32>
      tpu.vector_store %arg19[%c0_79, %c0_80, %c0_81], %163 {strides = array<i32>} : memref<1x8x128xf32, #tpu.memory_space<vmem>>, vector<1x8x128xf32>,
    } else {
    }
    return
  }
  func.func @transform_0(%arg0: i32, %arg1: i32) -> (i32, i32, i32) {
    %c0_i32 = arith.constant 0 : i32
    %c0_i32_0 = arith.constant 0 : i32
    %c0_i32_1 = arith.constant 0 : i32
    return %arg0, %c0_i32, %c0_i32_0 : i32, i32, i32
  }
  func.func @transform_1(%arg0: i32, %arg1: i32) -> (i32, i32, i32) {
    %c0_i32 = arith.constant 0 : i32
    %c0_i32_0 = arith.constant 0 : i32
    %c0_i32_1 = arith.constant 0 : i32
    return %arg1, %c0_i32, %c0_i32_0 : i32, i32, i32
  }
  func.func @transform_2(%arg0: i32, %arg1: i32) -> (i32, i32, i32) {
    %c0_i32 = arith.constant 0 : i32
    %c0_i32_0 = arith.constant 0 : i32
    %c0_i32_1 = arith.constant 0 : i32
    return %arg1, %c0_i32, %c0_i32_0 : i32, i32, i32
  }
  func.func @transform_3(%arg0: i32, %arg1: i32) -> (i32, i32, i32) {
    %c0_i32 = arith.constant 0 : i32
    %c0_i32_0 = arith.constant 0 : i32
    %c0_i32_1 = arith.constant 0 : i32
    return %arg1, %c0_i32, %c0_i32_0 : i32, i32, i32
  }
  func.func @transform_4(%arg0: i32, %arg1: i32) -> (i32, i32, i32) {
    %c0_i32 = arith.constant 0 : i32
    %c0_i32_0 = arith.constant 0 : i32
    %c0_i32_1 = arith.constant 0 : i32
    return %arg1, %c0_i32, %c0_i32_0 : i32, i32, i32
  }
  func.func @transform_5(%arg0: i32, %arg1: i32) -> (i32, i32, i32) {
    %c0_i32 = arith.constant 0 : i32
    %c0_i32_0 = arith.constant 0 : i32
    %c0_i32_1 = arith.constant 0 : i32
    return %arg1, %c0_i32, %c0_i32_0 : i32, i32, i32
  }
  func.func @transform_6(%arg0: i32, %arg1: i32) -> (i32, i32, i32) {
    %c0_i32 = arith.constant 0 : i32
    %c0_i32_0 = arith.constant 0 : i32
    %c0_i32_1 = arith.constant 0 : i32
    return %arg1, %c0_i32, %c0_i32_0 : i32, i32, i32
  }
  func.func @transform_7(%arg0: i32, %arg1: i32) -> (i32, i32, i32) {
    %c0_i32 = arith.constant 0 : i32
    %c0_i32_0 = arith.constant 0 : i32
    %c0_i32_1 = arith.constant 0 : i32
    return %arg1, %c0_i32, %c0_i32_0 : i32, i32, i32
  }
  func.func @transform_8(%arg0: i32, %arg1: i32) -> (i32, i32, i32) {
    %c0_i32 = arith.constant 0 : i32
    %c0_i32_0 = arith.constant 0 : i32
    %c0_i32_1 = arith.constant 0 : i32
    return %arg1, %c0_i32, %c0_i32_0 : i32, i32, i32
  }
  func.func @transform_9(%arg0: i32, %arg1: i32) -> (i32, i32, i32) {
    %c0_i32 = arith.constant 0 : i32
    %c0_i32_0 = arith.constant 0 : i32
    %c0_i32_1 = arith.constant 0 : i32
    return %arg1, %c0_i32, %c0_i32_0 : i32, i32, i32
  }
  func.func @transform_10(%arg0: i32, %arg1: i32) -> (i32, i32, i32) {
    %c0_i32 = arith.constant 0 : i32
    %c0_i32_0 = arith.constant 0 : i32
    %c0_i32_1 = arith.constant 0 : i32
    return %arg1, %c0_i32, %c0_i32_0 : i32, i32, i32
  }
  func.func @transform_11(%arg0: i32, %arg1: i32) -> (i32, i32, i32) {
    %c0_i32 = arith.constant 0 : i32
    %c0_i32_0 = arith.constant 0 : i32
    %c0_i32_1 = arith.constant 0 : i32
    return %arg1, %c0_i32, %c0_i32_0 : i32, i32, i32
  }
  func.func @transform_12(%arg0: i32, %arg1: i32) -> (i32, i32, i32) {
    %c0_i32 = arith.constant 0 : i32
    %c0_i32_0 = arith.constant 0 : i32
    %c0_i32_1 = arith.constant 0 : i32
    return %arg1, %c0_i32, %c0_i32_0 : i32, i32, i32
  }
  func.func @transform_13(%arg0: i32, %arg1: i32) -> (i32, i32) {
    %c0_i32 = arith.constant 0 : i32
    %c0_i32_0 = arith.constant 0 : i32
    %c0_i32_1 = arith.constant 0 : i32
    return %c0_i32, %c0_i32_0 : i32, i32
  }
  func.func @transform_14(%arg0: i32, %arg1: i32) -> (i32, i32) {
    %c0_i32 = arith.constant 0 : i32
    %c0_i32_0 = arith.constant 0 : i32
    %c0_i32_1 = arith.constant 0 : i32
    return %c0_i32, %c0_i32_0 : i32, i32
  }
  func.func @transform_15(%arg0: i32, %arg1: i32) -> (i32, i32) {
    %c0_i32 = arith.constant 0 : i32
    %c0_i32_0 = arith.constant 0 : i32
    %c0_i32_1 = arith.constant 0 : i32
    return %c0_i32, %c0_i32_0 : i32, i32
  }
  func.func @transform_16(%arg0: i32, %arg1: i32) -> (i32, i32) {
    %c0_i32 = arith.constant 0 : i32
    %c0_i32_0 = arith.constant 0 : i32
    %c0_i32_1 = arith.constant 0 : i32
    return %c0_i32, %c0_i32_0 : i32, i32
  }
  func.func @transform_17(%arg0: i32, %arg1: i32) -> (i32, i32, i32) {
    %c0_i32 = arith.constant 0 : i32
    %c0_i32_0 = arith.constant 0 : i32
    %c0_i32_1 = arith.constant 0 : i32
    return %arg0, %c0_i32, %c0_i32_0 : i32, i32, i32
  }
}

module attributes {stable_mosaic.version = 11 : i64} {
  func.func @_decoder_kernel(%arg0: i32, %arg1: i32, %arg2: memref<1x32x128xf32, #tpu.memory_space<vmem>>, %arg3: memref<1x1x128xf32, #tpu.memory_space<vmem>>, %arg4: memref<1x1x128xf32, #tpu.memory_space<vmem>>, %arg5: memref<1x128x384xbf16, #tpu.memory_space<vmem>>, %arg6: memref<1x1x384xf32, #tpu.memory_space<vmem>>, %arg7: memref<1x128x128xbf16, #tpu.memory_space<vmem>>, %arg8: memref<1x1x128xf32, #tpu.memory_space<vmem>>, %arg9: memref<1x1x128xf32, #tpu.memory_space<vmem>>, %arg10: memref<1x1x128xf32, #tpu.memory_space<vmem>>, %arg11: memref<1x128x512xbf16, #tpu.memory_space<vmem>>, %arg12: memref<1x1x512xf32, #tpu.memory_space<vmem>>, %arg13: memref<1x512x128xbf16, #tpu.memory_space<vmem>>, %arg14: memref<1x1x128xf32, #tpu.memory_space<vmem>>, %arg15: memref<1x128xf32, #tpu.memory_space<vmem>>, %arg16: memref<1x128xf32, #tpu.memory_space<vmem>>, %arg17: memref<128x384xbf16, #tpu.memory_space<vmem>>, %arg18: memref<1x384xf32, #tpu.memory_space<vmem>>, %arg19: memref<1x32x384xf32, #tpu.memory_space<vmem>>, %arg20: memref<1x32x1xf32, #tpu.memory_space<vmem>>, %arg21: memref<1x32x384xf32, #tpu.memory_space<vmem>>, %arg22: memref<1x32x1xf32, #tpu.memory_space<vmem>>, %arg23: memref<32x128xf32, #tpu.memory_space<vmem>>) attributes {dimension_semantics = [#tpu.dimension_semantics<parallel>, #tpu.dimension_semantics<arbitrary>], iteration_bounds = array<i64: 2, 2>, scalar_prefetch = 0 : i64, scratch_operands = 1 : i64, tpu.core_type = #tpu.core_type<tc>, window_params = [{transform_indices = @transform_0, window_bounds = array<i64: 1, 32, 128>}, {transform_indices = @transform_1, window_bounds = array<i64: 1, 1, 128>}, {transform_indices = @transform_2, window_bounds = array<i64: 1, 1, 128>}, {transform_indices = @transform_3, window_bounds = array<i64: 1, 128, 384>}, {transform_indices = @transform_4, window_bounds = array<i64: 1, 1, 384>}, {transform_indices = @transform_5, window_bounds = array<i64: 1, 128, 128>}, {transform_indices = @transform_6, window_bounds = array<i64: 1, 1, 128>}, {transform_indices = @transform_7, window_bounds = array<i64: 1, 1, 128>}, {transform_indices = @transform_8, window_bounds = array<i64: 1, 1, 128>}, {transform_indices = @transform_9, window_bounds = array<i64: 1, 128, 512>}, {transform_indices = @transform_10, window_bounds = array<i64: 1, 1, 512>}, {transform_indices = @transform_11, window_bounds = array<i64: 1, 512, 128>}, {transform_indices = @transform_12, window_bounds = array<i64: 1, 1, 128>}, {pipeline_mode = #tpu.pipeline_mode<synchronous>, transform_indices = @transform_13, window_bounds = array<i64: 1, 128>}, {pipeline_mode = #tpu.pipeline_mode<synchronous>, transform_indices = @transform_14, window_bounds = array<i64: 1, 128>}, {pipeline_mode = #tpu.pipeline_mode<synchronous>, transform_indices = @transform_15, window_bounds = array<i64: 128, 384>}, {pipeline_mode = #tpu.pipeline_mode<synchronous>, transform_indices = @transform_16, window_bounds = array<i64: 1, 384>}, {transform_indices = @transform_17, window_bounds = array<i64: 1, 32, 384>}, {transform_indices = @transform_18, window_bounds = array<i64: 1, 32, 1>}, {transform_indices = @transform_19, window_bounds = array<i64: 1, 32, 384>}, {transform_indices = @transform_20, window_bounds = array<i64: 1, 32, 1>}]} {
    %c0_i32 = arith.constant 0 : i32
    %0 = arith.cmpi eq, %arg1, %c0_i32 : i32
    %1 = arith.extui %0 : i1 to i32
    %c0_i32_0 = arith.constant 0 : i32
    %2 = arith.cmpi ne, %1, %c0_i32_0 : i32
    scf.if %2 {
      %c0_63 = arith.constant 0 : index
      %c0_64 = arith.constant 0 : index
      %c0_65 = arith.constant 0 : index
      %132 = vector.load %arg2[%c0_63, %c0_64, %c0_65] : memref<1x32x128xf32, #tpu.memory_space<vmem>>, vector<1x32x128xf32>
      %133 = vector.shape_cast %132 : vector<1x32x128xf32> to vector<32x128xf32>
      %c0_66 = arith.constant 0 : index
      %c0_67 = arith.constant 0 : index
      %134 = vector.load %arg23[%c0_66, %c0_67] : memref<32x128xf32, #tpu.memory_space<vmem>>, vector<32x128xf32>
      tpu.vector_store %arg23[%c0_66, %c0_67], %133 {strides = array<i32>} : memref<32x128xf32, #tpu.memory_space<vmem>>, vector<32x128xf32>,
    } else {
    }
    %c0 = arith.constant 0 : index
    %c0_1 = arith.constant 0 : index
    %c0_2 = arith.constant 0 : index
    %3 = vector.load %arg3[%c0, %c0_1, %c0_2] : memref<1x1x128xf32, #tpu.memory_space<vmem>>, vector<1x1x128xf32>
    %4 = vector.shape_cast %3 : vector<1x1x128xf32> to vector<1x128xf32>
    %c0_3 = arith.constant 0 : index
    %c0_4 = arith.constant 0 : index
    %c0_5 = arith.constant 0 : index
    %5 = vector.load %arg4[%c0_3, %c0_4, %c0_5] : memref<1x1x128xf32, #tpu.memory_space<vmem>>, vector<1x1x128xf32>
    %6 = vector.shape_cast %5 : vector<1x1x128xf32> to vector<1x128xf32>
    %c0_6 = arith.constant 0 : index
    %c0_7 = arith.constant 0 : index
    %c0_8 = arith.constant 0 : index
    %7 = vector.load %arg5[%c0_6, %c0_7, %c0_8] : memref<1x128x384xbf16, #tpu.memory_space<vmem>>, vector<1x128x384xbf16>
    %8 = vector.shape_cast %7 : vector<1x128x384xbf16> to vector<128x384xbf16>
    %c0_9 = arith.constant 0 : index
    %c0_10 = arith.constant 0 : index
    %c0_11 = arith.constant 0 : index
    %9 = vector.load %arg6[%c0_9, %c0_10, %c0_11] : memref<1x1x384xf32, #tpu.memory_space<vmem>>, vector<1x1x384xf32>
    %10 = vector.shape_cast %9 : vector<1x1x384xf32> to vector<1x384xf32>
    %c0_12 = arith.constant 0 : index
    %c0_13 = arith.constant 0 : index
    %c0_14 = arith.constant 0 : index
    %11 = vector.load %arg7[%c0_12, %c0_13, %c0_14] : memref<1x128x128xbf16, #tpu.memory_space<vmem>>, vector<1x128x128xbf16>
    %12 = vector.shape_cast %11 : vector<1x128x128xbf16> to vector<128x128xbf16>
    %c0_15 = arith.constant 0 : index
    %c0_16 = arith.constant 0 : index
    %c0_17 = arith.constant 0 : index
    %13 = vector.load %arg8[%c0_15, %c0_16, %c0_17] : memref<1x1x128xf32, #tpu.memory_space<vmem>>, vector<1x1x128xf32>
    %14 = vector.shape_cast %13 : vector<1x1x128xf32> to vector<1x128xf32>
    %c0_18 = arith.constant 0 : index
    %c0_19 = arith.constant 0 : index
    %c0_20 = arith.constant 0 : index
    %15 = vector.load %arg9[%c0_18, %c0_19, %c0_20] : memref<1x1x128xf32, #tpu.memory_space<vmem>>, vector<1x1x128xf32>
    %16 = vector.shape_cast %15 : vector<1x1x128xf32> to vector<1x128xf32>
    %c0_21 = arith.constant 0 : index
    %c0_22 = arith.constant 0 : index
    %c0_23 = arith.constant 0 : index
    %17 = vector.load %arg10[%c0_21, %c0_22, %c0_23] : memref<1x1x128xf32, #tpu.memory_space<vmem>>, vector<1x1x128xf32>
    %18 = vector.shape_cast %17 : vector<1x1x128xf32> to vector<1x128xf32>
    %c0_24 = arith.constant 0 : index
    %c0_25 = arith.constant 0 : index
    %c0_26 = arith.constant 0 : index
    %19 = vector.load %arg11[%c0_24, %c0_25, %c0_26] : memref<1x128x512xbf16, #tpu.memory_space<vmem>>, vector<1x128x512xbf16>
    %20 = vector.shape_cast %19 : vector<1x128x512xbf16> to vector<128x512xbf16>
    %c0_27 = arith.constant 0 : index
    %c0_28 = arith.constant 0 : index
    %c0_29 = arith.constant 0 : index
    %21 = vector.load %arg12[%c0_27, %c0_28, %c0_29] : memref<1x1x512xf32, #tpu.memory_space<vmem>>, vector<1x1x512xf32>
    %22 = vector.shape_cast %21 : vector<1x1x512xf32> to vector<1x512xf32>
    %c0_30 = arith.constant 0 : index
    %c0_31 = arith.constant 0 : index
    %c0_32 = arith.constant 0 : index
    %23 = vector.load %arg13[%c0_30, %c0_31, %c0_32] : memref<1x512x128xbf16, #tpu.memory_space<vmem>>, vector<1x512x128xbf16>
    %24 = vector.shape_cast %23 : vector<1x512x128xbf16> to vector<512x128xbf16>
    %c0_33 = arith.constant 0 : index
    %c0_34 = arith.constant 0 : index
    %c0_35 = arith.constant 0 : index
    %25 = vector.load %arg14[%c0_33, %c0_34, %c0_35] : memref<1x1x128xf32, #tpu.memory_space<vmem>>, vector<1x1x128xf32>
    %26 = vector.shape_cast %25 : vector<1x1x128xf32> to vector<1x128xf32>
    %c0_36 = arith.constant 0 : index
    %c0_37 = arith.constant 0 : index
    %27 = vector.load %arg23[%c0_36, %c0_37] : memref<32x128xf32, #tpu.memory_space<vmem>>, vector<32x128xf32>
    %cst = arith.constant dense<0.000000e+00> : vector<32xf32>
    %28 = vector.multi_reduction <add>, %27, %cst [1] : vector<32x128xf32> to vector<32xf32>
    %29 = vector.shape_cast %28 : vector<32xf32> to vector<32x1xf32>
    %cst_38 = arith.constant 1.280000e+02 : f32
    %30 = vector.broadcast %cst_38 : f32 to vector<32x1xf32>
    %31 = arith.divf %29, %30 : vector<32x1xf32>
    %32 = vector.broadcast %31 : vector<32x1xf32> to vector<32x128xf32>
    %33 = arith.subf %27, %32 : vector<32x128xf32>
    %34 = arith.mulf %33, %33 : vector<32x128xf32>
    %cst_39 = arith.constant dense<0.000000e+00> : vector<32xf32>
    %35 = vector.multi_reduction <add>, %34, %cst_39 [1] : vector<32x128xf32> to vector<32xf32>
    %36 = vector.shape_cast %35 : vector<32xf32> to vector<32x1xf32>
    %cst_40 = arith.constant 1.280000e+02 : f32
    %37 = vector.broadcast %cst_40 : f32 to vector<32x1xf32>
    %38 = arith.divf %36, %37 : vector<32x1xf32>
    %cst_41 = arith.constant 9.99999974E-6 : f32
    %39 = vector.broadcast %cst_41 : f32 to vector<32x1xf32>
    %40 = arith.addf %38, %39 : vector<32x1xf32>
    %41 = math.rsqrt %40 : vector<32x1xf32>
    %42 = vector.broadcast %41 : vector<32x1xf32> to vector<32x128xf32>
    %43 = arith.mulf %33, %42 : vector<32x128xf32>
    %44 = vector.broadcast %4 : vector<1x128xf32> to vector<32x128xf32>
    %45 = arith.mulf %43, %44 : vector<32x128xf32>
    %46 = vector.broadcast %6 : vector<1x128xf32> to vector<32x128xf32>
    %47 = arith.addf %45, %46 : vector<32x128xf32>
    %48 = arith.truncf %47 : vector<32x128xf32> to vector<32x128xbf16>
    %cst_42 = arith.constant dense<0.000000e+00> : vector<32x384xf32>
    %49 = tpu.matmul %48, %8, %cst_42 {dimension_numbers = #tpu.dot_dimension_numbers<[1], [0], [0], [1], [0, 0, 1, 1], [], []>} : vector<32x128xbf16>, vector<128x384xbf16>, vector<32x384xf32> -> vector<32x384xf32>
    %50 = vector.broadcast %10 : vector<1x384xf32> to vector<32x384xf32>
    %51 = arith.addf %49, %50 : vector<32x384xf32>
    %52 = vector.extract_strided_slice %51 {offsets = [0, 0], sizes = [32, 128], strides = [1, 1]} : vector<32x384xf32> to vector<32x128xf32>
    %53 = vector.shape_cast %52 : vector<32x128xf32> to vector<32x4x32xf32>
    %54 = tpu.transpose %53, [1, 0, 2] : vector<32x4x32xf32> -> vector<4x32x32xf32>
    %cst_43 = arith.constant 0.176776692 : f32
    %55 = vector.broadcast %cst_43 : f32 to vector<4x32x32xf32>
    %56 = arith.mulf %54, %55 : vector<4x32x32xf32>
    %57 = vector.extract_strided_slice %51 {offsets = [0, 128], sizes = [32, 128], strides = [1, 1]} : vector<32x384xf32> to vector<32x128xf32>
    %58 = vector.shape_cast %57 : vector<32x128xf32> to vector<32x4x32xf32>
    %59 = tpu.transpose %58, [1, 0, 2] : vector<32x4x32xf32> -> vector<4x32x32xf32>
    %60 = vector.extract_strided_slice %51 {offsets = [0, 256], sizes = [32, 128], strides = [1, 1]} : vector<32x384xf32> to vector<32x128xf32>
    %61 = vector.shape_cast %60 : vector<32x128xf32> to vector<32x4x32xf32>
    %62 = tpu.transpose %61, [1, 0, 2] : vector<32x4x32xf32> -> vector<4x32x32xf32>
    %63 = arith.truncf %56 : vector<4x32x32xf32> to vector<4x32x32xbf16>
    %64 = arith.truncf %59 : vector<4x32x32xf32> to vector<4x32x32xbf16>
    "tpu.trace_start"() <{level = 10 : i32, message = "hqd,hkd->hqk"}> : () -> ()
    %cst_44 = arith.constant dense<0.000000e+00> : vector<4x32x32xf32>
    %65 = tpu.matmul %63, %64, %cst_44 {dimension_numbers = #tpu.dot_dimension_numbers<[2], [2], [1], [1], [0, 0, 0, 1, 1, 1], [0], [0]>} : vector<4x32x32xbf16>, vector<4x32x32xbf16>, vector<4x32x32xf32> -> vector<4x32x32xf32>
    "tpu.trace_stop"() : () -> ()
    %cst_45 = arith.constant dense<0xFF800000> : vector<4x32xf32>
    %66 = vector.multi_reduction <maximumf>, %65, %cst_45 [2] : vector<4x32x32xf32> to vector<4x32xf32>
    %67 = vector.shape_cast %66 : vector<4x32xf32> to vector<4x32x1xf32>
    %68 = vector.broadcast %67 : vector<4x32x1xf32> to vector<4x32x32xf32>
    %69 = arith.subf %65, %68 : vector<4x32x32xf32>
    %70 = math.exp %69 : vector<4x32x32xf32>
    %cst_46 = arith.constant dense<0.000000e+00> : vector<4x32xf32>
    %71 = vector.multi_reduction <add>, %70, %cst_46 [2] : vector<4x32x32xf32> to vector<4x32xf32>
    %72 = vector.shape_cast %71 : vector<4x32xf32> to vector<4x32x1xf32>
    %73 = tpu.reciprocal %72 {approx = true} : vector<4x32x1xf32> -> vector<4x32x1xf32>
    %74 = vector.broadcast %73 : vector<4x32x1xf32> to vector<4x32x32xf32>
    %75 = arith.mulf %70, %74 : vector<4x32x32xf32>
    %76 = arith.truncf %75 : vector<4x32x32xf32> to vector<4x32x32xbf16>
    %77 = arith.truncf %62 : vector<4x32x32xf32> to vector<4x32x32xbf16>
    "tpu.trace_start"() <{level = 10 : i32, message = "hqk,hkd->hqd"}> : () -> ()
    %cst_47 = arith.constant dense<0.000000e+00> : vector<4x32x32xf32>
    %78 = tpu.matmul %76, %77, %cst_47 {dimension_numbers = #tpu.dot_dimension_numbers<[2], [1], [1], [2], [0, 0, 0, 1, 1, 2], [0], [0]>} : vector<4x32x32xbf16>, vector<4x32x32xbf16>, vector<4x32x32xf32> -> vector<4x32x32xf32>
    "tpu.trace_stop"() : () -> ()
    %79 = tpu.transpose %78, [1, 0, 2] : vector<4x32x32xf32> -> vector<32x4x32xf32>
    %80 = vector.shape_cast %79 : vector<32x4x32xf32> to vector<32x128xf32>
    %81 = arith.truncf %80 : vector<32x128xf32> to vector<32x128xbf16>
    %cst_48 = arith.constant dense<0.000000e+00> : vector<32x128xf32>
    %82 = tpu.matmul %81, %12, %cst_48 {dimension_numbers = #tpu.dot_dimension_numbers<[1], [0], [0], [1], [0, 0, 1, 1], [], []>} : vector<32x128xbf16>, vector<128x128xbf16>, vector<32x128xf32> -> vector<32x128xf32>
    %83 = arith.addf %27, %82 : vector<32x128xf32>
    %84 = vector.broadcast %14 : vector<1x128xf32> to vector<32x128xf32>
    %85 = arith.addf %83, %84 : vector<32x128xf32>
    %cst_49 = arith.constant dense<0.000000e+00> : vector<32xf32>
    %86 = vector.multi_reduction <add>, %85, %cst_49 [1] : vector<32x128xf32> to vector<32xf32>
    %87 = vector.shape_cast %86 : vector<32xf32> to vector<32x1xf32>
    %cst_50 = arith.constant 1.280000e+02 : f32
    %88 = vector.broadcast %cst_50 : f32 to vector<32x1xf32>
    %89 = arith.divf %87, %88 : vector<32x1xf32>
    %90 = vector.broadcast %89 : vector<32x1xf32> to vector<32x128xf32>
    %91 = arith.subf %85, %90 : vector<32x128xf32>
    %92 = arith.mulf %91, %91 : vector<32x128xf32>
    %cst_51 = arith.constant dense<0.000000e+00> : vector<32xf32>
    %93 = vector.multi_reduction <add>, %92, %cst_51 [1] : vector<32x128xf32> to vector<32xf32>
    %94 = vector.shape_cast %93 : vector<32xf32> to vector<32x1xf32>
    %cst_52 = arith.constant 1.280000e+02 : f32
    %95 = vector.broadcast %cst_52 : f32 to vector<32x1xf32>
    %96 = arith.divf %94, %95 : vector<32x1xf32>
    %cst_53 = arith.constant 9.99999974E-6 : f32
    %97 = vector.broadcast %cst_53 : f32 to vector<32x1xf32>
    %98 = arith.addf %96, %97 : vector<32x1xf32>
    %99 = math.rsqrt %98 : vector<32x1xf32>
    %100 = vector.broadcast %99 : vector<32x1xf32> to vector<32x128xf32>
    %101 = arith.mulf %91, %100 : vector<32x128xf32>
    %102 = vector.broadcast %16 : vector<1x128xf32> to vector<32x128xf32>
    %103 = arith.mulf %101, %102 : vector<32x128xf32>
    %104 = vector.broadcast %18 : vector<1x128xf32> to vector<32x128xf32>
    %105 = arith.addf %103, %104 : vector<32x128xf32>
    %106 = arith.truncf %105 : vector<32x128xf32> to vector<32x128xbf16>
    %cst_54 = arith.constant dense<0.000000e+00> : vector<32x512xf32>
    %107 = tpu.matmul %106, %20, %cst_54 {dimension_numbers = #tpu.dot_dimension_numbers<[1], [0], [0], [1], [0, 0, 1, 1], [], []>} : vector<32x128xbf16>, vector<128x512xbf16>, vector<32x512xf32> -> vector<32x512xf32>
    %108 = vector.broadcast %22 : vector<1x512xf32> to vector<32x512xf32>
    %109 = arith.addf %107, %108 : vector<32x512xf32>
    %cst_55 = arith.constant 5.000000e-01 : f32
    %110 = vector.broadcast %cst_55 : f32 to vector<32x512xf32>
    %111 = arith.mulf %110, %109 : vector<32x512xf32>
    %cst_56 = arith.constant 4.471500e-02 : f32
    %112 = vector.broadcast %cst_56 : f32 to vector<32x512xf32>
    %113 = arith.mulf %112, %109 : vector<32x512xf32>
    %114 = arith.mulf %113, %109 : vector<32x512xf32>
    %115 = arith.mulf %114, %109 : vector<32x512xf32>
    %116 = arith.addf %109, %115 : vector<32x512xf32>
    %cst_57 = arith.constant 0.797884583 : f32
    %117 = vector.broadcast %cst_57 : f32 to vector<32x512xf32>
    %118 = arith.mulf %117, %116 : vector<32x512xf32>
    %119 = math.tanh %118 : vector<32x512xf32>
    %cst_58 = arith.constant 1.000000e+00 : f32
    %120 = vector.broadcast %cst_58 : f32 to vector<32x512xf32>
    %121 = arith.addf %120, %119 : vector<32x512xf32>
    %122 = arith.mulf %111, %121 : vector<32x512xf32>
    %123 = arith.truncf %122 : vector<32x512xf32> to vector<32x512xbf16>
    %cst_59 = arith.constant dense<0.000000e+00> : vector<32x128xf32>
    %124 = tpu.matmul %123, %24, %cst_59 {dimension_numbers = #tpu.dot_dimension_numbers<[1], [0], [0], [1], [0, 0, 1, 1], [], []>} : vector<32x512xbf16>, vector<512x128xbf16>, vector<32x128xf32> -> vector<32x128xf32>
    %125 = arith.addf %85, %124 : vector<32x128xf32>
    %126 = vector.broadcast %26 : vector<1x128xf32> to vector<32x128xf32>
    %127 = arith.addf %125, %126 : vector<32x128xf32>
    %c0_60 = arith.constant 0 : index
    %c0_61 = arith.constant 0 : index
    %128 = vector.load %arg23[%c0_60, %c0_61] : memref<32x128xf32, #tpu.memory_space<vmem>>, vector<32x128xf32>
    tpu.vector_store %arg23[%c0_60, %c0_61], %127 {strides = array<i32>} : memref<32x128xf32, #tpu.memory_space<vmem>>, vector<32x128xf32>,
    %c1_i32 = arith.constant 1 : i32
    %129 = arith.cmpi eq, %arg1, %c1_i32 : i32
    %130 = arith.extui %129 : i1 to i32
    %c0_i32_62 = arith.constant 0 : i32
    %131 = arith.cmpi ne, %130, %c0_i32_62 : i32
    scf.if %131 {
      %c0_63 = arith.constant 0 : index
      %c0_64 = arith.constant 0 : index
      %132 = vector.load %arg23[%c0_63, %c0_64] : memref<32x128xf32, #tpu.memory_space<vmem>>, vector<32x128xf32>
      %c0_65 = arith.constant 0 : index
      %c0_66 = arith.constant 0 : index
      %133 = vector.load %arg15[%c0_65, %c0_66] : memref<1x128xf32, #tpu.memory_space<vmem>>, vector<1x128xf32>
      %c0_67 = arith.constant 0 : index
      %c0_68 = arith.constant 0 : index
      %134 = vector.load %arg16[%c0_67, %c0_68] : memref<1x128xf32, #tpu.memory_space<vmem>>, vector<1x128xf32>
      %cst_69 = arith.constant dense<0.000000e+00> : vector<32xf32>
      %135 = vector.multi_reduction <add>, %132, %cst_69 [1] : vector<32x128xf32> to vector<32xf32>
      %136 = vector.shape_cast %135 : vector<32xf32> to vector<32x1xf32>
      %cst_70 = arith.constant 1.280000e+02 : f32
      %137 = vector.broadcast %cst_70 : f32 to vector<32x1xf32>
      %138 = arith.divf %136, %137 : vector<32x1xf32>
      %139 = vector.broadcast %138 : vector<32x1xf32> to vector<32x128xf32>
      %140 = arith.subf %132, %139 : vector<32x128xf32>
      %141 = arith.mulf %140, %140 : vector<32x128xf32>
      %cst_71 = arith.constant dense<0.000000e+00> : vector<32xf32>
      %142 = vector.multi_reduction <add>, %141, %cst_71 [1] : vector<32x128xf32> to vector<32xf32>
      %143 = vector.shape_cast %142 : vector<32xf32> to vector<32x1xf32>
      %cst_72 = arith.constant 1.280000e+02 : f32
      %144 = vector.broadcast %cst_72 : f32 to vector<32x1xf32>
      %145 = arith.divf %143, %144 : vector<32x1xf32>
      %cst_73 = arith.constant 9.99999974E-6 : f32
      %146 = vector.broadcast %cst_73 : f32 to vector<32x1xf32>
      %147 = arith.addf %145, %146 : vector<32x1xf32>
      %148 = math.rsqrt %147 : vector<32x1xf32>
      %149 = vector.broadcast %148 : vector<32x1xf32> to vector<32x128xf32>
      %150 = arith.mulf %140, %149 : vector<32x128xf32>
      %151 = vector.broadcast %133 : vector<1x128xf32> to vector<32x128xf32>
      %152 = arith.mulf %150, %151 : vector<32x128xf32>
      %153 = vector.broadcast %134 : vector<1x128xf32> to vector<32x128xf32>
      %154 = arith.addf %152, %153 : vector<32x128xf32>
      %155 = arith.truncf %154 : vector<32x128xf32> to vector<32x128xbf16>
      %c0_74 = arith.constant 0 : index
      %c0_75 = arith.constant 0 : index
      %156 = vector.load %arg17[%c0_74, %c0_75] : memref<128x384xbf16, #tpu.memory_space<vmem>>, vector<128x384xbf16>
      %cst_76 = arith.constant dense<0.000000e+00> : vector<32x384xf32>
      %157 = tpu.matmul %155, %156, %cst_76 {dimension_numbers = #tpu.dot_dimension_numbers<[1], [0], [0], [1], [0, 0, 1, 1], [], []>} : vector<32x128xbf16>, vector<128x384xbf16>, vector<32x384xf32> -> vector<32x384xf32>
      %c0_77 = arith.constant 0 : index
      %c0_78 = arith.constant 0 : index
      %158 = vector.load %arg18[%c0_77, %c0_78] : memref<1x384xf32, #tpu.memory_space<vmem>>, vector<1x384xf32>
      %159 = vector.broadcast %158 : vector<1x384xf32> to vector<32x384xf32>
      %160 = arith.addf %157, %159 : vector<32x384xf32>
      %c0_79 = arith.constant 0 : index
      %c0_80 = arith.constant 0 : index
      %c0_81 = arith.constant 0 : index
      %161 = vector.load %arg21[%c0_79, %c0_80, %c0_81] : memref<1x32x384xf32, #tpu.memory_space<vmem>>, vector<1x32x384xf32>
      %162 = vector.shape_cast %161 : vector<1x32x384xf32> to vector<32x384xf32>
      %163 = vector.shape_cast %160 : vector<32x384xf32> to vector<1x32x384xf32>
      tpu.vector_store %arg21[%c0_79, %c0_80, %c0_81], %163 {strides = array<i32>} : memref<1x32x384xf32, #tpu.memory_space<vmem>>, vector<1x32x384xf32>,
      %c0_82 = arith.constant 0 : index
      %c0_83 = arith.constant 0 : index
      %c0_84 = arith.constant 0 : index
      %164 = vector.load %arg19[%c0_82, %c0_83, %c0_84] : memref<1x32x384xf32, #tpu.memory_space<vmem>>, vector<1x32x384xf32>
      %165 = vector.shape_cast %164 : vector<1x32x384xf32> to vector<32x384xf32>
      %166 = arith.subf %160, %165 : vector<32x384xf32>
      %167 = arith.mulf %166, %166 : vector<32x384xf32>
      %cst_85 = arith.constant dense<0.000000e+00> : vector<32xf32>
      %168 = vector.multi_reduction <add>, %167, %cst_85 [1] : vector<32x384xf32> to vector<32xf32>
      %169 = vector.shape_cast %168 : vector<32xf32> to vector<32x1xf32>
      %cst_86 = arith.constant 3.840000e+02 : f32
      %170 = vector.broadcast %cst_86 : f32 to vector<32x1xf32>
      %171 = arith.divf %169, %170 : vector<32x1xf32>
      %c0_87 = arith.constant 0 : index
      %c0_88 = arith.constant 0 : index
      %c0_89 = arith.constant 0 : index
      %172 = vector.load %arg20[%c0_87, %c0_88, %c0_89] : memref<1x32x1xf32, #tpu.memory_space<vmem>>, vector<1x32x1xf32>
      %173 = vector.shape_cast %172 : vector<1x32x1xf32> to vector<32x1xf32>
      %174 = arith.mulf %171, %173 : vector<32x1xf32>
      %c0_90 = arith.constant 0 : index
      %c0_91 = arith.constant 0 : index
      %c0_92 = arith.constant 0 : index
      %175 = vector.load %arg22[%c0_90, %c0_91, %c0_92] : memref<1x32x1xf32, #tpu.memory_space<vmem>>, vector<1x32x1xf32>
      %176 = vector.shape_cast %175 : vector<1x32x1xf32> to vector<32x1xf32>
      %177 = vector.shape_cast %174 : vector<32x1xf32> to vector<1x32x1xf32>
      tpu.vector_store %arg22[%c0_90, %c0_91, %c0_92], %177 {strides = array<i32>} : memref<1x32x1xf32, #tpu.memory_space<vmem>>, vector<1x32x1xf32>,
    } else {
    }
    return
  }
  func.func @transform_0(%arg0: i32, %arg1: i32) -> (i32, i32, i32) {
    %c0_i32 = arith.constant 0 : i32
    %c0_i32_0 = arith.constant 0 : i32
    %c0_i32_1 = arith.constant 0 : i32
    return %arg0, %c0_i32, %c0_i32_0 : i32, i32, i32
  }
  func.func @transform_1(%arg0: i32, %arg1: i32) -> (i32, i32, i32) {
    %c0_i32 = arith.constant 0 : i32
    %c0_i32_0 = arith.constant 0 : i32
    %c0_i32_1 = arith.constant 0 : i32
    return %arg1, %c0_i32, %c0_i32_0 : i32, i32, i32
  }
  func.func @transform_2(%arg0: i32, %arg1: i32) -> (i32, i32, i32) {
    %c0_i32 = arith.constant 0 : i32
    %c0_i32_0 = arith.constant 0 : i32
    %c0_i32_1 = arith.constant 0 : i32
    return %arg1, %c0_i32, %c0_i32_0 : i32, i32, i32
  }
  func.func @transform_3(%arg0: i32, %arg1: i32) -> (i32, i32, i32) {
    %c0_i32 = arith.constant 0 : i32
    %c0_i32_0 = arith.constant 0 : i32
    %c0_i32_1 = arith.constant 0 : i32
    return %arg1, %c0_i32, %c0_i32_0 : i32, i32, i32
  }
  func.func @transform_4(%arg0: i32, %arg1: i32) -> (i32, i32, i32) {
    %c0_i32 = arith.constant 0 : i32
    %c0_i32_0 = arith.constant 0 : i32
    %c0_i32_1 = arith.constant 0 : i32
    return %arg1, %c0_i32, %c0_i32_0 : i32, i32, i32
  }
  func.func @transform_5(%arg0: i32, %arg1: i32) -> (i32, i32, i32) {
    %c0_i32 = arith.constant 0 : i32
    %c0_i32_0 = arith.constant 0 : i32
    %c0_i32_1 = arith.constant 0 : i32
    return %arg1, %c0_i32, %c0_i32_0 : i32, i32, i32
  }
  func.func @transform_6(%arg0: i32, %arg1: i32) -> (i32, i32, i32) {
    %c0_i32 = arith.constant 0 : i32
    %c0_i32_0 = arith.constant 0 : i32
    %c0_i32_1 = arith.constant 0 : i32
    return %arg1, %c0_i32, %c0_i32_0 : i32, i32, i32
  }
  func.func @transform_7(%arg0: i32, %arg1: i32) -> (i32, i32, i32) {
    %c0_i32 = arith.constant 0 : i32
    %c0_i32_0 = arith.constant 0 : i32
    %c0_i32_1 = arith.constant 0 : i32
    return %arg1, %c0_i32, %c0_i32_0 : i32, i32, i32
  }
  func.func @transform_8(%arg0: i32, %arg1: i32) -> (i32, i32, i32) {
    %c0_i32 = arith.constant 0 : i32
    %c0_i32_0 = arith.constant 0 : i32
    %c0_i32_1 = arith.constant 0 : i32
    return %arg1, %c0_i32, %c0_i32_0 : i32, i32, i32
  }
  func.func @transform_9(%arg0: i32, %arg1: i32) -> (i32, i32, i32) {
    %c0_i32 = arith.constant 0 : i32
    %c0_i32_0 = arith.constant 0 : i32
    %c0_i32_1 = arith.constant 0 : i32
    return %arg1, %c0_i32, %c0_i32_0 : i32, i32, i32
  }
  func.func @transform_10(%arg0: i32, %arg1: i32) -> (i32, i32, i32) {
    %c0_i32 = arith.constant 0 : i32
    %c0_i32_0 = arith.constant 0 : i32
    %c0_i32_1 = arith.constant 0 : i32
    return %arg1, %c0_i32, %c0_i32_0 : i32, i32, i32
  }
  func.func @transform_11(%arg0: i32, %arg1: i32) -> (i32, i32, i32) {
    %c0_i32 = arith.constant 0 : i32
    %c0_i32_0 = arith.constant 0 : i32
    %c0_i32_1 = arith.constant 0 : i32
    return %arg1, %c0_i32, %c0_i32_0 : i32, i32, i32
  }
  func.func @transform_12(%arg0: i32, %arg1: i32) -> (i32, i32, i32) {
    %c0_i32 = arith.constant 0 : i32
    %c0_i32_0 = arith.constant 0 : i32
    %c0_i32_1 = arith.constant 0 : i32
    return %arg1, %c0_i32, %c0_i32_0 : i32, i32, i32
  }
  func.func @transform_13(%arg0: i32, %arg1: i32) -> (i32, i32) {
    %c0_i32 = arith.constant 0 : i32
    %c0_i32_0 = arith.constant 0 : i32
    %c0_i32_1 = arith.constant 0 : i32
    return %c0_i32, %c0_i32_0 : i32, i32
  }
  func.func @transform_14(%arg0: i32, %arg1: i32) -> (i32, i32) {
    %c0_i32 = arith.constant 0 : i32
    %c0_i32_0 = arith.constant 0 : i32
    %c0_i32_1 = arith.constant 0 : i32
    return %c0_i32, %c0_i32_0 : i32, i32
  }
  func.func @transform_15(%arg0: i32, %arg1: i32) -> (i32, i32) {
    %c0_i32 = arith.constant 0 : i32
    %c0_i32_0 = arith.constant 0 : i32
    %c0_i32_1 = arith.constant 0 : i32
    return %c0_i32, %c0_i32_0 : i32, i32
  }
  func.func @transform_16(%arg0: i32, %arg1: i32) -> (i32, i32) {
    %c0_i32 = arith.constant 0 : i32
    %c0_i32_0 = arith.constant 0 : i32
    %c0_i32_1 = arith.constant 0 : i32
    return %c0_i32, %c0_i32_0 : i32, i32
  }
  func.func @transform_17(%arg0: i32, %arg1: i32) -> (i32, i32, i32) {
    %c0_i32 = arith.constant 0 : i32
    %c0_i32_0 = arith.constant 0 : i32
    %c0_i32_1 = arith.constant 0 : i32
    return %arg0, %c0_i32, %c0_i32_0 : i32, i32, i32
  }
  func.func @transform_18(%arg0: i32, %arg1: i32) -> (i32, i32, i32) {
    %c0_i32 = arith.constant 0 : i32
    %c0_i32_0 = arith.constant 0 : i32
    %c0_i32_1 = arith.constant 0 : i32
    return %arg0, %c0_i32, %c0_i32_0 : i32, i32, i32
  }
  func.func @transform_19(%arg0: i32, %arg1: i32) -> (i32, i32, i32) {
    %c0_i32 = arith.constant 0 : i32
    %c0_i32_0 = arith.constant 0 : i32
    %c0_i32_1 = arith.constant 0 : i32
    return %arg0, %c0_i32, %c0_i32_0 : i32, i32, i32
  }
  func.func @transform_20(%arg0: i32, %arg1: i32) -> (i32, i32, i32) {
    %c0_i32 = arith.constant 0 : i32
    %c0_i32_0 = arith.constant 0 : i32
    %c0_i32_1 = arith.constant 0 : i32
    return %arg0, %c0_i32, %c0_i32_0 : i32, i32, i32
  }
}

</mosaic_0001>

<bundles_post_ra>
// kernel: forward.3
= control target key start
LH: loop header
LB: loop body
LE: loop exit
PB: predicated region body
PF: predicated region fallthrough
CT: control target
= control target key end

     0   :  { %s718_s15 = smov 0   ;;  %s844_s0 = inlined_call_operand.vmem [shape: f32[2,32,384], index: 0, kind: input, shape index: {}]   ;;  %s845_s1 = inlined_call_operand.vmem [shape: bf16[384,128], index: 1, kind: input, shape index: {}]   ;;  %s846_s2 = inlined_call_operand.vmem [shape: f32[1,128], index: 2, kind: input, shape index: {}]   ;;  %s847_s3 = inlined_call_operand.vmem [shape: f32[32,128], index: 3, kind: input, shape index: {}]   ;;  %s848_s4 = inlined_call_operand.vmem [shape: f32[2,32,128], index: 4, kind: output, shape index: {}]  }
   0x1 LB: > { %s536_s16 = sadd.s32 4294967295, %s691_s15   ;;  %p540_p0 = scmp.ge.s32.totalorder %s691_s15, 1  ;;  %s691_s15 = sphi %s718_s15, %s14_s15  }
   0x2   : > { %p162_p1 = scmp.lt.s32.totalorder %s691_s15, 3 }
   0x4   : > { %p163_p2 = pnand %p540_p0, %p162_p1 }
   0x5   : > { %p188_p3 = scmp.lt.s32.totalorder (!%p163_p2), %s536_s16, 1 }
   0x6   : > { %166 = sbr.rel (%p163_p2) target bundleno = 206 (0xce), region = 36 }
   0xb   : > { %v650_v0 = vld [vmem:[%s845_s1 + $0x38] sm:$0xff]  ;;  %v649_v3 = vld [vmem:[%s845_s1 + $0x30] sm:$0xff]  ;;  %v648_v6 = vld [vmem:[%s845_s1 + $0x28] sm:$0xff]  ;;  %s850_s16 = smov (!%p188_p3, %s536_s16), 1 }
   0xc   : > { %v658_v1 = vld [vmem:[%s845_s1 + $0x78] sm:$0xff]  ;;  %412 = vmatpush.bf16.msra.mxu0 %v650_v0  ;;  %v657_v4 = vld [vmem:[%s845_s1 + $0x70] sm:$0xff]  ;;  %667 = vmatpush.bf16.msra.mxu3 %v650_v0  ;;  %v656_v7 = vld [vmem:[%s845_s1 + $0x68] sm:$0xff]  ;;  %s675_s27 = smul.u32 96, %s850_s16  ;;  %s642_s23 = sshll.u32 %s850_s16, 5 }
   0xd   : > { %v666_v2 = vld [vmem:[%s845_s1 + $0xb8] sm:$0xff]  ;;  %431 = vmatpush.bf16.msra.mxu1 %v658_v1  ;;  %v665_v5 = vld [vmem:[%s845_s1 + $0xb0] sm:$0xff]  ;;  %v664_v8 = vld [vmem:[%s845_s1 + $0xa8] sm:$0xff]  ;;  %s197_s28 = scalar_lea.vmem %s848_s4, %s642_s23 }
   0xe   : > { %450 = vmatpush.bf16.msra.mxu2 %v666_v2  ;;  %v647_v9 = vld [vmem:[%s845_s1 + $0x20] sm:$0xff]  ;;  %v646_v12 = vld [vmem:[%s845_s1 + $0x18] sm:$0xff]  ;;  %v645_v15 = vld [vmem:[%s845_s1 + $0x10] sm:$0xff]  ;;  %s796_s10 = scalar_lea.vmem %s844_s0, %s675_s27 }
   0xf   : > { %v655_v10 = vld [vmem:[%s845_s1 + $0x60] sm:$0xff]  ;;  %v654_v13 = vld [vmem:[%s845_s1 + $0x58] sm:$0xff]  ;;  %v653_v16 = vld [vmem:[%s845_s1 + $0x50] sm:$0xff] }
  0x10   : > { %413 = vmatpush.bf16.msra.mxu0 %v649_v3  ;;  %668 = vmatpush.bf16.msra.mxu3 %v649_v3  ;;  %v663_v11 = vld [vmem:[%s845_s1 + $0xa0] sm:$0xff]  ;;  %v662_v14 = vld [vmem:[%s845_s1 + $0x98] sm:$0xff]  ;;  %v661_v17 = vld [vmem:[%s845_s1 + $0x90] sm:$0xff] }
  0x11   : > { %432 = vmatpush.bf16.msra.mxu1 %v657_v4  ;;  %v644_v18 = vld [vmem:[%s845_s1 + $0x8] sm:$0xff]  ;;  %v643_v21 = vld [vmem:[%s845_s1] sm:$0xff]  ;;  %v201_v25 = vld [vmem:[%s796_s10 + $0x18] sm:$0xff] }
  0x12   : > { %451 = vmatpush.bf16.msra.mxu2 %v665_v5  ;;  %v652_v19 = vld [vmem:[%s845_s1 + $0x48] sm:$0xff]  ;;  %v651_v22 = vld [vmem:[%s845_s1 + $0x40] sm:$0xff]  ;;  %v200_v28 = vld [vmem:[%s796_s10 + $0x10] sm:$0xff] }
  0x13   : > { %v660_v20 = vld [vmem:[%s845_s1 + $0x88] sm:$0xff]  ;;  %v659_v23 = vld [vmem:[%s845_s1 + $0x80] sm:$0xff]  ;;  %v204_v30 = vld [vmem:[%s796_s10 + $0x30] sm:$0xff] }
  0x14   : > { %414 = vmatpush.bf16.msra.mxu0 %v648_v6  ;;  %669 = vmatpush.bf16.msra.mxu3 %v648_v6  ;;  %v198_v24 = vld [vmem:[%s796_s10] sm:$0xff]  ;;  %v199_v26 = vld [vmem:[%s796_s10 + $0x8] sm:$0xff]  ;;  %v205_v36 = vld [vmem:[%s796_s10 + $0x38] sm:$0xff] }
  0x15   : > { %433 = vmatpush.bf16.msra.mxu1 %v656_v7  ;;  %v202_v27 = vld [vmem:[%s796_s10 + $0x20] sm:$0xff]  ;;  %v203_v29 = vld [vmem:[%s796_s10 + $0x28] sm:$0xff]  ;;  %v210_v32 = vpack.c.bf16 %v201_v25, %v198_v24  ;;  %v208_v37 = vld [vmem:[%s796_s10 + $0x50] sm:$0xff] }
  0x16   : > { %452 = vmatpush.bf16.msra.mxu2 %v664_v8  ;;  %v207_v31 = vld [vmem:[%s796_s10 + $0x48] sm:$0xff]  ;;  %v211_v33 = vpack.c.bf16 %v202_v27, %v199_v26  ;;  %v212_v34 = vpack.c.bf16 %v203_v29, %v200_v28  ;;  %v206_v38 = vld [vmem:[%s796_s10 + $0x40] sm:$0xff]  ;;  %v209_v39 = vld [vmem:[%s796_s10 + $0x58] sm:$0xff]  ;;  %v214_v40 = vpack.c.bf16 %v208_v37, %v205_v36 }
  0x17   : > { %v213_v35 = vpack.c.bf16 %v207_v31, %v204_v30  ;;  %v215_v41 = vpack.c.bf16 %v209_v39, %v206_v38  ;;  %v684_v42 = vld [vmem:[%s846_s2] ss:$0 sm:$0xff]  ;;  %v470_v57 = vld [vmem:[%s847_s3 + $0x8] sm:$0xff]  ;;  %v471_v0 = vld [vmem:[%s847_s3 + $0x10] sm:$0xff] }
  0x18   : > { %415 = vmatpush.bf16.msra.mxu0 %v647_v9  ;;  %670 = vmatpush.bf16.msra.mxu3 %v647_v9  ;;  %v469_v48 = vld [vmem:[%s847_s3] sm:$0xff]  ;;  %v472_v8 = vld [vmem:[%s847_s3 + $0x18] sm:$0xff] }
  0x19   : > { %434 = vmatpush.bf16.msra.mxu1 %v655_v10 }
  0x1a   : > { %453 = vmatpush.bf16.msra.mxu2 %v663_v11 }
  0x1c   : > { %416 = vmatpush.bf16.msra.mxu0 %v646_v12  ;;  %671 = vmatpush.bf16.msra.mxu3 %v646_v12 }
  0x1d   : > { %435 = vmatpush.bf16.msra.mxu1 %v654_v13 }
  0x1e   : > { %454 = vmatpush.bf16.msra.mxu2 %v662_v14 }
  0x20   : > { %417 = vmatpush.bf16.msra.mxu0 %v645_v15  ;;  %672 = vmatpush.bf16.msra.mxu3 %v645_v15 }
  0x21   : > { %436 = vmatpush.bf16.msra.mxu1 %v653_v16 }
  0x22   : > { %455 = vmatpush.bf16.msra.mxu2 %v661_v17 }
  0x24   : > { %418 = vmatpush.bf16.msra.mxu0 %v644_v18  ;;  %673 = vmatpush.bf16.msra.mxu3 %v644_v18 }
  0x25   : > { %437 = vmatpush.bf16.msra.mxu1 %v652_v19 }
  0x26   : > { %456 = vmatpush.bf16.msra.mxu2 %v660_v20 }
  0x28   : > { %419 = vmatpush.bf16.msra.mxu0 %v643_v21  ;;  %674 = vmatpush.bf16.msra.mxu3 %v643_v21 }
  0x29   : > { %438 = vmatpush.bf16.msra.mxu1 %v651_v22 }
  0x2a   : > { %457 = vmatpush.bf16.msra.mxu2 %v659_v23 }
  0x2b   : > { %420 = vmatmul.bf16.vlgmr.msra.gmra.mxu0 %v210_v32  ;;  %425 = vmatmul.bf16.vlgmr.msra.gmra.mxu3 %v213_v35 }
  0x2c   : > { %439 = vmatmul.bf16.vlgmr.msra.gmra.mxu1 %v211_v33 }
  0x2d   : > { %458 = vmatmul.bf16.vlgmr.msra.gmra.mxu2 %v212_v34 }
  0x3c   : > { %444 = vmatmul.bf16.gmra.mxu1 %v214_v40 }
  0x3d   : > { %463 = vmatmul.bf16.gmra.mxu2 %v215_v41 }
  0xa8   : > { %v421_v43 = vpop.f32.mrf.mxu0 }
  0xa9   : > { %v440_v44 = vpop.f32.mrf.mxu1  ;;  %v422_v45 = vadd.f32 %v684_v42, %v421_v43 }
  0xab   : > { %v441_v46 = vadd.f32 %v440_v44, %v422_v45 }
  0xae   : > { %v426_v55 = vpop.f32.mrf.mxu3 }
  0xaf   : > { %v427_v58 = vadd.f32 %v684_v42, %v426_v55 }
  0xb0   : > { %v459_v47 = vpop.f32.mrf.mxu2  ;;  %v423_v50 = vpop.f32.mrf.mxu0 }
  0xb1   : > { %v460_v49 = vadd.f32 %v459_v47, %v441_v46  ;;  %v442_v51 = vpop.f32.mrf.mxu1  ;;  %v424_v53 = vadd.f32 %v684_v42, %v423_v50 }
  0xb3   : > { %v473_v52 = vadd.f32 %v469_v48, %v460_v49  ;;  %v443_v54 = vadd.f32 %v442_v51, %v424_v53 }
  0xb5   : > { %477 = vst [vmem:[%s197_s28] sm:$0xff] %v473_v52 }
  0xb6   : > { %v428_v2 = vpop.f32.mrf.mxu3 }
  0xb7   : > { %v429_v5 = vadd.f32 %v684_v42, %v428_v2 }
  0xb8   : > { %v461_v56 = vpop.f32.mrf.mxu2 }
  0xb9   : > { %v462_v59 = vadd.f32 %v461_v56, %v443_v54  ;;  %v445_v60 = vpop.f32.mrf.mxu1 }
  0xba   : > { %v446_v62 = vadd.f32 %v445_v60, %v427_v58 }
  0xbb   : > { %v474_v61 = vadd.f32 %v470_v57, %v462_v59 }
  0xbd   : > { %478 = vst [vmem:[%s197_s28 + $0x8] sm:$0xff] %v474_v61 }
  0xc0   : > { %v464_v63 = vpop.f32.mrf.mxu2 }
  0xc1   : > { %v465_v1 = vadd.f32 %v464_v63, %v446_v62  ;;  %v447_v4 = vpop.f32.mrf.mxu1 }
  0xc2   : > { %v448_v6 = vadd.f32 %v447_v4, %v429_v5 }
  0xc3   : > { %v475_v3 = vadd.f32 %v471_v0, %v465_v1 }
  0xc5   : > { %479 = vst [vmem:[%s197_s28 + $0x10] sm:$0xff] %v475_v3 }
  0xc8   : > { %v466_v7 = vpop.f32.mrf.mxu2 }
  0xc9   : > { %v467_v9 = vadd.f32 %v466_v7, %v448_v6 }
  0xcb   : > { %v476_v10 = vadd.f32 %v472_v8, %v467_v9 }
  0xcd   : > { %480 = vst [vmem:[%s197_s28 + $0x18] sm:$0xff] %v476_v10 }
  0xce PF: > { %s14_s15 = sadd.s32 1, %s691_s15  }
  0xcf   : > { %p11_p4 = scmp.ge.s32.totalorder %s14_s15, 4  }
  0xd1   :  { %13 = sbr.rel (!%p11_p4) target bundleno = 1 (0x1), region = 66 }

// kernel: forward.4
= control target key start
LH: loop header
LB: loop body
LE: loop exit
PB: predicated region body
PF: predicated region fallthrough
CT: control target
= control target key end

     0   :  { %s3522_s24 = smov 0   ;;  %s3524_s25 = smov 0   ;;  %s4108_s0 = inlined_call_operand.vmem [shape: f32[2,8,128], index: 0, kind: input, shape index: {}]   ;;  %s4109_s1 = inlined_call_operand.vmem [shape: f32[2,1,128], index: 1, kind: input, shape index: {}]   ;;  %s4110_s2 = inlined_call_operand.vmem [shape: f32[2,1,128], index: 2, kind: input, shape index: {}]   ;;  %s4111_s3 = inlined_call_operand.vmem [shape: bf16[2,128,384], index: 3, kind: input, shape index: {}]   ;;  %s4112_s4 = inlined_call_operand.vmem [shape: f32[2,1,384], index: 4, kind: input, shape index: {}]   ;;  %s4113_s5 = inlined_call_operand.vmem [shape: bf16[2,128,128], index: 5, kind: input, shape index: {}]   ;;  %s4114_s6 = inlined_call_operand.vmem [shape: f32[2,1,128], index: 6, kind: input, shape index: {}]   ;;  %s4115_s7 = inlined_call_operand.vmem [shape: f32[2,1,128], index: 7, kind: input, shape index: {}]   ;;  %s4116_s8 = inlined_call_operand.vmem [shape: f32[2,1,128], index: 8, kind: input, shape index: {}]   ;;  %s4117_s9 = inlined_call_operand.vmem [shape: bf16[2,128,512], index: 9, kind: input, shape index: {}]   ;;  %s4118_s10 = inlined_call_operand.vmem [shape: f32[2,1,512], index: 10, kind: input, shape index: {}]   ;;  %s4119_s11 = inlined_call_operand.vmem [shape: bf16[2,512,128], index: 11, kind: input, shape index: {}]   ;;  %s4120_s12 = inlined_call_operand.vmem [shape: f32[2,1,128], index: 12, kind: input, shape index: {}]   ;;  %s4121_s13 = inlined_call_operand.vmem [shape: f32[1,128], index: 13, kind: input, shape index: {}]   ;;  %s4122_s14 = inlined_call_operand.vmem [shape: f32[1,128], index: 14, kind: input, shape index: {}]   ;;  %s4123_s15 = inlined_call_operand.vmem [shape: bf16[128,128], index: 15, kind: input, shape index: {}]   ;;  %s4124_s16 = inlined_call_operand.vmem [shape: f32[1,128], index: 16, kind: input, shape index: {}]   ;;  %s4125_s17 = inlined_call_operand.vmem [shape: f32[2,8,128], index: 17, kind: output, shape index: {}]  }
   0x1   :  { %4131 = sst [smem:[#allocation9_spill]] %s4108_s0  ;;  %s3526_s26 = smov 0  }
   0x2   :  { %4132 = sst [smem:[#allocation10_spill]] %s4109_s1  ;;  %s3528_s27 = smov 0  }
   0x3   :  { %4133 = sst [smem:[#allocation11_spill]] %s4111_s3  ;;  %s3530_s28 = smov 0  }
   0x4   :  { %4134 = sst [smem:[#allocation12_spill]] %s4112_s4 }
   0x5   :  { %4135 = sst [smem:[#allocation13_spill]] %s4113_s5 }
   0x6   :  { %4136 = sst [smem:[#allocation14_spill]] %s4121_s13 }
   0x7   :  { %4137 = sst [smem:[#allocation15_spill]] %s4122_s14 }
   0x8   :  { %4138 = sst [smem:[#allocation16_spill]] %s4123_s15 }
   0x9   :  { %4139 = sst [smem:[#allocation17_spill]] %s4124_s16 }
   0xa   :  { %4140 = sst [smem:[#allocation18_spill]] %s4125_s17 }
   0xb LB: > { %4141 = sst [smem:[#allocation3_spill]] %s3408_s24  ;;  %s36_s29 = sadd.s32 1, %s3416_s26  ;;  %s3424_s28 = sphi %s3530_s28, %s27_s28   ;;  %s3420_s27 = sphi %s3528_s27, %s4170_s27   ;;  %s3416_s26 = sphi %s3526_s26, %s4169_s26   ;;  %s3412_s25 = sphi %s3524_s25, %s4168_s25   ;;  %s3408_s24 = sphi %s3522_s24, %s4167_s24  }
   0xc   : > { %4142 = sst [smem:[#allocation4_spill]] %s3416_s26  ;;  %s39_s0 = sadd.s32 1, %s3420_s27 }
   0xd   : > { %4143 = sst [smem:[#allocation5_spill]] %s3420_s27  ;;  %p37_p0 = scmp.ge.s32.totalorder %s36_s29, 2 }
   0xe   : > { %4144 = sst [smem:[#allocation6_spill]] %s3424_s28  ;;  %p2750_p1 = scmp.ge.s32.totalorder %s3424_s28, 1 }
   0xf   : > { %p604_p2 = scmp.lt.s32.totalorder %s3424_s28, 5  ;;  %s4172_s29 = smov (%p37_p0, %s36_s29), 0 }
  0x10   : > { %4145 = sst [smem:[#allocation7_spill]] %s4172_s29  ;;  %s4174_s0 = smov (!%p37_p0, %s39_s0), %s3420_s27 }
  0x11   : > { %p605_p3 = pnand %p2750_p1, %p604_p2  ;;  %p41_p4 = scmp.ge.s32.totalorder %s4174_s0, 2 }
  0x12   : > { %p700_p5 = scmp.lt.s32.totalorder (!%p605_p3), %s3412_s25, 1  ;;  %p704_p6 = scmp.lt.s32.totalorder (!%p605_p3), %s3408_s24, 1 }
  0x13   : > { %s4176_s0 = smov (%p41_p4, %s4174_s0), 0  ;;  %608 = sbr.rel (%p605_p3) target bundleno = 2412 (0x96c), region = 88 }
  0x14   : > { %4146 = sst [smem:[#allocation8_spill]] %s4176_s0 }
  0x15   : > { %s4147_s20 = sld [smem:[#allocation9_spill]] (!%p605_p3) }
  0x16   : > { %s4149_s3 = sld [smem:[#allocation11_spill]] (!%p605_p3) }
  0x17   : > { %s4150_s5 = sld [smem:[#allocation13_spill]] (!%p605_p3) }
  0x18   : > { %s4178_s25 = smov (!%p700_p5, %s3412_s25), 1  ;;  %s4151_s4 = sld [smem:[#allocation12_spill]] }
  0x19   : > { %s3556_s30 = scalar_select %p704_p6, %s3408_s24, 1 }
  0x1a   : > { %s2751_s18 = sshll.u32 %s4178_s25, 3  ;;  %s4153_s19 = sld [smem:[#allocation3_spill]] }
  0x1b   : > { %s703_s21 = scalar_lea.vmem %s4147_s20, %s2751_s18  ;;  %s3296_s16 = smul.u32 192, %s3556_s30 }
  0x1c   : > { %s3297_s14 = smul.u32 3, %s3556_s30  ;;  %s3189_s13 = sshll.u32 %s3556_s30, 6 }
  0x1d   : > { %s3575_s25 = scalar_lea.vmem %s4149_s3, %s3296_s16  ;;  %s3580_s1 = scalar_lea.vmem %s4150_s5, %s3189_s13 }
  0x1e   : > { %s3585_s22 = scalar_lea.vmem %s4151_s4, %s3297_s14  ;;  %s3190_s17 = sshll.u32 %s3556_s30, 8 }
  0x1f   : > { %s2757_s13 = sshll.u32 %s3556_s30, 2  ;;  %s3604_s20 = scalar_lea.vmem %s4117_s9, %s3190_s17 }
  0x20   : > { %s3609_s26 = scalar_lea.vmem %s4118_s10, %s2757_s13  ;;  %s3614_s28 = scalar_lea.vmem %s4119_s11, %s3190_s17 }
  0x21   : > { %s749_s24 = scalar_lea.vmem %s4120_s12, %s3556_s30  ;;  %s4152_s4 = sld [smem:[#allocation18_spill]] }
  0x22   : > { %p2761_p7 = scmp.ne.s32.totalorder %s4153_s19, 0 }
  0x24   : > { %758 = sbr.rel (%p2761_p7) target bundleno = 43 (0x2b), region = 92 }
  0x27   : > { %s3623_s5 = scalar_lea.vmem %s4152_s4, %s2751_s18 }
  0x29   : > { %v759_v0 = vld [vmem:[%s703_s21] sm:$0xff] }
  0x2a   : > { %760 = vst [vmem:[#allocation2] sm:$0xff] %v759_v0 }
  0x2b PF: > { %v3426_v2 = vmov 128.0   ;;  %v2848_v13 = vld [vmem:[%s3575_s25 + $0xa8] sm:$0xf]  ;;  %v3214_v14 = vld [vmem:[%s3575_s25 + $0xb0] sm:$0xf0]  ;;  %s4154_s18 = sld [smem:[#allocation10_spill]]  ;;  %s4156_s15 = scalar_lea.vmem %s4110_s2, %s3556_s30 }
  0x2c   : > { %3350 = vrcp.f32 %v3426_v2  ;;  %v3213_v15 = vld [vmem:[%s3575_s25 + $0xac] sm:$0xf]  ;;  %v2849_v16 = vor.u32 %v3214_v14, %v2848_v13  ;;  %v2850_v17 = vld [vmem:[%s3575_s25 + $0xb4] sm:$0xf0]  ;;  %v2856_v18 = vld [vmem:[%s3575_s25 + $0xb0] sm:$0xf]  ;;  %s4157_s0 = scalar_lea.vmem %s4114_s6, %s3556_s30  ;;  %s4158_s29 = scalar_lea.vmem %s4115_s7, %s3556_s30 }
  0x2d   : > { %v3215_v19 = vld [vmem:[%s3575_s25 + $0xb8] sm:$0xf0]  ;;  %v2853_v20 = vor.u32 %v3213_v15, %v2850_v17  ;;  %v2836_v22 = vld [vmem:[%s3575_s25 + $0x90] sm:$0xf]  ;;  %v3210_v24 = vld [vmem:[%s3575_s25 + $0x94] sm:$0xf]  ;;  %s4159_s3 = scalar_lea.vmem %s4116_s8, %s3556_s30 }
  0x2e   : > { %v2857_v21 = vor.u32 %v3215_v19, %v2856_v18  ;;  %1085 = vmatpush.bf16.msra.mxu0 %v2849_v16  ;;  %v3211_v23 = vld [vmem:[%s3575_s25 + $0x98] sm:$0xf0]  ;;  %v2838_v26 = vld [vmem:[%s3575_s25 + $0x9c] sm:$0xf0]  ;;  %v2844_v27 = vld [vmem:[%s3575_s25 + $0x98] sm:$0xf] }
  0x2f   : > { %1098 = vmatpush.bf16.msra.mxu1 %v2853_v20  ;;  %v2837_v25 = vor.u32 %v3211_v23, %v2836_v22  ;;  %v3212_v28 = vld [vmem:[%s3575_s25 + $0xa0] sm:$0xf0]  ;;  %v2841_v29 = vor.u32 %v3210_v24, %v2838_v26  ;;  %v2824_v31 = vld [vmem:[%s3575_s25 + $0x78] sm:$0xf]  ;;  %v3207_v33 = vld [vmem:[%s3575_s25 + $0x7c] sm:$0xf] }
  0x30   : > { %1111 = vmatpush.bf16.msra.mxu2 %v2857_v21  ;;  %v2845_v30 = vor.u32 %v3212_v28, %v2844_v27  ;;  %v3208_v32 = vld [vmem:[%s3575_s25 + $0x80] sm:$0xf0]  ;;  %v2826_v35 = vld [vmem:[%s3575_s25 + $0x84] sm:$0xf0]  ;;  %v2832_v36 = vld [vmem:[%s3575_s25 + $0x80] sm:$0xf] }
  0x31   : > { %v913_v1 = vld [vmem:[#allocation2] sm:$0xff]  ;;  %v2825_v34 = vor.u32 %v3208_v32, %v2824_v31  ;;  %v3209_v37 = vld [vmem:[%s3575_s25 + $0x88] sm:$0xf0]  ;;  %v2829_v38 = vor.u32 %v3207_v33, %v2826_v35  ;;  %v2814_v44 = vld [vmem:[%s3575_s25 + $0x6c] sm:$0xf0]  ;;  %s4155_s21 = scalar_lea.vmem %s4154_s18, %s3556_s30  ;;  %s3427_s17 = smov 32  }
  0x32   : > { %914 = vadd.xlane.f32.xlu0 %v913_v1  ;;  %v3351_v3 = vpop.eup %3350  ;;  %1086 = vmatpush.bf16.msra.mxu0 %v2837_v25  ;;  %v2833_v39 = vor.u32 %v3209_v37, %v2832_v36  ;;  %v2812_v40 = vld [vmem:[%s3575_s25 + $0x60] sm:$0xf]  ;;  %v3205_v41 = vld [vmem:[%s3575_s25 + $0x68] sm:$0xf0]  ;;  %v3204_v42 = vld [vmem:[%s3575_s25 + $0x64] sm:$0xf] }
  0x33   : > { %v917_v4 = vmul.f32 128.0, %v3351_v3  ;;  %vm921_vm0 = vweird.f32 %v3351_v3  ;;  %1099 = vmatpush.bf16.msra.mxu1 %v2841_v29  ;;  %v2813_v43 = vor.u32 %v3205_v41, %v2812_v40  ;;  %v2820_v45 = vld [vmem:[%s3575_s25 + $0x68] sm:$0xf]  ;;  %v3206_v46 = vld [vmem:[%s3575_s25 + $0x70] sm:$0xf0]  ;;  %v2817_v47 = vor.u32 %v3204_v42, %v2814_v44  ;;  %s3428_s13 = smov 96  }
  0x34   : > { %1112 = vmatpush.bf16.msra.mxu2 %v2845_v30  ;;  %v2821_v48 = vor.u32 %v3206_v46, %v2820_v45  ;;  %v2800_v49 = vld [vmem:[%s3575_s25 + $0x48] sm:$0xf]  ;;  %v3202_v50 = vld [vmem:[%s3575_s25 + $0x50] sm:$0xf0]  ;;  %v3201_v51 = vld [vmem:[%s3575_s25 + $0x4c] sm:$0xf] }
  0x35   : > { %v918_v5 = vsub.f32 1.0, %v917_v4  ;;  %v2801_v52 = vor.u32 %v3202_v50, %v2800_v49  ;;  %v2802_v53 = vld [vmem:[%s3575_s25 + $0x54] sm:$0xf0]  ;;  %v2808_v54 = vld [vmem:[%s3575_s25 + $0x50] sm:$0xf]  ;;  %s3429_s14 = smov 64  }
  0x36   : > { %1087 = vmatpush.bf16.msra.mxu0 %v2825_v34  ;;  %v3203_v55 = vld [vmem:[%s3575_s25 + $0x58] sm:$0xf0]  ;;  %v2805_v56 = vor.u32 %v3201_v51, %v2802_v53  ;;  %v2788_v58 = vld [vmem:[%s3575_s25 + $0x30] sm:$0xf]  ;;  %v3198_v60 = vld [vmem:[%s3575_s25 + $0x34] sm:$0xf] }
  0x37   : > { %v919_v6 = vmul.f32 %v3351_v3, %v918_v5  ;;  %1100 = vmatpush.bf16.msra.mxu1 %v2829_v38  ;;  %v2809_v57 = vor.u32 %v3203_v55, %v2808_v54  ;;  %v3199_v59 = vld [vmem:[%s3575_s25 + $0x38] sm:$0xf0]  ;;  %v2790_v62 = vld [vmem:[%s3575_s25 + $0x3c] sm:$0xf0]  ;;  %v2796_v63 = vld [vmem:[%s3575_s25 + $0x38] sm:$0xf] }
  0x38   : > { %1113 = vmatpush.bf16.msra.mxu2 %v2833_v39  ;;  %v2789_v61 = vor.u32 %v3199_v59, %v2788_v58  ;;  %v3200_v0 = vld [vmem:[%s3575_s25 + $0x40] sm:$0xf0]  ;;  %v3195_v5 = vld [vmem:[%s3575_s25 + $0x1c] sm:$0xf]  ;;  %v2764_v14 = vld [vmem:[%s3575_s25] sm:$0xf] }
  0x39   : > { %v920_v7 = vadd.f32 %v3351_v3, %v919_v6  ;;  %v2797_v2 = vor.u32 %v3200_v0, %v2796_v63  ;;  %v3196_v4 = vld [vmem:[%s3575_s25 + $0x20] sm:$0xf0]  ;;  %v3193_v15 = vld [vmem:[%s3575_s25 + $0x8] sm:$0xf0]  ;;  %v2766_v18 = vld [vmem:[%s3575_s25 + $0xc] sm:$0xf0] }
  0x3a   : > { %1088 = vmatpush.bf16.msra.mxu0 %v2813_v43  ;;  %v3192_v16 = vld [vmem:[%s3575_s25 + $0x4] sm:$0xf]  ;;  %v2765_v17 = vor.u32 %v3193_v15, %v2764_v14  ;;  %v2772_v19 = vld [vmem:[%s3575_s25 + $0x8] sm:$0xf]  ;;  %v3194_v20 = vld [vmem:[%s3575_s25 + $0x10] sm:$0xf0] }
  0x3b   : > { %v3626_v8 = vsel %vm921_vm0, %v3351_v3, %v920_v7  ;;  %1101 = vmatpush.bf16.msra.mxu1 %v2817_v47  ;;  %v2776_v3 = vld [vmem:[%s3575_s25 + $0x18] sm:$0xf]  ;;  %v2778_v7 = vld [vmem:[%s3575_s25 + $0x24] sm:$0xf0]  ;;  %v2769_v21 = vor.u32 %v3192_v16, %v2766_v18  ;;  %v2773_v22 = vor.u32 %v3194_v20, %v2772_v19  ;;  %v3344_v32 = vld [vmem:[%s4155_s21] ss:$0 sm:$0xff] }
  0x3c   : > { %1114 = vmatpush.bf16.msra.mxu2 %v2821_v48  ;;  %v2777_v6 = vor.u32 %v3196_v4, %v2776_v3  ;;  %v3345_v35 = vld [vmem:[%s4156_s15] ss:$0 sm:$0xff]  ;;  %v3430_v50 = vmov 1983009808   ;;  %vm1135_vm4 = vcmask 1047556   ;;  %vm1497_vm5 = vcmask 261120  }
  0x3d   : > { %v3694_v39 = vld [vmem:[%s3585_s22] sm:$0x7]  ;;  %v1140_v51 = vunpack.c.l.s4 %v3430_v50  ;;  %v3431_v59 = vmov 1934713408   ;;  %vm1574_vm6 = vcmask 64512   ;;  %vm1630_vm7 = vcmask 1043456  }
  0x3e   : > { %1089 = vmatpush.bf16.msra.mxu0 %v2801_v52  ;;  %v951_v40 = vperm.slane %v3694_v39, 0  ;;  %v952_v41 = vperm.slane %v3694_v39, 1  ;;  %vm1827_vm8 = vcmask 523264   ;;  %vm1829_vm9 = vcmask 785408   ;;  %s4160_s4 = sld [smem:[#allocation3_spill]] }
  0x3f   : > { %1102 = vmatpush.bf16.msra.mxu1 %v2805_v56  ;;  %v3707_v56 = vunpack.c.0.s8 %v1140_v51 }
  0x40   : > { %1115 = vmatpush.bf16.msra.mxu2 %v2809_v57 }
  0x42   : > { %1090 = vmatpush.bf16.msra.mxu0 %v2789_v61 }
  0x44   : > { %1116 = vmatpush.bf16.msra.mxu2 %v2797_v2  ;;  %p3154_p8 = scmp.ne.s32.totalorder %s4160_s4, 1 }
  0x45   : > { %s4164_s21 = sld [smem:[#allocation15_spill]] (!%p3154_p8) }
  0x46   : > { %1091 = vmatpush.bf16.msra.mxu0 %v2777_v6 }
  0x4a   : > { %1092 = vmatpush.bf16.msra.mxu0 %v2765_v17 }
  0xa5   : > { %v915_v9 = vpop.xlane.xlu0 %914 }
  0xa6   : > { %v923_v10 = vmul.f32 %v3626_v8, %v915_v9  ;;  %v2784_v9 = vld [vmem:[%s3575_s25 + $0x20] sm:$0xf] }
  0xa8   : > { %v3629_v11 = vsub.f32 %v913_v1, %v923_v10  ;;  %v2793_v1 = vor.u32 %v3198_v60, %v2790_v62  ;;  %v3197_v10 = vld [vmem:[%s3575_s25 + $0x28] sm:$0xf0]  ;;  %v1164_v60 = vunpack.c.l.s4 %v3431_v59  ;;  %s4161_s25 = sld [smem:[#allocation16_spill]] (!%p3154_p8) }
  0xa9   : > { %v2785_v13 = vor.u32 %v3197_v10, %v2784_v9 }
  0xaa   : > { %v925_v12 = vmul.f32 %v3629_v11, %v3629_v11  ;;  %1103 = vmatpush.bf16.msra.mxu1 %v2793_v1  ;;  %v3712_v3 = vunpack.c.0.s8 %v1164_v60 }
  0xab   : > { %1117 = vmatpush.bf16.msra.mxu2 %v2785_v13 }
  0xac   : > { %926 = vadd.xlane.f32.xlu0 %v925_v12  ;;  %v2781_v12 = vor.u32 %v3195_v5, %v2778_v7 }
  0xae   : > { %1104 = vmatpush.bf16.msra.mxu1 %v2781_v12  ;;  %s4162_s23 = smov (!%p3154_p8), %s4161_s25 }
  0xaf   : > { %1118 = vmatpush.bf16.msra.mxu2 %v2773_v22 }
  0xb2   : > { %1105 = vmatpush.bf16.msra.mxu1 %v2769_v21 }
 0x11f   : > { %v927_v23 = vpop.xlane.xlu0 %926 }
 0x120   : > { %v928_v24 = vmul.f32 %v927_v23, %v3626_v8 }
 0x122   : > { %v929_v25 = vadd.f32 1e-05, %v928_v24 }
 0x124   : > { %3352 = vrsqrt.f32 %v929_v25  ;;  %vm936_vm2 = vweird.f32 %v929_v25 }
 0x12a   : > { %v3353_v26 = vpop.eup %3352 }
 0x12b   : > { %v931_v27 = vmul.f32 %v3353_v26, %v929_v25  ;;  %vm937_vm1 = vweird.f32 %v3353_v26 }
 0x12c   : > { %vm938_vm3 = vmor %vm936_vm2, %vm937_vm1 }
 0x12d   : > { %v932_v28 = vmul.f32 %v3353_v26, %v931_v27 }
 0x12f   : > { %v933_v29 = vmul.f32 0.5, %v932_v28 }
 0x131   : > { %v934_v30 = vsub.f32 1.5, %v933_v29 }
 0x133   : > { %v935_v31 = vmul.f32 %v3353_v26, %v934_v30 }
 0x135   : > { %v939_v33 = vsel %vm938_vm3, %v3353_v26, %v935_v31 }
 0x136   : > { %v940_v34 = vmul.f32 %v939_v33, %v3629_v11 }
 0x138   : > { %v944_v36 = vmul.f32 %v3344_v32, %v940_v34 }
 0x13a   : > { %v948_v37 = vadd.f32 %v3345_v35, %v944_v36 }
 0x13c   : > { %v949_v38 = vpack.c.bf16 %v948_v37, %v948_v37 }
 0x13e   : > { %1093 = vmatmul.bf16.vlgmr.msra.gmra.mxu0 %v949_v38  ;;  %1106 = vmatmul.bf16.vlgmr.msra.gmra.mxu1 %v949_v38 }
 0x13f   : > { %1119 = vmatmul.bf16.vlgmr.msra.gmra.mxu2 %v949_v38 }
 0x1bb   : > { %v1094_v42 = vpop.f32.mrf.mxu0  ;;  %v1107_v43 = vpop.f32.mrf.mxu1 }
 0x1bc   : > { %v1095_v11 = vadd.f32 %v1094_v42, %v951_v40  ;;  %v1108_v44 = vadd.f32 %v1107_v43, %v952_v41 }
 0x1be   : > { %1256 = vrot.lane.b32.xlu2 %v1108_v44, %s3427_s17  ;;  %1250 = vrot.lane.b32.xlu1 %v1108_v44, %s3428_s13  ;;  %v1261_v63 = vrot.slane %v1108_v44, 4  ;;  %v1137_v1 = vrot.slane %v1095_v11, 4 }
 0x1bf   : > { %1128 = vrot.lane.b32.xlu0 %v1095_v11, %s3429_s14 }
 0x1c2   : > { %v3701_v45 = vpop.f32.mrf.mxu2 }
 0x1c3   : > { %v1096_v46 = vpop.f32.mrf.mxu0  ;;  %v1109_v47 = vpop.f32.mrf.mxu1 }
 0x1c6   : > { %1253 = vrot.lane.b32.xlu1 %v1108_v44, %s3429_s14  ;;  %1125 = vrot.lane.b32.xlu2 %v1095_v11, %s3428_s13 }
 0x1ca   : > { %v1122_v48 = vpop.f32.mrf.mxu2 }
 0x1ce   : > { %1131 = vrot.lane.b32.xlu1 %v1095_v11, %s3427_s17 }
 0x218   : > { %v1257_v49 = vpop.permute.xlu2 %1256 }
 0x219   : > { %v1271_v54 = vrot.slane %v1257_v49, 4 }
 0x220   : > { %v1126_v17 = vpop.permute.xlu2 %1125 }
 0x221   : > { %v1149_v27 = vrot.slane %v1126_v17, 4 }
 0x230   : > { %v1251_v52 = vpop.permute.xlu1 %1250 }
 0x231   : > { %v1273_v53 = vrot.slane %v1251_v52, 4  ;;  %v1129_v57 = vpop.permute.xlu0 %1128  ;;  %v1272_v58 = vsel %vm1135_vm4, %v1271_v54, %v1251_v52 }
 0x232   : > { %v1134_v62 = vrot.slane %v1129_v57, 4  ;;  %v1278_v0 = vperm.slane %v1272_v58, %v3707_v56  ;;  %v1138_v7 = vsel %vm1135_vm4, %v1129_v57, %v1137_v1 }
 0x233   : > { %v1274_v55 = vsel %vm1135_vm4, %v1257_v49, %v1273_v53  ;;  %v1146_v18 = vperm.slane %v1138_v7, %v3707_v56 }
 0x234   : > { %v1282_v61 = vperm.slane %v1274_v55, %v3707_v56  ;;  %v1136_v10 = vsel %vm1135_vm4, %v1134_v62, %v1095_v11  ;;  %v1283_v13 = vrot.slane %v1278_v0, 4 }
 0x235   : > { %v1142_v20 = vperm.slane %v1136_v10, %v3707_v56  ;;  %v1173_v34 = vrot.slane %v1146_v18, 4 }
 0x236   : > { %v1295_v6 = vrot.slane %v1282_v61, 4 }
 0x237   : > { %v1161_v33 = vrot.slane %v1142_v20, 4 }
 0x238   : > { %v1254_v2 = vpop.permute.xlu1 %1253 }
 0x239   : > { %v1259_v4 = vrot.slane %v1254_v2, 4  ;;  %v1262_v5 = vsel %vm1135_vm4, %v1254_v2, %v1261_v63 }
 0x23a   : > { %v1270_v9 = vperm.slane %v1262_v5, %v3707_v56 }
 0x23b   : > { %v1260_v12 = vsel %vm1135_vm4, %v1259_v4, %v1108_v44 }
 0x23c   : > { %v1266_v14 = vperm.slane %v1260_v12, %v3707_v56  ;;  %v1296_v15 = vsel %vm1135_vm4, %v1295_v6, %v1270_v9  ;;  %v1297_v16 = vrot.slane %v1270_v9, 4 }
 0x23d   : > { %v1302_v19 = vperm.slane %v1296_v15, %v3712_v3 }
 0x23e   : > { %v1284_v21 = vsel %vm1135_vm4, %v1283_v13, %v1266_v14  ;;  %v1285_v22 = vrot.slane %v1266_v14, 4  ;;  %v1298_v23 = vsel %vm1135_vm4, %v1282_v61, %v1297_v16 }
 0x23f   : > { %v1290_v24 = vperm.slane %v1284_v21, %v3712_v3  ;;  %v1306_v25 = vperm.slane %v1298_v23, %v3712_v3  ;;  %v1311_v26 = vrot.slane %v1302_v19, 4 }
 0x240   : > { %v1286_v28 = vsel %vm1135_vm4, %v1278_v0, %v1285_v22  ;;  %v1132_v29 = vpop.permute.xlu1 %1131 }
 0x241   : > { %v1294_v30 = vperm.slane %v1286_v28, %v3712_v3  ;;  %v1307_v31 = vrot.slane %v1290_v24, 4  ;;  %v1313_v32 = vrot.slane %v1306_v25, 4  ;;  %v1147_v35 = vrot.slane %v1132_v29, 4 }
 0x242   : > { %v1150_v36 = vsel %vm1135_vm4, %v1132_v29, %v1149_v27  ;;  %v1312_v38 = vsel %vm1135_vm4, 0.0, %v1311_v26 }
 0x243   : > { %v1309_v37 = vrot.slane %v1294_v30, 4  ;;  %v1314_v40 = vsel %vm1135_vm4, 0.0, %v1313_v32  ;;  %v1326_v41 = vsel %vm1135_vm4, %v1313_v32, %v1302_v19  ;;  %v1308_v42 = vsel %vm1135_vm4, 0.0, %v1307_v31 }
 0x244   : > { %v1331_v43 = vrot.slane %v1314_v40, 4  ;;  %v1148_v11 = vsel %vm1135_vm4, %v1147_v35, %v1126_v17  ;;  %v1158_v44 = vperm.slane %v1150_v36, %v3707_v56  ;;  %v1330_v47 = vperm.slane %v1326_v41, %v3707_v56 }
 0x245   : > { %v1310_v46 = vsel %vm1135_vm4, 0.0, %v1309_v37  ;;  %v1154_v48 = vperm.slane %v1148_v11, %v3707_v56  ;;  %v1315_v49 = vsel %vm1135_vm4, %v1309_v37, %v1290_v24 }
 0x246   : > { %v1320_v50 = vrot.slane %v1310_v46, 4  ;;  %v1332_v51 = vsel %vm1135_vm4, %v1331_v43, %v1312_v38  ;;  %v1171_v52 = vrot.slane %v1158_v44, 4  ;;  %v1174_v53 = vsel %vm1135_vm4, %v1158_v44, %v1173_v34 }
 0x247   : > { %v1336_v54 = vperm.slane %v1332_v51, %v3707_v56  ;;  %v1159_v55 = vrot.slane %v1154_v48, 4  ;;  %v1162_v57 = vsel %vm1135_vm4, %v1154_v48, %v1161_v33  ;;  %v1182_v58 = vperm.slane %v1174_v53, %v3712_v3 }
 0x248   : > { %v1170_v59 = vperm.slane %v1162_v57, %v3712_v3  ;;  %v1172_v60 = vsel %vm1135_vm4, %v1171_v52, %v1146_v18  ;;  %v1319_v61 = vperm.slane %v1315_v49, %v3707_v56  ;;  %v1321_v62 = vsel %vm1135_vm4, %v1320_v50, %v1308_v42 }
 0x249   : > { %v1160_v63 = vsel %vm1135_vm4, %v1159_v55, %v1142_v20  ;;  %v1178_v0 = vperm.slane %v1172_v60, %v3712_v3  ;;  %v1189_v1 = vrot.slane %v1182_v58, 4  ;;  %v1325_v2 = vperm.slane %v1321_v62, %v3707_v56 }
 0x24a   : > { %v1166_v4 = vperm.slane %v1160_v63, %v3712_v3  ;;  %v1185_v5 = vrot.slane %v1170_v59, 4  ;;  %v1339_v6 = vrot.slane %v1319_v61, 4  ;;  %v1349_v7 = vrot.slane %v1336_v54, 4 }
 0x24b   : > { %v1187_v9 = vrot.slane %v1178_v0, 4  ;;  %v1190_v10 = vsel %vm1135_vm4, 0.0, %v1189_v1  ;;  %v1202_v12 = vsel %vm1135_vm4, %v1189_v1, %v1178_v0  ;;  %v1337_v13 = vrot.slane %v1325_v2, 4 }
 0x24c   : > { %v1183_v14 = vrot.slane %v1166_v4, 4  ;;  %v1186_v15 = vsel %vm1135_vm4, 0.0, %v1185_v5  ;;  %v1206_v16 = vperm.slane %v1202_v12, %v3707_v56  ;;  %v1207_v17 = vrot.slane %v1190_v10, 4 }
 0x24d   : > { %v1188_v18 = vsel %vm1135_vm4, 0.0, %v1187_v9  ;;  %v1196_v19 = vrot.slane %v1186_v15, 4  ;;  %v1338_v20 = vsel %vm1135_vm4, %v1337_v13, %v1319_v61  ;;  %v1350_v21 = vsel %vm1135_vm4, %v1349_v7, %v1330_v47 }
 0x24e   : > { %v1184_v22 = vsel %vm1135_vm4, 0.0, %v1183_v14  ;;  %v1208_v23 = vsel %vm1135_vm4, %v1207_v17, %v1188_v18  ;;  %v1227_v24 = vrot.slane %v1206_v16, 4  ;;  %v1344_v25 = vperm.slane %v1338_v20, %v3712_v3 }
 0x24f   : > { %v1212_v26 = vperm.slane %v1208_v23, %v3707_v56  ;;  %v1356_v27 = vperm.slane %v1350_v21, %v3712_v3  ;;  %v1340_v28 = vsel %vm1135_vm4, %v1325_v2, %v1339_v6  ;;  %v1351_v29 = vrot.slane %v1330_v47, 4 }
 0x250   : > { %v1348_v30 = vperm.slane %v1340_v28, %v3712_v3  ;;  %v1363_v31 = vrot.slane %v1344_v25, 4  ;;  %v1191_v32 = vsel %vm1135_vm4, %v1185_v5, %v1166_v4  ;;  %v1197_v33 = vsel %vm1135_vm4, %v1196_v19, %v1184_v22 }
 0x251   : > { %v1361_v34 = vrot.slane %v1356_v27, 4  ;;  %v1352_v35 = vsel %vm1135_vm4, %v1336_v54, %v1351_v29  ;;  %v1195_v36 = vperm.slane %v1191_v32, %v3707_v56  ;;  %v1201_v37 = vperm.slane %v1197_v33, %v3707_v56 }
 0x252   : > { %v1360_v38 = vperm.slane %v1352_v35, %v3712_v3  ;;  %v1367_v40 = vrot.slane %v1348_v30, 4  ;;  %v1364_v41 = vsel %vm1135_vm4, %v1356_v27, %v1363_v31  ;;  %v1225_v42 = vrot.slane %v1212_v26, 4 }
 0x253   : > { %v1362_v43 = vsel %vm1135_vm4, %v1361_v34, %v1344_v25  ;;  %v1494_v11 = vpack.c.bf16 %v1364_v41, %v1364_v41  ;;  %v1213_v44 = vrot.slane %v1201_v37, 4  ;;  %v1215_v46 = vrot.slane %v1195_v36, 4 }
 0x254   : > { %v1493_v47 = vpack.c.bf16 %v1362_v43, %v1362_v43  ;;  %v1365_v48 = vrot.slane %v1360_v38, 4  ;;  %v1368_v49 = vsel %vm1135_vm4, %v1360_v38, %v1367_v40  ;;  %v1226_v50 = vsel %vm1135_vm4, %v1225_v42, %v1206_v16 }
 0x255   : > { %v1496_v51 = vpack.c.bf16 %v1368_v49, %v1368_v49  ;;  %v1521_v52 = vsel %vm1497_vm5, %v1494_v11, 0  ;;  %v1214_v53 = vsel %vm1135_vm4, %v1213_v44, %v1195_v36  ;;  %v1232_v54 = vperm.slane %v1226_v50, %v3712_v3 }
 0x256   : > { %v1502_v55 = vsel %vm1497_vm5, %v1493_v47, 0  ;;  %v1220_v57 = vperm.slane %v1214_v53, %v3712_v3  ;;  %v1216_v58 = vsel %vm1135_vm4, %v1201_v37, %v1215_v46  ;;  %v1228_v59 = vsel %vm1135_vm4, %v1212_v26, %v1227_v24 }
 0x257   : > { %1511 = vmatpush.bf16.xpose.msra.mxu3 %v1502_v55  ;;  %v1559_v60 = vsel %vm1497_vm5, %v1496_v51, 0  ;;  %v1237_v61 = vrot.slane %v1232_v54, 4  ;;  %v1224_v62 = vperm.slane %v1216_v58, %v3712_v3  ;;  %v1366_v63 = vsel %vm1135_vm4, %v1365_v48, %v1348_v30 }
 0x258   : > { %1568 = vmatpush.bf16.xpose.msrb.mxu0 %v1559_v60  ;;  %v1236_v1 = vperm.slane %v1228_v59, %v3712_v3  ;;  %v1495_v5 = vpack.c.bf16 %v1366_v63, %v1366_v63  ;;  %v1239_v13 = vrot.slane %v1220_v57, 4  ;;  %v953_v29 = vperm.slane %v3694_v39, 2 }
 0x259   : > { %v1238_v0 = vsel %vm1135_vm4, %v1237_v61, %v1220_v57  ;;  %v1243_v2 = vrot.slane %v1224_v62, 4 }
 0x25a   : > { %v1245_v4 = vmul.f32 0.17677669, %v1238_v0  ;;  %v1540_v12 = vsel %vm1497_vm5, %v1495_v5, 0  ;;  %v1240_v14 = vsel %vm1135_vm4, %v1232_v54, %v1239_v13  ;;  %v1241_v17 = vrot.slane %v1236_v1, 4 }
 0x25b   : > { %v1244_v6 = vsel %vm1135_vm4, %v1236_v1, %v1243_v2  ;;  %v1246_v15 = vmul.f32 0.17677669, %v1240_v14  ;;  %v1121_v31 = vadd.f32 %v3701_v45, %v953_v29 }
 0x25c   : > { %v1489_v7 = vpack.c.bf16 %v1245_v4, %v1245_v4  ;;  %v1248_v9 = vmul.f32 0.17677669, %v1244_v6  ;;  %v1242_v18 = vsel %vm1135_vm4, %v1241_v17, %v1224_v62 }
 0x25d   : > { %v1490_v16 = vpack.c.bf16 %v1246_v15, %v1246_v15  ;;  %v1247_v19 = vmul.f32 0.17677669, %v1242_v18  ;;  %v1381_v62 = vrot.slane %v1121_v31, 4 }
 0x25e   : > { %2858 = vmatmul.msk.bf16.vlgmr.msra.gmra.mxu3 %vm1497_vm5, %v1489_v7  ;;  %v1492_v10 = vpack.c.bf16 %v1248_v9, %v1248_v9 }
 0x25f   : > { %1530 = vmatpush.bf16.xpose.msrb.mxu3 %v1521_v52  ;;  %v1491_v20 = vpack.c.bf16 %v1247_v19, %v1247_v19 }
 0x260   : > { %2861 = vmatmul.msk.bf16.vlgmr.msrb.gmra.mxu0 %vm1497_vm5, %v1492_v10 }
 0x267   : > { %1549 = vmatpush.bf16.xpose.msra.mxu3 %v1540_v12 }
 0x26e   : > { %2859 = vmatmul.msk.bf16.vlgmr.msrb.gmra.mxu3 %vm1497_vm5, %v1490_v16 }
 0x27e   : > { %2860 = vmatmul.msk.bf16.vlgmr.msra.gmra.mxu3 %vm1497_vm5, %v1491_v20 }
 0x2dd   : > { %v1570_v21 = vpop.f32.mrf.mxu0 }
 0x2de   : > { %v1584_v22 = vsel %vm1574_vm6, %v1570_v21, -inf }
 0x2df   : > { %1585 = vmax.xlane.f32.xlu2 %v1584_v22 }
 0x2e1   : > { %v1513_v23 = vpop.f32.mrf.mxu3 }
 0x2e2   : > { %v1575_v25 = vsel %vm1574_vm6, %v1513_v23, -inf }
 0x2e5   : > { %v1572_v24 = vpop.f32.mrf.mxu0 }
 0x2e7   : > { %1576 = vmax.xlane.f32.xlu2 %v1575_v25 }
 0x2e9   : > { %v1515_v26 = vpop.f32.mrf.mxu3 }
 0x2f1   : > { %v1532_v27 = vpop.f32.mrf.mxu3 }
 0x2f2   : > { %v1578_v28 = vsel %vm1574_vm6, %v1532_v27, -inf }
 0x2f3   : > { %1579 = vmax.xlane.f32.xlu0 %v1578_v28 }
 0x2f9   : > { %v1534_v30 = vpop.f32.mrf.mxu3 }
 0x2ff   : > { %1370 = vrot.lane.b32.xlu2 %v1121_v31, %s3428_s13 }
 0x301   : > { %v1551_v32 = vpop.f32.mrf.mxu3 }
 0x302   : > { %v1581_v33 = vsel %vm1574_vm6, %v1551_v32, -inf }
 0x303   : > { %1582 = vmax.xlane.f32.xlu1 %v1581_v33 }
 0x307   : > { %1376 = vrot.lane.b32.xlu0 %v1121_v31, %s3427_s17 }
 0x309   : > { %v1553_v34 = vpop.f32.mrf.mxu3 }
 0x31c   : > { %1373 = vrot.lane.b32.xlu1 %v1121_v31, %s3429_s14 }
 0x352   : > { %v1586_v35 = vpop.xlane.xlu2 %1585 }
 0x353   : > { %v1590_v38 = vsub.f32 %v1570_v21, %v1586_v35 }
 0x355   : > { %v1597_v39 = vmul.f32 1.442695, %v1590_v38 }
 0x35a   : > { %v1577_v36 = vpop.xlane.xlu2 %1576 }
 0x35b   : > { %v1587_v37 = vsub.f32 %v1513_v23, %v1577_v36 }
 0x35d   : > { %v1591_v40 = vmul.f32 1.442695, %v1587_v37 }
 0x35f   : > { %3354 = vpow2.f32 %v1591_v40 }
 0x360   : > { %3356 = vpow2.f32 %v1597_v39 }
 0x362   : > { %v1371_v54 = vpop.permute.xlu2 %1370 }
 0x363   : > { %v1393_v57 = vrot.slane %v1371_v54, 4 }
 0x365   : > { %v3807_v41 = vpop.eup %3354 }
 0x366   : > { %v1599_v45 = vsel %vm1574_vm6, %v3807_v41, 0.0  ;;  %v1580_v42 = vpop.xlane.xlu0 %1579  ;;  %v3811_v44 = vpop.eup %3356 }
 0x367   : > { %1600 = vadd.xlane.f32.xlu2 %v1599_v45  ;;  %v1588_v43 = vsub.f32 %v1532_v27, %v1580_v42  ;;  %v1608_v46 = vsel %vm1574_vm6, %v3811_v44, 0.0 }
 0x369   : > { %v1593_v11 = vmul.f32 1.442695, %v1588_v43 }
 0x36b   : > { %3358 = vpow2.f32 %v1593_v11 }
 0x36f   : > { %1609 = vadd.xlane.f32.xlu2 %v1608_v46 }
 0x371   : > { %v3815_v47 = vpop.eup %3358 }
 0x372   : > { %v1602_v48 = vsel %vm1574_vm6, %v3815_v47, 0.0 }
 0x373   : > { %1603 = vadd.xlane.f32.xlu0 %v1602_v48 }
 0x376   : > { %v1583_v49 = vpop.xlane.xlu1 %1582 }
 0x377   : > { %v1589_v50 = vsub.f32 %v1551_v32, %v1583_v49 }
 0x379   : > { %v1595_v51 = vmul.f32 1.442695, %v1589_v50  ;;  %v1377_v55 = vpop.permute.xlu0 %1376 }
 0x37a   : > { %v1391_v58 = vrot.slane %v1377_v55, 4  ;;  %v1394_v59 = vsel %vm1135_vm4, %v1377_v55, %v1393_v57 }
 0x37b   : > { %3360 = vpow2.f32 %v1595_v51  ;;  %v1402_v61 = vperm.slane %v1394_v59, %v3707_v56 }
 0x37c   : > { %v1392_v60 = vsel %vm1135_vm4, %v1391_v58, %v1371_v54 }
 0x37d   : > { %v1398_v63 = vperm.slane %v1392_v60, %v3707_v56  ;;  %v1415_v4 = vrot.slane %v1402_v61, 4 }
 0x37f   : > { %v1403_v7 = vrot.slane %v1398_v63, 4 }
 0x381   : > { %v3819_v52 = vpop.eup %3360 }
 0x382   : > { %v1605_v53 = vsel %vm1574_vm6, %v3819_v52, 0.0 }
 0x383   : > { %1606 = vadd.xlane.f32.xlu1 %v1605_v53 }
 0x38e   : > { %v1374_v0 = vpop.permute.xlu1 %1373 }
 0x38f   : > { %v1379_v1 = vrot.slane %v1374_v0, 4  ;;  %v1382_v2 = vsel %vm1135_vm4, %v1374_v0, %v1381_v62 }
 0x390   : > { %v1390_v5 = vperm.slane %v1382_v2, %v3707_v56 }
 0x391   : > { %v1380_v6 = vsel %vm1135_vm4, %v1379_v1, %v1121_v31 }
 0x392   : > { %v1386_v9 = vperm.slane %v1380_v6, %v3707_v56  ;;  %v1416_v10 = vsel %vm1135_vm4, %v1415_v4, %v1390_v5  ;;  %v1417_v12 = vrot.slane %v1390_v5, 4 }
 0x393   : > { %v1422_v13 = vperm.slane %v1416_v10, %v3712_v3 }
 0x394   : > { %v1404_v14 = vsel %vm1135_vm4, %v1403_v7, %v1386_v9  ;;  %v1405_v15 = vrot.slane %v1386_v9, 4  ;;  %v1418_v16 = vsel %vm1135_vm4, %v1402_v61, %v1417_v12 }
 0x395   : > { %v1410_v17 = vperm.slane %v1404_v14, %v3712_v3  ;;  %v1426_v18 = vperm.slane %v1418_v16, %v3712_v3  ;;  %v1431_v21 = vrot.slane %v1422_v13, 4 }
 0x396   : > { %v1406_v19 = vsel %vm1135_vm4, %v1398_v63, %v1405_v15 }
 0x397   : > { %v1414_v20 = vperm.slane %v1406_v19, %v3712_v3  ;;  %v1433_v22 = vrot.slane %v1426_v18, 4  ;;  %v1427_v23 = vrot.slane %v1410_v17, 4  ;;  %v1432_v30 = vsel %vm1135_vm4, 0.0, %v1431_v21 }
 0x399   : > { %v1429_v24 = vrot.slane %v1414_v20, 4  ;;  %v1434_v25 = vsel %vm1135_vm4, 0.0, %v1433_v22  ;;  %v1446_v26 = vsel %vm1135_vm4, %v1433_v22, %v1422_v13  ;;  %v1428_v36 = vsel %vm1135_vm4, 0.0, %v1427_v23 }
 0x39a   : > { %v1450_v27 = vperm.slane %v1446_v26, %v3707_v56  ;;  %v1451_v28 = vrot.slane %v1434_v25, 4 }
 0x39b   : > { %v1430_v29 = vsel %vm1135_vm4, 0.0, %v1429_v24  ;;  %v1435_v31 = vsel %vm1135_vm4, %v1429_v24, %v1410_v17 }
 0x39c   : > { %v1440_v32 = vrot.slane %v1430_v29, 4  ;;  %v1452_v33 = vsel %vm1135_vm4, %v1451_v28, %v1432_v30  ;;  %v1471_v34 = vrot.slane %v1450_v27, 4  ;;  %v1439_v35 = vperm.slane %v1435_v31, %v3707_v56 }
 0x39d   : > { %v1456_v37 = vperm.slane %v1452_v33, %v3707_v56 }
 0x39e   : > { %v1441_v38 = vsel %vm1135_vm4, %v1440_v32, %v1428_v36  ;;  %v1459_v40 = vrot.slane %v1439_v35, 4 }
 0x39f   : > { %v1445_v39 = vperm.slane %v1441_v38, %v3707_v56  ;;  %v1472_v45 = vsel %vm1135_vm4, %v1456_v37, %v1471_v34  ;;  %v1469_v42 = vrot.slane %v1456_v37, 4 }
 0x3a0   : > { %v1480_v43 = vperm.slane %v1472_v45, %v3712_v3 }
 0x3a1   : > { %v1460_v11 = vsel %vm1135_vm4, %v1445_v39, %v1459_v40  ;;  %v1457_v46 = vrot.slane %v1445_v39, 4  ;;  %v1470_v48 = vsel %vm1135_vm4, %v1469_v42, %v1450_v27 }
 0x3a2   : > { %v1468_v49 = vperm.slane %v1460_v11, %v3712_v3  ;;  %v1485_v50 = vrot.slane %v1480_v43, 4  ;;  %v1476_v51 = vperm.slane %v1470_v48, %v3712_v3 }
 0x3a3   : > { %v1458_v53 = vsel %vm1135_vm4, %v1457_v46, %v1439_v35 }
 0x3a4   : > { %v1486_v54 = vsel %vm1135_vm4, %v1485_v50, %v1468_v49  ;;  %v1464_v55 = vperm.slane %v1458_v53, %v3712_v3  ;;  %v1481_v57 = vrot.slane %v1476_v51, 4  ;;  %v1487_v58 = vrot.slane %v1468_v49, 4 }
 0x3a5   : > { %v1625_v59 = vpack.c.bf16 %v1486_v54, %v1486_v54 }
 0x3a6   : > { %v1482_v60 = vsel %vm1135_vm4, %v1481_v57, %v1464_v55  ;;  %v1483_v61 = vrot.slane %v1464_v55, 4  ;;  %v1488_v62 = vsel %vm1135_vm4, %v1480_v43, %v1487_v58 }
 0x3a7   : > { %v1670_v63 = vsel %vm1630_vm7, %v1625_v59, 0  ;;  %v1623_v0 = vpack.c.bf16 %v1482_v60, %v1482_v60  ;;  %v1626_v1 = vpack.c.bf16 %v1488_v62, %v1488_v62 }
 0x3a8   : > { %1679 = vmatpush.bf16.msrb.mxu3 %v1670_v63  ;;  %v1484_v2 = vsel %vm1135_vm4, %v1476_v51, %v1483_v61 }
 0x3a9   : > { %v1632_v4 = vsel %vm1630_vm7, %v1623_v0, 0  ;;  %v1689_v5 = vsel %vm1630_vm7, %v1626_v1, 0  ;;  %v1624_v6 = vpack.c.bf16 %v1484_v2, %v1484_v2 }
 0x3aa   : > { %1641 = vmatpush.bf16.msrb.mxu2 %v1632_v4  ;;  %1698 = vmatpush.bf16.msra.mxu0 %v1689_v5 }
 0x3ab   : > { %v1651_v7 = vsel %vm1630_vm7, %v1624_v6, 0 }
 0x3ae   : > { %1660 = vmatpush.bf16.msra.mxu2 %v1651_v7 }
 0x3da   : > { %v1601_v9 = vpop.xlane.xlu2 %1600 }
 0x3db   : > { %3362 = vrcp.f32 %v1601_v9 }
 0x3e1   : > { %v3363_v10 = vpop.eup %3362 }
 0x3e2   : > { %v1615_v12 = vmul.f32 %v3363_v10, %v3807_v41  ;;  %v1610_v13 = vpop.xlane.xlu2 %1609 }
 0x3e3   : > { %3364 = vrcp.f32 %v1610_v13 }
 0x3e4   : > { %v1619_v14 = vpack.c.bf16 %v1615_v12, %v1615_v12 }
 0x3e6   : > { %2862 = vmatmul.msk.bf16.vlgmr.msrb.gmra.mxu2 %vm1574_vm6, %v1619_v14  ;;  %v1604_v15 = vpop.xlane.xlu0 %1603 }
 0x3e7   : > { %3366 = vrcp.f32 %v1604_v15 }
 0x3e9   : > { %v3365_v16 = vpop.eup %3364 }
 0x3ea   : > { %v1618_v17 = vmul.f32 %v3365_v16, %v3811_v44 }
 0x3ec   : > { %v1622_v18 = vpack.c.bf16 %v1618_v17, %v1618_v17 }
 0x3ed   : > { %v3367_v19 = vpop.eup %3366 }
 0x3ee   : > { %2865 = vmatmul.msk.bf16.vlgmr.msra.gmra.mxu0 %vm1574_vm6, %v1622_v18  ;;  %v1616_v20 = vmul.f32 %v3367_v19, %v3815_v47 }
 0x3f0   : > { %v1620_v21 = vpack.c.bf16 %v1616_v20, %v1616_v20 }
 0x3f6   : > { %2863 = vmatmul.msk.bf16.vlgmr.msra.gmra.mxu2 %vm1574_vm6, %v1620_v21  ;;  %v1607_v41 = vpop.xlane.xlu1 %1606 }
 0x3f7   : > { %3368 = vrcp.f32 %v1607_v41 }
 0x3fd   : > { %v3369_v22 = vpop.eup %3368 }
 0x3fe   : > { %v1617_v23 = vmul.f32 %v3369_v22, %v3819_v52 }
 0x400   : > { %v1621_v24 = vpack.c.bf16 %v1617_v23, %v1617_v23 }
 0x402   : > { %2864 = vmatmul.msk.bf16.vlgmr.msrb.gmra.mxu3 %vm1574_vm6, %v1621_v24 }
 0x469   : > { %v1643_v25 = vpop.f32.mrf.mxu2 }
 0x46a   : > { %v1706_v34 = vrot.slane %v1643_v25, 4 }
 0x46b   : > { %v1700_v26 = vpop.f32.mrf.mxu0 }
 0x46c   : > { %v1716_v30 = vrot.slane %v1700_v26, 4 }
 0x471   : > { %v1645_v44 = vpop.f32.mrf.mxu2 }
 0x473   : > { %v1702_v27 = vpop.f32.mrf.mxu0 }
 0x479   : > { %v1662_v28 = vpop.f32.mrf.mxu2 }
 0x47a   : > { %v1718_v29 = vrot.slane %v1662_v28, 4  ;;  %v1717_v32 = vsel %vm1135_vm4, %v1716_v30, %v1662_v28 }
 0x47b   : > { %v1723_v52 = vperm.slane %v1717_v32, %v3707_v56  ;;  %v3221_v32 = vld [vmem:[%s3580_s1 + $0x28] sm:$0xff] }
 0x47c   : > { %v1719_v47 = vsel %vm1135_vm4, %v1700_v26, %v1718_v29 }
 0x47d   : > { %v1727_v33 = vperm.slane %v1719_v47, %v3707_v56  ;;  %v1728_v45 = vrot.slane %v1723_v52, 4 }
 0x47f   : > { %v1740_v38 = vrot.slane %v1727_v33, 4 }
 0x481   : > { %v1664_v31 = vpop.f32.mrf.mxu2 }
 0x482   : > { %v3223_v31 = vld [vmem:[%s3580_s1 + $0x38] sm:$0xff] }
 0x483   : > { %1880 = vmatpush.bf16.msrb.mxu1 %v3223_v31  ;;  %v3240_v31 = vld [vmem:[%s3604_s20 + $0x84] sm:$0xf] }
 0x485   : > { %v1681_v35 = vpop.f32.mrf.mxu3 }
 0x486   : > { %v1704_v36 = vrot.slane %v1681_v35, 4  ;;  %v1707_v37 = vsel %vm1135_vm4, %v1681_v35, %v1706_v34  ;;  %v3219_v34 = vld [vmem:[%s3580_s1 + $0x18] sm:$0xff]  ;;  %v3217_v35 = vld [vmem:[%s3580_s1 + $0x8] sm:$0xff] }
 0x487   : > { %v1715_v40 = vperm.slane %v1707_v37, %v3707_v56 }
 0x488   : > { %v1705_v39 = vsel %vm1135_vm4, %v1704_v36, %v1643_v25  ;;  %v3216_v36 = vld [vmem:[%s3580_s1] sm:$0xff] }
 0x489   : > { %v1711_v42 = vperm.slane %v1705_v39, %v3707_v56  ;;  %v1741_v43 = vsel %vm1135_vm4, %v1740_v38, %v1715_v40  ;;  %v1742_v11 = vrot.slane %v1715_v40, 4 }
 0x48a   : > { %v1747_v46 = vperm.slane %v1741_v43, %v3712_v3 }
 0x48b   : > { %v1729_v48 = vsel %vm1135_vm4, %v1728_v45, %v1711_v42  ;;  %v1730_v49 = vrot.slane %v1711_v42, 4  ;;  %v1743_v50 = vsel %vm1135_vm4, %v1727_v33, %v1742_v11  ;;  %v3220_v33 = vld [vmem:[%s3580_s1 + $0x20] sm:$0xff] }
 0x48c   : > { %v1735_v51 = vperm.slane %v1729_v48, %v3712_v3  ;;  %v1751_v53 = vperm.slane %v1743_v50, %v3712_v3  ;;  %v1756_v58 = vrot.slane %v1747_v46, 4  ;;  %v3346_v11 = vld [vmem:[%s4157_s0] ss:$0 sm:$0xff] }
 0x48d   : > { %v1731_v54 = vsel %vm1135_vm4, %v1723_v52, %v1730_v49  ;;  %v1683_v55 = vpop.f32.mrf.mxu3  ;;  %v3218_v52 = vld [vmem:[%s3580_s1 + $0x10] sm:$0xff]  ;;  %v3380_v48 = vld [vmem:[#allocation2] sm:$0xff] }
 0x48e   : > { %v1739_v57 = vperm.slane %v1731_v54, %v3712_v3  ;;  %v1758_v59 = vrot.slane %v1751_v53, 4  ;;  %v1752_v60 = vrot.slane %v1735_v51, 4  ;;  %v1757_v4 = vsel %vm1135_vm4, 0.0, %v1756_v58  ;;  %v3012_v53 = vld [vmem:[%s3604_s20 + $0xe0] sm:$0xf] }
 0x48f   : > { %v3254_v54 = vld [vmem:[%s3604_s20 + $0xec] sm:$0xf0]  ;;  %v3252_v55 = vld [vmem:[%s3604_s20 + $0xe4] sm:$0xf]  ;;  %v3014_v58 = vld [vmem:[%s3604_s20 + $0xf0] sm:$0xf0] }
 0x490   : > { %v1754_v61 = vrot.slane %v1739_v57, 4  ;;  %v1759_v62 = vsel %vm1135_vm4, 0.0, %v1758_v59  ;;  %v1771_v63 = vsel %vm1135_vm4, %v1758_v59, %v1747_v46  ;;  %v1753_v12 = vsel %vm1135_vm4, 0.0, %v1752_v60  ;;  %v3020_v59 = vld [vmem:[%s3604_s20 + $0xe8] sm:$0xf] }
 0x491   : > { %v1775_v0 = vperm.slane %v1771_v63, %v3707_v56  ;;  %v1776_v1 = vrot.slane %v1759_v62, 4  ;;  %v3013_v57 = vor.u32 %v3254_v54, %v3012_v53  ;;  %v3255_v60 = vld [vmem:[%s3604_s20 + $0xf4] sm:$0xf0]  ;;  %v3253_v63 = vld [vmem:[%s3604_s20 + $0xec] sm:$0xf] }
 0x492   : > { %v1755_v2 = vsel %vm1135_vm4, 0.0, %v1754_v61  ;;  %v1760_v5 = vsel %vm1135_vm4, %v1754_v61, %v1735_v51  ;;  %v3017_v61 = vor.u32 %v3252_v55, %v3014_v58  ;;  %v3021_v62 = vor.u32 %v3255_v60, %v3020_v59  ;;  %v2958_v53 = vld [vmem:[%s3604_s20 + $0x78] sm:$0xf0]  ;;  %v2932_v55 = vld [vmem:[%s3604_s20 + $0x40] sm:$0xf] }
 0x493   : > { %v1777_v6 = vsel %vm1135_vm4, %v1776_v1, %v1757_v4  ;;  %v1764_v7 = vperm.slane %v1760_v5, %v3707_v56  ;;  %v1765_v9 = vrot.slane %v1755_v2, 4  ;;  %v1796_v10 = vrot.slane %v1775_v0, 4  ;;  %2096 = vmatpush.bf16.msrb.mxu2 %v3013_v57  ;;  %v3234_v57 = vld [vmem:[%s3604_s20 + $0x4c] sm:$0xf0]  ;;  %v3232_v58 = vld [vmem:[%s3604_s20 + $0x44] sm:$0xf] }
 0x494   : > { %v1781_v13 = vperm.slane %v1777_v6, %v3707_v56  ;;  %2109 = vmatpush.bf16.msra.mxu3 %v3017_v61  ;;  %2122 = vmatpush.bf16.msrb.mxu0 %v3021_v62  ;;  %v2933_v59 = vor.u32 %v3234_v57, %v2932_v55  ;;  %v2934_v60 = vld [vmem:[%s3604_s20 + $0x50] sm:$0xf0]  ;;  %v2940_v61 = vld [vmem:[%s3604_s20 + $0x48] sm:$0xf]  ;;  %v3235_v62 = vld [vmem:[%s3604_s20 + $0x54] sm:$0xf0] }
 0x495   : > { %v1766_v14 = vsel %vm1135_vm4, %v1765_v9, %v1753_v12  ;;  %v1784_v15 = vrot.slane %v1764_v7, 4  ;;  %v3250_v9 = vld [vmem:[%s3604_s20 + $0xcc] sm:$0xf0]  ;;  %v3276_v55 = vld [vmem:[%s3614_s28 + $0xa0] sm:$0xff] }
 0x496   : > { %v1770_v16 = vperm.slane %v1766_v14, %v3707_v56  ;;  %v1797_v17 = vsel %vm1135_vm4, %v1781_v13, %v1796_v10  ;;  %v1794_v18 = vrot.slane %v1781_v13, 4  ;;  %v3248_v10 = vld [vmem:[%s3604_s20 + $0xc4] sm:$0xf]  ;;  %v2998_v13 = vld [vmem:[%s3604_s20 + $0xd0] sm:$0xf0] }
 0x497   : > { %v1805_v19 = vperm.slane %v1797_v17, %v3712_v3  ;;  %v3004_v14 = vld [vmem:[%s3604_s20 + $0xc8] sm:$0xf]  ;;  %v3284_v57 = vld [vmem:[%s3614_s28 + $0xe0] sm:$0xff] }
 0x498   : > { %v1785_v20 = vsel %vm1135_vm4, %v1770_v16, %v1784_v15  ;;  %v1782_v21 = vrot.slane %v1770_v16, 4  ;;  %v1795_v41 = vsel %vm1135_vm4, %v1794_v18, %v1775_v0  ;;  %v3022_v0 = vld [vmem:[%s3604_s20 + $0xf8] sm:$0xf0]  ;;  %v3251_v15 = vld [vmem:[%s3604_s20 + $0xd4] sm:$0xf0]  ;;  %v3001_v16 = vor.u32 %v3248_v10, %v2998_v13 }
 0x499   : > { %v1793_v22 = vperm.slane %v1785_v20, %v3712_v3  ;;  %v1810_v23 = vrot.slane %v1805_v19, 4  ;;  %v1801_v24 = vperm.slane %v1795_v41, %v3712_v3  ;;  %v3025_v1 = vor.u32 %v3253_v63, %v3022_v0  ;;  %v3249_v18 = vld [vmem:[%s3604_s20 + $0xcc] sm:$0xf]  ;;  %v3246_v41 = vld [vmem:[%s3604_s20 + $0xac] sm:$0xf0] }
 0x49a   : > { %v1783_v25 = vsel %vm1135_vm4, %v1782_v21, %v1764_v7  ;;  %v2996_v7 = vld [vmem:[%s3604_s20 + $0xc0] sm:$0xf]  ;;  %v3005_v17 = vor.u32 %v3251_v15, %v3004_v14  ;;  %2110 = vmatpush.bf16.msra.mxu3 %v3001_v16  ;;  %v2937_v63 = vor.u32 %v3232_v58, %v2934_v60  ;;  %v2941_v0 = vor.u32 %v3235_v62, %v2940_v61  ;;  %v2918_v10 = vld [vmem:[%s3604_s20 + $0x30] sm:$0xf0]  ;;  %v2924_v13 = vld [vmem:[%s3604_s20 + $0x28] sm:$0xf] }
 0x49b   : > { %v1811_v56 = vsel %vm1135_vm4, %v1810_v23, %v1793_v22  ;;  %v1812_v26 = vrot.slane %v1793_v22, 4  ;;  %v1789_v44 = vperm.slane %v1783_v25, %v3712_v3  ;;  %v1806_v27 = vrot.slane %v1801_v24, 4  ;;  %v3222_v3 = vld [vmem:[%s3580_s1 + $0x30] sm:$0xff]  ;;  %v2980_v21 = vld [vmem:[%s3604_s20 + $0xa0] sm:$0xf]  ;;  %v3261_v58 = vld [vmem:[%s3614_s28 + $0x28] sm:$0xff] }
 0x49c   : > { %1819 = vrot.lane.b32.xlu2 %v1811_v56, %s3429_s14  ;;  %1881 = vmatpush.bf16.msrb.mxu1 %v3222_v3  ;;  %v2997_v12 = vor.u32 %v3250_v9, %v2996_v7  ;;  %v3244_v22 = vld [vmem:[%s3604_s20 + $0xa4] sm:$0xf]  ;;  %v2981_v23 = vor.u32 %v3246_v41, %v2980_v21  ;;  %v2988_v25 = vld [vmem:[%s3604_s20 + $0xa8] sm:$0xf]  ;;  %v3247_v56 = vld [vmem:[%s3604_s20 + $0xb4] sm:$0xf0] }
 0x49d   : > { %v1813_v28 = vsel %vm1135_vm4, %v1805_v19, %v1812_v26  ;;  %v1808_v29 = vrot.slane %v1789_v44, 4  ;;  %v1807_v30 = vsel %vm1135_vm4, %v1806_v27, %v1789_v44  ;;  %v3006_v19 = vld [vmem:[%s3604_s20 + $0xd8] sm:$0xf0]  ;;  %2123 = vmatpush.bf16.msrb.mxu0 %v3005_v17  ;;  %v2989_v44 = vor.u32 %v3247_v56, %v2988_v25  ;;  %v3245_v27 = vld [vmem:[%s3604_s20 + $0xac] sm:$0xf]  ;;  %v3260_v62 = vld [vmem:[%s3614_s28 + $0x20] sm:$0xff] }
 0x49e   : > { %1823 = vrot.lane.b32.xlu0 %v1813_v28, %s3428_s13  ;;  %2097 = vmatpush.bf16.msrb.mxu2 %v2997_v12  ;;  %v3009_v20 = vor.u32 %v3249_v18, %v3006_v19  ;;  %v2990_v28 = vld [vmem:[%s3604_s20 + $0xb8] sm:$0xf0]  ;;  %v3230_v7 = vld [vmem:[%s3604_s20 + $0x2c] sm:$0xf0]  ;;  %v3228_v9 = vld [vmem:[%s3604_s20 + $0x24] sm:$0xf] }
 0x49f   : > { %v1809_v47 = vsel %vm1135_vm4, %v1801_v24, %v1808_v29  ;;  %v2982_v24 = vld [vmem:[%s3604_s20 + $0xb0] sm:$0xf0]  ;;  %v2993_v29 = vor.u32 %v3245_v27, %v2990_v28  ;;  %v3231_v14 = vld [vmem:[%s3604_s20 + $0x34] sm:$0xf0]  ;;  %v3229_v15 = vld [vmem:[%s3604_s20 + $0x2c] sm:$0xf]  ;;  %v2921_v16 = vor.u32 %v3228_v9, %v2918_v10 }
 0x4a0   : > { %1815 = vrot.lane.b32.xlu1 %v1809_v47, %s3427_s17  ;;  %1882 = vmatpush.bf16.msrb.mxu1 %v3221_v32  ;;  %v2985_v26 = vor.u32 %v3244_v22, %v2982_v24  ;;  %v3242_v47 = vld [vmem:[%s3604_s20 + $0x8c] sm:$0xf0]  ;;  %v2966_v32 = vld [vmem:[%s3604_s20 + $0x90] sm:$0xf0]  ;;  %v2925_v17 = vor.u32 %v3231_v14, %v2924_v13  ;;  %v2926_v18 = vld [vmem:[%s3604_s20 + $0x38] sm:$0xf0] }
 0x4a1   : > { %2124 = vmatpush.bf16.msrb.mxu0 %v2989_v44  ;;  %v2900_v19 = vld [vmem:[%s3604_s20] sm:$0xf]  ;;  %v2929_v21 = vor.u32 %v3229_v15, %v2926_v18  ;;  %v3224_v41 = vld [vmem:[%s3604_s20 + $0x4] sm:$0xf]  ;;  %v2902_v22 = vld [vmem:[%s3604_s20 + $0x10] sm:$0xf0] }
 0x4a2   : > { %2098 = vmatpush.bf16.msrb.mxu2 %v2981_v23  ;;  %2111 = vmatpush.bf16.msra.mxu3 %v2985_v26  ;;  %v2908_v23 = vld [vmem:[%s3604_s20 + $0x8] sm:$0xf]  ;;  %v3227_v24 = vld [vmem:[%s3604_s20 + $0x14] sm:$0xf0]  ;;  %v3225_v25 = vld [vmem:[%s3604_s20 + $0xc] sm:$0xf]  ;;  %v2905_v27 = vor.u32 %v3224_v41, %v2902_v22 }
 0x4a3   : > { %v2910_v56 = vld [vmem:[%s3604_s20 + $0x18] sm:$0xf0]  ;;  %v2909_v28 = vor.u32 %v3227_v24, %v2908_v23  ;;  %v3258_v9 = vld [vmem:[%s3614_s28 + $0x10] sm:$0xff]  ;;  %v3280_v13 = vld [vmem:[%s3614_s28 + $0xc0] sm:$0xff] }
 0x4a4   : > { %1883 = vmatpush.bf16.msrb.mxu1 %v3220_v33  ;;  %v2972_v33 = vld [vmem:[%s3604_s20 + $0x88] sm:$0xf]  ;;  %v3275_v60 = vld [vmem:[%s3614_s28 + $0x98] sm:$0xff]  ;;  %v3266_v10 = vld [vmem:[%s3614_s28 + $0x50] sm:$0xff] }
 0x4a5   : > { %v3283_v61 = vld [vmem:[%s3614_s28 + $0xd8] sm:$0xff]  ;;  %v847_v14 = vld [vmem:[%s3609_s26] sm:$0xf]  ;;  %v3257_v15 = vld [vmem:[%s3614_s28 + $0x8] sm:$0xff] }
 0x4a6   : > { %v1931_v18 = vperm.slane %v847_v14, 3  ;;  %v1928_v24 = vperm.slane %v847_v14, 0 }
 0x4a8   : > { %1884 = vmatpush.bf16.msrb.mxu1 %v3219_v34  ;;  %v3243_v34 = vld [vmem:[%s3604_s20 + $0x94] sm:$0xf0] }
 0x4ac   : > { %1885 = vmatpush.bf16.msrb.mxu1 %v3218_v52  ;;  %v2969_v52 = vor.u32 %v3240_v31, %v2966_v32  ;;  %v3287_v31 = vld [vmem:[%s3614_s28 + $0xf8] sm:$0xff]  ;;  %v3278_v32 = vld [vmem:[%s3614_s28 + $0xb0] sm:$0xff] }
 0x4ae   : > { %2112 = vmatpush.bf16.msra.mxu3 %v2969_v52 }
 0x4b0   : > { %1886 = vmatpush.bf16.msrb.mxu1 %v3217_v35  ;;  %v2973_v35 = vor.u32 %v3243_v34, %v2972_v33  ;;  %v3286_v33 = vld [vmem:[%s3614_s28 + $0xf0] sm:$0xff] }
 0x4b2   : > { %2125 = vmatpush.bf16.msrb.mxu0 %v2973_v35 }
 0x4b4   : > { %1887 = vmatpush.bf16.msrb.mxu1 %v3216_v36  ;;  %v3241_v36 = vld [vmem:[%s3604_s20 + $0x8c] sm:$0xf] }
 0x4b8   : > { %2135 = vmatpush.bf16.msra.mxu1 %v3025_v1  ;;  %v3233_v1 = vld [vmem:[%s3604_s20 + $0x4c] sm:$0xf] }
 0x4bc   : > { %2136 = vmatpush.bf16.msra.mxu1 %v3009_v20  ;;  %v3226_v20 = vld [vmem:[%s3604_s20 + $0xc] sm:$0xf0] }
 0x4bd   : > { %v2901_v26 = vor.u32 %v3226_v20, %v2900_v19  ;;  %v3256_v19 = vld [vmem:[%s3614_s28] sm:$0xff] }
 0x4be   : > { %v3264_v20 = vld [vmem:[%s3614_s28 + $0x40] sm:$0xff] }
 0x4c0   : > { %2137 = vmatpush.bf16.msra.mxu1 %v2993_v29 }
 0x4f6   : > { %v1820_v38 = vpop.permute.xlu2 %1819 }
 0x510   : > { %v1824_v39 = vpop.permute.xlu0 %1823 }
 0x512   : > { %v1816_v37 = vpop.permute.xlu1 %1815 }
 0x513   : > { %v1826_v40 = vsel %vm1497_vm5, %v1807_v30, %v1816_v37  ;;  %v2964_v30 = vld [vmem:[%s3604_s20 + $0x80] sm:$0xf]  ;;  %v2974_v37 = vld [vmem:[%s3604_s20 + $0x98] sm:$0xf0] }
 0x514   : > { %v1828_v45 = vsel %vm1827_vm8, %v1826_v40, %v1820_v38  ;;  %v2965_v3 = vor.u32 %v3242_v47, %v2964_v30  ;;  %v2977_v38 = vor.u32 %v3241_v36, %v2974_v37  ;;  %v2948_v40 = vld [vmem:[%s3604_s20 + $0x60] sm:$0xf]  ;;  %v2913_v30 = vor.u32 %v3225_v25, %v2910_v56  ;;  %v3279_v47 = vld [vmem:[%s3614_s28 + $0xb8] sm:$0xff] }
 0x515   : > { %v1830_v42 = vsel %vm1829_vm9, %v1828_v45, %v1824_v39  ;;  %v3238_v39 = vld [vmem:[%s3604_s20 + $0x6c] sm:$0xf0]  ;;  %v3236_v45 = vld [vmem:[%s3604_s20 + $0x64] sm:$0xf]  ;;  %v1929_v25 = vperm.slane %v847_v14, 1 }
 0x516   : > { %v1831_v43 = vpack.c.bf16 %v1830_v42, %v1830_v42  ;;  %2099 = vmatpush.bf16.msrb.mxu2 %v2965_v3  ;;  %2138 = vmatpush.bf16.msra.mxu1 %v2977_v38  ;;  %v2949_v42 = vor.u32 %v3238_v39, %v2948_v40  ;;  %v3347_v40 = vld [vmem:[%s4158_s29] ss:$0 sm:$0xff] }
 0x518   : > { %1888 = vmatmul.bf16.vlgmr.msrb.gmra.mxu1 %v1831_v43  ;;  %v2950_v43 = vld [vmem:[%s3604_s20 + $0x70] sm:$0xf0] }
 0x51a   : > { %2100 = vmatpush.bf16.msrb.mxu2 %v2949_v42  ;;  %v3348_v42 = vld [vmem:[%s4159_s3] ss:$0 sm:$0xff] }
 0x51e   : > { %2101 = vmatpush.bf16.msrb.mxu2 %v2933_v59  ;;  %v3269_v59 = vld [vmem:[%s3614_s28 + $0x68] sm:$0xff] }
 0x595   : > { %v1889_v46 = vpop.f32.mrf.mxu1 }
 0x596   : > { %v1893_v49 = vadd.f32 %v3380_v48, %v1889_v46  ;;  %v3239_v46 = vld [vmem:[%s3604_s20 + $0x74] sm:$0xf0]  ;;  %v2953_v48 = vor.u32 %v3236_v45, %v2950_v43 }
 0x598   : > { %v3932_v50 = vadd.f32 %v3346_v11, %v1893_v49  ;;  %v2956_v11 = vld [vmem:[%s3604_s20 + $0x68] sm:$0xf]  ;;  %2113 = vmatpush.bf16.msra.mxu3 %v2953_v48  ;;  %v3263_v48 = vld [vmem:[%s3614_s28 + $0x38] sm:$0xff] }
 0x599   : > { %v2957_v49 = vor.u32 %v3239_v46, %v2956_v11 }
 0x59a   : > { %1898 = vadd.xlane.f32.xlu1 %v3932_v50 }
 0x59b   : > { %2126 = vmatpush.bf16.msrb.mxu0 %v2957_v49  ;;  %v3271_v49 = vld [vmem:[%s3614_s28 + $0x78] sm:$0xff] }
 0x59c   : > { %2114 = vmatpush.bf16.msra.mxu3 %v2937_v63  ;;  %v3268_v63 = vld [vmem:[%s3614_s28 + $0x60] sm:$0xff] }
 0x59d   : > { %v1891_v51 = vpop.f32.mrf.mxu1 }
 0x59e   : > { %v3237_v51 = vld [vmem:[%s3604_s20 + $0x6c] sm:$0xf] }
 0x59f   : > { %v2961_v54 = vor.u32 %v3237_v51, %v2958_v53  ;;  %2127 = vmatpush.bf16.msrb.mxu0 %v2941_v0  ;;  %v3285_v51 = vld [vmem:[%s3614_s28 + $0xe8] sm:$0xff]  ;;  %v3262_v53 = vld [vmem:[%s3614_s28 + $0x30] sm:$0xff] }
 0x5a0   : > { %2115 = vmatpush.bf16.msra.mxu3 %v2921_v16  ;;  %v3274_v0 = vld [vmem:[%s3614_s28 + $0x90] sm:$0xff]  ;;  %v3265_v16 = vld [vmem:[%s3614_s28 + $0x48] sm:$0xff] }
 0x5a1   : > { %2139 = vmatpush.bf16.msra.mxu1 %v2961_v54  ;;  %v3270_v54 = vld [vmem:[%s3614_s28 + $0x70] sm:$0xff] }
 0x5a3   : > { %2128 = vmatpush.bf16.msrb.mxu0 %v2925_v17  ;;  %v1930_v17 = vperm.slane %v847_v14, 2 }
 0x5a4   : > { %2116 = vmatpush.bf16.msra.mxu3 %v2905_v27 }
 0x5a7   : > { %2129 = vmatpush.bf16.msrb.mxu0 %v2909_v28 }
 0x5a8   : > { %2393 = vmatpush.bf16.msrb.mxu3 %v3271_v49 }
 0x5ab   : > { %2406 = vmatpush.bf16.msra.mxu0 %v3279_v47 }
 0x5ac   : > { %2394 = vmatpush.bf16.msrb.mxu3 %v3270_v54 }
 0x5af   : > { %2407 = vmatpush.bf16.msra.mxu0 %v3278_v32 }
 0x5b0   : > { %2395 = vmatpush.bf16.msrb.mxu3 %v3269_v59 }
 0x5b4   : > { %2396 = vmatpush.bf16.msrb.mxu3 %v3268_v63 }
 0x60d   : > { %v1899_v2 = vpop.xlane.xlu1 %1898 }
 0x60e   : > { %v1900_v4 = vmul.f32 %v1899_v2, %v3626_v8  ;;  %v2942_v2 = vld [vmem:[%s3604_s20 + $0x58] sm:$0xf0] }
 0x610   : > { %v3945_v5 = vsub.f32 %v3932_v50, %v1900_v4  ;;  %v2916_v4 = vld [vmem:[%s3604_s20 + $0x20] sm:$0xf] }
 0x611   : > { %v2917_v12 = vor.u32 %v3230_v7, %v2916_v4  ;;  %v3267_v4 = vld [vmem:[%s3614_s28 + $0x58] sm:$0xff]  ;;  %v3281_v7 = vld [vmem:[%s3614_s28 + $0xc8] sm:$0xff] }
 0x612   : > { %v1902_v6 = vmul.f32 %v3945_v5, %v3945_v5  ;;  %2397 = vmatpush.bf16.msrb.mxu3 %v3267_v4 }
 0x613   : > { %2102 = vmatpush.bf16.msrb.mxu2 %v2917_v12  ;;  %v3272_v12 = vld [vmem:[%s3614_s28 + $0x80] sm:$0xff] }
 0x614   : > { %1903 = vadd.xlane.f32.xlu0 %v1902_v6  ;;  %v2945_v6 = vor.u32 %v3233_v1, %v2942_v2  ;;  %v3282_v1 = vld [vmem:[%s3614_s28 + $0xd0] sm:$0xff]  ;;  %v3259_v2 = vld [vmem:[%s3614_s28 + $0x18] sm:$0xff] }
 0x616   : > { %2140 = vmatpush.bf16.msra.mxu1 %v2945_v6  ;;  %v3273_v6 = vld [vmem:[%s3614_s28 + $0x88] sm:$0xff]  ;;  %2398 = vmatpush.bf16.msrb.mxu3 %v3266_v10 }
 0x617   : > { %2103 = vmatpush.bf16.msrb.mxu2 %v2901_v26 }
 0x61a   : > { %2141 = vmatpush.bf16.msra.mxu1 %v2929_v21  ;;  %2399 = vmatpush.bf16.msrb.mxu3 %v3265_v16 }
 0x61b   : > { %2380 = vmatpush.bf16.msra.mxu2 %v3263_v48 }
 0x61e   : > { %2142 = vmatpush.bf16.msra.mxu1 %v2913_v30  ;;  %2400 = vmatpush.bf16.msrb.mxu3 %v3264_v20 }
 0x61f   : > { %2381 = vmatpush.bf16.msra.mxu2 %v3262_v53 }
 0x622   : > { %2419 = vmatpush.bf16.msrb.mxu1 %v3287_v31 }
 0x623   : > { %2382 = vmatpush.bf16.msra.mxu2 %v3261_v58 }
 0x626   : > { %2420 = vmatpush.bf16.msrb.mxu1 %v3286_v33 }
 0x627   : > { %2383 = vmatpush.bf16.msra.mxu2 %v3260_v62 }
 0x62a   : > { %2421 = vmatpush.bf16.msrb.mxu1 %v3285_v51 }
 0x62b   : > { %2384 = vmatpush.bf16.msra.mxu2 %v3259_v2 }
 0x62e   : > { %2422 = vmatpush.bf16.msrb.mxu1 %v3284_v57 }
 0x62f   : > { %2385 = vmatpush.bf16.msra.mxu2 %v3258_v9 }
 0x632   : > { %2423 = vmatpush.bf16.msrb.mxu1 %v3283_v61 }
 0x633   : > { %2386 = vmatpush.bf16.msra.mxu2 %v3257_v15 }
 0x636   : > { %2424 = vmatpush.bf16.msrb.mxu1 %v3282_v1 }
 0x637   : > { %2387 = vmatpush.bf16.msra.mxu2 %v3256_v19 }
 0x63a   : > { %2425 = vmatpush.bf16.msrb.mxu1 %v3281_v7 }
 0x63e   : > { %2426 = vmatpush.bf16.msrb.mxu1 %v3280_v13 }
 0x687   : > { %v1904_v44 = vpop.xlane.xlu0 %1903 }
 0x688   : > { %v1905_v29 = vmul.f32 %v1904_v44, %v3626_v8 }
 0x68a   : > { %v1906_v3 = vadd.f32 1e-05, %v1905_v29 }
 0x68c   : > { %3370 = vrsqrt.f32 %v1906_v3  ;;  %vm1913_vm11 = vweird.f32 %v1906_v3 }
 0x692   : > { %v3371_v34 = vpop.eup %3370 }
 0x693   : > { %v1908_v52 = vmul.f32 %v3371_v34, %v1906_v3  ;;  %vm1914_vm10 = vweird.f32 %v3371_v34 }
 0x694   : > { %vm1915_vm12 = vmor %vm1913_vm11, %vm1914_vm10 }
 0x695   : > { %v1909_v35 = vmul.f32 %v3371_v34, %v1908_v52 }
 0x697   : > { %v1910_v36 = vmul.f32 0.5, %v1909_v35 }
 0x699   : > { %v1911_v37 = vsub.f32 1.5, %v1910_v36 }
 0x69b   : > { %v1912_v38 = vmul.f32 %v3371_v34, %v1911_v37 }
 0x69d   : > { %v1916_v39 = vsel %vm1915_vm12, %v3371_v34, %v1912_v38 }
 0x69e   : > { %v1917_v45 = vmul.f32 %v1916_v39, %v3945_v5  ;;  %v3277_v5 = vld [vmem:[%s3614_s28 + $0xa8] sm:$0xff]  ;;  %s4163_s28 = sld [smem:[#allocation14_spill]] (!%p3154_p8) }
 0x69f   : > { %2408 = vmatpush.bf16.msra.mxu0 %v3277_v5 }
 0x6a0   : > { %v1921_v43 = vmul.f32 %v3347_v40, %v1917_v45 }
 0x6a2   : > { %v1925_v11 = vadd.f32 %v3348_v42, %v1921_v43 }
 0x6a3   : > { %2409 = vmatpush.bf16.msra.mxu0 %v3276_v55 }
 0x6a4   : > { %v1926_v46 = vpack.c.bf16 %v1925_v11, %v1925_v11 }
 0x6a6   : > { %2104 = vmatmul.bf16.vlgmr.msrb.gmra.mxu2 %v1926_v46  ;;  %2117 = vmatmul.bf16.vlgmr.msra.gmra.mxu3 %v1926_v46 }
 0x6a7   : > { %2130 = vmatmul.bf16.vlgmr.msrb.gmra.mxu0 %v1926_v46  ;;  %2143 = vmatmul.bf16.vlgmr.msra.gmra.mxu1 %v1926_v46 }
 0x6a8   : > { %2410 = vmatpush.bf16.msra.mxu0 %v3275_v60 }
 0x6ac   : > { %2411 = vmatpush.bf16.msra.mxu0 %v3274_v0 }
 0x6b0   : > { %2412 = vmatpush.bf16.msra.mxu0 %v3273_v6 }
 0x6b4   : > { %2413 = vmatpush.bf16.msra.mxu0 %v3272_v12 }
 0x724   : > { %v2131_v21 = vpop.f32.mrf.mxu0  ;;  %v2144_v41 = vpop.f32.mrf.mxu1 }
 0x725   : > { %v2132_v22 = vadd.f32 %v2131_v21, %v1930_v17  ;;  %v2145_v23 = vadd.f32 %v2144_v41, %v1931_v18  ;;  %v3349_v41 = vld [vmem:[%s749_s24] ss:$0 sm:$0xff]  ;;  %s4165_s24 = sld [smem:[#allocation17_spill]] (!%p3154_p8) }
 0x727   : > { %v2154_v56 = vmul.f32 0.044715, %v2132_v22  ;;  %v2155_v26 = vmul.f32 0.044715, %v2145_v23  ;;  %v2150_v54 = vmul.f32 0.5, %v2132_v22  ;;  %v2151_v57 = vmul.f32 0.5, %v2145_v23 }
 0x729   : > { %v2158_v44 = vmul.f32 %v2154_v56, %v2132_v22  ;;  %v2159_v27 = vmul.f32 %v2155_v26, %v2145_v23  ;;  %v2105_v28 = vpop.f32.mrf.mxu2  ;;  %v2118_v29 = vpop.f32.mrf.mxu3 }
 0x72a   : > { %v2106_v30 = vadd.f32 %v2105_v28, %v1928_v24  ;;  %v2119_v47 = vadd.f32 %v2118_v29, %v1929_v25 }
 0x72b   : > { %v2162_v31 = vmul.f32 %v2158_v44, %v2132_v22  ;;  %v2163_v3 = vmul.f32 %v2159_v27, %v2145_v23 }
 0x72c   : > { %v2152_v32 = vmul.f32 0.044715, %v2106_v30  ;;  %v2153_v33 = vmul.f32 0.044715, %v2119_v47  ;;  %v2133_v34 = vpop.f32.mrf.mxu0  ;;  %v2146_v52 = vpop.f32.mrf.mxu1  ;;  %v2148_v1 = vmul.f32 0.5, %v2106_v30  ;;  %v2149_v4 = vmul.f32 0.5, %v2119_v47 }
 0x72d   : > { %v2166_v35 = vadd.f32 %v2162_v31, %v2132_v22  ;;  %v2167_v36 = vadd.f32 %v2163_v3, %v2145_v23 }
 0x72e   : > { %v2156_v37 = vmul.f32 %v2152_v32, %v2106_v30  ;;  %v2157_v38 = vmul.f32 %v2153_v33, %v2119_v47 }
 0x72f   : > { %v2170_v40 = vmul.f32 0.7978846, %v2166_v35  ;;  %v2171_v39 = vmul.f32 0.7978846, %v2167_v36 }
 0x730   : > { %v2160_v45 = vmul.f32 %v2156_v37, %v2106_v30  ;;  %v2161_v42 = vmul.f32 %v2157_v38, %v2119_v47 }
 0x731   : > { %v2107_v43 = vpop.f32.mrf.mxu2  ;;  %v2120_v11 = vpop.f32.mrf.mxu3  ;;  %3372 = vtanh.f32 %v2170_v40 }
 0x732   : > { %3374 = vtanh.f32 %v2171_v39  ;;  %v2164_v46 = vadd.f32 %v2160_v45, %v2106_v30  ;;  %v2165_v48 = vadd.f32 %v2161_v42, %v2119_v47 }
 0x734   : > { %v2168_v49 = vmul.f32 0.7978846, %v2164_v46  ;;  %v2169_v5 = vmul.f32 0.7978846, %v2165_v48 }
 0x736   : > { %3376 = vtanh.f32 %v2168_v49 }
 0x737   : > { %v3373_v51 = vpop.eup %3372  ;;  %3378 = vtanh.f32 %v2169_v5 }
 0x738   : > { %v3375_v53 = vpop.eup %3374  ;;  %v2178_v55 = vadd.f32 1.0, %v3373_v51 }
 0x739   : > { %v2179_v58 = vadd.f32 1.0, %v3375_v53 }
 0x73a   : > { %v2182_v59 = vmul.f32 %v2178_v55, %v2150_v54 }
 0x73b   : > { %v2183_v60 = vmul.f32 %v2179_v58, %v2151_v57 }
 0x73c   : > { %v3377_v61 = vpop.eup %3376  ;;  %v2186_v62 = vpack.c.bf16 %v2182_v59, %v2182_v59 }
 0x73d   : > { %v3379_v63 = vpop.eup %3378  ;;  %v2187_v0 = vpack.c.bf16 %v2183_v60, %v2183_v60  ;;  %v2176_v2 = vadd.f32 1.0, %v3377_v61 }
 0x73e   : > { %2414 = vmatmul.bf16.vlgmr.msra.gmra.mxu0 %v2186_v62  ;;  %v2177_v6 = vadd.f32 1.0, %v3379_v63 }
 0x73f   : > { %2427 = vmatmul.bf16.vlgmr.msrb.gmra.mxu1 %v2187_v0  ;;  %v2180_v7 = vmul.f32 %v2176_v2, %v2148_v1 }
 0x740   : > { %v2181_v9 = vmul.f32 %v2177_v6, %v2149_v4 }
 0x741   : > { %v2184_v10 = vpack.c.bf16 %v2180_v7, %v2180_v7 }
 0x742   : > { %v2185_v12 = vpack.c.bf16 %v2181_v9, %v2181_v9 }
 0x743   : > { %2388 = vmatmul.bf16.vlgmr.msra.gmra.mxu2 %v2184_v10 }
 0x744   : > { %2401 = vmatmul.bf16.vlgmr.msrb.gmra.mxu3 %v2185_v12 }
 0x7bb   : > { %v2415_v13 = vpop.f32.mrf.mxu0 }
 0x7bc   : > { %v2428_v14 = vpop.f32.mrf.mxu1 }
 0x7c3   : > { %v2417_v15 = vpop.f32.mrf.mxu0 }
 0x7c4   : > { %v2430_v16 = vpop.f32.mrf.mxu1 }
 0x7c6   : > { %v2389_v17 = vpop.f32.mrf.mxu2 }
 0x7c7   : > { %v2402_v18 = vpop.f32.mrf.mxu3 }
 0x7c8   : > { %v2403_v19 = vadd.f32 %v2402_v18, %v2389_v17 }
 0x7ca   : > { %v2416_v20 = vadd.f32 %v2415_v13, %v2403_v19 }
 0x7cc   : > { %v2429_v21 = vadd.f32 %v2428_v14, %v2416_v20 }
 0x7ce   : > { %v2432_v22 = vadd.f32 %v2429_v21, %v3932_v50  ;;  %v2391_v23 = vpop.f32.mrf.mxu2  ;;  %2441 = sbr.rel (%p3154_p8) target bundleno = 2412 (0x96c), region = 96 }
 0x7cf   : > { %v2404_v24 = vpop.f32.mrf.mxu3 }
 0x7d0   : > { %v2436_v25 = vadd.f32 %v3349_v41, %v2432_v22 }
 0x7d2   : > { %2437 = vst [vmem:[#allocation2] sm:$0xff] %v2436_v25 }
 0x7d3   : > { %v3295_v26 = vld [vmem:[%s4161_s25 + $0x38] sm:$0xff]  ;;  %v3294_v50 = vld [vmem:[%s4162_s23 + $0x30] sm:$0xff]  ;;  %v3293_v30 = vld [vmem:[%s4162_s23 + $0x28] sm:$0xff] }
 0x7d4   : > { %2542 = vmatpush.bf16.msra.mxu0 %v3295_v26  ;;  %v3292_v47 = vld [vmem:[%s4162_s23 + $0x20] sm:$0xff]  ;;  %v3291_v31 = vld [vmem:[%s4162_s23 + $0x18] sm:$0xff]  ;;  %v3290_v3 = vld [vmem:[%s4162_s23 + $0x10] sm:$0xff] }
 0x7d5   : > { %v3289_v32 = vld [vmem:[%s4162_s23 + $0x8] sm:$0xff]  ;;  %v3288_v33 = vld [vmem:[%s4162_s23] sm:$0xff] }
 0x7d6   : > { %v3381_v42 = vld [vmem:[%s4163_s28] ss:$0 sm:$0xff] }
 0x7d7   : > { %v3383_v5 = vld [vmem:[%s4165_s24] ss:$0 sm:$0xff] }
 0x7d8   : > { %2543 = vmatpush.bf16.msra.mxu0 %v3294_v50 }
 0x7d9   : > { %v2442_v56 = vld [vmem:[#allocation2] sm:$0xff] }
 0x7da   : > { %2445 = vadd.xlane.f32.xlu0 %v2442_v56 }
 0x7dc   : > { %2544 = vmatpush.bf16.msra.mxu0 %v3293_v30 }
 0x7e0   : > { %2545 = vmatpush.bf16.msra.mxu0 %v3292_v47 }
 0x7e4   : > { %2546 = vmatpush.bf16.msra.mxu0 %v3291_v31 }
 0x7e8   : > { %2547 = vmatpush.bf16.msra.mxu0 %v3290_v3 }
 0x7ec   : > { %2548 = vmatpush.bf16.msra.mxu0 %v3289_v32 }
 0x7f0   : > { %2549 = vmatpush.bf16.msra.mxu0 %v3288_v33 }
 0x84d   : > { %v2446_v44 = vpop.xlane.xlu0 %2445 }
 0x84e   : > { %v2447_v27 = vmul.f32 %v2446_v44, %v3626_v8 }
 0x850   : > { %v2448_v28 = vsub.f32 %v2442_v56, %v2447_v27 }
 0x852   : > { %v2449_v29 = vmul.f32 %v2448_v28, %v2448_v28 }
 0x854   : > { %2450 = vadd.xlane.f32.xlu0 %v2449_v29 }
 0x8c7   : > { %v2451_v34 = vpop.xlane.xlu0 %2450 }
 0x8c8   : > { %v2452_v52 = vmul.f32 %v2451_v34, %v3626_v8  ;;  %v3382_v8 = vld [vmem:[%s4164_s21] ss:$0 sm:$0xff] }
 0x8ca   : > { %v2453_v35 = vadd.f32 1e-05, %v2452_v52 }
 0x8cc   : > { %3384 = vrsqrt.f32 %v2453_v35  ;;  %vm2460_vm14 = vweird.f32 %v2453_v35 }
 0x8d2   : > { %v3385_v36 = vpop.eup %3384 }
 0x8d3   : > { %v2455_v37 = vmul.f32 %v3385_v36, %v2453_v35  ;;  %vm2461_vm13 = vweird.f32 %v3385_v36 }
 0x8d4   : > { %vm2462_vm15 = vmor %vm2460_vm14, %vm2461_vm13 }
 0x8d5   : > { %v2456_v38 = vmul.f32 %v3385_v36, %v2455_v37 }
 0x8d7   : > { %v2457_v40 = vmul.f32 0.5, %v2456_v38 }
 0x8d9   : > { %v2458_v39 = vsub.f32 1.5, %v2457_v40 }
 0x8db   : > { %v2459_v45 = vmul.f32 %v3385_v36, %v2458_v39 }
 0x8dd   : > { %v2463_v43 = vsel %vm2462_vm15, %v3385_v36, %v2459_v45 }
 0x8de   : > { %v2464_v11 = vmul.f32 %v2463_v43, %v2448_v28 }
 0x8e0   : > { %v2468_v46 = vmul.f32 %v3381_v42, %v2464_v11 }
 0x8e2   : > { %v2472_v48 = vadd.f32 %v3382_v8, %v2468_v46 }
 0x8e4   : > { %v2473_v49 = vpack.c.bf16 %v2472_v48, %v2472_v48 }
 0x8e6   : > { %2550 = vmatmul.bf16.vlgmr.msra.gmra.mxu0 %v2473_v49 }
 0x963   : > { %v2551_v51 = vpop.f32.mrf.mxu0 }
 0x964   : > { %v2552_v53 = vadd.f32 %v3383_v5, %v2551_v51 }
 0x966   : > { %2555 = vst [vmem:[%s3623_s5] sm:$0xff] %v2552_v53 }
 0x96b   : > { %v2553_v54 = vpop.f32.mrf.mxu0 }
 0x96c PF: > { %s4166_s15 = sld [smem:[#allocation6_spill]] }
 0x96d   : > { %s4167_s24 = sld [smem:[#allocation4_spill]] }
 0x96e   : > { %s4168_s25 = sld [smem:[#allocation5_spill]] }
 0x96f   : > { %s4169_s26 = sld [smem:[#allocation7_spill]] }
 0x970   : > { %s4170_s27 = sld [smem:[#allocation8_spill]] }
 0x972   : > { %s27_s28 = sadd.s32 1, %s4166_s15  }
 0x973   : > { %p24_p9 = scmp.ge.s32.totalorder %s27_s28, 6  }
 0x975   :  { %26 = sbr.rel (!%p24_p9) target bundleno = 11 (0xb), region = 162 }

// kernel: forward.5
= control target key start
LH: loop header
LB: loop body
LE: loop exit
PB: predicated region body
PF: predicated region fallthrough
CT: control target
= control target key end

     0   :  { %s8839_s0 = inlined_call_operand.vmem [shape: f32[2,32,128], index: 0, kind: input, shape index: {}]   ;;  %s8840_s1 = inlined_call_operand.vmem [shape: f32[2,1,128], index: 1, kind: input, shape index: {}]   ;;  %s8841_s2 = inlined_call_operand.vmem [shape: f32[2,1,128], index: 2, kind: input, shape index: {}]   ;;  %s8842_s3 = inlined_call_operand.vmem [shape: bf16[2,128,384], index: 3, kind: input, shape index: {}]   ;;  %s8843_s4 = inlined_call_operand.vmem [shape: f32[2,1,384], index: 4, kind: input, shape index: {}]   ;;  %s8844_s5 = inlined_call_operand.vmem [shape: bf16[2,128,128], index: 5, kind: input, shape index: {}]   ;;  %s8845_s6 = inlined_call_operand.vmem [shape: f32[2,1,128], index: 6, kind: input, shape index: {}]   ;;  %s8846_s7 = inlined_call_operand.vmem [shape: f32[2,1,128], index: 7, kind: input, shape index: {}]   ;;  %s8847_s8 = inlined_call_operand.vmem [shape: f32[2,1,128], index: 8, kind: input, shape index: {}]   ;;  %s8848_s9 = inlined_call_operand.vmem [shape: bf16[2,128,512], index: 9, kind: input, shape index: {}]   ;;  %s8849_s10 = inlined_call_operand.vmem [shape: f32[2,1,512], index: 10, kind: input, shape index: {}]   ;;  %s8850_s11 = inlined_call_operand.vmem [shape: bf16[2,512,128], index: 11, kind: input, shape index: {}]   ;;  %s8851_s12 = inlined_call_operand.vmem [shape: f32[2,1,128], index: 12, kind: input, shape index: {}]   ;;  %s8852_s13 = inlined_call_operand.vmem [shape: f32[1,128], index: 13, kind: input, shape index: {}]   ;;  %s8853_s14 = inlined_call_operand.vmem [shape: f32[1,128], index: 14, kind: input, shape index: {}]   ;;  %s8854_s15 = inlined_call_operand.vmem [shape: bf16[128,384], index: 15, kind: input, shape index: {}]   ;;  %s8855_s16 = inlined_call_operand.vmem [shape: f32[1,384], index: 16, kind: input, shape index: {}]   ;;  %s8856_s17 = inlined_call_operand.vmem [shape: f32[2,32,384], index: 17, kind: input, shape index: {}]   ;;  %s8857_s18 = inlined_call_operand.vmem [shape: f32[2,32,1], index: 18, kind: input, shape index: {}]   ;;  %s8858_s19 = inlined_call_operand.hbm [shape: f32[2,32,384], index: 19, kind: output, shape index: {0}]   ;;  %s8859_s20 = inlined_call_operand.vmem [shape: f32[2,32,1], index: 20, kind: output, shape index: {1}]  }
   0x1   :  { %8883 = sst [smem:[#allocation23_spill]] %s8839_s0 }
   0x2   :  { %8884 = sst [smem:[#allocation24_spill]] %s8840_s1 }
   0x3   :  { %8885 = sst [smem:[#allocation25_spill]] %s8841_s2 }
   0x4   :  { %8886 = sst [smem:[#allocation26_spill]] %s8842_s3 }
   0x5   :  { %8887 = sst [smem:[#allocation27_spill]] %s8843_s4 }
   0x6   :  { %8888 = sst [smem:[#allocation28_spill]] %s8844_s5 }
   0x7   :  { %8889 = sst [smem:[#allocation29_spill]] %s8852_s13 }
   0x8   :  { %8890 = sst [smem:[#allocation30_spill]] %s8853_s14 }
   0x9   :  { %8891 = sst [smem:[#allocation31_spill]] %s8854_s15 }
   0xa   :  { %8892 = sst [smem:[#allocation32_spill]] %s8855_s16 }
   0xb   :  { %8893 = sst [smem:[#allocation33_spill]] %s8856_s17 }
   0xc   :  { %8894 = sst [smem:[#allocation34_spill]] %s8857_s18 }
   0xd   :  { %8895 = sst [smem:[#allocation35_spill]] %s8858_s19 }
   0xe   :  { %8896 = sst [smem:[#allocation36_spill]] %s8859_s20 }
   0xf   :  { %26 = vsyncpa [#allocation4], 0 }
  0x10   :  { %28 = vsyncpa [#allocation4 + $0x1], 0  ;;  %s6670_s1 = smov 0   ;;  %s6672_s22 = smov 0  }
  0x11   :  { %s6674_s23 = smov 0   ;;  %s6676_s24 = smov 0  }
  0x12   :  { %s6678_s2 = smov 0   ;;  %s6680_s25 = smov 0  }
  0x13   :  { %s6682_s3 = smov 0   ;;  %s6684_s26 = smov 0  }
  0x14 LB: > { %8897 = sst [smem:[#allocation6_spill]] %s6526_s1  ;;  %s5494_s27 = sadd.s32 4294967295, %s6554_s26   ;;  %s6554_s26 = sphi %s6684_s26, %s34_s26   ;;  %s6550_s3 = sphi %s6682_s3, %s8971_s3   ;;  %s6546_s25 = sphi %s6680_s25, %s8970_s25   ;;  %s6542_s2 = sphi %s6678_s2, %s8969_s2   ;;  %s6538_s24 = sphi %s6676_s24, %s8968_s24   ;;  %s6534_s23 = sphi %s6674_s23, %s8967_s23   ;;  %s6530_s22 = sphi %s6672_s22, %s8966_s22   ;;  %s6526_s1 = sphi %s6670_s1, %s8965_s1  }
  0x15   : > { %8898 = sst [smem:[#allocation7_spill]] %s6530_s22  ;;  %s5495_s28 = sadd.s32 4294967294, %s6554_s26  }
  0x16   : > { %8899 = sst [smem:[#allocation8_spill]] %s6534_s23  ;;  %s43_s4 = sadd.s32 1, %s6546_s25 }
  0x17   : > { %8900 = sst [smem:[#allocation9_spill]] %s6538_s24  ;;  %p44_p0 = scmp.ge.s32.totalorder %s43_s4, 2 }
  0x18   : > { %8901 = sst [smem:[#allocation10_spill]] %s6542_s2  ;;  %s46_s29 = sadd.s32 1, %s6550_s3 }
  0x19   : > { %8902 = sst [smem:[#allocation11_spill]] %s6546_s25  ;;  %p537_p1 = scmp.ne.s32.totalorder %s6534_s23, %s6530_s22 }
  0x1a   : > { %8903 = sst [smem:[#allocation12_spill]] %s6550_s3  ;;  %p538_p2 = scmp.eq.s32.totalorder %s5494_s27, 3 }
  0x1b   : > { %8904 = sst [smem:[#allocation13_spill]] %s6554_s26  ;;  %s8973_s4 = smov (%p44_p0, %s43_s4), 0 }
  0x1c   : > { %8905 = sst [smem:[#allocation14_spill]] %s8973_s4  ;;  %s8975_s29 = smov (!%p44_p0, %s46_s29), %s6550_s3 }
  0x1d   : > { %p6719_p3 = por %p538_p2, %p537_p1  ;;  %p543_p4 = scmp.ne.s32.totalorder %s6530_s22, %s6526_s1 }
  0x1e   : > { %p48_p5 = scmp.ge.s32.totalorder %s8975_s29, 2  ;;  %p544_p6 = scmp.eq.s32.totalorder %s5495_s28, 3 }
  0x1f   : > { %s8906_s30 = scalar_select %p6719_p3, 1, 0 }
  0x20   : > { %p5498_p7 = scmp.ge.s32.totalorder %s6554_s26, 1  ;;  %p706_p8 = scmp.lt.s32.totalorder %s6554_s26, 5 }
  0x21   : > { %8907 = sst [smem:[#allocation15_spill]] %s8906_s30  ;;  %s8977_s29 = smov (%p48_p5, %s8975_s29), 0 }
  0x22   : > { %8908 = sst [smem:[#allocation16_spill]] %s8977_s29  ;;  %p6729_p9 = por %p544_p6, %p543_p4 }
  0x23   : > { %p707_p10 = pnand %p5498_p7, %p706_p8  ;;  %s524_s21 = ssub.s32 %s6550_s3, %s8977_s29 }
  0x24   : > { %s8909_s0 = scalar_select %p6729_p9, 1, 0 }
  0x25   : > { %s527_s27 = sadd.s32 1, %s6534_s23  ;;  %p525_p11 = scmp.eq.s32.totalorder %s524_s21, 0 }
  0x26   : > { %8910 = sst [smem:[#allocation17_spill]] %s8909_s0  ;;  %710 = sbr.rel (%p707_p10) target bundleno = 2837 (0xb15), region = 96 }
  0x27   : > { %s6737_s4 = scalar_select %p525_p11, %s6534_s23, %s527_s27  }
  0x29   : > { %8911 = sst [smem:[#allocation18_spill]] %s6737_s4 }
  0x2b   : > { %s8871_s28 = sand.u32 1, %s6530_s22   ;;  %p825_p12 = scmp.lt.s32.totalorder %s6542_s2, 1 }
  0x2c   : > { %s6149_s25 = smul.u32 96, %s8871_s28  ;;  %p830_p13 = scmp.lt.s32.totalorder %s6538_s24, 1 }
  0x2d   : > { %s826_s1 = scalar_select %p825_p12, %s6542_s2, 1 }
  0x2e   : > { %s8912_s21 = sld [smem:[#allocation23_spill]] }
  0x2f   : > { %s6015_s0 = sshll.u32 %s826_s1, 5  ;;  %s6152_s26 = smul.u32 96, %s826_s1 }
  0x30   : > { %s8913_s18 = sld [smem:[#allocation34_spill]] }
  0x31   : > { %s6754_s30 = scalar_select %p830_p13, %s6538_s24, 1 }
  0x32   : > { %s8915_s17 = sld [smem:[#allocation33_spill]] }
  0x33   : > { %s8916_s20 = sld [smem:[#allocation36_spill]]  ;;  %s6016_s13 = sshll.u32 %s6754_s30, 6 }
  0x34   : > { %s829_s27 = scalar_lea.vmem %s8912_s21, %s6015_s0  ;;  %s6151_s15 = smul.u32 3, %s6754_s30 }
  0x35   : > { %s8920_s5 = sld [smem:[#allocation28_spill]]  ;;  %s855_s24 = scalar_lea.vmem %s8846_s7, %s6754_s30 }
  0x36   : > { %s6751_s19 = scalar_lea.vmem %s8913_s18, %s6015_s0  ;;  %s8921_s3 = sld [smem:[#allocation26_spill]] }
  0x37   : > { %8914 = sst [smem:[#allocation19_spill]] %s6751_s19  ;;  %s6150_s19 = smul.u32 192, %s6754_s30 }
  0x38   : > { %s6759_s1 = scalar_lea.vmem %s8915_s17, %s6152_s26  ;;  %s8922_s22 = sld [smem:[#allocation27_spill]] }
  0x39   : > { %s6764_s4 = scalar_lea.vmem %s8916_s20, %s6015_s0  ;;  %s6017_s23 = sshll.u32 %s6754_s30, 8 }
  0x3a   : > { %8917 = sst [smem:[#allocation20_spill]] %s6764_s4  ;;  %s5506_s29 = sshll.u32 %s6754_s30, 2 }
  0x3b   : > { %s6780_s17 = scalar_lea.vmem %s8920_s5, %s6016_s13  ;;  %s858_s5 = scalar_lea.vmem %s8847_s8, %s6754_s30 }
  0x3c   : > { %s6785_s20 = scalar_lea.vmem %s8921_s3, %s6150_s19  ;;  %s6808_s3 = scalar_lea.vmem %s8848_s9, %s6017_s23 }
  0x3d   : > { %s6819_s4 = scalar_lea.vmem %s8850_s11, %s6017_s23  ;;  %s875_s13 = scalar_lea.vmem %s8851_s12, %s6754_s30 }
  0x3e   : > { %s6794_s2 = scalar_lea.vmem %s8922_s22, %s6151_s15  ;;  %s6814_s15 = scalar_lea.vmem %s8849_s10, %s5506_s29 }
  0x3f   : > { %s6825_s26 = scalar_lea.vmem [#allocation3], %s6149_s25  ;;  %s8923_s19 = sld [smem:[#allocation9_spill]] }
  0x45   : > { %p5514_p0 = scmp.ne.s32.totalorder %s8923_s19, 0 }
  0x47   : > { %895 = sbr.rel (%p5514_p0) target bundleno = 81 (0x51), region = 100 }
  0x4c   : > { %v896_v0 = vld [vmem:[%s829_s27] sm:$0xff]  ;;  %v897_v1 = vld [vmem:[%s829_s27 + $0x8] sm:$0xff]  ;;  %v898_v2 = vld [vmem:[%s829_s27 + $0x10] sm:$0xff] }
  0x4d   : > { %900 = vst [vmem:[#allocation2 + $0x10] sm:$0xff] %v896_v0  ;;  %v899_v3 = vld [vmem:[%s829_s27 + $0x18] sm:$0xff] }
  0x4e   : > { %901 = vst [vmem:[#allocation2] sm:$0xff] %v897_v1 }
  0x4f   : > { %902 = vst [vmem:[#allocation2 + $0x18] sm:$0xff] %v898_v2 }
  0x50   : > { %903 = vst [vmem:[#allocation2 + $0x8] sm:$0xff] %v899_v3 }
  0x51 PF: > { %v6556_v8 = vmov 128.0   ;;  %v5601_v31 = vld [vmem:[%s6785_s20 + $0xa8] sm:$0xf]  ;;  %v6043_v32 = vld [vmem:[%s6785_s20 + $0xb0] sm:$0xf0]  ;;  %s8925_s27 = sld [smem:[#allocation24_spill]]  ;;  %s8947_s22 = scalar_lea.vmem %s8845_s6, %s6754_s30 }
  0x52   : > { %6330 = vrcp.f32 %v6556_v8  ;;  %v6042_v33 = vld [vmem:[%s6785_s20 + $0xac] sm:$0xf]  ;;  %v5602_v34 = vor.u32 %v6043_v32, %v5601_v31  ;;  %v5603_v35 = vld [vmem:[%s6785_s20 + $0xb4] sm:$0xf0]  ;;  %v5609_v36 = vld [vmem:[%s6785_s20 + $0xb0] sm:$0xf] }
  0x53   : > { %v6044_v37 = vld [vmem:[%s6785_s20 + $0xb8] sm:$0xf0]  ;;  %v5606_v38 = vor.u32 %v6042_v33, %v5603_v35  ;;  %v5589_v40 = vld [vmem:[%s6785_s20 + $0x90] sm:$0xf]  ;;  %v6039_v42 = vld [vmem:[%s6785_s20 + $0x94] sm:$0xf] }
  0x54   : > { %v1056_v5 = vld [vmem:[#allocation2 + $0x10] sm:$0xff]  ;;  %v5610_v39 = vor.u32 %v6044_v37, %v5609_v36  ;;  %1298 = vmatpush.bf16.msra.mxu0 %v5602_v34  ;;  %v6040_v41 = vld [vmem:[%s6785_s20 + $0x98] sm:$0xf0]  ;;  %v5591_v44 = vld [vmem:[%s6785_s20 + $0x9c] sm:$0xf0]  ;;  %s8927_s29 = sld [smem:[#allocation25_spill]] }
  0x55   : > { %1060 = vadd.xlane.f32.xlu0 %v1056_v5  ;;  %v1057_v7 = vld [vmem:[#allocation2] sm:$0xff]  ;;  %1317 = vmatpush.bf16.msra.mxu1 %v5606_v38  ;;  %v5590_v43 = vor.u32 %v6040_v41, %v5589_v40  ;;  %v5597_v45 = vld [vmem:[%s6785_s20 + $0x98] sm:$0xf]  ;;  %v5594_v47 = vor.u32 %v6039_v42, %v5591_v44  ;;  %v6036_v51 = vld [vmem:[%s6785_s20 + $0x7c] sm:$0xf]  ;;  %s6557_s18 = smov 64  }
  0x56   : > { %v1058_v4 = vld [vmem:[#allocation2 + $0x18] sm:$0xff]  ;;  %1336 = vmatpush.bf16.msra.mxu2 %v5610_v39  ;;  %v6041_v46 = vld [vmem:[%s6785_s20 + $0xa0] sm:$0xf0]  ;;  %v5579_v53 = vld [vmem:[%s6785_s20 + $0x84] sm:$0xf0]  ;;  %s6558_s28 = smov 96  }
  0x57   : > { %1064 = vadd.xlane.f32.xlu1 %v1058_v4  ;;  %v1059_v6 = vld [vmem:[#allocation2 + $0x8] sm:$0xff]  ;;  %v5598_v48 = vor.u32 %v6041_v46, %v5597_v45  ;;  %v5577_v49 = vld [vmem:[%s6785_s20 + $0x78] sm:$0xf]  ;;  %v6037_v50 = vld [vmem:[%s6785_s20 + $0x80] sm:$0xf0]  ;;  %v5582_v56 = vor.u32 %v6036_v51, %v5579_v53  ;;  %s8926_s14 = scalar_lea.vmem %s8925_s27, %s6754_s30  ;;  %vm1396_vm13 = vcmask 1047556  }
  0x58   : > { %v6331_v9 = vpop.eup %6330  ;;  %1299 = vmatpush.bf16.msra.mxu0 %v5590_v43  ;;  %v5578_v52 = vor.u32 %v6037_v50, %v5577_v49  ;;  %v5585_v54 = vld [vmem:[%s6785_s20 + $0x80] sm:$0xf]  ;;  %v6038_v55 = vld [vmem:[%s6785_s20 + $0x88] sm:$0xf0]  ;;  %v6033_v60 = vld [vmem:[%s6785_s20 + $0x64] sm:$0xf] }
  0x59   : > { %v1069_v10 = vmul.f32 128.0, %v6331_v9  ;;  %vm1073_vm0 = vweird.f32 %v6331_v9  ;;  %1318 = vmatpush.bf16.msra.mxu1 %v5594_v47  ;;  %v5586_v57 = vor.u32 %v6038_v55, %v5585_v54  ;;  %v5565_v58 = vld [vmem:[%s6785_s20 + $0x60] sm:$0xf]  ;;  %v6034_v59 = vld [vmem:[%s6785_s20 + $0x68] sm:$0xf0]  ;;  %vm2864_vm14 = vcmask 261120  }
  0x5a   : > { %1337 = vmatpush.bf16.msra.mxu2 %v5598_v48  ;;  %v5566_v61 = vor.u32 %v6034_v59, %v5565_v58  ;;  %v5567_v62 = vld [vmem:[%s6785_s20 + $0x6c] sm:$0xf0]  ;;  %v5573_v63 = vld [vmem:[%s6785_s20 + $0x68] sm:$0xf]  ;;  %v6035_v0 = vld [vmem:[%s6785_s20 + $0x70] sm:$0xf0]  ;;  %s8928_s21 = scalar_lea.vmem %s8927_s29, %s6754_s30 }
  0x5b   : > { %v1070_v11 = vsub.f32 1.0, %v1069_v10  ;;  %v5570_v1 = vor.u32 %v6033_v60, %v5567_v62  ;;  %v5574_v2 = vor.u32 %v6035_v0, %v5573_v63  ;;  %v5553_v3 = vld [vmem:[%s6785_s20 + $0x48] sm:$0xf]  ;;  %v5561_v8 = vld [vmem:[%s6785_s20 + $0x50] sm:$0xf]  ;;  %vm3937_vm15 = vcmask 523264  }
  0x5c   : > { %1300 = vmatpush.bf16.msra.mxu0 %v5578_v52  ;;  %v5537_v31 = vld [vmem:[%s6785_s20 + $0x20] sm:$0xf]  ;;  %v6026_v32 = vld [vmem:[%s6785_s20 + $0x28] sm:$0xf0]  ;;  %v6021_v38 = vld [vmem:[%s6785_s20 + $0x4] sm:$0xf] }
  0x5d   : > { %1062 = vadd.xlane.f32.xlu0 %v1057_v7  ;;  %v1071_v12 = vmul.f32 %v6331_v9, %v1070_v11  ;;  %1319 = vmatpush.bf16.msra.mxu1 %v5582_v56  ;;  %v5538_v35 = vor.u32 %v6026_v32, %v5537_v31  ;;  %v5517_v36 = vld [vmem:[%s6785_s20] sm:$0xf]  ;;  %v6022_v37 = vld [vmem:[%s6785_s20 + $0x8] sm:$0xf0]  ;;  %v5519_v42 = vld [vmem:[%s6785_s20 + $0xc] sm:$0xf0] }
  0x5e   : > { %1338 = vmatpush.bf16.msra.mxu2 %v5586_v57  ;;  %v5518_v41 = vor.u32 %v6022_v37, %v5517_v36  ;;  %v5525_v43 = vld [vmem:[%s6785_s20 + $0x8] sm:$0xf]  ;;  %v6023_v44 = vld [vmem:[%s6785_s20 + $0x10] sm:$0xf0]  ;;  %v5522_v45 = vor.u32 %v6021_v38, %v5519_v42  ;;  %s8949_s30 = sld [smem:[#allocation9_spill]] }
  0x5f   : > { %1066 = vadd.xlane.f32.xlu1 %v1059_v6  ;;  %v1072_v13 = vadd.f32 %v6331_v9, %v1071_v12  ;;  %v5541_v12 = vld [vmem:[%s6785_s20 + $0x30] sm:$0xf]  ;;  %v5526_v46 = vor.u32 %v6023_v44, %v5525_v43 }
  0x60   : > { %1301 = vmatpush.bf16.msra.mxu0 %v5566_v61 }
  0x61   : > { %v6828_v14 = vsel %vm1073_vm0, %v6331_v9, %v1072_v13  ;;  %1320 = vmatpush.bf16.msra.mxu1 %v5570_v1  ;;  %v6032_v9 = vld [vmem:[%s6785_s20 + $0x58] sm:$0xf0]  ;;  %vm3942_vm0 = vcmask 785408  }
  0x62   : > { %8924 = vst [vmem:[#allocation21_spill] sm:$0xff] %v6828_v14  ;;  %1339 = vmatpush.bf16.msra.mxu2 %v5574_v2  ;;  %v5562_v11 = vor.u32 %v6032_v9, %v5561_v8  ;;  %v6028_v13 = vld [vmem:[%s6785_s20 + $0x38] sm:$0xf0] }
  0x64   : > { %p5915_p1 = scmp.ne.s32.totalorder %s8949_s30, 1 }
  0x65   : > { %s8953_s25 = sld [smem:[#allocation30_spill]] (!%p5915_p1) }
  0x66   : > { %1340 = vmatpush.bf16.msra.mxu2 %v5562_v11  ;;  %s8954_s30 = sld [smem:[#allocation32_spill]] (!%p5915_p1) }
  0xc8   : > { %v1061_v16 = vpop.xlane.xlu0 %1060 }
  0xc9   : > { %v1075_v18 = vmul.f32 %v6828_v14, %v1061_v16  ;;  %v5542_v16 = vor.u32 %v6028_v13, %v5541_v12  ;;  %v6324_v12 = vld [vmem:[%s8926_s14] ss:$0 sm:$0xff] }
  0xca   : > { %v1065_v15 = vpop.xlane.xlu1 %1064 }
  0xcb   : > { %v1077_v17 = vmul.f32 %v6828_v14, %v1065_v15  ;;  %v6834_v20 = vsub.f32 %v1056_v5, %v1075_v18  ;;  %v6030_v5 = vld [vmem:[%s6785_s20 + $0x4c] sm:$0xf]  ;;  %v6027_v15 = vld [vmem:[%s6785_s20 + $0x34] sm:$0xf]  ;;  %v5549_v18 = vld [vmem:[%s6785_s20 + $0x38] sm:$0xf] }
  0xcd   : > { %v6832_v19 = vsub.f32 %v1058_v4, %v1077_v17  ;;  %v1083_v22 = vmul.f32 %v6834_v20, %v6834_v20  ;;  %v6031_v4 = vld [vmem:[%s6785_s20 + $0x50] sm:$0xf0]  ;;  %v5543_v17 = vld [vmem:[%s6785_s20 + $0x3c] sm:$0xf0] }
  0xcf   : > { %v1085_v21 = vmul.f32 %v6832_v19, %v6832_v19  ;;  %1087 = vadd.xlane.f32.xlu2 %v1083_v22  ;;  %v5546_v22 = vor.u32 %v6027_v15, %v5543_v17 }
  0xd0   : > { %v1063_v24 = vpop.xlane.xlu0 %1062 }
  0xd1   : > { %1091 = vadd.xlane.f32.xlu0 %v1085_v21  ;;  %v1076_v26 = vmul.f32 %v6828_v14, %v1063_v24  ;;  %v6029_v21 = vld [vmem:[%s6785_s20 + $0x40] sm:$0xf0]  ;;  %v5529_v24 = vld [vmem:[%s6785_s20 + $0x18] sm:$0xf] }
  0xd2   : > { %v1067_v23 = vpop.xlane.xlu1 %1066 }
  0xd3   : > { %v1078_v25 = vmul.f32 %v6828_v14, %v1067_v23  ;;  %v6844_v28 = vsub.f32 %v1057_v7, %v1076_v26  ;;  %v5555_v7 = vld [vmem:[%s6785_s20 + $0x54] sm:$0xf0]  ;;  %v5550_v23 = vor.u32 %v6029_v21, %v5549_v18  ;;  %v6024_v26 = vld [vmem:[%s6785_s20 + $0x1c] sm:$0xf] }
  0xd4   : > { %v5558_v10 = vor.u32 %v6030_v5, %v5555_v7 }
  0xd5   : > { %v6842_v27 = vsub.f32 %v1059_v6, %v1078_v25  ;;  %v1084_v30 = vmul.f32 %v6844_v28, %v6844_v28  ;;  %v5554_v6 = vor.u32 %v6031_v4, %v5553_v3  ;;  %1341 = vmatpush.bf16.msra.mxu2 %v5550_v23  ;;  %v6025_v25 = vld [vmem:[%s6785_s20 + $0x20] sm:$0xf0] }
  0xd6   : > { %1321 = vmatpush.bf16.msra.mxu1 %v5558_v10 }
  0xd7   : > { %v1086_v29 = vmul.f32 %v6842_v27, %v6842_v27  ;;  %1089 = vadd.xlane.f32.xlu2 %v1084_v30  ;;  %1302 = vmatpush.bf16.msra.mxu0 %v5554_v6  ;;  %v5531_v30 = vld [vmem:[%s6785_s20 + $0x24] sm:$0xf0] }
  0xd8   : > { %v5534_v34 = vor.u32 %v6024_v26, %v5531_v30 }
  0xd9   : > { %1093 = vadd.xlane.f32.xlu1 %v1086_v29  ;;  %v5530_v29 = vor.u32 %v6025_v25, %v5529_v24  ;;  %1342 = vmatpush.bf16.msra.mxu2 %v5538_v35 }
  0xda   : > { %1322 = vmatpush.bf16.msra.mxu1 %v5546_v22  ;;  %v6325_v22 = vld [vmem:[%s8928_s21] ss:$0 sm:$0xff] }
  0xdb   : > { %1303 = vmatpush.bf16.msra.mxu0 %v5542_v16 }
  0xdd   : > { %1343 = vmatpush.bf16.msra.mxu2 %v5526_v46 }
  0xde   : > { %1323 = vmatpush.bf16.msra.mxu1 %v5534_v34 }
  0xdf   : > { %1304 = vmatpush.bf16.msra.mxu0 %v5530_v29 }
  0xe2   : > { %1324 = vmatpush.bf16.msra.mxu1 %v5522_v45 }
  0xe3   : > { %1305 = vmatpush.bf16.msra.mxu0 %v5518_v41 }
 0x142   : > { %v1088_v33 = vpop.xlane.xlu2 %1087 }
 0x143   : > { %v1095_v39 = vmul.f32 %v1088_v33, %v6828_v14 }
 0x144   : > { %v1092_v40 = vpop.xlane.xlu0 %1091 }
 0x145   : > { %v1099_v47 = vadd.f32 1e-05, %v1095_v39  ;;  %v1097_v48 = vmul.f32 %v1092_v40, %v6828_v14  ;;  %v938_v40 = vld [vmem:[%s6794_s2] sm:$0x7]  ;;  %s6559_s2 = smov 32  }
 0x146   : > { %v1166_v41 = vperm.slane %v938_v40, 2  ;;  %v1165_v42 = vperm.slane %v938_v40, 1 }
 0x147   : > { %6332 = vrsqrt.f32 %v1099_v47  ;;  %v1101_v49 = vadd.f32 1e-05, %v1097_v48  ;;  %vm1109_vm2 = vweird.f32 %v1099_v47 }
 0x149   : > { %6334 = vrsqrt.f32 %v1101_v49  ;;  %vm1129_vm9 = vweird.f32 %v1101_v49 }
 0x14a   : > { %v1090_v51 = vpop.xlane.xlu2 %1089 }
 0x14b   : > { %v1096_v53 = vmul.f32 %v1090_v51, %v6828_v14 }
 0x14c   : > { %v1094_v50 = vpop.xlane.xlu1 %1093 }
 0x14d   : > { %v1098_v52 = vmul.f32 %v1094_v50, %v6828_v14  ;;  %v6333_v54 = vpop.eup %6332  ;;  %v1100_v56 = vadd.f32 1e-05, %v1096_v53 }
 0x14e   : > { %v1104_v57 = vmul.f32 %v6333_v54, %v1099_v47  ;;  %vm1110_vm1 = vweird.f32 %v6333_v54 }
 0x14f   : > { %v1102_v55 = vadd.f32 1e-05, %v1098_v52  ;;  %v6335_v60 = vpop.eup %6334  ;;  %vm1111_vm3 = vmor %vm1109_vm2, %vm1110_vm1  ;;  %vm1119_vm5 = vweird.f32 %v1100_v56 }
 0x150   : > { %v1105_v58 = vmul.f32 %v6333_v54, %v1104_v57  ;;  %v1124_v2 = vmul.f32 %v6335_v60, %v1101_v49  ;;  %vm1130_vm10 = vweird.f32 %v6335_v60 }
 0x151   : > { %6336 = vrsqrt.f32 %v1102_v55  ;;  %vm1139_vm7 = vweird.f32 %v1102_v55  ;;  %vm1131_vm12 = vmor %vm1129_vm9, %vm1130_vm10 }
 0x152   : > { %6338 = vrsqrt.f32 %v1100_v56  ;;  %v1106_v59 = vmul.f32 0.5, %v1105_v58  ;;  %v1125_v7 = vmul.f32 %v6335_v60, %v1124_v2 }
 0x154   : > { %v1107_v61 = vsub.f32 1.5, %v1106_v59  ;;  %v1126_v13 = vmul.f32 0.5, %v1125_v7  ;;  %v6560_v7 = vmov 1983009808  }
 0x156   : > { %v1108_v1 = vmul.f32 %v6333_v54, %v1107_v61 }
 0x157   : > { %v6337_v62 = vpop.eup %6336 }
 0x158   : > { %v6339_v63 = vpop.eup %6338  ;;  %v1134_v0 = vmul.f32 %v6337_v62, %v1102_v55  ;;  %v1112_v6 = vsel %vm1111_vm3, %v6333_v54, %v1108_v1  ;;  %vm1140_vm8 = vweird.f32 %v6337_v62 }
 0x159   : > { %v1114_v3 = vmul.f32 %v6339_v63, %v1100_v56  ;;  %vm1120_vm4 = vweird.f32 %v6339_v63  ;;  %v1143_v11 = vmul.f32 %v1112_v6, %v6834_v20  ;;  %v1127_v20 = vsub.f32 1.5, %v1126_v13  ;;  %vm1141_vm11 = vmor %vm1139_vm7, %vm1140_vm8 }
 0x15a   : > { %v1135_v4 = vmul.f32 %v6337_v62, %v1134_v0  ;;  %vm1121_vm6 = vmor %vm1119_vm5, %vm1120_vm4  ;;  %v1164_v56 = vperm.slane %v938_v40, 0 }
 0x15b   : > { %v1115_v5 = vmul.f32 %v6339_v63, %v1114_v3  ;;  %v1150_v21 = vmul.f32 %v6324_v12, %v1143_v11  ;;  %v1128_v29 = vmul.f32 %v6335_v60, %v1127_v20 }
 0x15c   : > { %v1136_v9 = vmul.f32 0.5, %v1135_v4 }
 0x15d   : > { %v1116_v8 = vmul.f32 0.5, %v1115_v5  ;;  %v1157_v25 = vadd.f32 %v6325_v22, %v1150_v21  ;;  %v1132_v31 = vsel %vm1131_vm12, %v6335_v60, %v1128_v29 }
 0x15e   : > { %v1137_v16 = vsub.f32 1.5, %v1136_v9  ;;  %v1145_v33 = vmul.f32 %v1132_v31, %v6832_v19 }
 0x15f   : > { %v1117_v10 = vsub.f32 1.5, %v1116_v8  ;;  %v1401_v8 = vunpack.c.l.s4 %v6560_v7 }
 0x160   : > { %v1138_v24 = vmul.f32 %v6337_v62, %v1137_v16  ;;  %v1152_v35 = vmul.f32 %v6324_v12, %v1145_v33 }
 0x161   : > { %v1118_v15 = vmul.f32 %v6339_v63, %v1117_v10 }
 0x162   : > { %v1159_v37 = vadd.f32 %v6325_v22, %v1152_v35 }
 0x163   : > { %v1122_v17 = vsel %vm1121_vm6, %v6339_v63, %v1118_v15 }
 0x164   : > { %v1144_v18 = vmul.f32 %v1122_v17, %v6844_v28  ;;  %v1142_v28 = vsel %vm1141_vm11, %v6337_v62, %v1138_v24 }
 0x165   : > { %v1146_v32 = vmul.f32 %v1142_v28, %v6842_v27 }
 0x166   : > { %v1151_v23 = vmul.f32 %v6324_v12, %v1144_v18 }
 0x167   : > { %v1153_v34 = vmul.f32 %v6324_v12, %v1146_v32  ;;  %v6985_v12 = vunpack.c.0.s8 %v1401_v8 }
 0x168   : > { %v1158_v26 = vadd.f32 %v6325_v22, %v1151_v23  ;;  %v6561_v23 = vmov 1934713408  }
 0x169   : > { %v1160_v36 = vadd.f32 %v6325_v22, %v1153_v34  ;;  %v1425_v24 = vunpack.c.l.s4 %v6561_v23 }
 0x16a   : > { %v1161_v30 = vpack.c.bf16 %v1158_v26, %v1157_v25 }
 0x16b   : > { %v1162_v38 = vpack.c.bf16 %v1160_v36, %v1159_v37  ;;  %v6996_v40 = vunpack.c.0.s8 %v1425_v24 }
 0x16c   : > { %1306 = vmatmul.bf16.vlgmr.msra.gmra.mxu0 %v1161_v30  ;;  %1325 = vmatmul.bf16.vlgmr.msra.gmra.mxu1 %v1161_v30 }
 0x16d   : > { %1344 = vmatmul.bf16.vlgmr.msra.gmra.mxu2 %v1161_v30 }
 0x17c   : > { %1311 = vmatmul.bf16.gmra.mxu0 %v1162_v38  ;;  %1330 = vmatmul.bf16.gmra.mxu1 %v1162_v38 }
 0x17d   : > { %1349 = vmatmul.bf16.gmra.mxu2 %v1162_v38 }
 0x1e9   : > { %v1326_v39 = vpop.f32.mrf.mxu1  ;;  %v1307_v50 = vpop.f32.mrf.mxu0 }
 0x1ea   : > { %v6919_v46 = vadd.f32 %v1326_v39, %v1165_v42  ;;  %v6939_v57 = vadd.f32 %v1307_v50, %v1164_v56 }
 0x1ec   : > { %v1894_v29 = vrot.slane %v6919_v46, 4 }
 0x1f0   : > { %v1345_v43 = vpop.f32.mrf.mxu2 }
 0x1f1   : > { %v6917_v44 = vadd.f32 %v1345_v43, %v1166_v41  ;;  %v1328_v45 = vpop.f32.mrf.mxu1  ;;  %v1309_v55 = vpop.f32.mrf.mxu0 }
 0x1f2   : > { %v6921_v27 = vadd.f32 %v1328_v45, %v1165_v42  ;;  %v6941_v58 = vadd.f32 %v1309_v55, %v1164_v56 }
 0x1f4   : > { %v6239_v19 = vpack.i.bf16 %v6921_v27, %v6919_v46  ;;  %v1950_v31 = vrot.slane %v6921_v27, 4 }
 0x1f6   : > { %6240 = vrot.lane.b32.xlu0 %v6239_v19, %s6557_s18  ;;  %6235 = vrot.lane.b32.xlu2 %v6239_v19, %s6558_s28 }
 0x1f8   : > { %v1347_v47 = vpop.f32.mrf.mxu2 }
 0x1f9   : > { %v6927_v48 = vadd.f32 %v1347_v47, %v1166_v41  ;;  %v1331_v49 = vpop.f32.mrf.mxu1  ;;  %v1312_v59 = vpop.f32.mrf.mxu0 }
 0x1fa   : > { %v6930_v52 = vadd.f32 %v1331_v49, %v1165_v42  ;;  %v6955_v62 = vadd.f32 %v1312_v59, %v1164_v56 }
 0x1fc   : > { %v1510_v7 = vrot.slane %v6955_v62, 4 }
 0x1fe   : > { %6245 = vrot.lane.b32.xlu2 %v6239_v19, %s6559_s2 }
 0x200   : > { %v1350_v61 = vpop.f32.mrf.mxu2 }
 0x201   : > { %v1333_v51 = vpop.f32.mrf.mxu1  ;;  %v1314_v60 = vpop.f32.mrf.mxu0  ;;  %v6973_v2 = vadd.f32 %v1350_v61, %v1166_v41 }
 0x202   : > { %v6932_v53 = vadd.f32 %v1333_v51, %v1165_v42  ;;  %v6957_v63 = vadd.f32 %v1314_v60, %v1164_v56  ;;  %v1398_v56 = vrot.slane %v6939_v57, 4 }
 0x203   : > { %8929 = vst [vmem:[#allocation22_spill] sm:$0xff] %v6973_v2 }
 0x204   : > { %v6259_v54 = vpack.i.bf16 %v6932_v53, %v6930_v52 }
 0x206   : > { %6260 = vrot.lane.b32.xlu1 %v6259_v54, %s6559_s2  ;;  %6255 = vrot.lane.b32.xlu0 %v6259_v54, %s6557_s18 }
 0x207   : > { %6250 = vrot.lane.b32.xlu2 %v6259_v54, %s6558_s28 }
 0x208   : > { %v1352_v0 = vpop.f32.mrf.mxu2 }
 0x209   : > { %v6971_v1 = vadd.f32 %v1352_v0, %v1166_v41 }
 0x20b   : > { %v6977_v3 = vpack.i.bf16 %v6971_v1, %v6973_v2 }
 0x20e   : > { %1361 = vrot.lane.b32.xlu0 %v6941_v58, %s6558_s28  ;;  %1359 = vrot.lane.b32.xlu1 %v6939_v57, %s6558_s28 }
 0x20f   : > { %1371 = vrot.lane.b32.xlu2 %v6939_v57, %s6557_s18 }
 0x216   : > { %1383 = vrot.lane.b32.xlu0 %v6939_v57, %s6559_s2  ;;  %1373 = vrot.lane.b32.xlu1 %v6941_v58, %s6557_s18 }
 0x217   : > { %1385 = vrot.lane.b32.xlu2 %v6941_v58, %s6559_s2 }
 0x21e   : > { %1365 = vrot.lane.b32.xlu0 %v6957_v63, %s6558_s28  ;;  %1363 = vrot.lane.b32.xlu1 %v6955_v62, %s6558_s28 }
 0x21f   : > { %1375 = vrot.lane.b32.xlu2 %v6955_v62, %s6557_s18 }
 0x226   : > { %1387 = vrot.lane.b32.xlu0 %v6955_v62, %s6559_s2  ;;  %1377 = vrot.lane.b32.xlu1 %v6957_v63, %s6557_s18 }
 0x227   : > { %1389 = vrot.lane.b32.xlu2 %v6957_v63, %s6559_s2 }
 0x22e   : > { %6265 = vrot.lane.b32.xlu0 %v6977_v3, %s6558_s28 }
 0x22f   : > { %6270 = vrot.lane.b32.xlu2 %v6977_v3, %s6557_s18 }
 0x250   : > { %v6236_v4 = vpop.permute.xlu2 %6235 }
 0x251   : > { %v6237_v6 = vunpack.i.l.bf16 %v6236_v4  ;;  %v6238_v17 = vunpack.i.h.bf16 %v6236_v4 }
 0x253   : > { %v1906_v11 = vrot.slane %v6237_v6, 4  ;;  %v1962_v28 = vrot.slane %v6238_v17, 4 }
 0x258   : > { %v6246_v5 = vpop.permute.xlu2 %6245 }
 0x259   : > { %v6247_v9 = vunpack.i.l.bf16 %v6246_v5  ;;  %v6248_v13 = vunpack.i.h.bf16 %v6246_v5 }
 0x25b   : > { %v1904_v15 = vrot.slane %v6247_v9, 4  ;;  %v1907_v16 = vsel %vm1396_vm13, %v6247_v9, %v1906_v11  ;;  %v1960_v18 = vrot.slane %v6248_v13, 4  ;;  %v1963_v45 = vsel %vm1396_vm13, %v6248_v13, %v1962_v28 }
 0x25c   : > { %v1915_v22 = vperm.slane %v1907_v16, %v6985_v12  ;;  %v1971_v59 = vperm.slane %v1963_v45, %v6985_v12 }
 0x25d   : > { %v1905_v21 = vsel %vm1396_vm13, %v1904_v15, %v6237_v6  ;;  %v1961_v37 = vsel %vm1396_vm13, %v1960_v18, %v6238_v17  ;;  %v2006_v6 = vrot.slane %v6930_v52, 4  ;;  %v2062_v17 = vrot.slane %v6932_v53, 4 }
 0x25e   : > { %v1911_v32 = vperm.slane %v1905_v21, %v6985_v12  ;;  %v1928_v36 = vrot.slane %v1915_v22, 4  ;;  %v1967_v51 = vperm.slane %v1961_v37, %v6985_v12  ;;  %v1984_v18 = vrot.slane %v1971_v59, 4 }
 0x260   : > { %v1916_v50 = vrot.slane %v1911_v32, 4  ;;  %v1972_v8 = vrot.slane %v1967_v51, 4 }
 0x261   : > { %v6983_v10 = vpop.permute.xlu2 %6250 }
 0x262   : > { %v6253_v4 = vunpack.i.h.bf16 %v6983_v10 }
 0x264   : > { %v2074_v23 = vrot.slane %v6253_v4, 4 }
 0x268   : > { %v6241_v20 = vpop.permute.xlu0 %6240 }
 0x269   : > { %v6243_v25 = vunpack.i.h.bf16 %v6241_v20  ;;  %v6242_v26 = vunpack.i.l.bf16 %v6241_v20  ;;  %v1372_v30 = vpop.permute.xlu2 %1371 }
 0x26a   : > { %v1395_v39 = vrot.slane %v1372_v30, 4  ;;  %v1399_v16 = vsel %vm1396_vm13, %v1372_v30, %v1398_v56 }
 0x26b   : > { %v1948_v33 = vrot.slane %v6243_v25, 4  ;;  %v1892_v34 = vrot.slane %v6242_v26, 4  ;;  %v1895_v35 = vsel %vm1396_vm13, %v6242_v26, %v1894_v29  ;;  %v1951_v42 = vsel %vm1396_vm13, %v6243_v25, %v1950_v31 }
 0x26c   : > { %v1903_v38 = vperm.slane %v1895_v35, %v6985_v12  ;;  %v1959_v55 = vperm.slane %v1951_v42, %v6985_v12  ;;  %v7039_v30 = vperm.slane %v1399_v16, %v6985_v12 }
 0x26d   : > { %v1949_v41 = vsel %vm1396_vm13, %v1948_v33, %v6921_v27  ;;  %v1893_v43 = vsel %vm1396_vm13, %v1892_v34, %v6919_v46  ;;  %v1397_v27 = vsel %vm1396_vm13, %v1395_v39, %v6939_v57  ;;  %v1454_v46 = vrot.slane %v6941_v58, 4 }
 0x26e   : > { %v1955_v19 = vperm.slane %v1949_v41, %v6985_v12  ;;  %v1899_v47 = vperm.slane %v1893_v43, %v6985_v12  ;;  %v1929_v49 = vsel %vm1396_vm13, %v1928_v36, %v1903_v38  ;;  %v1930_v54 = vrot.slane %v1903_v38, 4 }
 0x26f   : > { %v7016_v0 = vperm.slane %v1929_v49, %v6996_v40  ;;  %v6252_v57 = vunpack.i.l.bf16 %v6983_v10  ;;  %v7024_v11 = vperm.slane %v1397_v27, %v6985_v12  ;;  %v1986_v13 = vrot.slane %v1959_v55, 4 }
 0x270   : > { %v1917_v60 = vsel %vm1396_vm13, %v1916_v50, %v1899_v47  ;;  %v1918_v61 = vrot.slane %v1899_v47, 4  ;;  %v1974_v5 = vrot.slane %v1955_v19, 4  ;;  %v1931_v9 = vsel %vm1396_vm13, %v1915_v22, %v1930_v54 }
 0x271   : > { %v7027_v15 = vperm.slane %v1917_v60, %v6996_v40  ;;  %v1944_v20 = vrot.slane %v7016_v0, 4  ;;  %v1973_v10 = vsel %vm1396_vm13, %v1972_v8, %v1955_v19  ;;  %v1939_v22 = vperm.slane %v1931_v9, %v6996_v40  ;;  %v7055_v45 = vpop.permute.xlu2 %1385 }
 0x272   : > { %v1919_v21 = vsel %vm1396_vm13, %v1911_v32, %v1918_v61  ;;  %v1975_v24 = vsel %vm1396_vm13, %v1967_v51, %v1974_v5  ;;  %v2018_v26 = vrot.slane %v6252_v57, 4  ;;  %v1985_v29 = vsel %vm1396_vm13, %v1984_v18, %v1959_v55 }
 0x273   : > { %v1422_v28 = vrot.slane %v7024_v11, 4  ;;  %v1927_v31 = vperm.slane %v1919_v21, %v6996_v40  ;;  %v7045_v33 = vperm.slane %v1973_v10, %v6996_v40  ;;  %v1987_v34 = vsel %vm1396_vm13, %v1971_v59, %v1986_v13 }
 0x274   : > { %v7049_v37 = vsel %vm1396_vm13, 0.0, %v1944_v20  ;;  %v1983_v38 = vperm.slane %v1975_v24, %v6996_v40  ;;  %v1946_v42 = vrot.slane %v1939_v22, 4  ;;  %v7053_v43 = vperm.slane %v1985_v29, %v6996_v40 }
 0x275   : > { %v1995_v55 = vperm.slane %v1987_v34, %v6996_v40  ;;  %v1434_v24 = vrot.slane %v7039_v30, 4 }
 0x276   : > { %v7076_v10 = vrot.slane %v1983_v38, 4 }
 0x278   : > { %v6261_v35 = vpop.permute.xlu1 %6260  ;;  %v6256_v36 = vpop.permute.xlu0 %6255 }
 0x279   : > { %v6263_v39 = vunpack.i.h.bf16 %v6261_v35  ;;  %v6262_v41 = vunpack.i.l.bf16 %v6261_v35  ;;  %v6258_v19 = vunpack.i.h.bf16 %v6256_v36  ;;  %v6257_v47 = vunpack.i.l.bf16 %v6256_v36 }
 0x27a   : > { %v7086_v36 = vsel %vm1396_vm13, 0.0, %v1946_v42 }
 0x27b   : > { %v2072_v49 = vrot.slane %v6263_v39, 4  ;;  %v2016_v50 = vrot.slane %v6262_v41, 4  ;;  %v2019_v51 = vsel %vm1396_vm13, %v6262_v41, %v2018_v26  ;;  %v2075_v54 = vsel %vm1396_vm13, %v6263_v39, %v2074_v23 }
 0x27c   : > { %v2027_v27 = vperm.slane %v2019_v51, %v6985_v12  ;;  %v2060_v56 = vrot.slane %v6258_v19, 4  ;;  %v2063_v59 = vsel %vm1396_vm13, %v6258_v19, %v2062_v17  ;;  %v2083_v5 = vperm.slane %v2075_v54, %v6985_v12  ;;  %v1376_v51 = vpop.permute.xlu2 %1375 }
 0x27d   : > { %v2017_v60 = vsel %vm1396_vm13, %v2016_v50, %v6252_v57  ;;  %v2073_v61 = vsel %vm1396_vm13, %v2072_v49, %v6253_v4  ;;  %v2004_v8 = vrot.slane %v6257_v47, 4  ;;  %v2071_v18 = vperm.slane %v2063_v59, %v6985_v12 }
 0x27e   : > { %v2023_v13 = vperm.slane %v2017_v60, %v6985_v12  ;;  %v2040_v16 = vrot.slane %v2027_v27, 4  ;;  %v2079_v21 = vperm.slane %v2073_v61, %v6985_v12  ;;  %v2061_v20 = vsel %vm1396_vm13, %v2060_v56, %v6932_v53 }
 0x27f   : > { %v2005_v57 = vsel %vm1396_vm13, %v2004_v8, %v6930_v52  ;;  %v2007_v4 = vsel %vm1396_vm13, %v6257_v47, %v2006_v6  ;;  %v7074_v17 = vrot.slane %v1927_v31, 4  ;;  %v2067_v23 = vperm.slane %v2061_v20, %v6985_v12 }
 0x280   : > { %v2011_v22 = vperm.slane %v2005_v57, %v6985_v12  ;;  %v2028_v26 = vrot.slane %v2023_v13, 4  ;;  %v2096_v29 = vrot.slane %v2083_v5, 4  ;;  %v2015_v34 = vperm.slane %v2007_v4, %v6985_v12  ;;  %v7082_v53 = vpop.permute.xlu0 %1361 }
 0x281   : > { %v1464_v52 = vrot.slane %v7055_v45, 4  ;;  %v2086_v35 = vrot.slane %v2067_v23, 4  ;;  %v2098_v6 = vrot.slane %v2071_v18, 4  ;;  %v2084_v38 = vrot.slane %v2079_v21, 4 }
 0x282   : > { %v2030_v31 = vrot.slane %v2011_v22, 4  ;;  %v2041_v39 = vsel %vm1396_vm13, %v2040_v16, %v2015_v34  ;;  %v2042_v41 = vrot.slane %v2015_v34, 4  ;;  %v2000_v19 = vrot.slane %v7053_v43, 4 }
 0x283   : > { %v2002_v47 = vrot.slane %v1995_v55, 4  ;;  %v2087_v50 = vsel %vm1396_vm13, %v2079_v21, %v2086_v35  ;;  %v7094_v54 = vsel %vm1396_vm13, 0.0, %v7074_v17  ;;  %v2127_v56 = vsel %vm1396_vm13, %v1946_v42, %v7016_v0 }
 0x284   : > { %v2031_v49 = vsel %vm1396_vm13, %v2023_v13, %v2030_v31  ;;  %v2029_v59 = vsel %vm1396_vm13, %v2028_v26, %v2011_v22  ;;  %v2097_v60 = vsel %vm1396_vm13, %v2096_v29, %v2071_v18  ;;  %v7102_v61 = vsel %vm1396_vm13, 0.0, %v7076_v10  ;;  %v1390_v29 = vpop.permute.xlu2 %1389 }
 0x285   : > { %v2043_v55 = vsel %vm1396_vm13, %v2027_v27, %v2042_v41  ;;  %v2047_v8 = vperm.slane %v2041_v39, %v6996_v40  ;;  %v2099_v13 = vsel %vm1396_vm13, %v2083_v5, %v2098_v6  ;;  %v2039_v16 = vperm.slane %v2031_v49, %v6996_v40  ;;  %v1360_v6 = vpop.permute.xlu1 %1359 }
 0x286   : > { %v2085_v21 = vsel %vm1396_vm13, %v2084_v38, %v2067_v23  ;;  %v2095_v0 = vperm.slane %v2087_v50, %v6996_v40  ;;  %v1508_v42 = vrot.slane %v1376_v51, 4  ;;  %v7111_v20 = vperm.slane %v2127_v56, %v6985_v12 }
 0x287   : > { %v7115_v57 = vperm.slane %v2029_v59, %v6996_v40  ;;  %v2103_v27 = vperm.slane %v2097_v60, %v6996_v40  ;;  %v7119_v4 = vsel %vm1396_vm13, 0.0, %v2002_v47  ;;  %v2181_v5 = vsel %vm1396_vm13, %v2002_v47, %v7053_v43 }
 0x288   : > { %v2051_v23 = vperm.slane %v2043_v55, %v6996_v40  ;;  %v2107_v22 = vperm.slane %v2099_v13, %v6996_v40  ;;  %v7126_v26 = vsel %vm1396_vm13, 0.0, %v2000_v19  ;;  %v2056_v34 = vrot.slane %v2047_v8, 4  ;;  %v1384_v41 = vpop.permute.xlu0 %1383 }
 0x289   : > { %v7130_v35 = vperm.slane %v2085_v21, %v6996_v40  ;;  %v7133_v38 = vrot.slane %v2039_v16, 4  ;;  %v7135_v39 = vrot.slane %v2095_v0, 4  ;;  %v1509_v43 = vsel %vm1396_vm13, %v1508_v42, %v6955_v62 }
 0x28a   : > { %v7140_v19 = vperm.slane %v2181_v5, %v6985_v12  ;;  %v2052_v49 = vrot.slane %v7115_v57, 4  ;;  %v2112_v50 = vrot.slane %v2103_v27, 4  ;;  %v2058_v56 = vrot.slane %v2051_v23, 4 }
 0x28b   : > { %v2114_v59 = vrot.slane %v2107_v22, 4  ;;  %v1511_v60 = vsel %vm1396_vm13, %v1376_v51, %v1510_v7  ;;  %v1410_v55 = vrot.slane %v1360_v6, 4  ;;  %v7148_v13 = vsel %vm1396_vm13, 0.0, %v2056_v34 }
 0x28c   : > { %v7152_v21 = vperm.slane %v1509_v43, %v6985_v12  ;;  %v1408_v0 = vrot.slane %v1384_v41, 4  ;;  %v7156_v42 = vsel %vm1396_vm13, 0.0, %v7133_v38  ;;  %v7160_v5 = vsel %vm1396_vm13, 0.0, %v7135_v39 }
 0x28d   : > { %v1466_v62 = vrot.slane %v7082_v53, 4  ;;  %v1411_v7 = vsel %vm1396_vm13, %v1384_v41, %v1410_v55  ;;  %v7165_v51 = vsel %vm1396_vm13, 0.0, %v2112_v50  ;;  %v7168_v23 = vperm.slane %v1511_v60, %v6985_v12 }
 0x28e   : > { %v1409_v22 = vsel %vm1396_vm13, %v1408_v0, %v1360_v6  ;;  %v1419_v34 = vperm.slane %v1411_v7, %v6985_v12  ;;  %v7173_v43 = vsel %vm1396_vm13, 0.0, %v2058_v56  ;;  %v7176_v47 = vsel %vm1396_vm13, 0.0, %v2114_v59 }
 0x28f   : > { %v2235_v31 = vsel %vm1396_vm13, %v2058_v56, %v2047_v8  ;;  %v1415_v41 = vperm.slane %v1409_v22, %v6985_v12  ;;  %v2229_v50 = vrot.slane %v7156_v42, 4  ;;  %v1465_v60 = vsel %vm1396_vm13, %v1464_v52, %v7082_v53 }
 0x290   : > { %v1432_v6 = vrot.slane %v1419_v34, 4  ;;  %v1435_v55 = vsel %vm1396_vm13, %v1419_v34, %v1434_v24  ;;  %v1467_v0 = vsel %vm1396_vm13, %v7055_v45, %v1466_v62  ;;  %v7195_v22 = vperm.slane %v2235_v31, %v6985_v12  ;;  %v1374_v34 = vpop.permute.xlu1 %1373 }
 0x291   : > { %v1420_v7 = vrot.slane %v1415_v41, 4  ;;  %v1423_v8 = vsel %vm1396_vm13, %v1415_v41, %v1422_v28  ;;  %v1443_v56 = vperm.slane %v1435_v55, %v6996_v40  ;;  %v2289_v45 = vsel %vm1396_vm13, %v2114_v59, %v2103_v27 }
 0x292   : > { %v1431_v52 = vperm.slane %v1423_v8, %v6996_v40  ;;  %v1433_v24 = vsel %vm1396_vm13, %v1432_v6, %v7039_v30  ;;  %v1471_v55 = vperm.slane %v1465_v60, %v6985_v12  ;;  %v1475_v31 = vperm.slane %v1467_v0, %v6985_v12  ;;  %v1366_v8 = vpop.permute.xlu0 %1365 }
 0x293   : > { %v1421_v62 = vsel %vm1396_vm13, %v1420_v7, %v7024_v11  ;;  %v1439_v28 = vperm.slane %v1433_v24, %v6996_v40  ;;  %v1450_v41 = vrot.slane %v1443_v56, 4  ;;  %v1452_v27 = vrot.slane %v1374_v34, 4 }
 0x294   : > { %v1427_v18 = vperm.slane %v1421_v62, %v6996_v40  ;;  %v1446_v9 = vrot.slane %v1431_v52, 4  ;;  %v7211_v59 = vperm.slane %v2289_v45, %v6985_v12  ;;  %v1455_v60 = vsel %vm1396_vm13, %v1374_v34, %v1454_v46 }
 0x295   : > { %v1448_v30 = vrot.slane %v1439_v28, 4  ;;  %v1451_v6 = vsel %vm1396_vm13, 0.0, %v1450_v41  ;;  %v1631_v52 = vsel %vm1396_vm13, %v1450_v41, %v1439_v28  ;;  %v1534_v62 = vrot.slane %v7152_v21, 4 }
 0x296   : > { %v1444_v7 = vrot.slane %v1427_v18, 4  ;;  %v1447_v0 = vsel %vm1396_vm13, 0.0, %v1446_v9  ;;  %v1636_v24 = vrot.slane %v1451_v6, 4  ;;  %v1476_v32 = vrot.slane %v1471_v55, 4 }
 0x297   : > { %v1449_v56 = vsel %vm1396_vm13, 0.0, %v1448_v30  ;;  %v1488_v25 = vrot.slane %v1475_v31, 4  ;;  %v1576_v45 = vrot.slane %v1390_v29, 4  ;;  %v1620_v11 = vsel %vm1396_vm13, %v1446_v9, %v1427_v18 }
 0x298   : > { %v1637_v16 = vsel %vm1396_vm13, %v1636_v24, %v1449_v56  ;;  %v1453_v46 = vsel %vm1396_vm13, %v1452_v27, %v6941_v58  ;;  %v1463_v34 = vperm.slane %v1455_v60, %v6985_v12  ;;  %v1445_v30 = vsel %vm1396_vm13, 0.0, %v1444_v7 }
 0x299   : > { %v1625_v53 = vrot.slane %v1447_v0, 4  ;;  %v7228_v28 = vperm.slane %v1631_v52, %v6985_v12  ;;  %v1459_v41 = vperm.slane %v1453_v46, %v6985_v12  ;;  %v7232_v6 = vperm.slane %v1637_v16, %v6985_v12 }
 0x29a   : > { %v1489_v9 = vsel %vm1396_vm13, %v1488_v25, %v1463_v34  ;;  %v1490_v18 = vrot.slane %v1463_v34, 4  ;;  %v1578_v56 = vrot.slane %v1366_v8, 4  ;;  %v1577_v7 = vsel %vm1396_vm13, %v1576_v45, %v1366_v8 }
 0x29b   : > { %v1477_v24 = vsel %vm1396_vm13, %v1476_v32, %v1459_v41  ;;  %v1478_v58 = vrot.slane %v1459_v41, 4  ;;  %v1495_v27 = vperm.slane %v1489_v9, %v6996_v40  ;;  %v1546_v60 = vrot.slane %v7168_v23, 4  ;;  %v1364_v41 = vpop.permute.xlu1 %1363 }
 0x29c   : > { %v1483_v0 = vperm.slane %v1477_v24, %v6996_v40  ;;  %v1491_v52 = vsel %vm1396_vm13, %v1475_v31, %v1490_v18  ;;  %v1579_v16 = vsel %vm1396_vm13, %v1390_v29, %v1578_v56  ;;  %v7243_v46 = vperm.slane %v1620_v11, %v6985_v12 }
 0x29d   : > { %v1479_v32 = vsel %vm1396_vm13, %v1471_v55, %v1478_v58  ;;  %v1499_v34 = vperm.slane %v1491_v52, %v6996_v40  ;;  %v7249_v8 = vsel %vm1396_vm13, %v1625_v53, %v1445_v30  ;;  %v7254_v31 = vperm.slane %v1577_v7, %v6985_v12 }
 0x29e   : > { %v1487_v9 = vperm.slane %v1479_v32, %v6996_v40  ;;  %v1504_v29 = vrot.slane %v1495_v27, 4  ;;  %v7257_v18 = vperm.slane %v1579_v16, %v6985_v12  ;;  %v2053_v55 = vsel %vm1396_vm13, 0.0, %v2052_v49 }
 0x29f   : > { %v1506_v11 = vrot.slane %v1499_v34, 4  ;;  %v1500_v56 = vrot.slane %v1483_v0, 4  ;;  %v2224_v53 = vsel %vm1396_vm13, %v7133_v38, %v7115_v57  ;;  %v2230_v30 = vsel %vm1396_vm13, %v2229_v50, %v2053_v55 }
 0x2a0   : > { %v1502_v24 = vrot.slane %v1487_v9, 4  ;;  %v7271_v52 = vperm.slane %v2224_v53, %v6985_v12  ;;  %v7274_v16 = vperm.slane %v2230_v30, %v6985_v12  ;;  %v1588_v34 = vrot.slane %v7254_v31, 4 }
 0x2a1   : > { %v1507_v58 = vsel %vm1396_vm13, 0.0, %v1506_v11  ;;  %v1685_v7 = vsel %vm1396_vm13, %v1506_v11, %v1495_v27  ;;  %v1522_v57 = vrot.slane %v1364_v41, 4  ;;  %v1505_v42 = vsel %vm1396_vm13, 0.0, %v1504_v29 }
 0x2a2   : > { %v1674_v49 = vsel %vm1396_vm13, %v1502_v24, %v1483_v0  ;;  %v1690_v32 = vrot.slane %v1507_v58, 4  ;;  %v1503_v38 = vsel %vm1396_vm13, 0.0, %v1502_v24  ;;  %v8930_v50 = vrot.slane %v7173_v43, 4 }
 0x2a3   : > { %v2248_v9 = vrot.slane %v7271_v52, 4  ;;  %v7286_v11 = vperm.slane %v1685_v7, %v6985_v12  ;;  %v2260_v53 = vrot.slane %v7195_v22, 4  ;;  %v1501_v24 = vsel %vm1396_vm13, 0.0, %v1500_v56 }
 0x2a4   : > { %v2241_v27 = vsel %vm1396_vm13, %v8930_v50, %v7148_v13  ;;  %v7295_v29 = vperm.slane %v1674_v49, %v6985_v12  ;;  %v8931_v43 = vrot.slane %v7130_v35, 4  ;;  %v1679_v58 = vrot.slane %v1503_v38, 4 }
 0x2a5   : > { %v7290_v55 = vperm.slane %v2241_v27, %v6985_v12  ;;  %v2249_v30 = vsel %vm1396_vm13, %v7274_v16, %v2248_v9  ;;  %v1691_v7 = vsel %vm1396_vm13, %v1690_v32, %v1505_v42  ;;  %v2278_v56 = vsel %vm1396_vm13, %v7135_v39, %v7130_v35  ;;  %v1388_v27 = vpop.permute.xlu0 %1387  ;;  %v1378_v42 = vpop.permute.xlu1 %1377 }
 0x2a6   : > { %v2109_v13 = vsel %vm1396_vm13, 0.0, %v8931_v43  ;;  %v7309_v49 = vperm.slane %v2249_v30, %v6996_v40  ;;  %v7315_v43 = vperm.slane %v2278_v56, %v6985_v12  ;;  %v8932_v38 = vrot.slane %v7160_v5, 4 }
 0x2a7   : > { %v2261_v50 = vsel %vm1396_vm13, %v7290_v55, %v2260_v53  ;;  %v8933_v35 = vrot.slane %v7176_v47, 4  ;;  %v2314_v30 = vrot.slane %v7211_v59, 4  ;;  %v1564_v9 = vrot.slane %v1378_v42, 4 }
 0x2a8   : > { %v7312_v45 = vperm.slane %v2261_v50, %v6996_v40  ;;  %v2284_v32 = vsel %vm1396_vm13, %v8932_v38, %v2109_v13  ;;  %v2302_v5 = vrot.slane %v7315_v43, 4  ;;  %v1520_v13 = vrot.slane %v1388_v27, 4 }
 0x2a9   : > { %v7322_v53 = vperm.slane %v2284_v32, %v6985_v12  ;;  %v2295_v39 = vsel %vm1396_vm13, %v8933_v35, %v7165_v51  ;;  %v1680_v38 = vsel %vm1396_vm13, %v1679_v58, %v1501_v24  ;;  %v1523_v32 = vsel %vm1396_vm13, %v1388_v27, %v1522_v57 }
 0x2aa   : > { %v2274_v50 = vrot.slane %v7312_v45, 4  ;;  %v7331_v56 = vperm.slane %v2295_v39, %v6985_v12  ;;  %v8934_v25 = vrot.slane %v6957_v63, 4  ;;  %v1521_v0 = vsel %vm1396_vm13, %v1520_v13, %v1364_v41 }
 0x2ab   : > { %v2303_v35 = vsel %vm1396_vm13, %v7322_v53, %v2302_v5  ;;  %v7354_v27 = vperm.slane %v1691_v7, %v6985_v12 }
 0x2ac   : > { %v1567_v47 = vsel %vm1396_vm13, %v1378_v42, %v8934_v25  ;;  %v2275_v51 = vsel %vm1396_vm13, %v2274_v50, %v7309_v49  ;;  %v2315_v39 = vsel %vm1396_vm13, %v7331_v56, %v2314_v30  ;;  %v7347_v24 = vperm.slane %v2303_v35, %v6996_v40 }
 0x2ad   : > { %v7350_v57 = vperm.slane %v2315_v39, %v6996_v40  ;;  %v2838_v58 = vpack.c.bf16 %v2275_v51, %v2275_v51  ;;  %v1527_v25 = vperm.slane %v1521_v0, %v6985_v12  ;;  %v1531_v50 = vperm.slane %v1523_v32, %v6985_v12 }
 0x2ae   : > { %v1565_v30 = vsel %vm1396_vm13, %v1564_v9, %v6957_v63  ;;  %v1575_v51 = vperm.slane %v1567_v47, %v6985_v12  ;;  %v1708_v2 = vrot.slane %v7354_v27, 4 }
 0x2af   : > { %v2328_v41 = vrot.slane %v7350_v57, 4  ;;  %v1532_v5 = vrot.slane %v1527_v25, 4  ;;  %v1535_v13 = vsel %vm1396_vm13, %v1527_v25, %v1534_v62  ;;  %v1544_v7 = vrot.slane %v1531_v50, 4 }
 0x2b0   : > { %v1543_v0 = vperm.slane %v1535_v13, %v6996_v40  ;;  %v1547_v35 = vsel %vm1396_vm13, %v1531_v50, %v1546_v60  ;;  %v1571_v32 = vperm.slane %v1565_v30, %v6985_v12  ;;  %v2963_v9 = vunpack.c.l.b16 %v2838_v58 }
 0x2b1   : > { %v2329_v63 = vsel %vm1396_vm13, %v2328_v41, %v7347_v24  ;;  %v1533_v39 = vsel %vm1396_vm13, %v1532_v5, %v7152_v21  ;;  %v1555_v62 = vperm.slane %v1547_v35, %v6996_v40  ;;  %v1545_v13 = vsel %vm1396_vm13, %v1544_v7, %v7168_v23 }
 0x2b2   : > { %v2839_v25 = vpack.c.bf16 %v2329_v63, %v2329_v63  ;;  %v1539_v47 = vperm.slane %v1533_v39, %v6996_v40  ;;  %v1558_v42 = vrot.slane %v1543_v0, 4  ;;  %v7379_v60 = vperm.slane %v1680_v38, %v6985_v12 }
 0x2b3   : > { %v1551_v50 = vperm.slane %v1545_v13, %v6996_v40  ;;  %v1562_v30 = vrot.slane %v1555_v62, 4  ;;  %v1590_v41 = vrot.slane %v1571_v32, 4  ;;  %v1589_v21 = vsel %vm1396_vm13, %v1588_v34, %v1571_v32 }
 0x2b4   : > { %v2964_v58 = vunpack.c.l.b16 %v2839_v25  ;;  %v2246_v5 = vrot.slane %v7274_v16, 4  ;;  %v1556_v35 = vrot.slane %v1539_v47, 4  ;;  %v8935_v0 = vrot.slane %v7257_v18, 4 }
 0x2b5   : > { %v1560_v63 = vrot.slane %v1551_v50, 4  ;;  %v1563_v23 = vsel %vm1396_vm13, 0.0, %v1562_v30  ;;  %v7391_v39 = vsel %vm1396_vm13, 0.0, %v1558_v42  ;;  %v1739_v62 = vsel %vm1396_vm13, %v1562_v30, %v1551_v50 }
 0x2b6   : > { %v1601_v38 = vsel %vm1396_vm13, %v8935_v0, %v1575_v51  ;;  %v2966_v7 = vpack.c.b16 %v2964_v58, %v2963_v9  ;;  %v1744_v25 = vrot.slane %v1563_v23, 4  ;;  %v1728_v34 = vsel %vm1396_vm13, %v1558_v42, %v1539_v47 }
 0x2b7   : > { %v1561_v13 = vsel %vm1396_vm13, 0.0, %v1560_v63  ;;  %v1591_v16 = vsel %vm1396_vm13, %v7254_v31, %v1590_v41  ;;  %v1595_v32 = vperm.slane %v1589_v21, %v6996_v40  ;;  %v1602_v58 = vrot.slane %v1575_v51, 4 }
 0x2b8   : > { %v2977_v14 = vsel %vm2864_vm14, %v2966_v7, 0  ;;  %v1745_v0 = vsel %vm1396_vm13, %v1744_v25, %v1561_v13  ;;  %v1599_v9 = vperm.slane %v1591_v16, %v6996_v40  ;;  %v7404_v50 = vperm.slane %v1739_v62, %v6985_v12 }
 0x2b9   : > { %2985 = vmatpush.bf16.xpose.msrb.mxu0 %v2977_v14  ;;  %v7407_v42 = vperm.slane %v1745_v0, %v6985_v12  ;;  %v1607_v31 = vperm.slane %v1601_v38, %v6996_v40  ;;  %v7411_v47 = vperm.slane %v1728_v34, %v6985_v12  ;;  %v1603_v30 = vsel %vm1396_vm13, %v7257_v18, %v1602_v58 }
 0x2ba   : > { %v2247_v51 = vsel %vm1396_vm13, %v2246_v5, %v7271_v52  ;;  %v2258_v41 = vrot.slane %v7290_v55, 4  ;;  %v1733_v14 = vrot.slane %v7391_v39, 4  ;;  %v1611_v21 = vperm.slane %v1603_v30, %v6996_v40 }
 0x2bb   : > { %v1612_v63 = vrot.slane %v1595_v32, 4  ;;  %v1614_v23 = vrot.slane %v1599_v9, 4  ;;  %v7421_v7 = vsel %vm1396_vm13, 0.0, %v1556_v35  ;;  %v1616_v38 = vrot.slane %v1607_v31, 4 }
 0x2bc   : > { %v2259_v62 = vsel %vm1396_vm13, %v2258_v41, %v7195_v22  ;;  %v2300_v18 = vrot.slane %v7322_v53, 4  ;;  %v1762_v25 = vrot.slane %v7407_v42, 4  ;;  %v1764_v52 = vrot.slane %v7404_v50, 4 }
 0x2bd   : > { %v1618_v55 = vrot.slane %v1611_v21, 4  ;;  %v7429_v5 = vperm.slane %v2247_v51, %v6996_v40  ;;  %v7432_v13 = vperm.slane %v2259_v62, %v6996_v40  ;;  %v2312_v34 = vrot.slane %v7331_v56, 4 }
 0x2be   : > { %v2301_v35 = vsel %vm1396_vm13, %v2300_v18, %v7315_v43  ;;  %v2276_v22 = vrot.slane %v7309_v49, 4  ;;  %v7439_v53 = vsel %vm1396_vm13, 0.0, %v1612_v63  ;;  %v7442_v16 = vsel %vm1396_vm13, 0.0, %v1614_v23 }
 0x2bf   : > { %v1782_v0 = vsel %vm1396_vm13, %v1614_v23, %v1595_v32  ;;  %v2330_v9 = vrot.slane %v7347_v24, 4  ;;  %v1617_v58 = vsel %vm1396_vm13, 0.0, %v1616_v38  ;;  %v1619_v30 = vsel %vm1396_vm13, 0.0, %v1618_v55 }
 0x2c0   : > { %v2270_v43 = vrot.slane %v7432_v13, 4  ;;  %v2313_v56 = vsel %vm1396_vm13, %v2312_v34, %v7211_v59  ;;  %v7452_v49 = vperm.slane %v2301_v35, %v6996_v40  ;;  %v2277_v32 = vsel %vm1396_vm13, %v7312_v45, %v2276_v22 }
 0x2c1   : > { %v7455_v51 = vperm.slane %v2313_v56, %v6996_v40  ;;  %v2331_v24 = vsel %vm1396_vm13, %v7350_v57, %v2330_v9  ;;  %v7462_v41 = vperm.slane %v1782_v0, %v6985_v12  ;;  %v1793_v21 = vsel %vm1396_vm13, %v1618_v55, %v1607_v31 }
 0x2c2   : > { %v2271_v59 = vsel %vm1396_vm13, %v2270_v43, %v7429_v5  ;;  %v2842_v63 = vpack.c.bf16 %v2277_v32, %v2277_v32  ;;  %v2843_v62 = vpack.c.bf16 %v2331_v24, %v2331_v24  ;;  %v8936_v18 = vrot.slane %v7027_v15, 4 }
 0x2c3   : > { %v2324_v23 = vrot.slane %v7455_v51, 4  ;;  %v2830_v38 = vpack.c.bf16 %v2271_v59, %v2271_v59  ;;  %v1798_v35 = vrot.slane %v1619_v30, 4  ;;  %v2116_v57 = vsel %vm1396_vm13, %v7074_v17, %v7027_v15 }
 0x2c4   : > { %v1941_v45 = vsel %vm1396_vm13, 0.0, %v8936_v18  ;;  %v3014_v34 = vunpack.c.l.b16 %v2842_v63  ;;  %v8937_v31 = vrot.slane %v7094_v54, 4  ;;  %v3015_v9 = vunpack.c.l.b16 %v2843_v62 }
 0x2c5   : > { %v2325_v22 = vsel %vm1396_vm13, %v2324_v23, %v7452_v49  ;;  %v2860_v0 = vunpack.c.l.b16 %v2830_v38  ;;  %v8938_v43 = vrot.slane %v7045_v33, 4  ;;  %v2120_v30 = vperm.slane %v2116_v57, %v6985_v12 }
 0x2c6   : > { %v2122_v55 = vsel %vm1396_vm13, %v8937_v31, %v1941_v45  ;;  %v2831_v32 = vpack.c.bf16 %v2325_v22, %v2325_v22  ;;  %v8939_v15 = vrot.slane %v7086_v36, 4  ;;  %v3017_v54 = vpack.c.b16 %v3015_v9, %v3014_v34 }
 0x2c7   : > { %v1997_v56 = vsel %vm1396_vm13, 0.0, %v8938_v43  ;;  %v2126_v24 = vperm.slane %v2122_v55, %v6985_v12  ;;  %v2152_v63 = vrot.slane %v7111_v20, 4  ;;  %v2170_v23 = vsel %vm1396_vm13, %v7076_v10, %v7045_v33 }
 0x2c8   : > { %v2133_v17 = vsel %vm1396_vm13, %v8939_v15, %v7049_v37  ;;  %v2861_v38 = vunpack.c.l.b16 %v2831_v32  ;;  %v2140_v62 = vrot.slane %v2120_v30, 4  ;;  %v2174_v18 = vperm.slane %v2170_v23, %v6985_v12 }
 0x2c9   : > { %v2137_v59 = vperm.slane %v2133_v17, %v6985_v12  ;;  %v8940_v45 = vrot.slane %v7102_v61, 4  ;;  %v3028_v36 = vsel %vm2864_vm14, %v3017_v54, 0  ;;  %v8941_v31 = vrot.slane %v7119_v4, 4 }
 0x2ca   : > { %v2863_v33 = vpack.c.b16 %v2861_v38, %v2860_v0  ;;  %3036 = vmatpush.bf16.xpose.msrb.mxu1 %v3028_v36  ;;  %v2141_v10 = vsel %vm1396_vm13, %v2126_v24, %v2140_v62  ;;  %v1799_v9 = vsel %vm1396_vm13, %v1798_v35, %v1617_v58  ;;  %v2206_v32 = vrot.slane %v7140_v19, 4 }
 0x2cb   : > { %v2176_v57 = vsel %vm1396_vm13, %v8940_v45, %v1997_v56  ;;  %v2153_v37 = vsel %vm1396_vm13, %v2137_v59, %v2152_v63  ;;  %v2187_v55 = vsel %vm1396_vm13, %v8941_v31, %v7126_v26  ;;  %v2149_v43 = vperm.slane %v2141_v10, %v6996_v40 }
 0x2cc   : > { %v2180_v34 = vperm.slane %v2176_v57, %v6985_v12  ;;  %v2161_v22 = vperm.slane %v2153_v37, %v6996_v40  ;;  %v2191_v61 = vperm.slane %v2187_v55, %v6985_v12  ;;  %v2194_v56 = vrot.slane %v2174_v18, 4 }
 0x2cd   : > { %v1787_v15 = vrot.slane %v7442_v16, 4  ;;  %v2875_v4 = vsel %vm2864_vm14, %v2863_v33, 0  ;;  %v2138_v0 = vrot.slane %v2126_v24, 4  ;;  %v7513_v17 = vperm.slane %v1793_v21, %v6985_v12 }
 0x2ce   : > { %v2166_v26 = vrot.slane %v2161_v22, 4  ;;  %2883 = vmatpush.bf16.xpose.msra.mxu3 %v2875_v4  ;;  %v2195_v54 = vsel %vm1396_vm13, %v2180_v34, %v2194_v56  ;;  %v2207_v63 = vsel %vm1396_vm13, %v2191_v61, %v2206_v32  ;;  %v2150_v58 = vrot.slane %v2137_v59, 4 }
 0x2cf   : > { %v7518_v35 = vperm.slane %v1799_v9, %v6985_v12  ;;  %v2203_v38 = vperm.slane %v2195_v54, %v6996_v40  ;;  %v2215_v62 = vperm.slane %v2207_v63, %v6996_v40  ;;  %v2139_v24 = vsel %vm1396_vm13, %v2138_v0, %v2120_v30 }
 0x2d0   : > { %v2167_v23 = vsel %vm1396_vm13, %v2166_v26, %v2149_v43  ;;  %v2151_v21 = vsel %vm1396_vm13, %v2150_v58, %v7111_v20  ;;  %v2192_v57 = vrot.slane %v2180_v34, 4  ;;  %v7527_v37 = vperm.slane %v2139_v24, %v6996_v40 }
 0x2d1   : > { %v2836_v45 = vpack.c.bf16 %v2167_v23, %v2167_v23  ;;  %v2220_v36 = vrot.slane %v2215_v62, 4  ;;  %v7530_v59 = vperm.slane %v2151_v21, %v6996_v40  ;;  %v2204_v31 = vrot.slane %v2191_v61, 4 }
 0x2d2   : > { %v2193_v33 = vsel %vm1396_vm13, %v2192_v57, %v2174_v18  ;;  %v2168_v10 = vrot.slane %v2149_v43, 4  ;;  %v2222_v9 = vrot.slane %v2203_v38, 4  ;;  %v2272_v54 = vrot.slane %v7429_v5, 4 }
 0x2d3   : > { %v2961_v55 = vunpack.c.l.b16 %v2836_v45  ;;  %v2221_v56 = vsel %vm1396_vm13, %v2220_v36, %v2203_v38  ;;  %v2162_v30 = vrot.slane %v7530_v59, 4  ;;  %v7536_v20 = vperm.slane %v2193_v33, %v6996_v40 }
 0x2d4   : > { %v2205_v34 = vsel %vm1396_vm13, %v2204_v31, %v7140_v19  ;;  %v2837_v32 = vpack.c.bf16 %v2221_v56, %v2221_v56  ;;  %v2169_v61 = vsel %vm1396_vm13, %v2161_v22, %v2168_v10  ;;  %v2223_v18 = vsel %vm1396_vm13, %v2215_v62, %v2222_v9 }
 0x2d5   : > { %v7541_v4 = vperm.slane %v2205_v34, %v6996_v40  ;;  %v2163_v43 = vsel %vm1396_vm13, %v2162_v30, %v7527_v37  ;;  %v2840_v26 = vpack.c.bf16 %v2169_v61, %v2169_v61  ;;  %v2841_v0 = vpack.c.bf16 %v2223_v18, %v2223_v18 }
 0x2d6   : > { %v2962_v63 = vunpack.c.l.b16 %v2837_v32  ;;  %v2828_v23 = vpack.c.bf16 %v2163_v43, %v2163_v43  ;;  %v2326_v19 = vrot.slane %v7452_v49, 4  ;;  %v2273_v22 = vsel %vm1396_vm13, %v7432_v13, %v2272_v54 }
 0x2d7   : > { %v2216_v58 = vrot.slane %v7541_v4, 4  ;;  %v3012_v38 = vunpack.c.l.b16 %v2840_v26  ;;  %v3013_v45 = vunpack.c.l.b16 %v2841_v0  ;;  %v1630_v62 = vperm.slane %v7249_v8, %v6985_v12 }
 0x2d8   : > { %v2965_v24 = vpack.c.b16 %v2962_v63, %v2961_v55  ;;  %v2858_v57 = vunpack.c.l.b16 %v2828_v23  ;;  %v2327_v5 = vsel %vm1396_vm13, %v7455_v51, %v2326_v19  ;;  %v2834_v33 = vpack.c.bf16 %v2273_v22, %v2273_v22 }
 0x2d9   : > { %v2217_v21 = vsel %vm1396_vm13, %v2216_v58, %v7536_v20  ;;  %v3016_v31 = vpack.c.b16 %v3013_v45, %v3012_v38  ;;  %v2835_v49 = vpack.c.bf16 %v2327_v5, %v2327_v5  ;;  %v1644_v9 = vrot.slane %v7243_v46, 4 }
 0x2da   : > { %v2829_v36 = vpack.c.bf16 %v2217_v21, %v2217_v21  ;;  %v2974_v10 = vsel %vm2864_vm14, %v2965_v24, 0  ;;  %v8942_v13 = vrot.slane %v7228_v28, 4  ;;  %v8943_v55 = vrot.slane %v7295_v29, 4 }
 0x2db   : > { %2986 = vmatpush.bf16.xpose.msrb.mxu0 %v2974_v10  ;;  %v3025_v30 = vsel %vm2864_vm14, %v3016_v31, 0  ;;  %v2912_v34 = vunpack.c.l.b16 %v2834_v33  ;;  %v2913_v32 = vunpack.c.l.b16 %v2835_v49  ;;  %v1645_v61 = vsel %vm1396_vm13, %v1630_v62, %v1644_v9 }
 0x2dc   : > { %v1657_v8 = vsel %vm1396_vm13, %v7232_v6, %v8942_v13  ;;  %v1699_v56 = vsel %vm1396_vm13, %v7379_v60, %v8943_v55  ;;  %v2859_v51 = vunpack.c.l.b16 %v2829_v36  ;;  %3037 = vmatpush.bf16.xpose.msrb.mxu1 %v3025_v30  ;;  %v8944_v26 = vrot.slane %v7286_v11, 4 }
 0x2dd   : > { %v1665_v18 = vperm.slane %v1657_v8, %v6996_v40  ;;  %v1707_v43 = vperm.slane %v1699_v56, %v6996_v40  ;;  %v2915_v63 = vpack.c.b16 %v2913_v32, %v2912_v34  ;;  %v1653_v58 = vperm.slane %v1645_v61, %v6996_v40 }
 0x2de   : > { %v1711_v0 = vsel %vm1396_vm13, %v7354_v27, %v8944_v26  ;;  %v2862_v54 = vpack.c.b16 %v2859_v51, %v2858_v57  ;;  %v1642_v38 = vrot.slane %v1630_v62, 4  ;;  %v8945_v45 = vrot.slane %v7232_v6, 4 }
 0x2df   : > { %v1719_v23 = vperm.slane %v1711_v0, %v6996_v40  ;;  %v1670_v19 = vrot.slane %v1665_v18, 4  ;;  %v1696_v24 = vrot.slane %v7379_v60, 4  ;;  %v2926_v5 = vsel %vm2864_vm14, %v2915_v63, 0 }
 0x2e0   : > { %v1655_v22 = vsel %vm1396_vm13, %v8945_v45, %v7228_v28  ;;  %v2872_v21 = vsel %vm2864_vm14, %v2862_v54, 0  ;;  %v1643_v62 = vsel %vm1396_vm13, %v1642_v38, %v7243_v46  ;;  %v1709_v28 = vsel %vm1396_vm13, %v1708_v2, %v7286_v11 }
 0x2e1   : > { %v1724_v36 = vrot.slane %v1719_v23, 4  ;;  %v7586_v57 = vperm.slane %v1655_v22, %v6996_v40  ;;  %2884 = vmatpush.bf16.xpose.msra.mxu3 %v2872_v21  ;;  %v1671_v31 = vsel %vm1396_vm13, %v1670_v19, %v1653_v58  ;;  %v1697_v6 = vsel %vm1396_vm13, %v1696_v24, %v7295_v29 }
 0x2e2   : > { %v1844_v33 = vmul.f32 0.17677669, %v1671_v31  ;;  %v7599_v49 = vperm.slane %v1643_v62, %v6996_v40  ;;  %v7603_v46 = vperm.slane %v1697_v6, %v6996_v40  ;;  %v7606_v29 = vperm.slane %v1709_v28, %v6996_v40 }
 0x2e3   : > { %v1725_v60 = vsel %vm1396_vm13, %v1724_v36, %v1707_v43  ;;  %v1666_v10 = vrot.slane %v7586_v57, 4  ;;  %v1672_v13 = vrot.slane %v1653_v58, 4  ;;  %v1818_v27 = vrot.slane %v7513_v17, 4 }
 0x2e4   : > { %v1845_v9 = vmul.f32 0.17677669, %v1725_v60  ;;  %v2820_v2 = vpack.c.bf16 %v1844_v33, %v1844_v33  ;;  %v1726_v8 = vrot.slane %v1707_v43, 4  ;;  %v1816_v55 = vrot.slane %v7518_v35, 4 }
 0x2e5   : > { %v1667_v11 = vsel %vm1396_vm13, %v1666_v10, %v7599_v49  ;;  %v1720_v51 = vrot.slane %v7606_v29, 4  ;;  %v1673_v32 = vsel %vm1396_vm13, %v1665_v18, %v1672_v13  ;;  %v2164_v26 = vrot.slane %v7527_v37, 4 }
 0x2e6   : > { %v2821_v56 = vpack.c.bf16 %v1845_v9, %v1845_v9  ;;  %v1836_v30 = vmul.f32 0.17677669, %v1667_v11  ;;  %v2951_v34 = vunpack.c.l.b16 %v2820_v2  ;;  %v1727_v61 = vsel %vm1396_vm13, %v1719_v23, %v1726_v8 }
 0x2e7   : > { %v1721_v54 = vsel %vm1396_vm13, %v1720_v51, %v7603_v46  ;;  %v1848_v58 = vmul.f32 0.17677669, %v1673_v32  ;;  %v1849_v19 = vmul.f32 0.17677669, %v1727_v61  ;;  %v2165_v38 = vsel %vm1396_vm13, %v7530_v59, %v2164_v26 }
 0x2e8   : > { %v2952_v0 = vunpack.c.l.b16 %v2821_v56  ;;  %v2812_v63 = vpack.c.bf16 %v1836_v30, %v1836_v30  ;;  %v1837_v43 = vmul.f32 0.17677669, %v1721_v54  ;;  %v2218_v45 = vrot.slane %v7536_v20, 4 }
 0x2e9   : > { %2934 = vmatpush.bf16.xpose.msrb.mxu3 %v2926_v5  ;;  %v2824_v18 = vpack.c.bf16 %v1848_v58, %v1848_v58  ;;  %v2832_v21 = vpack.c.bf16 %v2165_v38, %v2165_v38  ;;  %v2825_v5 = vpack.c.bf16 %v1849_v19, %v1849_v19  ;;  %v1734_v36 = vsel %vm1396_vm13, %v1733_v14, %v7421_v7 }
 0x2ea   : > { %v2955_v22 = vpack.c.b16 %v2952_v0, %v2951_v34  ;;  %v2848_v24 = vunpack.c.l.b16 %v2812_v63  ;;  %v2813_v23 = vpack.c.bf16 %v1837_v43, %v1837_v43  ;;  %v2219_v37 = vsel %vm1396_vm13, %v7541_v4, %v2218_v45 }
 0x2eb   : > { %v3002_v31 = vunpack.c.l.b16 %v2824_v18  ;;  %v2833_v59 = vpack.c.bf16 %v2219_v37, %v2219_v37  ;;  %v2910_v62 = vunpack.c.l.b16 %v2832_v21  ;;  %v1738_v20 = vperm.slane %v1734_v36, %v6985_v12 }
 0x2ec   : > { %5615 = vmatmul.msk.bf16.vlgmr.msrb.gmra.mxu0 %vm2864_vm14, %v2955_v22  ;;  %v2849_v6 = vunpack.c.l.b16 %v2813_v23  ;;  %v3003_v28 = vunpack.c.l.b16 %v2825_v5  ;;  %v1752_v60 = vrot.slane %v7411_v47, 4  ;;  %v1765_v4 = vsel %vm1396_vm13, %v7407_v42, %v1764_v52 }
 0x2ed   : > { %v2911_v33 = vunpack.c.l.b16 %v2833_v59  ;;  %v1773_v39 = vperm.slane %v1765_v4, %v6996_v40  ;;  %v1788_v14 = vsel %vm1396_vm13, %v1787_v15, %v7439_v53  ;;  %v1806_v7 = vrot.slane %v7462_v41, 4 }
 0x2ee   : > { %v2852_v10 = vpack.c.b16 %v2849_v6, %v2848_v24  ;;  %v3006_v9 = vpack.c.b16 %v3003_v28, %v3002_v31  ;;  %v1753_v13 = vsel %vm1396_vm13, %v1738_v20, %v1752_v60  ;;  %v1792_v2 = vperm.slane %v1788_v14, %v6985_v12 }
 0x2ef   : > { %v2914_v11 = vpack.c.b16 %v2911_v33, %v2910_v62  ;;  %v1761_v8 = vperm.slane %v1753_v13, %v6996_v40  ;;  %v1778_v52 = vrot.slane %v1773_v39, 4  ;;  %v1819_v56 = vsel %vm1396_vm13, %v7518_v35, %v1818_v27 }
 0x2f0   : > { %5611 = vmatmul.msk.bf16.vlgmr.msra.gmra.mxu3 %vm2864_vm14, %v2852_v10  ;;  %5617 = vmatmul.msk.bf16.vlgmr.msrb.gmra.mxu1 %vm2864_vm14, %v3006_v9  ;;  %v1807_v53 = vsel %vm1396_vm13, %v1792_v2, %v1806_v7  ;;  %v1827_v16 = vperm.slane %v1819_v56, %v6996_v40  ;;  %v1750_v15 = vrot.slane %v1738_v20, 4  ;;  %v1763_v51 = vsel %vm1396_vm13, %v1762_v25, %v7404_v50 }
 0x2f1   : > { %v2923_v30 = vsel %vm2864_vm14, %v2914_v11, 0  ;;  %v1779_v34 = vsel %vm1396_vm13, %v1778_v52, %v1761_v8  ;;  %v1815_v27 = vperm.slane %v1807_v53, %v6996_v40  ;;  %v1769_v32 = vperm.slane %v1763_v51, %v6996_v40 }
 0x2f2   : > { %2935 = vmatpush.bf16.xpose.msrb.mxu3 %v2923_v30  ;;  %v1832_v61 = vrot.slane %v1827_v16, 4  ;;  %v1846_v26 = vmul.f32 0.17677669, %v1779_v34  ;;  %v1751_v0 = vsel %vm1396_vm13, %v1750_v15, %v7411_v47  ;;  %v1804_v54 = vrot.slane %v1792_v2, 4 }
 0x2f3   : > { %v1757_v63 = vperm.slane %v1751_v0, %v6996_v40  ;;  %v1774_v42 = vrot.slane %v1769_v32, 4  ;;  %v1817_v50 = vsel %vm1396_vm13, %v1816_v55, %v7513_v17  ;;  %v1780_v25 = vrot.slane %v1761_v8, 4 }
 0x2f4   : > { %v1833_v58 = vsel %vm1396_vm13, %v1832_v61, %v1815_v27  ;;  %v2822_v43 = vpack.c.bf16 %v1846_v26, %v1846_v26  ;;  %v1805_v19 = vsel %vm1396_vm13, %v1804_v54, %v7462_v41  ;;  %v1823_v38 = vperm.slane %v1817_v50, %v6996_v40 }
 0x2f5   : > { %v1847_v45 = vmul.f32 0.17677669, %v1833_v58  ;;  %v1775_v47 = vsel %vm1396_vm13, %v1774_v42, %v1757_v63  ;;  %v1811_v22 = vperm.slane %v1805_v19, %v6996_v40  ;;  %v1781_v24 = vsel %vm1396_vm13, %v1773_v39, %v1780_v25 }
 0x2f6   : > { %v1828_v18 = vrot.slane %v1823_v38, 4  ;;  %v1838_v35 = vmul.f32 0.17677669, %v1775_v47  ;;  %v1834_v21 = vrot.slane %v1815_v27, 4  ;;  %v1850_v55 = vmul.f32 0.17677669, %v1781_v24 }
 0x2f7   : > { %v2823_v17 = vpack.c.bf16 %v1847_v45, %v1847_v45  ;;  %v2953_v23 = vunpack.c.l.b16 %v2822_v43  ;;  %v1722_v60 = vrot.slane %v7603_v46, 4  ;;  %v1668_v7 = vrot.slane %v7599_v49, 4 }
 0x2f8   : > { %v1829_v5 = vsel %vm1396_vm13, %v1828_v18, %v1811_v22  ;;  %v2814_v37 = vpack.c.bf16 %v1838_v35, %v1838_v35  ;;  %v1835_v41 = vsel %vm1396_vm13, %v1827_v16, %v1834_v21  ;;  %v2826_v62 = vpack.c.bf16 %v1850_v55, %v1850_v55 }
 0x2f9   : > { %v2954_v36 = vunpack.c.l.b16 %v2823_v17  ;;  %v1839_v31 = vmul.f32 0.17677669, %v1829_v5  ;;  %v1851_v59 = vmul.f32 0.17677669, %v1835_v41  ;;  %v1723_v13 = vsel %vm1396_vm13, %v7606_v29, %v1722_v60 }
 0x2fa   : > { %v2850_v4 = vunpack.c.l.b16 %v2814_v37  ;;  %v3004_v39 = vunpack.c.l.b16 %v2826_v62  ;;  %v1669_v46 = vsel %vm1396_vm13, %v7586_v57, %v1668_v7  ;;  %v1841_v2 = vmul.f32 0.17677669, %v1723_v13 }
 0x2fb   : > { %v2956_v20 = vpack.c.b16 %v2954_v36, %v2953_v23  ;;  %v2815_v6 = vpack.c.bf16 %v1839_v31, %v1839_v31  ;;  %v2827_v28 = vpack.c.bf16 %v1851_v59, %v1851_v59  ;;  %v1840_v11 = vmul.f32 0.17677669, %v1669_v46  ;;  %v7750_v46 = vpop.permute.xlu2 %6270 }
 0x2fc   : > { %v2817_v8 = vpack.c.bf16 %v1841_v2, %v1841_v2  ;;  %v1830_v53 = vrot.slane %v1811_v22, 4  ;;  %v1776_v49 = vrot.slane %v1757_v63, 4  ;;  %v6279_v62 = vpack.i.bf16 %v6927_v48, %v6917_v44 }
 0x2fd   : > { %5616 = vmatmul.msk.bf16.gmra.mxu0 %vm2864_vm14, %v2956_v20  ;;  %v2851_v33 = vunpack.c.l.b16 %v2815_v6  ;;  %v3005_v14 = vunpack.c.l.b16 %v2827_v28  ;;  %v2816_v52 = vpack.c.bf16 %v1840_v11, %v1840_v11 }
 0x2fe   : > { %v2901_v56 = vunpack.c.l.b16 %v2817_v8  ;;  %v1831_v51 = vsel %vm1396_vm13, %v1823_v38, %v1830_v53  ;;  %v1777_v29 = vsel %vm1396_vm13, %v1769_v32, %v1776_v49 }
 0x2ff   : > { %v2853_v10 = vpack.c.b16 %v2851_v33, %v2850_v4  ;;  %v3007_v9 = vpack.c.b16 %v3005_v14, %v3004_v39  ;;  %v2900_v16 = vunpack.c.l.b16 %v2816_v52  ;;  %v1843_v30 = vmul.f32 0.17677669, %v1831_v51  ;;  %v7747_v39 = vpop.permute.xlu0 %6265 }
 0x300   : > { %v1842_v34 = vmul.f32 0.17677669, %v1777_v29 }
 0x301   : > { %5612 = vmatmul.msk.bf16.gmra.mxu3 %vm2864_vm14, %v2853_v10  ;;  %5618 = vmatmul.msk.bf16.gmra.mxu1 %vm2864_vm14, %v3007_v9  ;;  %v2904_v15 = vpack.c.b16 %v2901_v56, %v2900_v16  ;;  %v2819_v27 = vpack.c.bf16 %v1843_v30, %v1843_v30 }
 0x302   : > { %v2818_v61 = vpack.c.bf16 %v1842_v34, %v1842_v34 }
 0x303   : > { %v2903_v57 = vunpack.c.l.b16 %v2819_v27 }
 0x304   : > { %v2902_v26 = vunpack.c.l.b16 %v2818_v61 }
 0x306   : > { %v2905_v0 = vpack.c.b16 %v2903_v57, %v2902_v26 }
 0x311   : > { %5613 = vmatmul.msk.bf16.vlgmr.msrb.gmra.mxu3 %vm2864_vm14, %v2904_v15 }
 0x321   : > { %5614 = vmatmul.msk.bf16.gmra.mxu3 %vm2864_vm14, %v2905_v0 }
 0x369   : > { %v2988_v54 = vpop.f32.mrf.mxu0 }
 0x36a   : > { %v3073_v42 = vsel %vm2864_vm14, %v2988_v54, -inf }
 0x36b   : > { %3074 = vmax.xlane.f32.xlu0 %v3073_v42 }
 0x36d   : > { %v3039_v63 = vpop.f32.mrf.mxu1 }
 0x36e   : > { %v3085_v50 = vsel %vm2864_vm14, %v3039_v63, -inf }
 0x36f   : > { %3086 = vmax.xlane.f32.xlu1 %v3085_v50 }
 0x371   : > { %v7688_v25 = vpop.f32.mrf.mxu0 }
 0x372   : > { %v3076_v32 = vsel %vm2864_vm14, %v7688_v25, -inf }
 0x373   : > { %3077 = vmax.xlane.f32.xlu2 %v3076_v32  ;;  %v2886_v58 = vpop.f32.mrf.mxu3 }
 0x374   : > { %v3049_v38 = vsel %vm2864_vm14, %v2886_v58, -inf }
 0x375   : > { %v7692_v43 = vpop.f32.mrf.mxu1 }
 0x376   : > { %v3088_v19 = vsel %vm2864_vm14, %v7692_v43, -inf }
 0x377   : > { %3089 = vmax.xlane.f32.xlu0 %v3088_v19  ;;  %3050 = vmax.xlane.f32.xlu1 %v3049_v38 }
 0x37a   : > { %v7697_v45 = vpop.f32.mrf.mxu0 }
 0x37b   : > { %v7699_v47 = vpop.f32.mrf.mxu3  ;;  %v3079_v24 = vsel %vm2864_vm14, %v7697_v45, -inf }
 0x37c   : > { %v3052_v18 = vsel %vm2864_vm14, %v7699_v47, -inf }
 0x37e   : > { %v7701_v22 = vpop.f32.mrf.mxu1 }
 0x37f   : > { %v3091_v35 = vsel %vm2864_vm14, %v7701_v22, -inf  ;;  %3080 = vmax.xlane.f32.xlu1 %v3079_v24  ;;  %3053 = vmax.xlane.f32.xlu0 %v3052_v18 }
 0x380   : > { %3092 = vmax.xlane.f32.xlu2 %v3091_v35 }
 0x382   : > { %v7709_v21 = vpop.f32.mrf.mxu0 }
 0x383   : > { %v3082_v23 = vsel %vm2864_vm14, %v7709_v21, -inf }
 0x384   : > { %v7711_v17 = vpop.f32.mrf.mxu3 }
 0x385   : > { %v3055_v37 = vsel %vm2864_vm14, %v7711_v17, -inf }
 0x386   : > { %v7713_v55 = vpop.f32.mrf.mxu1 }
 0x387   : > { %v3094_v5 = vsel %vm2864_vm14, %v7713_v55, -inf  ;;  %3083 = vmax.xlane.f32.xlu0 %v3082_v23 }
 0x388   : > { %3095 = vmax.xlane.f32.xlu1 %v3094_v5  ;;  %3056 = vmax.xlane.f32.xlu2 %v3055_v37 }
 0x38c   : > { %v7721_v41 = vpop.f32.mrf.mxu3 }
 0x38d   : > { %v3058_v36 = vsel %vm2864_vm14, %v7721_v41, -inf }
 0x390   : > { %3059 = vmax.xlane.f32.xlu1 %v3058_v36 }
 0x394   : > { %v7725_v31 = vpop.f32.mrf.mxu3 }
 0x395   : > { %v3061_v59 = vsel %vm2864_vm14, %v7725_v31, -inf }
 0x396   : > { %3062 = vmax.xlane.f32.xlu2 %v3061_v59 }
 0x39b   : > { %6280 = vrot.lane.b32.xlu0 %v6279_v62, %s6558_s28 }
 0x39c   : > { %v7732_v20 = vpop.f32.mrf.mxu3 }
 0x39d   : > { %v3064_v6 = vsel %vm2864_vm14, %v7732_v20, -inf }
 0x39e   : > { %3065 = vmax.xlane.f32.xlu1 %v3064_v6 }
 0x3a4   : > { %v7736_v28 = vpop.f32.mrf.mxu3 }
 0x3a5   : > { %v3067_v33 = vsel %vm2864_vm14, %v7736_v28, -inf }
 0x3ac   : > { %v7738_v60 = vpop.f32.mrf.mxu3 }
 0x3ad   : > { %v3070_v4 = vsel %vm2864_vm14, %v7738_v60, -inf }
 0x3ae   : > { %3071 = vmax.xlane.f32.xlu2 %v3070_v4 }
 0x3b7   : > { %6275 = vrot.lane.b32.xlu1 %v6977_v3, %s6559_s2 }
 0x3c5   : > { %3068 = vmax.xlane.f32.xlu0 %v3067_v33 }
 0x3c6   : > { %6285 = vrot.lane.b32.xlu2 %v6279_v62, %s6557_s18 }
 0x3d9   : > { %6290 = vrot.lane.b32.xlu0 %v6279_v62, %s6559_s2 }
 0x3de   : > { %v3075_v14 = vpop.xlane.xlu0 %3074 }
 0x3df   : > { %v3105_v7 = vsub.f32 %v2988_v54, %v3075_v14 }
 0x3e1   : > { %v3129_v10 = vmul.f32 1.442695, %v3105_v7 }
 0x3e2   : > { %v3087_v9 = vpop.xlane.xlu1 %3086 }
 0x3e3   : > { %6340 = vpow2.f32 %v3129_v10  ;;  %v3109_v13 = vsub.f32 %v3039_v63, %v3087_v9 }
 0x3e5   : > { %v3137_v2 = vmul.f32 1.442695, %v3109_v13 }
 0x3e6   : > { %v3078_v16 = vpop.xlane.xlu2 %3077 }
 0x3e7   : > { %6342 = vpow2.f32 %v3137_v2  ;;  %v3106_v51 = vsub.f32 %v7688_v25, %v3078_v16 }
 0x3e9   : > { %v7752_v3 = vpop.eup %6340  ;;  %v3131_v34 = vmul.f32 1.442695, %v3106_v51 }
 0x3ea   : > { %v3090_v11 = vpop.xlane.xlu0 %3089  ;;  %v3051_v8 = vpop.xlane.xlu1 %3050  ;;  %v3169_v56 = vsel %vm2864_vm14, %v7752_v3, 0.0 }
 0x3eb   : > { %v3097_v52 = vsub.f32 %v2886_v58, %v3051_v8  ;;  %v3110_v26 = vsub.f32 %v7692_v43, %v3090_v11 }
 0x3ed   : > { %v7756_v53 = vpop.eup %6342  ;;  %v3113_v49 = vmul.f32 1.442695, %v3097_v52  ;;  %v3139_v42 = vmul.f32 1.442695, %v3110_v26 }
 0x3ee   : > { %v3181_v15 = vsel %vm2864_vm14, %v7756_v53, 0.0 }
 0x3ef   : > { %3170 = vadd.xlane.f32.xlu2 %v3169_v56  ;;  %3182 = vadd.xlane.f32.xlu1 %v3181_v15  ;;  %6344 = vpow2.f32 %v3113_v49 }
 0x3f0   : > { %6346 = vpow2.f32 %v3131_v34 }
 0x3f2   : > { %v3054_v29 = vpop.xlane.xlu0 %3053  ;;  %v3081_v27 = vpop.xlane.xlu1 %3080 }
 0x3f3   : > { %v3098_v30 = vsub.f32 %v7699_v47, %v3054_v29  ;;  %v3093_v0 = vpop.xlane.xlu2 %3092 }
 0x3f4   : > { %v3111_v14 = vsub.f32 %v7701_v22, %v3093_v0  ;;  %v6268_v0 = vunpack.i.h.bf16 %v7747_v39 }
 0x3f5   : > { %v3115_v61 = vmul.f32 1.442695, %v3098_v30  ;;  %v7762_v57 = vpop.eup %6344 }
 0x3f6   : > { %v3145_v54 = vsel %vm2864_vm14, %v7762_v57, 0.0  ;;  %v7767_v63 = vpop.eup %6346  ;;  %v3141_v8 = vmul.f32 1.442695, %v3111_v14 }
 0x3f7   : > { %3146 = vadd.xlane.f32.xlu1 %v3145_v54  ;;  %6348 = vpow2.f32 %v3115_v61  ;;  %v3172_v43 = vsel %vm2864_vm14, %v7767_v63, 0.0 }
 0x3f8   : > { %6350 = vpow2.f32 %v3139_v42 }
 0x3fa   : > { %v3084_v33 = vpop.xlane.xlu0 %3083 }
 0x3fb   : > { %v3096_v25 = vpop.xlane.xlu1 %3095  ;;  %v3057_v58 = vpop.xlane.xlu2 %3056  ;;  %v3108_v10 = vsub.f32 %v7709_v21, %v3084_v33  ;;  %v2542_v21 = vrot.slane %v6971_v1, 4 }
 0x3fc   : > { %v3099_v35 = vsub.f32 %v7711_v17, %v3057_v58  ;;  %v3107_v17 = vsub.f32 %v7697_v45, %v3081_v27 }
 0x3fd   : > { %v7769_v50 = vpop.eup %6348  ;;  %v3135_v52 = vmul.f32 1.442695, %v3108_v10 }
 0x3fe   : > { %v3148_v32 = vsel %vm2864_vm14, %v7769_v50, 0.0  ;;  %v7775_v19 = vpop.eup %6350  ;;  %v3117_v5 = vmul.f32 1.442695, %v3099_v35  ;;  %v3133_v13 = vmul.f32 1.442695, %v3107_v17  ;;  %v2430_v35 = vrot.slane %v6927_v48, 4 }
 0x3ff   : > { %3149 = vadd.xlane.f32.xlu2 %v3148_v32  ;;  %v3184_v38 = vsel %vm2864_vm14, %v7775_v19, 0.0 }
 0x403   : > { %3173 = vadd.xlane.f32.xlu0 %v3172_v43  ;;  %v3060_v47 = vpop.xlane.xlu1 %3059 }
 0x404   : > { %v3100_v62 = vsub.f32 %v7721_v41, %v3060_v47  ;;  %v3112_v41 = vsub.f32 %v7713_v55, %v3096_v25  ;;  %v8946_v55 = vld [vmem:[#allocation22_spill] sm:$0xff]  ;;  %v6267_v25 = vunpack.i.l.bf16 %v7747_v39 }
 0x405   : > { %v2486_v16 = vrot.slane %v8946_v55, 4 }
 0x406   : > { %v3119_v7 = vmul.f32 1.442695, %v3100_v62  ;;  %v3143_v56 = vmul.f32 1.442695, %v3112_v41 }
 0x407   : > { %3185 = vadd.xlane.f32.xlu2 %v3184_v38 }
 0x409   : > { %v3063_v24 = vpop.xlane.xlu2 %3062 }
 0x40a   : > { %v3101_v18 = vsub.f32 %v7725_v31, %v3063_v24  ;;  %v6273_v31 = vunpack.i.h.bf16 %v7750_v46 }
 0x40c   : > { %v3121_v23 = vmul.f32 1.442695, %v3101_v18  ;;  %v2540_v11 = vrot.slane %v6273_v31, 4  ;;  %v2543_v49 = vsel %vm1396_vm13, %v6273_v31, %v2542_v21  ;;  %v2374_v18 = vrot.slane %v6917_v44, 4 }
 0x40d   : > { %v2551_v27 = vperm.slane %v2543_v49, %v6985_v12  ;;  %v7822_v54 = vpop.permute.xlu0 %6280 }
 0x40e   : > { %6352 = vpow2.f32 %v3121_v23  ;;  %v2541_v15 = vsel %vm1396_vm13, %v2540_v11, %v6971_v1  ;;  %v6283_v24 = vunpack.i.h.bf16 %v7822_v54  ;;  %v6282_v62 = vunpack.i.l.bf16 %v7822_v54 }
 0x40f   : > { %6354 = vpow2.f32 %v3117_v5  ;;  %v7813_v61 = vperm.slane %v2541_v15, %v6985_v12  ;;  %v2578_v47 = vrot.slane %v2551_v27, 4 }
 0x410   : > { %v7854_v10 = vrot.slane %v6283_v24, 4 }
 0x411   : > { %v3066_v37 = vpop.xlane.xlu1 %3065  ;;  %v2566_v39 = vrot.slane %v7813_v61, 4 }
 0x412   : > { %v3102_v36 = vsub.f32 %v7732_v20, %v3066_v37  ;;  %v6272_v20 = vunpack.i.l.bf16 %v7750_v46  ;;  %v2554_v37 = vrot.slane %v6268_v0, 4 }
 0x414   : > { %v7782_v59 = vpop.eup %6352  ;;  %v3123_v6 = vmul.f32 1.442695, %v3102_v36  ;;  %v2484_v45 = vrot.slane %v6272_v20, 4  ;;  %v2487_v29 = vsel %vm1396_vm13, %v6272_v20, %v2486_v16  ;;  %v2498_v36 = vrot.slane %v6267_v25, 4 }
 0x415   : > { %v3157_v4 = vsel %vm2864_vm14, %v7782_v59, 0.0  ;;  %v7792_v9 = vpop.eup %6354  ;;  %v7819_v1 = vperm.slane %v2487_v29, %v6985_v12 }
 0x416   : > { %6356 = vpow2.f32 %v3123_v6  ;;  %3158 = vadd.xlane.f32.xlu0 %v3157_v4  ;;  %v3151_v46 = vsel %vm2864_vm14, %v7792_v9, 0.0  ;;  %v2485_v51 = vsel %vm1396_vm13, %v2484_v45, %v8946_v55 }
 0x417   : > { %6358 = vpow2.f32 %v3119_v7  ;;  %v7816_v26 = vperm.slane %v2485_v51, %v6985_v12  ;;  %v2522_v5 = vrot.slane %v7819_v1, 4 }
 0x418   : > { %6360 = vpow2.f32 %v3133_v13 }
 0x419   : > { %6362 = vpow2.f32 %v3141_v8 }
 0x41a   : > { %6364 = vpow2.f32 %v3135_v52 }
 0x41b   : > { %6366 = vpow2.f32 %v3143_v56 }
 0x41c   : > { %v7795_v2 = vpop.eup %6356 }
 0x41d   : > { %v3160_v22 = vsel %vm2864_vm14, %v7795_v2, 0.0  ;;  %v7809_v34 = vpop.eup %6358 }
 0x41e   : > { %3161 = vadd.xlane.f32.xlu1 %v3160_v22  ;;  %3152 = vadd.xlane.f32.xlu0 %v3151_v46  ;;  %v7824_v42 = vpop.eup %6360  ;;  %v3154_v58 = vsel %vm2864_vm14, %v7809_v34, 0.0  ;;  %v7867_v46 = vrot.slane %v6282_v62, 4 }
 0x41f   : > { %v7830_v43 = vpop.eup %6362  ;;  %v3175_v17 = vsel %vm2864_vm14, %v7824_v42, 0.0 }
 0x420   : > { %v7832_v38 = vpop.eup %6364  ;;  %v7850_v20 = vsel %vm2864_vm14, %v7830_v43, 0.0 }
 0x421   : > { %v3072_v30 = vpop.xlane.xlu2 %3071  ;;  %v7837_v23 = vpop.eup %6366  ;;  %v7861_v11 = vsel %vm2864_vm14, %v7832_v38, 0.0 }
 0x422   : > { %v3104_v32 = vsub.f32 %v7738_v60, %v3072_v30  ;;  %v2510_v60 = vrot.slane %v7816_v26, 4  ;;  %v3190_v13 = vsel %vm2864_vm14, %v7837_v23, 0.0 }
 0x424   : > { %v3127_v6 = vmul.f32 1.442695, %v3104_v32 }
 0x426   : > { %3155 = vadd.xlane.f32.xlu1 %v3154_v58  ;;  %6368 = vpow2.f32 %v3127_v6 }
 0x429   : > { %v6276_v4 = vpop.permute.xlu1 %6275  ;;  %v7843_v33 = vpop.permute.xlu2 %6285 }
 0x42a   : > { %v6278_v31 = vunpack.i.h.bf16 %v6276_v4  ;;  %v6277_v14 = vunpack.i.l.bf16 %v6276_v4  ;;  %v6288_v7 = vunpack.i.h.bf16 %v7843_v33  ;;  %v6287_v41 = vunpack.i.l.bf16 %v7843_v33 }
 0x42c   : > { %v2552_v8 = vrot.slane %v6278_v31, 4  ;;  %v2555_v45 = vsel %vm1396_vm13, %v6278_v31, %v2554_v37  ;;  %v2496_v52 = vrot.slane %v6277_v14, 4  ;;  %v2499_v22 = vsel %vm1396_vm13, %v6277_v14, %v2498_v36 }
 0x42d   : > { %v2563_v21 = vperm.slane %v2555_v45, %v6985_v12  ;;  %v2507_v56 = vperm.slane %v2499_v22, %v6985_v12  ;;  %v2428_v49 = vrot.slane %v6288_v7, 4  ;;  %v2431_v15 = vsel %vm1396_vm13, %v6288_v7, %v2430_v35  ;;  %v7886_v7 = vpop.eup %6368 }
 0x42e   : > { %v2553_v55 = vsel %vm1396_vm13, %v2552_v8, %v6268_v0  ;;  %v2497_v16 = vsel %vm1396_vm13, %v2496_v52, %v6267_v25  ;;  %3176 = vadd.xlane.f32.xlu1 %v3175_v17  ;;  %v2372_v0 = vrot.slane %v6287_v41, 4 }
 0x42f   : > { %v2559_v51 = vperm.slane %v2553_v55, %v6985_v12  ;;  %v2576_v29 = vrot.slane %v2563_v21, 4  ;;  %v2579_v30 = vsel %vm1396_vm13, %v2563_v21, %v2578_v47  ;;  %v2503_v32 = vperm.slane %v2497_v16, %v6985_v12 }
 0x430   : > { %v2587_v58 = vperm.slane %v2579_v30, %v6996_v40  ;;  %v2520_v37 = vrot.slane %v2507_v56, 4  ;;  %v2523_v36 = vsel %vm1396_vm13, %v2507_v56, %v2522_v5 }
 0x431   : > { %v2564_v25 = vrot.slane %v2559_v51, 4  ;;  %v2567_v6 = vsel %vm1396_vm13, %v2559_v51, %v2566_v39  ;;  %v2577_v35 = vsel %vm1396_vm13, %v2576_v29, %v2551_v27  ;;  %v2508_v4 = vrot.slane %v2503_v32, 4 }
 0x432   : > { %v2575_v17 = vperm.slane %v2567_v6, %v6996_v40  ;;  %v2583_v47 = vperm.slane %v2577_v35, %v6996_v40  ;;  %v2594_v31 = vrot.slane %v2587_v58, 4  ;;  %v2511_v14 = vsel %vm1396_vm13, %v2503_v32, %v2510_v60 }
 0x433   : > { %v2565_v5 = vsel %vm1396_vm13, %v2564_v25, %v7813_v61  ;;  %v2509_v8 = vsel %vm1396_vm13, %v2508_v4, %v7816_v26  ;;  %v2519_v39 = vperm.slane %v2511_v14, %v6996_v40  ;;  %v2521_v27 = vsel %vm1396_vm13, %v2520_v37, %v7819_v1 }
 0x434   : > { %v2571_v45 = vperm.slane %v2565_v5, %v6996_v40  ;;  %v2590_v52 = vrot.slane %v2575_v17, 4  ;;  %v2592_v22 = vrot.slane %v2583_v47, 4  ;;  %v2595_v21 = vsel %vm1396_vm13, 0.0, %v2594_v31 }
 0x435   : > { %v2769_v60 = vsel %vm1396_vm13, %v2594_v31, %v2583_v47  ;;  %v2774_v56 = vrot.slane %v2595_v21, 4  ;;  %v2515_v55 = vperm.slane %v2509_v8, %v6996_v40  ;;  %v2527_v61 = vperm.slane %v2521_v27, %v6996_v40 }
 0x436   : > { %v2588_v16 = vrot.slane %v2571_v45, 4  ;;  %v2591_v26 = vsel %vm1396_vm13, 0.0, %v2590_v52  ;;  %v2593_v51 = vsel %vm1396_vm13, 0.0, %v2592_v22  ;;  %v2758_v1 = vsel %vm1396_vm13, %v2590_v52, %v2571_v45  ;;  %3191 = vadd.xlane.f32.xlu1 %v3190_v13 }
 0x437   : > { %v7904_v29 = vperm.slane %v2769_v60, %v6985_v12  ;;  %v2775_v30 = vsel %vm1396_vm13, %v2774_v56, %v2593_v51  ;;  %v2429_v32 = vsel %vm1396_vm13, %v2428_v49, %v6927_v48  ;;  %v7910_v58 = vperm.slane %v2431_v15, %v6985_v12 }
 0x438   : > { %v2762_v37 = vperm.slane %v2758_v1, %v6985_v12  ;;  %v2763_v25 = vrot.slane %v2591_v26, 4  ;;  %v2531_v6 = vperm.slane %v2523_v36, %v6996_v40  ;;  %v2532_v35 = vrot.slane %v2515_v55, 4  ;;  %v3069_v27 = vpop.xlane.xlu0 %3068 }
 0x439   : > { %v2589_v4 = vsel %vm1396_vm13, 0.0, %v2588_v16  ;;  %v7916_v13 = vperm.slane %v2775_v30, %v6985_v12  ;;  %v2534_v17 = vrot.slane %v2519_v39, 4  ;;  %v2536_v47 = vrot.slane %v2527_v61, 4 }
 0x43a   : > { %v2794_v31 = vrot.slane %v7904_v29, 4  ;;  %v2538_v14 = vrot.slane %v2531_v6, 4  ;;  %v7920_v48 = vperm.slane %v2429_v32, %v6985_v12  ;;  %v2373_v49 = vsel %vm1396_vm13, %v2372_v0, %v6917_v44 }
 0x43b   : > { %v2533_v15 = vsel %vm1396_vm13, 0.0, %v2532_v35  ;;  %v2535_v36 = vsel %vm1396_vm13, 0.0, %v2534_v17  ;;  %v2537_v5 = vsel %vm1396_vm13, 0.0, %v2536_v47  ;;  %v2704_v8 = vsel %vm1396_vm13, %v2534_v17, %v2515_v55 }
 0x43c   : > { %v2539_v39 = vsel %vm1396_vm13, 0.0, %v2538_v14  ;;  %v2708_v45 = vperm.slane %v2704_v8, %v6985_v12  ;;  %v2709_v52 = vrot.slane %v2535_v36, 4  ;;  %v2715_v22 = vsel %vm1396_vm13, %v2538_v14, %v2527_v61 }
 0x43d   : > { %v2719_v21 = vperm.slane %v2715_v22, %v6985_v12  ;;  %v2720_v60 = vrot.slane %v2539_v39, 4  ;;  %v2375_v0 = vsel %vm1396_vm13, %v6287_v41, %v2374_v18  ;;  %v7938_v56 = vperm.slane %v2373_v49, %v6985_v12 }
 0x43e   : > { %v2466_v55 = vrot.slane %v7910_v58, 4  ;;  %v3166_v16 = vsel %vm2864_vm14, %v7886_v7, 0.0  ;;  %v3103_v26 = vsub.f32 %v7736_v28, %v3069_v27  ;;  %v2710_v61 = vsel %vm1396_vm13, %v2709_v52, %v2533_v15 }
 0x43f   : > { %v2721_v51 = vsel %vm1396_vm13, %v2720_v60, %v2537_v5  ;;  %v2740_v1 = vrot.slane %v2719_v21, 4  ;;  %v7947_v44 = vperm.slane %v2375_v0, %v6985_v12  ;;  %3167 = vadd.xlane.f32.xlu0 %v3166_v16  ;;  %v2714_v18 = vperm.slane %v2710_v61, %v6985_v12 }
 0x440   : > { %v2725_v33 = vperm.slane %v2721_v51, %v6985_v12  ;;  %v2398_v41 = vrot.slane %v7938_v56, 4  ;;  %v3125_v30 = vmul.f32 1.442695, %v3103_v26  ;;  %v2728_v32 = vrot.slane %v2708_v45, 4 }
 0x441   : > { %v2764_v6 = vsel %vm1396_vm13, %v2763_v25, %v2589_v4  ;;  %v2782_v28 = vrot.slane %v2762_v37, 4  ;;  %v2795_v35 = vsel %vm1396_vm13, %v7916_v13, %v2794_v31  ;;  %v2726_v17 = vrot.slane %v2714_v18, 4 }
 0x442   : > { %6370 = vpow2.f32 %v3125_v30  ;;  %v2729_v47 = vsel %vm1396_vm13, %v2714_v18, %v2728_v32  ;;  %v2741_v14 = vsel %vm1396_vm13, %v2725_v33, %v2740_v1  ;;  %v2768_v49 = vperm.slane %v2764_v6, %v6985_v12 }
 0x443   : > { %v2737_v15 = vperm.slane %v2729_v47, %v6996_v40  ;;  %v2749_v36 = vperm.slane %v2741_v14, %v6996_v40  ;;  %v2803_v5 = vperm.slane %v2795_v35, %v6996_v40  ;;  %v2727_v25 = vsel %vm1396_vm13, %v2726_v17, %v2708_v45 }
 0x444   : > { %v2783_v4 = vsel %vm1396_vm13, %v2768_v49, %v2782_v28  ;;  %v2733_v31 = vperm.slane %v2727_v25, %v6996_v40  ;;  %v2738_v8 = vrot.slane %v2725_v33, 4  ;;  %v2780_v27 = vrot.slane %v2768_v49, 4 }
 0x445   : > { %v2754_v39 = vrot.slane %v2749_v36, 4  ;;  %v2791_v52 = vperm.slane %v2783_v4, %v6996_v40  ;;  %v2808_v22 = vrot.slane %v2803_v5, 4  ;;  %v2792_v60 = vrot.slane %v7916_v13, 4 }
 0x446   : > { %v2739_v0 = vsel %vm1396_vm13, %v2738_v8, %v2719_v21  ;;  %v2752_v16 = vrot.slane %v2733_v31, 4  ;;  %v2781_v26 = vsel %vm1396_vm13, %v2780_v27, %v2762_v37  ;;  %v2756_v61 = vrot.slane %v2737_v15, 4 }
 0x447   : > { %3188 = vadd.xlane.f32.xlu0 %v7850_v20  ;;  %v2755_v45 = vsel %vm1396_vm13, %v2754_v39, %v2737_v15  ;;  %v2809_v51 = vsel %vm1396_vm13, %v2808_v22, %v2791_v52  ;;  %v2745_v1 = vperm.slane %v2739_v0, %v6996_v40  ;;  %v2787_v18 = vperm.slane %v2781_v26, %v6996_v40 }
 0x448   : > { %v7973_v33 = vpop.eup %6370  ;;  %v3251_v30 = vpack.c.bf16 %v2755_v45, %v2755_v45  ;;  %v3252_v13 = vpack.c.bf16 %v2809_v51, %v2809_v51  ;;  %v2793_v21 = vsel %vm1396_vm13, %v2792_v60, %v7904_v29  ;;  %v2757_v37 = vsel %vm1396_vm13, %v2749_v36, %v2756_v61 }
 0x449   : > { %v3163_v20 = vsel %vm2864_vm14, %v7973_v33, 0.0  ;;  %v2750_v32 = vrot.slane %v2745_v1, 4  ;;  %v2799_v6 = vperm.slane %v2793_v21, %v6996_v40  ;;  %v2806_v28 = vrot.slane %v2787_v18, 4 }
 0x44a   : > { %v3367_v35 = vunpack.c.l.b16 %v3251_v30  ;;  %v3368_v17 = vunpack.c.l.b16 %v3252_v13  ;;  %3164 = vadd.xlane.f32.xlu2 %v3163_v20  ;;  %v2810_v47 = vrot.slane %v2791_v52, 4  ;;  %v3255_v14 = vpack.c.bf16 %v2757_v37, %v2757_v37 }
 0x44b   : > { %v2751_v49 = vsel %vm1396_vm13, %v2750_v32, %v2733_v31  ;;  %v2804_v15 = vrot.slane %v2799_v6, 4  ;;  %v2753_v25 = vsel %vm1396_vm13, %v2745_v1, %v2752_v16  ;;  %v2807_v29 = vsel %vm1396_vm13, %v2799_v6, %v2806_v28  ;;  %v6291_v36 = vpop.permute.xlu0 %6290 }
 0x44c   : > { %v3370_v4 = vpack.c.b16 %v3368_v17, %v3367_v35  ;;  %v3243_v8 = vpack.c.bf16 %v2751_v49, %v2751_v49  ;;  %v2811_v27 = vsel %vm1396_vm13, %v2803_v5, %v2810_v47  ;;  %v3414_v39 = vunpack.c.l.b16 %v3255_v14 }
 0x44d   : > { %v2805_v22 = vsel %vm1396_vm13, %v2804_v15, %v2787_v18  ;;  %v3256_v60 = vpack.c.bf16 %v2811_v27, %v2811_v27  ;;  %v3247_v0 = vpack.c.bf16 %v2753_v25, %v2753_v25  ;;  %v3248_v26 = vpack.c.bf16 %v2807_v29, %v2807_v29 }
 0x44e   : > { %3385 = vmatpush.bf16.msra.mxu0 %v3370_v4  ;;  %v3244_v52 = vpack.c.bf16 %v2805_v22, %v2805_v22  ;;  %v3273_v61 = vunpack.c.l.b16 %v3243_v8  ;;  %v6293_v31 = vunpack.i.h.bf16 %v6291_v36  ;;  %v6292_v45 = vunpack.i.l.bf16 %v6291_v36 }
 0x44f   : > { %v2410_v16 = vrot.slane %v7947_v44, 4  ;;  %v3415_v51 = vunpack.c.l.b16 %v3256_v60  ;;  %v3320_v1 = vunpack.c.l.b16 %v3247_v0  ;;  %v3321_v30 = vunpack.c.l.b16 %v3248_v26 }
 0x450   : > { %v3274_v13 = vunpack.c.l.b16 %v3244_v52  ;;  %v2440_v21 = vrot.slane %v6293_v31, 4  ;;  %v2443_v5 = vsel %vm1396_vm13, %v6293_v31, %v7854_v10  ;;  %v2384_v37 = vrot.slane %v6292_v45, 4 }
 0x451   : > { %v3417_v18 = vpack.c.b16 %v3415_v51, %v3414_v39  ;;  %v3323_v20 = vpack.c.b16 %v3321_v30, %v3320_v1  ;;  %v2451_v32 = vperm.slane %v2443_v5, %v6985_v12  ;;  %v2387_v6 = vsel %vm1396_vm13, %v6292_v45, %v7867_v46 }
 0x452   : > { %v3276_v28 = vpack.c.b16 %v3274_v13, %v3273_v61  ;;  %v2441_v35 = vsel %vm1396_vm13, %v2440_v21, %v6283_v24  ;;  %v2385_v17 = vsel %vm1396_vm13, %v2384_v37, %v6282_v62  ;;  %v2395_v47 = vperm.slane %v2387_v6, %v6985_v12  ;;  %3179 = vadd.xlane.f32.xlu2 %v7861_v11 }
 0x453   : > { %3432 = vmatpush.bf16.msra.mxu1 %v3417_v18  ;;  %3338 = vmatpush.bf16.msra.mxu3 %v3323_v20  ;;  %v2447_v10 = vperm.slane %v2441_v35, %v6985_v12  ;;  %v2464_v14 = vrot.slane %v2451_v32, 4  ;;  %v2391_v46 = vperm.slane %v2385_v17, %v6985_v12  ;;  %v2467_v49 = vsel %vm1396_vm13, %v2451_v32, %v2466_v55 }
 0x454   : > { %v2454_v24 = vrot.slane %v7920_v48, 4  ;;  %3291 = vmatpush.bf16.msrb.mxu2 %v3276_v28  ;;  %v2408_v54 = vrot.slane %v2395_v47, 4  ;;  %v2411_v62 = vsel %vm1396_vm13, %v2395_v47, %v2410_v16  ;;  %v2475_v15 = vperm.slane %v2467_v49, %v6996_v40 }
 0x455   : > { %v2452_v11 = vrot.slane %v2447_v10, 4  ;;  %v2396_v25 = vrot.slane %v2391_v46, 4  ;;  %v2399_v29 = vsel %vm1396_vm13, %v2391_v46, %v2398_v41  ;;  %v2419_v36 = vperm.slane %v2411_v62, %v6996_v40 }
 0x456   : > { %v2407_v4 = vperm.slane %v2399_v29, %v6996_v40  ;;  %v2409_v55 = vsel %vm1396_vm13, %v2408_v54, %v7947_v44  ;;  %v2455_v8 = vsel %vm1396_vm13, %v2447_v10, %v2454_v24  ;;  %v2465_v27 = vsel %vm1396_vm13, %v2464_v14, %v7910_v58 }
 0x457   : > { %v2397_v39 = vsel %vm1396_vm13, %v2396_v25, %v7938_v56  ;;  %v2415_v22 = vperm.slane %v2409_v55, %v6996_v40  ;;  %v2426_v60 = vrot.slane %v2419_v36, 4  ;;  %v2453_v41 = vsel %vm1396_vm13, %v2452_v11, %v7920_v48 }
 0x458   : > { %v2403_v0 = vperm.slane %v2397_v39, %v6996_v40  ;;  %v2422_v26 = vrot.slane %v2407_v4, 4  ;;  %v2459_v52 = vperm.slane %v2453_v41, %v6996_v40  ;;  %v2463_v44 = vperm.slane %v2455_v8, %v6996_v40 }
 0x459   : > { %v2424_v61 = vrot.slane %v2415_v22, 4  ;;  %v2427_v31 = vsel %vm1396_vm13, 0.0, %v2426_v60  ;;  %v2471_v58 = vperm.slane %v2465_v27, %v6996_v40  ;;  %v2482_v45 = vrot.slane %v2475_v15, 4 }
 0x45a   : > { %v2420_v56 = vrot.slane %v2403_v0, 4  ;;  %v2423_v16 = vsel %vm1396_vm13, 0.0, %v2422_v26  ;;  %v2476_v51 = vrot.slane %v2459_v52, 4  ;;  %v2478_v1 = vrot.slane %v2463_v44, 4 }
 0x45b   : > { %v2425_v48 = vsel %vm1396_vm13, 0.0, %v2424_v61  ;;  %v2480_v30 = vrot.slane %v2471_v58, 4  ;;  %v2483_v13 = vsel %vm1396_vm13, 0.0, %v2482_v45  ;;  %v2601_v21 = vrot.slane %v2423_v16, 4 }
 0x45c   : > { %v2479_v5 = vsel %vm1396_vm13, 0.0, %v2478_v1  ;;  %v2607_v37 = vsel %vm1396_vm13, %v2426_v60, %v2415_v22  ;;  %v2612_v18 = vrot.slane %v2427_v31, 4  ;;  %v2661_v20 = vsel %vm1396_vm13, %v2482_v45, %v2471_v58 }
 0x45d   : > { %v2481_v32 = vsel %vm1396_vm13, 0.0, %v2480_v30  ;;  %v2611_v6 = vperm.slane %v2607_v37, %v6985_v12  ;;  %v2655_v28 = vrot.slane %v2479_v5, 4  ;;  %v2665_v35 = vperm.slane %v2661_v20, %v6985_v12 }
 0x45e   : > { %v2666_v17 = vrot.slane %v2483_v13, 4  ;;  %v2421_v47 = vsel %vm1396_vm13, 0.0, %v2420_v56  ;;  %v2477_v10 = vsel %vm1396_vm13, 0.0, %v2476_v51  ;;  %v2596_v14 = vsel %vm1396_vm13, %v2422_v26, %v2403_v0 }
 0x45f   : > { %v2600_v46 = vperm.slane %v2596_v14, %v6985_v12  ;;  %v2602_v49 = vsel %vm1396_vm13, %v2601_v21, %v2421_v47  ;;  %v2613_v24 = vsel %vm1396_vm13, %v2612_v18, %v2425_v48  ;;  %v2632_v54 = vrot.slane %v2611_v6, 4 }
 0x460   : > { %v2606_v62 = vperm.slane %v2602_v49, %v6985_v12  ;;  %v2617_v15 = vperm.slane %v2613_v24, %v6985_v12  ;;  %v2650_v11 = vsel %vm1396_vm13, %v2478_v1, %v2459_v52  ;;  %v2656_v25 = vsel %vm1396_vm13, %v2655_v28, %v2477_v10 }
 0x461   : > { %v2620_v29 = vrot.slane %v2600_v46, 4  ;;  %v2654_v36 = vperm.slane %v2650_v11, %v6985_v12  ;;  %v2660_v4 = vperm.slane %v2656_v25, %v6985_v12  ;;  %v2667_v55 = vsel %vm1396_vm13, %v2666_v17, %v2481_v32 }
 0x462   : > { %v8050_v8 = vpop.xlane.xlu1 %3182  ;;  %v2633_v27 = vsel %vm1396_vm13, %v2617_v15, %v2632_v54  ;;  %v2671_v39 = vperm.slane %v2667_v55, %v6985_v12  ;;  %v2686_v22 = vrot.slane %v2665_v35, 4  ;;  %v2618_v60 = vrot.slane %v2606_v62, 4 }
 0x463   : > { %v2621_v41 = vsel %vm1396_vm13, %v2606_v62, %v2620_v29  ;;  %v2641_v0 = vperm.slane %v2633_v27, %v6996_v40  ;;  %v2674_v26 = vrot.slane %v2654_v36, 4  ;;  %v2630_v16 = vrot.slane %v2617_v15, 4 }
 0x464   : > { %v2629_v52 = vperm.slane %v2621_v41, %v6996_v40  ;;  %v2687_v44 = vsel %vm1396_vm13, %v2671_v39, %v2686_v22  ;;  %v2619_v61 = vsel %vm1396_vm13, %v2618_v60, %v2600_v46  ;;  %v2672_v51 = vrot.slane %v2660_v4, 4 }
 0x465   : > { %v2646_v31 = vrot.slane %v2641_v0, 4  ;;  %v2675_v58 = vsel %vm1396_vm13, %v2660_v4, %v2674_v26  ;;  %v2695_v45 = vperm.slane %v2687_v44, %v6996_v40  ;;  %v2684_v1 = vrot.slane %v2671_v39, 4 }
 0x466   : > { %v2683_v56 = vperm.slane %v2675_v58, %v6996_v40  ;;  %v2625_v13 = vperm.slane %v2619_v61, %v6996_v40  ;;  %v2648_v21 = vrot.slane %v2629_v52, 4  ;;  %v2631_v37 = vsel %vm1396_vm13, %v2630_v16, %v2611_v6  ;;  %v3171_v6 = vpop.xlane.xlu2 %3170 }
 0x467   : > { %v2647_v48 = vsel %vm1396_vm13, %v2646_v31, %v2629_v52  ;;  %v2700_v30 = vrot.slane %v2695_v45, 4  ;;  %v2673_v18 = vsel %vm1396_vm13, %v2672_v51, %v2654_v36  ;;  %v2685_v20 = vsel %vm1396_vm13, %v2684_v1, %v2665_v35 }
 0x468   : > { %v3249_v5 = vpack.c.bf16 %v2647_v48, %v2647_v48  ;;  %v2637_v28 = vperm.slane %v2631_v37, %v6996_v40  ;;  %v2679_v17 = vperm.slane %v2673_v18, %v6996_v40  ;;  %v2691_v47 = vperm.slane %v2685_v20, %v6996_v40 }
 0x469   : > { %v2701_v32 = vsel %vm1396_vm13, %v2700_v30, %v2683_v56  ;;  %v2649_v46 = vsel %vm1396_vm13, %v2641_v0, %v2648_v21  ;;  %v2644_v24 = vrot.slane %v2625_v13, 4  ;;  %v2702_v35 = vrot.slane %v2683_v56, 4 }
 0x46a   : > { %v3250_v10 = vpack.c.bf16 %v2701_v32, %v2701_v32  ;;  %v3365_v14 = vunpack.c.l.b16 %v3249_v5  ;;  %v2642_v49 = vrot.slane %v2637_v28, 4  ;;  %v2696_v54 = vrot.slane %v2691_v47, 4  ;;  %v3147_v15 = vpop.xlane.xlu1 %3146 }
 0x46b   : > { %v2698_v11 = vrot.slane %v2679_v17, 4  ;;  %v3253_v36 = vpack.c.bf16 %v2649_v46, %v2649_v46  ;;  %6372 = vrcp.f32 %v3147_v15  ;;  %v2703_v39 = vsel %vm1396_vm13, %v2695_v45, %v2702_v35 }
 0x46c   : > { %v3366_v62 = vunpack.c.l.b16 %v3250_v10  ;;  %v2643_v25 = vsel %vm1396_vm13, %v2642_v49, %v2625_v13  ;;  %v2697_v29 = vsel %vm1396_vm13, %v2696_v54, %v2679_v17  ;;  %v2645_v60 = vsel %vm1396_vm13, %v2637_v28, %v2644_v24 }
 0x46d   : > { %v3241_v55 = vpack.c.bf16 %v2643_v25, %v2643_v25  ;;  %v3242_v27 = vpack.c.bf16 %v2697_v29, %v2697_v29  ;;  %v3412_v22 = vunpack.c.l.b16 %v3253_v36  ;;  %v3254_v26 = vpack.c.bf16 %v2703_v39, %v2703_v39 }
 0x46e   : > { %v3369_v4 = vpack.c.b16 %v3366_v62, %v3365_v14  ;;  %v2699_v52 = vsel %vm1396_vm13, %v2691_v47, %v2698_v11  ;;  %6374 = vrcp.f32 %v3171_v6  ;;  %v3245_v44 = vpack.c.bf16 %v2645_v60, %v2645_v60 }
 0x46f   : > { %v3271_v41 = vunpack.c.l.b16 %v3241_v55  ;;  %v3272_v0 = vunpack.c.l.b16 %v3242_v27  ;;  %v3246_v61 = vpack.c.bf16 %v2699_v52, %v2699_v52  ;;  %v3413_v58 = vunpack.c.l.b16 %v3254_v26 }
 0x470   : > { %3386 = vmatpush.bf16.msra.mxu0 %v3369_v4  ;;  %v3318_v56 = vunpack.c.l.b16 %v3245_v44 }
 0x471   : > { %v3275_v31 = vpack.c.b16 %v3272_v0, %v3271_v41  ;;  %v3319_v16 = vunpack.c.l.b16 %v3246_v61  ;;  %v3416_v51 = vpack.c.b16 %v3413_v58, %v3412_v22  ;;  %v6373_v45 = vpop.eup %6372 }
 0x472   : > { %v3150_v1 = vpop.xlane.xlu2 %3149  ;;  %v3209_v21 = vmul.f32 %v6373_v45, %v7762_v57 }
 0x473   : > { %3292 = vmatpush.bf16.msrb.mxu2 %v3275_v31  ;;  %v3322_v48 = vpack.c.b16 %v3319_v16, %v3318_v56  ;;  %6376 = vrcp.f32 %v3150_v1  ;;  %3433 = vmatpush.bf16.msra.mxu1 %v3416_v51 }
 0x474   : > { %6378 = vrcp.f32 %v8050_v8  ;;  %v6375_v13 = vpop.eup %6374  ;;  %v3225_v20 = vpack.c.bf16 %v3209_v21, %v3209_v21 }
 0x475   : > { %3339 = vmatpush.bf16.msra.mxu3 %v3322_v48  ;;  %v3217_v5 = vmul.f32 %v6375_v13, %v7752_v3 }
 0x476   : > { %v3174_v30 = vpop.xlane.xlu0 %3173  ;;  %v3261_v46 = vunpack.c.l.b16 %v3225_v20 }
 0x477   : > { %6380 = vrcp.f32 %v3174_v30  ;;  %v3233_v47 = vpack.c.bf16 %v3217_v5, %v3217_v5 }
 0x479   : > { %v6377_v37 = vpop.eup %6376  ;;  %v3355_v57 = vunpack.c.l.b16 %v3233_v47 }
 0x47a   : > { %v6379_v18 = vpop.eup %6378  ;;  %v3210_v32 = vmul.f32 %v6377_v37, %v7769_v50  ;;  %v3186_v28 = vpop.xlane.xlu2 %3185 }
 0x47b   : > { %6382 = vrcp.f32 %v3186_v28  ;;  %v3221_v14 = vmul.f32 %v6379_v18, %v7756_v53 }
 0x47c   : > { %v3226_v10 = vpack.c.bf16 %v3210_v32, %v3210_v32 }
 0x47d   : > { %v6381_v17 = vpop.eup %6380  ;;  %v3237_v62 = vpack.c.bf16 %v3221_v14, %v3221_v14 }
 0x47e   : > { %v3218_v8 = vmul.f32 %v6381_v17, %v7767_v63  ;;  %v3262_v49 = vunpack.c.l.b16 %v3226_v10 }
 0x47f   : > { %v3402_v35 = vunpack.c.l.b16 %v3237_v62 }
 0x480   : > { %v3234_v24 = vpack.c.bf16 %v3218_v8, %v3218_v8  ;;  %v3265_v3 = vpack.c.b16 %v3262_v49, %v3261_v46 }
 0x481   : > { %v6383_v6 = vpop.eup %6382 }
 0x482   : > { %v3356_v54 = vunpack.c.l.b16 %v3234_v24  ;;  %v3222_v50 = vmul.f32 %v6383_v6, %v7775_v19  ;;  %5619 = vmatmul.msk.bf16.vlgmr.msrb.gmra.mxu2 %vm2864_vm14, %v3265_v3 }
 0x484   : > { %v3359_v15 = vpack.c.b16 %v3356_v54, %v3355_v57  ;;  %v3238_v11 = vpack.c.bf16 %v3222_v50, %v3222_v50 }
 0x486   : > { %5623 = vmatmul.msk.bf16.vlgmr.msra.gmra.mxu0 %vm2864_vm14, %v3359_v15  ;;  %v3403_v63 = vunpack.c.l.b16 %v3238_v11 }
 0x488   : > { %v3406_v53 = vpack.c.b16 %v3403_v63, %v3402_v35 }
 0x489   : > { %v3159_v25 = vpop.xlane.xlu0 %3158 }
 0x48a   : > { %6384 = vrcp.f32 %v3159_v25  ;;  %5625 = vmatmul.msk.bf16.vlgmr.msra.gmra.mxu1 %vm2864_vm14, %v3406_v53 }
 0x490   : > { %v6385_v4 = vpop.eup %6384 }
 0x491   : > { %v3162_v29 = vpop.xlane.xlu1 %3161  ;;  %v3153_v36 = vpop.xlane.xlu0 %3152  ;;  %v3213_v55 = vmul.f32 %v6385_v4, %v7782_v59 }
 0x492   : > { %6386 = vrcp.f32 %v3162_v29 }
 0x493   : > { %6388 = vrcp.f32 %v3153_v36  ;;  %v3229_v27 = vpack.c.bf16 %v3213_v55, %v3213_v55 }
 0x495   : > { %v3308_v0 = vunpack.c.l.b16 %v3229_v27 }
 0x498   : > { %v6387_v19 = vpop.eup %6386 }
 0x499   : > { %v3214_v39 = vmul.f32 %v6387_v19, %v7795_v2  ;;  %v3156_v22 = vpop.xlane.xlu1 %3155  ;;  %v6389_v60 = vpop.eup %6388 }
 0x49a   : > { %6390 = vrcp.f32 %v3156_v22  ;;  %v3211_v52 = vmul.f32 %v6389_v60, %v7792_v9 }
 0x49b   : > { %v3230_v41 = vpack.c.bf16 %v3214_v39, %v3214_v39 }
 0x49c   : > { %v3227_v58 = vpack.c.bf16 %v3211_v52, %v3211_v52 }
 0x49d   : > { %v3309_v26 = vunpack.c.l.b16 %v3230_v41 }
 0x49e   : > { %v3263_v56 = vunpack.c.l.b16 %v3227_v58 }
 0x49f   : > { %v3312_v44 = vpack.c.b16 %v3309_v26, %v3308_v0 }
 0x4a0   : > { %v6391_v61 = vpop.eup %6390 }
 0x4a1   : > { %5621 = vmatmul.msk.bf16.vlgmr.msra.gmra.mxu3 %vm2864_vm14, %v3312_v44  ;;  %v3212_v31 = vmul.f32 %v6391_v61, %v7809_v34  ;;  %v3177_v51 = vpop.xlane.xlu1 %3176 }
 0x4a3   : > { %v3228_v59 = vpack.c.bf16 %v3212_v31, %v3212_v31 }
 0x4a5   : > { %v3264_v16 = vunpack.c.l.b16 %v3228_v59 }
 0x4a7   : > { %v3266_v2 = vpack.c.b16 %v3264_v16, %v3263_v56 }
 0x4a9   : > { %5620 = vmatmul.msk.bf16.gmra.mxu2 %vm2864_vm14, %v3266_v2  ;;  %v3192_v1 = vpop.xlane.xlu1 %3191 }
 0x4aa   : > { %6392 = vrcp.f32 %v3192_v1 }
 0x4b0   : > { %v6393_v48 = vpop.eup %6392 }
 0x4b1   : > { %v3224_v30 = vmul.f32 %v6393_v48, %v7837_v23 }
 0x4b2   : > { %v3168_v45 = vpop.xlane.xlu0 %3167 }
 0x4b3   : > { %6394 = vrcp.f32 %v3168_v45  ;;  %v3240_v34 = vpack.c.bf16 %v3224_v30, %v3224_v30 }
 0x4b5   : > { %v3405_v28 = vunpack.c.l.b16 %v3240_v34 }
 0x4b9   : > { %v6395_v21 = vpop.eup %6394 }
 0x4ba   : > { %v3189_v9 = vpop.xlane.xlu0 %3188  ;;  %v3216_v37 = vmul.f32 %v6395_v21, %v7886_v7 }
 0x4bb   : > { %6396 = vrcp.f32 %v3189_v9 }
 0x4bc   : > { %v3232_v10 = vpack.c.bf16 %v3216_v37, %v3216_v37 }
 0x4bd   : > { %v3165_v13 = vpop.xlane.xlu2 %3164 }
 0x4be   : > { %6398 = vrcp.f32 %v3165_v13  ;;  %v3311_v24 = vunpack.c.l.b16 %v3232_v10 }
 0x4bf   : > { %6400 = vrcp.f32 %v3177_v51 }
 0x4c1   : > { %v6397_v5 = vpop.eup %6396 }
 0x4c2   : > { %v3223_v18 = vmul.f32 %v6397_v5, %v7830_v43 }
 0x4c4   : > { %v6399_v20 = vpop.eup %6398  ;;  %v3239_v32 = vpack.c.bf16 %v3223_v18, %v3223_v18 }
 0x4c5   : > { %v3180_v17 = vpop.xlane.xlu2 %3179  ;;  %v3215_v47 = vmul.f32 %v6399_v20, %v7973_v33  ;;  %v6401_v8 = vpop.eup %6400 }
 0x4c6   : > { %v3404_v14 = vunpack.c.l.b16 %v3239_v32  ;;  %6402 = vrcp.f32 %v3180_v17  ;;  %v3219_v57 = vmul.f32 %v6401_v8, %v7824_v42 }
 0x4c7   : > { %v3231_v23 = vpack.c.bf16 %v3215_v47, %v3215_v47 }
 0x4c8   : > { %v3407_v46 = vpack.c.b16 %v3405_v28, %v3404_v14  ;;  %v3235_v3 = vpack.c.bf16 %v3219_v57, %v3219_v57 }
 0x4c9   : > { %v3310_v49 = vunpack.c.l.b16 %v3231_v23 }
 0x4ca   : > { %5626 = vmatmul.msk.bf16.gmra.mxu1 %vm2864_vm14, %v3407_v46  ;;  %v3357_v6 = vunpack.c.l.b16 %v3235_v3 }
 0x4cb   : > { %v3313_v7 = vpack.c.b16 %v3311_v24, %v3310_v49 }
 0x4cc   : > { %v6403_v43 = vpop.eup %6402 }
 0x4cd   : > { %5622 = vmatmul.msk.bf16.gmra.mxu3 %vm2864_vm14, %v3313_v7  ;;  %v3220_v54 = vmul.f32 %v6403_v43, %v7832_v38 }
 0x4cf   : > { %v3236_v33 = vpack.c.bf16 %v3220_v54, %v3220_v54 }
 0x4d1   : > { %v3358_v62 = vunpack.c.l.b16 %v3236_v33 }
 0x4d3   : > { %v3360_v15 = vpack.c.b16 %v3358_v62, %v3357_v6 }
 0x4d5   : > { %5624 = vmatmul.msk.bf16.gmra.mxu0 %vm2864_vm14, %v3360_v15 }
 0x503   : > { %v3388_v50 = vpop.f32.mrf.mxu0 }
 0x504   : > { %v3445_v35 = vrot.slane %v3388_v50, 4 }
 0x505   : > { %v3294_v11 = vpop.f32.mrf.mxu2 }
 0x506   : > { %v3447_v63 = vrot.slane %v3294_v11, 4  ;;  %v3446_v42 = vsel %vm1396_vm13, %v3445_v35, %v3294_v11 }
 0x507   : > { %v3435_v25 = vpop.f32.mrf.mxu1  ;;  %v3452_v36 = vperm.slane %v3446_v42, %v6985_v12 }
 0x508   : > { %v3448_v29 = vsel %vm1396_vm13, %v3388_v50, %v3447_v63  ;;  %v3457_v4 = vrot.slane %v3435_v25, 4 }
 0x509   : > { %v3456_v19 = vperm.slane %v3448_v29, %v6985_v12  ;;  %v3471_v41 = vrot.slane %v3452_v36, 4 }
 0x50b   : > { %v3390_v53 = vpop.f32.mrf.mxu0  ;;  %v3483_v44 = vrot.slane %v3456_v19, 4 }
 0x50c   : > { %v3501_v55 = vrot.slane %v3390_v53, 4 }
 0x50d   : > { %v3296_v38 = vpop.f32.mrf.mxu2 }
 0x50e   : > { %v3503_v39 = vrot.slane %v3296_v38, 4  ;;  %v3502_v26 = vsel %vm1396_vm13, %v3501_v55, %v3296_v38 }
 0x50f   : > { %v3437_v56 = vpop.f32.mrf.mxu1  ;;  %v3508_v51 = vperm.slane %v3502_v26, %v6985_v12 }
 0x510   : > { %v3504_v59 = vsel %vm1396_vm13, %v3390_v53, %v3503_v39  ;;  %v3513_v21 = vrot.slane %v3437_v56, 4 }
 0x511   : > { %v3512_v13 = vperm.slane %v3504_v59, %v6985_v12  ;;  %v3527_v28 = vrot.slane %v3508_v51, 4 }
 0x513   : > { %v3539_v43 = vrot.slane %v3512_v13, 4 }
 0x524   : > { %v3341_v27 = vpop.f32.mrf.mxu3 }
 0x525   : > { %v3458_v22 = vsel %vm1396_vm13, %v3457_v4, %v3341_v27  ;;  %v3459_v60 = vrot.slane %v3341_v27, 4 }
 0x526   : > { %v3464_v0 = vperm.slane %v3458_v22, %v6985_v12 }
 0x527   : > { %v3460_v52 = vsel %vm1396_vm13, %v3435_v25, %v3459_v60 }
 0x528   : > { %v3468_v61 = vperm.slane %v3460_v52, %v6985_v12  ;;  %v3469_v31 = vrot.slane %v3464_v0, 4  ;;  %v3472_v58 = vsel %vm1396_vm13, %v3464_v0, %v3471_v41 }
 0x529   : > { %v3480_v16 = vperm.slane %v3472_v58, %v6996_v40 }
 0x52a   : > { %v3470_v2 = vsel %vm1396_vm13, %v3469_v31, %v3452_v36  ;;  %v3481_v1 = vrot.slane %v3468_v61, 4  ;;  %v3484_v45 = vsel %vm1396_vm13, %v3468_v61, %v3483_v44 }
 0x52b   : > { %v3476_v48 = vperm.slane %v3470_v2, %v6996_v40  ;;  %v3492_v9 = vperm.slane %v3484_v45, %v6996_v40  ;;  %v3495_v30 = vrot.slane %v3480_v16, 4 }
 0x52c   : > { %v3482_v34 = vsel %vm1396_vm13, %v3481_v1, %v3456_v19  ;;  %v3343_v5 = vpop.f32.mrf.mxu3 }
 0x52d   : > { %v3488_v37 = vperm.slane %v3482_v34, %v6996_v40  ;;  %v3493_v18 = vrot.slane %v3476_v48, 4  ;;  %v3496_v20 = vsel %vm1396_vm13, 0.0, %v3495_v30  ;;  %v3499_v32 = vrot.slane %v3492_v9, 4 }
 0x52e   : > { %v3669_v17 = vsel %vm1396_vm13, %v3495_v30, %v3476_v48  ;;  %v3674_v47 = vrot.slane %v3496_v20, 4  ;;  %v3514_v10 = vsel %vm1396_vm13, %v3513_v21, %v3343_v5  ;;  %v3515_v7 = vrot.slane %v3343_v5, 4 }
 0x52f   : > { %v3494_v8 = vsel %vm1396_vm13, 0.0, %v3493_v18  ;;  %v3497_v14 = vrot.slane %v3488_v37, 4  ;;  %v3500_v23 = vsel %vm1396_vm13, 0.0, %v3499_v32  ;;  %v3673_v46 = vperm.slane %v3669_v17, %v6985_v12 }
 0x530   : > { %v3675_v49 = vsel %vm1396_vm13, %v3674_v47, %v3494_v8  ;;  %v3680_v24 = vsel %vm1396_vm13, %v3499_v32, %v3488_v37  ;;  %v3685_v57 = vrot.slane %v3500_v23, 4  ;;  %v3520_v3 = vperm.slane %v3514_v10, %v6985_v12 }
 0x531   : > { %v3679_v54 = vperm.slane %v3675_v49, %v6985_v12  ;;  %v3498_v33 = vsel %vm1396_vm13, 0.0, %v3497_v14  ;;  %v3693_v6 = vrot.slane %v3673_v46, 4  ;;  %v3516_v62 = vsel %vm1396_vm13, %v3437_v56, %v3515_v7 }
 0x532   : > { %v3684_v15 = vperm.slane %v3680_v24, %v6985_v12  ;;  %v3686_v50 = vsel %vm1396_vm13, %v3685_v57, %v3498_v33  ;;  %v3524_v11 = vperm.slane %v3516_v62, %v6985_v12  ;;  %v3525_v35 = vrot.slane %v3520_v3, 4 }
 0x533   : > { %v3528_v63 = vsel %vm1396_vm13, %v3520_v3, %v3527_v28  ;;  %v3690_v42 = vperm.slane %v3686_v50, %v6985_v12  ;;  %v3691_v4 = vrot.slane %v3679_v54, 4  ;;  %v3694_v22 = vsel %vm1396_vm13, %v3679_v54, %v3693_v6 }
 0x534   : > { %v3536_v25 = vperm.slane %v3528_v63, %v6996_v40  ;;  %v3705_v53 = vrot.slane %v3684_v15, 4  ;;  %v3526_v29 = vsel %vm1396_vm13, %v3525_v35, %v3508_v51  ;;  %v3537_v36 = vrot.slane %v3524_v11, 4 }
 0x535   : > { %v3540_v38 = vsel %vm1396_vm13, %v3524_v11, %v3539_v43  ;;  %v3532_v55 = vperm.slane %v3526_v29, %v6996_v40  ;;  %v3692_v31 = vsel %vm1396_vm13, %v3691_v4, %v3673_v46  ;;  %v3703_v58 = vrot.slane %v3690_v42, 4 }
 0x536   : > { %v3548_v19 = vperm.slane %v3540_v38, %v6996_v40  ;;  %v3551_v27 = vrot.slane %v3536_v25, 4  ;;  %v3538_v39 = vsel %vm1396_vm13, %v3537_v36, %v3512_v13  ;;  %v3706_v60 = vsel %vm1396_vm13, %v3690_v42, %v3705_v53 }
 0x537   : > { %v3544_v41 = vperm.slane %v3538_v39, %v6996_v40  ;;  %v3549_v0 = vrot.slane %v3532_v55, 4  ;;  %v3702_v48 = vperm.slane %v3694_v22, %v6996_v40  ;;  %v3714_v34 = vperm.slane %v3706_v60, %v6996_v40 }
 0x538   : > { %v3552_v26 = vsel %vm1396_vm13, 0.0, %v3551_v27  ;;  %v3555_v52 = vrot.slane %v3548_v19, 4  ;;  %v3723_v44 = vsel %vm1396_vm13, %v3551_v27, %v3532_v55  ;;  %v3698_v37 = vperm.slane %v3692_v31, %v6996_v40  ;;  %v3299_v19 = vpop.f32.mrf.mxu2 }
 0x539   : > { %v3728_v61 = vrot.slane %v3552_v26, 4  ;;  %v3550_v59 = vsel %vm1396_vm13, 0.0, %v3549_v0  ;;  %v3553_v56 = vrot.slane %v3544_v41, 4  ;;  %v3727_v51 = vperm.slane %v3723_v44, %v6985_v12 }
 0x53a   : > { %v3556_v16 = vsel %vm1396_vm13, 0.0, %v3555_v52  ;;  %v3734_v1 = vsel %vm1396_vm13, %v3555_v52, %v3544_v41  ;;  %v3704_v18 = vsel %vm1396_vm13, %v3703_v58, %v3684_v15  ;;  %v3721_v47 = vrot.slane %v3702_v48, 4 }
 0x53b   : > { %v3729_v2 = vsel %vm1396_vm13, %v3728_v61, %v3550_v59  ;;  %v3739_v45 = vrot.slane %v3556_v16, 4  ;;  %v3747_v30 = vrot.slane %v3727_v51, 4  ;;  %v3554_v13 = vsel %vm1396_vm13, 0.0, %v3553_v56 }
 0x53c   : > { %v3733_v9 = vperm.slane %v3729_v2, %v6985_v12  ;;  %v3738_v21 = vperm.slane %v3734_v1, %v6985_v12  ;;  %v3710_v17 = vperm.slane %v3704_v18, %v6996_v40  ;;  %v3719_v57 = vrot.slane %v3714_v34, 4 }
 0x53d   : > { %v3740_v5 = vsel %vm1396_vm13, %v3739_v45, %v3554_v13  ;;  %v3717_v43 = vrot.slane %v3698_v37, 4  ;;  %v3722_v6 = vsel %vm1396_vm13, %v3714_v34, %v3721_v47  ;;  %v3559_v22 = vrot.slane %v3299_v19, 4 }
 0x53e   : > { %v3744_v20 = vperm.slane %v3740_v5, %v6985_v12  ;;  %v3748_v32 = vsel %vm1396_vm13, %v3733_v9, %v3747_v30  ;;  %v3759_v28 = vrot.slane %v3738_v21, 4  ;;  %v3745_v8 = vrot.slane %v3733_v9, 4  ;;  %v6052_v5 = vld [vmem:[%s6780_s17 + $0x38] sm:$0xff] }
 0x53f   : > { %v3756_v10 = vperm.slane %v3748_v32, %v6996_v40  ;;  %v3715_v23 = vrot.slane %v3710_v17, 4  ;;  %v3720_v63 = vsel %vm1396_vm13, %v3719_v57, %v3702_v48  ;;  %v3718_v29 = vsel %vm1396_vm13, %v3710_v17, %v3717_v43  ;;  %3997 = vmatpush.bf16.msra.mxu2 %v6052_v5 }
 0x540   : > { %v3760_v14 = vsel %vm1396_vm13, %v3744_v20, %v3759_v28  ;;  %v3757_v46 = vrot.slane %v3744_v20, 4  ;;  %v3746_v7 = vsel %vm1396_vm13, %v3745_v8, %v3727_v51  ;;  %v3301_v48 = vpop.f32.mrf.mxu2 }
 0x541   : > { %v3768_v49 = vperm.slane %v3760_v14, %v6996_v40  ;;  %v3775_v24 = vrot.slane %v3756_v10, 4  ;;  %v3752_v54 = vperm.slane %v3746_v7, %v6996_v40  ;;  %v8174_v33 = vsel %vm1396_vm13, %v3715_v23, %v3698_v37 }
 0x542   : > { %v3758_v3 = vsel %vm1396_vm13, %v3757_v46, %v3738_v21  ;;  %v3615_v8 = vrot.slane %v3301_v48, 4 }
 0x543   : > { %v3776_v62 = vsel %vm1396_vm13, %v3768_v49, %v3775_v24  ;;  %v3773_v15 = vrot.slane %v3768_v49, 4  ;;  %v3764_v50 = vperm.slane %v3758_v3, %v6996_v40  ;;  %v3771_v35 = vrot.slane %v3752_v54, 4 }
 0x544   : > { %v6304_v11 = vpack.i.bf16 %v3776_v62, %v3722_v6 }
 0x545   : > { %v3774_v42 = vsel %vm1396_vm13, %v3773_v15, %v3756_v10  ;;  %v3769_v25 = vrot.slane %v3764_v50, 4  ;;  %v3772_v36 = vsel %vm1396_vm13, %v3764_v50, %v3771_v35 }
 0x546   : > { %6305 = vrot.lane.b32.xlu1 %v6304_v11, %s6558_s28  ;;  %v6299_v53 = vpack.i.bf16 %v3774_v42, %v3720_v63  ;;  %v6294_v38 = vpack.i.bf16 %v3772_v36, %v3718_v29 }
 0x547   : > { %v8185_v4 = vsel %vm1396_vm13, %v3769_v25, %v3752_v54  ;;  %v3440_v55 = vpop.f32.mrf.mxu1 }
 0x548   : > { %6300 = vrot.lane.b32.xlu0 %v6299_v53, %s6557_s18  ;;  %6295 = vrot.lane.b32.xlu2 %v6294_v38, %s6559_s2  ;;  %v3569_v27 = vrot.slane %v3440_v55, 4 }
 0x54f   : > { %v3442_v31 = vpop.f32.mrf.mxu1 }
 0x550   : > { %v3346_v39 = vpop.f32.mrf.mxu3  ;;  %v3625_v45 = vrot.slane %v3442_v31, 4 }
 0x551   : > { %v3570_v60 = vsel %vm1396_vm13, %v3569_v27, %v3346_v39  ;;  %v3571_v41 = vrot.slane %v3346_v39, 4 }
 0x552   : > { %v3576_v0 = vperm.slane %v3570_v60, %v6985_v12  ;;  %v3393_v26 = vpop.f32.mrf.mxu0 }
 0x553   : > { %v3572_v52 = vsel %vm1396_vm13, %v3440_v55, %v3571_v41  ;;  %v3557_v44 = vrot.slane %v3393_v26, 4  ;;  %v3560_v61 = vsel %vm1396_vm13, %v3393_v26, %v3559_v22 }
 0x554   : > { %v3580_v58 = vperm.slane %v3572_v52, %v6985_v12  ;;  %v3568_v59 = vperm.slane %v3560_v61, %v6985_v12  ;;  %v3581_v16 = vrot.slane %v3576_v0, 4 }
 0x555   : > { %v3558_v56 = vsel %vm1396_vm13, %v3557_v44, %v3299_v19 }
 0x556   : > { %v3593_v51 = vrot.slane %v3580_v58, 4  ;;  %v3564_v2 = vperm.slane %v3558_v56, %v6985_v12  ;;  %v3595_v1 = vrot.slane %v3568_v59, 4 }
 0x558   : > { %v3582_v9 = vsel %vm1396_vm13, %v3581_v16, %v3564_v2  ;;  %v3583_v30 = vrot.slane %v3564_v2, 4  ;;  %v3594_v13 = vsel %vm1396_vm13, %v3593_v51, %v3568_v59  ;;  %v3596_v21 = vsel %vm1396_vm13, %v3580_v58, %v3595_v1  ;;  %v3348_v34 = vpop.f32.mrf.mxu3 }
 0x559   : > { %v3588_v37 = vperm.slane %v3582_v9, %v6996_v40  ;;  %v3600_v18 = vperm.slane %v3594_v13, %v6996_v40  ;;  %v3604_v20 = vperm.slane %v3596_v21, %v6996_v40  ;;  %v3626_v32 = vsel %vm1396_vm13, %v3625_v45, %v3348_v34 }
 0x55a   : > { %v3584_v28 = vsel %vm1396_vm13, %v3576_v0, %v3583_v30  ;;  %v3627_v17 = vrot.slane %v3348_v34, 4  ;;  %v3632_v47 = vperm.slane %v3626_v32, %v6985_v12  ;;  %v3395_v10 = vpop.f32.mrf.mxu0 }
 0x55b   : > { %v3592_v14 = vperm.slane %v3584_v28, %v6996_v40  ;;  %v3609_v23 = vrot.slane %v3600_v18, 4  ;;  %v3611_v46 = vrot.slane %v3604_v20, 4  ;;  %v3605_v49 = vrot.slane %v3588_v37, 4 }
 0x55c   : > { %v3628_v24 = vsel %vm1396_vm13, %v3442_v31, %v3627_v17  ;;  %v3637_v57 = vrot.slane %v3632_v47, 4  ;;  %v3613_v7 = vrot.slane %v3395_v10, 4  ;;  %v3616_v6 = vsel %vm1396_vm13, %v3395_v10, %v3615_v8 }
 0x55d   : > { %v3607_v43 = vrot.slane %v3592_v14, 4  ;;  %v3610_v54 = vsel %vm1396_vm13, 0.0, %v3609_v23  ;;  %v3612_v3 = vsel %vm1396_vm13, 0.0, %v3611_v46  ;;  %v3788_v62 = vsel %vm1396_vm13, %v3611_v46, %v3600_v18 }
 0x55e   : > { %v3793_v15 = vrot.slane %v3612_v3, 4  ;;  %v3636_v50 = vperm.slane %v3628_v24, %v6985_v12  ;;  %v3614_v11 = vsel %vm1396_vm13, %v3613_v7, %v3301_v48  ;;  %v3792_v42 = vperm.slane %v3788_v62, %v6985_v12 }
 0x55f   : > { %v3608_v35 = vsel %vm1396_vm13, 0.0, %v3607_v43  ;;  %v3777_v63 = vsel %vm1396_vm13, %v3607_v43, %v3588_v37  ;;  %v3620_v25 = vperm.slane %v3614_v11, %v6985_v12  ;;  %v3624_v38 = vperm.slane %v3616_v6, %v6985_v12 }
 0x560   : > { %v3782_v53 = vrot.slane %v3608_v35, 4  ;;  %v3794_v29 = vsel %vm1396_vm13, %v3793_v15, %v3610_v54  ;;  %v3649_v36 = vrot.slane %v3636_v50, 4  ;;  %v3606_v55 = vsel %vm1396_vm13, 0.0, %v3605_v49 }
 0x561   : > { %v3798_v19 = vperm.slane %v3794_v29, %v6985_v12  ;;  %v3638_v27 = vsel %vm1396_vm13, %v3637_v57, %v3620_v25  ;;  %v3639_v39 = vrot.slane %v3620_v25, 4  ;;  %v3651_v41 = vrot.slane %v3624_v38, 4 }
 0x562   : > { %v3644_v22 = vperm.slane %v3638_v27, %v6996_v40  ;;  %v3650_v60 = vsel %vm1396_vm13, %v3649_v36, %v3624_v38  ;;  %v3781_v0 = vperm.slane %v3777_v63, %v6985_v12  ;;  %v3813_v26 = vrot.slane %v3792_v42, 4 }
 0x563   : > { %v3640_v52 = vsel %vm1396_vm13, %v3632_v47, %v3639_v39  ;;  %v3656_v44 = vperm.slane %v3650_v60, %v6996_v40  ;;  %v3783_v61 = vsel %vm1396_vm13, %v3782_v53, %v3606_v55  ;;  %v3652_v58 = vsel %vm1396_vm13, %v3636_v50, %v3651_v41 }
 0x564   : > { %v3648_v31 = vperm.slane %v3640_v52, %v6996_v40  ;;  %v3661_v59 = vrot.slane %v3644_v22, 4  ;;  %v3787_v56 = vperm.slane %v3783_v61, %v6985_v12  ;;  %v3660_v16 = vperm.slane %v3652_v58, %v6996_v40 }
 0x565   : > { %v3801_v51 = vrot.slane %v3781_v0, 4  ;;  %v3665_v1 = vrot.slane %v3656_v44, 4  ;;  %v3814_v9 = vsel %vm1396_vm13, %v3798_v19, %v3813_v26  ;;  %v3811_v30 = vrot.slane %v3798_v19, 4 }
 0x566   : > { %v3663_v2 = vrot.slane %v3648_v31, 4  ;;  %v3799_v45 = vrot.slane %v3787_v56, 4  ;;  %v3667_v48 = vrot.slane %v3660_v16, 4  ;;  %v3662_v13 = vsel %vm1396_vm13, 0.0, %v3661_v59  ;;  %v6051_v59 = vld [vmem:[%s6780_s17 + $0x30] sm:$0xff]  ;;  %v6049_v16 = vld [vmem:[%s6780_s17 + $0x20] sm:$0xff] }
 0x567   : > { %v3802_v5 = vsel %vm1396_vm13, %v3787_v56, %v3801_v51  ;;  %v3666_v28 = vsel %vm1396_vm13, 0.0, %v3665_v1  ;;  %v3812_v46 = vsel %vm1396_vm13, %v3811_v30, %v3792_v42  ;;  %v3822_v57 = vperm.slane %v3814_v9, %v6996_v40  ;;  %3998 = vmatpush.bf16.msra.mxu2 %v6051_v59  ;;  %v6050_v56 = vld [vmem:[%s6780_s17 + $0x28] sm:$0xff]  ;;  %v6048_v51 = vld [vmem:[%s6780_s17 + $0x18] sm:$0xff] }
 0x568   : > { %v3664_v21 = vsel %vm1396_vm13, 0.0, %v3663_v2  ;;  %v3831_v34 = vsel %vm1396_vm13, %v3663_v2, %v3644_v22  ;;  %v3668_v37 = vsel %vm1396_vm13, 0.0, %v3667_v48  ;;  %v3842_v20 = vsel %vm1396_vm13, %v3667_v48, %v3656_v44  ;;  %v6047_v2 = vld [vmem:[%s6780_s17 + $0x10] sm:$0xff]  ;;  %v6046_v1 = vld [vmem:[%s6780_s17 + $0x8] sm:$0xff] }
 0x569   : > { %v3836_v18 = vrot.slane %v3664_v21, 4  ;;  %v3835_v32 = vperm.slane %v3831_v34, %v6985_v12  ;;  %v3846_v17 = vperm.slane %v3842_v20, %v6985_v12  ;;  %v3847_v47 = vrot.slane %v3668_v37, 4 }
 0x56a   : > { %v3800_v10 = vsel %vm1396_vm13, %v3799_v45, %v3781_v0  ;;  %v3810_v8 = vperm.slane %v3802_v5, %v6996_v40  ;;  %v3818_v3 = vperm.slane %v3812_v46, %v6996_v40  ;;  %v3827_v63 = vrot.slane %v3822_v57, 4  ;;  %v6045_v45 = vld [vmem:[%s6780_s17] sm:$0xff] }
 0x56b   : > { %v3837_v14 = vsel %vm1396_vm13, %v3836_v18, %v3662_v13  ;;  %v3855_v23 = vrot.slane %v3835_v32, 4  ;;  %v3848_v49 = vsel %vm1396_vm13, %v3847_v47, %v3666_v28  ;;  %v3867_v24 = vrot.slane %v3846_v17, 4  ;;  %3999 = vmatpush.bf16.msra.mxu2 %v6050_v56 }
 0x56c   : > { %v3841_v7 = vperm.slane %v3837_v14, %v6985_v12  ;;  %v3852_v43 = vperm.slane %v3848_v49, %v6985_v12  ;;  %v3806_v54 = vperm.slane %v3800_v10, %v6996_v40  ;;  %v3829_v11 = vrot.slane %v3810_v8, 4 }
 0x56d   : > { %v3823_v35 = vrot.slane %v3818_v3, 4  ;;  %v3828_v41 = vsel %vm1396_vm13, %v3827_v63, %v3810_v8  ;;  %v6444_v63 = vld [vmem:[#allocation2 + $0x10] sm:$0xff] }
 0x56e   : > { %v3856_v6 = vsel %vm1396_vm13, %v3841_v7, %v3855_v23  ;;  %v3853_v62 = vrot.slane %v3841_v7, 4  ;;  %v3868_v50 = vsel %vm1396_vm13, %v3852_v43, %v3867_v24  ;;  %v3865_v53 = vrot.slane %v3852_v43, 4 }
 0x56f   : > { %v3864_v15 = vperm.slane %v3856_v6, %v6996_v40  ;;  %v3876_v42 = vperm.slane %v3868_v50, %v6996_v40  ;;  %v3825_v29 = vrot.slane %v3806_v54, 4  ;;  %v3824_v38 = vsel %vm1396_vm13, %v3823_v35, %v3806_v54  ;;  %4000 = vmatpush.bf16.msra.mxu2 %v6049_v16 }
 0x570   : > { %v3854_v25 = vsel %vm1396_vm13, %v3853_v62, %v3835_v32  ;;  %v3866_v19 = vsel %vm1396_vm13, %v3865_v53, %v3846_v17  ;;  %v3830_v27 = vsel %vm1396_vm13, %v3822_v57, %v3829_v11  ;;  %v6326_v11 = vld [vmem:[%s8947_s22] ss:$0 sm:$0xff] }
 0x571   : > { %v3883_v12 = vrot.slane %v3864_v15, 4  ;;  %v3860_v36 = vperm.slane %v3854_v25, %v6996_v40  ;;  %v3881_v55 = vrot.slane %v3876_v42, 4  ;;  %v3872_v22 = vperm.slane %v3866_v19, %v6996_v40 }
 0x572   : > { %v3826_v44 = vsel %vm1396_vm13, %v3818_v3, %v3825_v29 }
 0x573   : > { %v3884_v39 = vsel %vm1396_vm13, %v3876_v42, %v3883_v12  ;;  %v3879_v60 = vrot.slane %v3860_v36, 4  ;;  %v3882_v0 = vsel %vm1396_vm13, %v3881_v55, %v3864_v15  ;;  %v3877_v61 = vrot.slane %v3872_v22, 4  ;;  %4001 = vmatpush.bf16.msra.mxu2 %v6048_v51  ;;  %v6445_v12 = vld [vmem:[#allocation2] sm:$0xff]  ;;  %v6446_v55 = vld [vmem:[#allocation2 + $0x18] sm:$0xff] }
 0x574   : > { %v6319_v26 = vpack.i.bf16 %v3884_v39, %v3830_v27  ;;  %v6314_v52 = vpack.i.bf16 %v3882_v0, %v3828_v41 }
 0x575   : > { %v3880_v31 = vsel %vm1396_vm13, %v3872_v22, %v3879_v60  ;;  %v3878_v58 = vsel %vm1396_vm13, %v3877_v61, %v3860_v36  ;;  %v6447_v22 = vld [vmem:[#allocation2 + $0x8] sm:$0xff] }
 0x576   : > { %6320 = vrot.lane.b32.xlu1 %v6319_v26, %s6558_s28  ;;  %v6309_v40 = vpack.i.bf16 %v3880_v31, %v3826_v44  ;;  %6315 = vrot.lane.b32.xlu2 %v6314_v52, %s6557_s18  ;;  %v8948_v26 = vld [vmem:[#allocation21_spill] sm:$0xff] }
 0x577   : > { %4002 = vmatpush.bf16.msra.mxu2 %v6047_v2 }
 0x578   : > { %6310 = vrot.lane.b32.xlu0 %v6309_v40, %s6559_s2 }
 0x57b   : > { %4003 = vmatpush.bf16.msra.mxu2 %v6046_v1 }
 0x57f   : > { %4004 = vmatpush.bf16.msra.mxu2 %v6045_v45 }
 0x5a2   : > { %v6296_v48 = vpop.permute.xlu2 %6295 }
 0x5a3   : > { %v6298_v9 = vunpack.i.h.bf16 %v6296_v48  ;;  %v6297_v30 = vunpack.i.l.bf16 %v6296_v48 }
 0x5a5   : > { %v3933_v37 = vsel %vm2864_vm14, %v8174_v33, %v6297_v30  ;;  %v3934_v18 = vsel %vm2864_vm14, %v8185_v4, %v6298_v9  ;;  %v5773_v30 = vld [vmem:[%s6808_s3 + $0xe0] sm:$0xf] }
 0x5b8   : > { %v6306_v13 = vpop.permute.xlu1 %6305 }
 0x5b9   : > { %v6308_v20 = vunpack.i.h.bf16 %v6306_v13  ;;  %v6307_v32 = vunpack.i.l.bf16 %v6306_v13  ;;  %v6083_v13 = vld [vmem:[%s6808_s3 + $0xec] sm:$0xf0] }
 0x5ba   : > { %v6301_v21 = vpop.permute.xlu0 %6300 }
 0x5bb   : > { %v6303_v34 = vunpack.i.h.bf16 %v6301_v21  ;;  %v6302_v5 = vunpack.i.l.bf16 %v6301_v21  ;;  %v6081_v21 = vld [vmem:[%s6808_s3 + $0xe4] sm:$0xf] }
 0x5bd   : > { %v3938_v28 = vsel %vm3937_vm15, %v3933_v37, %v6302_v5  ;;  %v3939_v17 = vsel %vm3937_vm15, %v3934_v18, %v6303_v34  ;;  %v5774_v34 = vor.u32 %v6083_v13, %v5773_v30  ;;  %v5775_v5 = vld [vmem:[%s6808_s3 + $0xf0] sm:$0xf0]  ;;  %v5781_v37 = vld [vmem:[%s6808_s3 + $0xe8] sm:$0xf]  ;;  %v6084_v18 = vld [vmem:[%s6808_s3 + $0xf4] sm:$0xf0] }
 0x5be   : > { %v3943_v47 = vsel %vm3942_vm0, %v3938_v28, %v6307_v32  ;;  %v3944_v10 = vsel %vm3942_vm0, %v3939_v17, %v6308_v20  ;;  %v5778_v20 = vor.u32 %v6081_v21, %v5775_v5  ;;  %v5782_v32 = vor.u32 %v6084_v18, %v5781_v37  ;;  %v6082_v28 = vld [vmem:[%s6808_s3 + $0xec] sm:$0xf]  ;;  %v5783_v17 = vld [vmem:[%s6808_s3 + $0xf8] sm:$0xf0]  ;;  %v5711_v30 = vld [vmem:[%s6808_s3 + $0x70] sm:$0xf0] }
 0x5bf   : > { %v3947_v8 = vpack.c.bf16 %v3944_v10, %v3943_v47  ;;  %4292 = vmatpush.bf16.msrb.mxu3 %v5774_v34  ;;  %v5786_v47 = vor.u32 %v6082_v28, %v5783_v17  ;;  %v5757_v10 = vld [vmem:[%s6808_s3 + $0xc0] sm:$0xf]  ;;  %v5717_v13 = vld [vmem:[%s6808_s3 + $0x68] sm:$0xf]  ;;  %v6068_v34 = vld [vmem:[%s6808_s3 + $0x74] sm:$0xf0] }
 0x5c0   : > { %4311 = vmatpush.bf16.msrb.mxu0 %v5778_v20  ;;  %4330 = vmatpush.bf16.msrb.mxu1 %v5782_v32  ;;  %v6066_v5 = vld [vmem:[%s6808_s3 + $0x6c] sm:$0xf]  ;;  %v5719_v37 = vld [vmem:[%s6808_s3 + $0x78] sm:$0xf0]  ;;  %v5693_v20 = vld [vmem:[%s6808_s3 + $0x40] sm:$0xf] }
 0x5c1   : > { %4005 = vmatmul.bf16.vlgmr.msra.gmra.mxu2 %v3947_v8  ;;  %v6079_v8 = vld [vmem:[%s6808_s3 + $0xcc] sm:$0xf0] }
 0x5c2   : > { %4349 = vmatpush.bf16.msrb.mxu2 %v5786_v47  ;;  %v5718_v47 = vor.u32 %v6068_v34, %v5717_v13 }
 0x5d0   : > { %v6316_v14 = vpop.permute.xlu2 %6315 }
 0x5d1   : > { %v6318_v24 = vunpack.i.h.bf16 %v6316_v14  ;;  %v6317_v4 = vunpack.i.l.bf16 %v6316_v14  ;;  %v6077_v14 = vld [vmem:[%s6808_s3 + $0xc4] sm:$0xf] }
 0x5e8   : > { %v6321_v23 = vpop.permute.xlu1 %6320 }
 0x5e9   : > { %v6323_v57 = vunpack.i.h.bf16 %v6321_v23  ;;  %v6322_v7 = vunpack.i.l.bf16 %v6321_v23 }
 0x5ea   : > { %v6311_v46 = vpop.permute.xlu0 %6310 }
 0x5eb   : > { %v6313_v33 = vunpack.i.h.bf16 %v6311_v46  ;;  %v6312_v49 = vunpack.i.l.bf16 %v6311_v46  ;;  %v5758_v46 = vor.u32 %v6079_v8, %v5757_v10  ;;  %v6063_v10 = vld [vmem:[%s6808_s3 + $0x4c] sm:$0xf0]  ;;  %v6061_v8 = vld [vmem:[%s6808_s3 + $0x44] sm:$0xf] }
 0x5ed   : > { %v3935_v43 = vsel %vm2864_vm14, %v3824_v38, %v6312_v49  ;;  %v3936_v54 = vsel %vm2864_vm14, %v3878_v58, %v6313_v33  ;;  %v5759_v33 = vld [vmem:[%s6808_s3 + $0xd0] sm:$0xf0]  ;;  %v5765_v49 = vld [vmem:[%s6808_s3 + $0xc8] sm:$0xf]  ;;  %4293 = vmatpush.bf16.msrb.mxu3 %v5758_v46 }
 0x5ee   : > { %v3940_v3 = vsel %vm3937_vm15, %v3935_v43, %v6317_v4  ;;  %v3941_v6 = vsel %vm3937_vm15, %v3936_v54, %v6318_v24  ;;  %v6080_v24 = vld [vmem:[%s6808_s3 + $0xd4] sm:$0xf0]  ;;  %v6078_v43 = vld [vmem:[%s6808_s3 + $0xcc] sm:$0xf]  ;;  %v5767_v54 = vld [vmem:[%s6808_s3 + $0xd8] sm:$0xf0] }
 0x5ef   : > { %v3945_v62 = vsel %vm3942_vm0, %v3940_v3, %v6322_v7  ;;  %v3946_v15 = vsel %vm3942_vm0, %v3941_v6, %v6323_v57  ;;  %v5762_v57 = vor.u32 %v6077_v14, %v5759_v33  ;;  %v5766_v7 = vor.u32 %v6080_v24, %v5765_v49  ;;  %v5741_v3 = vld [vmem:[%s6808_s3 + $0xa0] sm:$0xf]  ;;  %v5695_v46 = vld [vmem:[%s6808_s3 + $0x50] sm:$0xf0]  ;;  %v5701_v33 = vld [vmem:[%s6808_s3 + $0x48] sm:$0xf] }
 0x5f0   : > { %v3948_v50 = vpack.c.bf16 %v3946_v15, %v3945_v62  ;;  %v5770_v6 = vor.u32 %v6078_v43, %v5767_v54  ;;  %v6075_v62 = vld [vmem:[%s6808_s3 + $0xac] sm:$0xf0]  ;;  %v6073_v15 = vld [vmem:[%s6808_s3 + $0xa4] sm:$0xf]  ;;  %v6064_v49 = vld [vmem:[%s6808_s3 + $0x54] sm:$0xf0]  ;;  %v5698_v54 = vor.u32 %v6061_v8, %v5695_v46 }
 0x5f1   : > { %4312 = vmatpush.bf16.msrb.mxu0 %v5762_v57  ;;  %4331 = vmatpush.bf16.msrb.mxu1 %v5766_v7  ;;  %v6062_v24 = vld [vmem:[%s6808_s3 + $0x4c] sm:$0xf]  ;;  %v5694_v7 = vor.u32 %v6063_v10, %v5693_v20  ;;  %v5677_v43 = vld [vmem:[%s6808_s3 + $0x20] sm:$0xf] }
 0x5f2   : > { %4010 = vmatmul.bf16.gmra.mxu2 %v3948_v50  ;;  %v5743_v50 = vld [vmem:[%s6808_s3 + $0xb0] sm:$0xf0] }
 0x5f3   : > { %4350 = vmatpush.bf16.msrb.mxu2 %v5770_v6  ;;  %v6059_v6 = vld [vmem:[%s6808_s3 + $0x2c] sm:$0xf0] }
 0x644   : > { %v4006_v35 = vpop.f32.mrf.mxu2 }
 0x645   : > { %v4016_v42 = vadd.f32 %v6444_v63, %v4006_v35  ;;  %v5742_v35 = vor.u32 %v6075_v62, %v5741_v3  ;;  %v5746_v63 = vor.u32 %v6073_v15, %v5743_v50  ;;  %v5702_v3 = vor.u32 %v6064_v49, %v5701_v33  ;;  %v6057_v62 = vld [vmem:[%s6808_s3 + $0x24] sm:$0xf]  ;;  %v5679_v15 = vld [vmem:[%s6808_s3 + $0x30] sm:$0xf0] }
 0x647   : > { %v8299_v25 = vadd.f32 %v6326_v11, %v4016_v42  ;;  %v5749_v42 = vld [vmem:[%s6808_s3 + $0xa8] sm:$0xf]  ;;  %4294 = vmatpush.bf16.msrb.mxu3 %v5742_v35  ;;  %4313 = vmatpush.bf16.msrb.mxu0 %v5746_v63 }
 0x648   : > { %v5685_v63 = vld [vmem:[%s6808_s3 + $0x28] sm:$0xf] }
 0x649   : > { %4027 = vadd.xlane.f32.xlu0 %v8299_v25 }
 0x64c   : > { %v4008_v53 = vpop.f32.mrf.mxu2 }
 0x64d   : > { %v4017_v29 = vadd.f32 %v6445_v12, %v4008_v53  ;;  %v6076_v53 = vld [vmem:[%s6808_s3 + $0xb4] sm:$0xf0] }
 0x64e   : > { %v5750_v12 = vor.u32 %v6076_v53, %v5749_v42  ;;  %v6060_v42 = vld [vmem:[%s6808_s3 + $0x34] sm:$0xf0]  ;;  %v6058_v53 = vld [vmem:[%s6808_s3 + $0x2c] sm:$0xf] }
 0x64f   : > { %v8302_v36 = vadd.f32 %v6326_v11, %v4017_v29  ;;  %v6074_v29 = vld [vmem:[%s6808_s3 + $0xac] sm:$0xf] }
 0x650   : > { %4332 = vmatpush.bf16.msrb.mxu1 %v5750_v12  ;;  %v5687_v12 = vld [vmem:[%s6808_s3 + $0x38] sm:$0xf0] }
 0x651   : > { %4029 = vadd.xlane.f32.xlu2 %v8302_v36 }
 0x675   : > { %v4011_v38 = vpop.f32.mrf.mxu2 }
 0x676   : > { %v4018_v19 = vadd.f32 %v6446_v55, %v4011_v38  ;;  %v5751_v38 = vld [vmem:[%s6808_s3 + $0xb8] sm:$0xf0]  ;;  %v5725_v55 = vld [vmem:[%s6808_s3 + $0x80] sm:$0xf] }
 0x678   : > { %v8305_v27 = vadd.f32 %v6326_v11, %v4018_v19  ;;  %v5754_v19 = vor.u32 %v6074_v29, %v5751_v38  ;;  %v5678_v38 = vor.u32 %v6059_v6, %v5677_v43 }
 0x67a   : > { %4031 = vadd.xlane.f32.xlu1 %v8305_v27  ;;  %4351 = vmatpush.bf16.msrb.mxu2 %v5754_v19  ;;  %v5682_v19 = vor.u32 %v6057_v62, %v5679_v15 }
 0x67d   : > { %v4013_v39 = vpop.f32.mrf.mxu2 }
 0x67e   : > { %v4019_v60 = vadd.f32 %v6447_v22, %v4013_v39  ;;  %v6071_v39 = vld [vmem:[%s6808_s3 + $0x8c] sm:$0xf0]  ;;  %v6069_v22 = vld [vmem:[%s6808_s3 + $0x84] sm:$0xf] }
 0x680   : > { %v8308_v41 = vadd.f32 %v6326_v11, %v4019_v60  ;;  %v5727_v60 = vld [vmem:[%s6808_s3 + $0x90] sm:$0xf0] }
 0x682   : > { %4033 = vadd.xlane.f32.xlu0 %v8308_v41 }
 0x6bc   : > { %v4028_v0 = vpop.xlane.xlu0 %4027 }
 0x6bd   : > { %v4035_v52 = vmul.f32 %v4028_v0, %v8948_v26  ;;  %v5726_v0 = vor.u32 %v6071_v39, %v5725_v55  ;;  %v5686_v39 = vor.u32 %v6060_v42, %v5685_v63 }
 0x6bf   : > { %v8313_v44 = vsub.f32 %v8299_v25, %v4035_v52  ;;  %v5733_v52 = vld [vmem:[%s6808_s3 + $0x88] sm:$0xf]  ;;  %4295 = vmatpush.bf16.msrb.mxu3 %v5726_v0  ;;  %v6053_v0 = vld [vmem:[%s6808_s3 + $0x4] sm:$0xf] }
 0x6c1   : > { %v4043_v61 = vmul.f32 %v8313_v44, %v8313_v44 }
 0x6c3   : > { %4047 = vadd.xlane.f32.xlu2 %v4043_v61  ;;  %v6072_v61 = vld [vmem:[%s6808_s3 + $0x94] sm:$0xf0] }
 0x6c4   : > { %v4030_v31 = vpop.xlane.xlu2 %4029 }
 0x6c5   : > { %v4036_v40 = vmul.f32 %v4030_v31, %v8948_v26  ;;  %v6070_v31 = vld [vmem:[%s6808_s3 + $0x8c] sm:$0xf] }
 0x6c7   : > { %v8319_v58 = vsub.f32 %v8302_v36, %v4036_v40  ;;  %v5730_v40 = vor.u32 %v6069_v22, %v5727_v60  ;;  %v5661_v22 = vld [vmem:[%s6808_s3] sm:$0xf]  ;;  %v6055_v60 = vld [vmem:[%s6808_s3 + $0xc] sm:$0xf0] }
 0x6c9   : > { %v4044_v59 = vmul.f32 %v8319_v58, %v8319_v58  ;;  %4314 = vmatpush.bf16.msrb.mxu0 %v5730_v40  ;;  %v5663_v40 = vld [vmem:[%s6808_s3 + $0x10] sm:$0xf0] }
 0x6cb   : > { %4049 = vadd.xlane.f32.xlu1 %v4044_v59  ;;  %v5734_v59 = vor.u32 %v6072_v61, %v5733_v52 }
 0x6cd   : > { %4333 = vmatpush.bf16.msrb.mxu1 %v5734_v59  ;;  %v5669_v59 = vld [vmem:[%s6808_s3 + $0x8] sm:$0xf] }
 0x6d1   : > { %4334 = vmatpush.bf16.msrb.mxu1 %v5718_v47 }
 0x6d5   : > { %4335 = vmatpush.bf16.msrb.mxu1 %v5702_v3 }
 0x6d9   : > { %4336 = vmatpush.bf16.msrb.mxu1 %v5686_v39  ;;  %v6108_v39 = vld [vmem:[%s6819_s4 + $0xb8] sm:$0xff] }
 0x6ed   : > { %v4032_v56 = vpop.xlane.xlu1 %4031 }
 0x6ee   : > { %v4037_v16 = vmul.f32 %v4032_v56, %v8948_v26  ;;  %v5735_v56 = vld [vmem:[%s6808_s3 + $0x98] sm:$0xf0] }
 0x6f0   : > { %v8325_v51 = vsub.f32 %v8305_v27, %v4037_v16  ;;  %v5709_v16 = vld [vmem:[%s6808_s3 + $0x60] sm:$0xf] }
 0x6f2   : > { %v4045_v2 = vmul.f32 %v8325_v51, %v8325_v51 }
 0x6f4   : > { %4051 = vadd.xlane.f32.xlu0 %v4045_v2  ;;  %v6067_v2 = vld [vmem:[%s6808_s3 + $0x6c] sm:$0xf0] }
 0x6f5   : > { %v4034_v1 = vpop.xlane.xlu0 %4033  ;;  %v5710_v18 = vor.u32 %v6067_v2, %v5709_v16  ;;  %v6054_v16 = vld [vmem:[%s6808_s3 + $0xc] sm:$0xf]  ;;  %v5671_v2 = vld [vmem:[%s6808_s3 + $0x18] sm:$0xf0] }
 0x6f6   : > { %v4038_v45 = vmul.f32 %v4034_v1, %v8948_v26  ;;  %v5674_v34 = vor.u32 %v6054_v16, %v5671_v2  ;;  %v6105_v16 = vld [vmem:[%s6819_s4 + $0xa0] sm:$0xff]  ;;  %v6090_v2 = vld [vmem:[%s6819_s4 + $0x28] sm:$0xff] }
 0x6f7   : > { %4296 = vmatpush.bf16.msrb.mxu3 %v5710_v18 }
 0x6f8   : > { %v8331_v48 = vsub.f32 %v8308_v41, %v4038_v45  ;;  %v5738_v45 = vor.u32 %v6070_v31, %v5735_v56  ;;  %v5690_v31 = vor.u32 %v6058_v53, %v5687_v12  ;;  %v6056_v56 = vld [vmem:[%s6808_s3 + $0x14] sm:$0xf0] }
 0x6fa   : > { %v4046_v9 = vmul.f32 %v8331_v48, %v8331_v48  ;;  %4352 = vmatpush.bf16.msrb.mxu2 %v5738_v45  ;;  %v5662_v45 = vor.u32 %v6055_v60, %v5661_v22  ;;  %v6107_v22 = vld [vmem:[%s6819_s4 + $0xb0] sm:$0xff]  ;;  %v6092_v60 = vld [vmem:[%s6819_s4 + $0x38] sm:$0xff] }
 0x6fb   : > { %4297 = vmatpush.bf16.msrb.mxu3 %v5694_v7 }
 0x6fc   : > { %4053 = vadd.xlane.f32.xlu2 %v4046_v9  ;;  %v6065_v9 = vld [vmem:[%s6808_s3 + $0x64] sm:$0xf] }
 0x6fd   : > { %v5714_v17 = vor.u32 %v6065_v9, %v5711_v30  ;;  %v5666_v9 = vor.u32 %v6053_v0, %v5663_v40  ;;  %v5670_v30 = vor.u32 %v6056_v56, %v5669_v59  ;;  %v6116_v0 = vld [vmem:[%s6819_s4 + $0xf8] sm:$0xff]  ;;  %v6115_v40 = vld [vmem:[%s6819_s4 + $0xf0] sm:$0xff]  ;;  %v990_v59 = vld [vmem:[%s6814_s15] sm:$0xf]  ;;  %s8955_s15 = sld [smem:[#allocation19_spill]] (!%p5915_p1) }
 0x6fe   : > { %v6097_v56 = vld [vmem:[%s6819_s4 + $0x60] sm:$0xff] }
 0x6ff   : > { %4315 = vmatpush.bf16.msrb.mxu0 %v5714_v17  ;;  %4298 = vmatpush.bf16.msrb.mxu3 %v5678_v38 }
 0x700   : > { %4337 = vmatpush.bf16.msrb.mxu1 %v5670_v30  ;;  %v8451_v30 = vperm.slane %v990_v59, 1 }
 0x703   : > { %4316 = vmatpush.bf16.msrb.mxu0 %v5698_v54  ;;  %4299 = vmatpush.bf16.msrb.mxu3 %v5662_v45  ;;  %v6096_v45 = vld [vmem:[%s6819_s4 + $0x58] sm:$0xff] }
 0x704   : > { %4750 = vmatpush.bf16.msra.mxu1 %v6108_v39 }
 0x707   : > { %4317 = vmatpush.bf16.msrb.mxu0 %v5682_v19  ;;  %4712 = vmatpush.bf16.msra.mxu3 %v6092_v60 }
 0x708   : > { %4751 = vmatpush.bf16.msra.mxu1 %v6107_v22 }
 0x70b   : > { %4318 = vmatpush.bf16.msrb.mxu0 %v5666_v9  ;;  %v6104_v9 = vld [vmem:[%s6819_s4 + $0x98] sm:$0xff] }
 0x736   : > { %v4048_v23 = vpop.xlane.xlu2 %4047 }
 0x737   : > { %v4055_v4 = vmul.f32 %v4048_v23, %v8948_v26  ;;  %v5722_v23 = vor.u32 %v6066_v5, %v5719_v37  ;;  %v6327_v37 = vld [vmem:[%s855_s24] ss:$0 sm:$0xff] }
 0x739   : > { %v8356_v11 = vadd.f32 1e-05, %v4055_v4  ;;  %v5703_v4 = vld [vmem:[%s6808_s3 + $0x58] sm:$0xf0]  ;;  %4353 = vmatpush.bf16.msrb.mxu2 %v5722_v23  ;;  %s8952_s3 = sld [smem:[#allocation29_spill]] (!%p5915_p1) }
 0x73a   : > { %v5706_v35 = vor.u32 %v6062_v24, %v5703_v4 }
 0x73b   : > { %6404 = vrsqrt.f32 %v8356_v11  ;;  %vm4069_vm2 = vweird.f32 %v8356_v11 }
 0x73d   : > { %4354 = vmatpush.bf16.msrb.mxu2 %v5706_v35 }
 0x73e   : > { %v4050_v1 = vpop.xlane.xlu1 %4049 }
 0x73f   : > { %v4056_v21 = vmul.f32 %v4050_v1, %v8948_v26 }
 0x741   : > { %v8381_v32 = vpop.eup %6404  ;;  %v8383_v28 = vadd.f32 1e-05, %v4056_v21  ;;  %4355 = vmatpush.bf16.msrb.mxu2 %v5690_v31  ;;  %v6091_v31 = vld [vmem:[%s6819_s4 + $0x30] sm:$0xff] }
 0x742   : > { %v4064_v14 = vmul.f32 %v8381_v32, %v8356_v11  ;;  %vm4070_vm1 = vweird.f32 %v8381_v32  ;;  %4713 = vmatpush.bf16.msra.mxu3 %v6091_v31  ;;  %v6085_v31 = vld [vmem:[%s6819_s4] sm:$0xff] }
 0x743   : > { %6406 = vrsqrt.f32 %v8383_v28  ;;  %vm4071_vm3 = vmor %vm4069_vm2, %vm4070_vm1  ;;  %vm4079_vm5 = vweird.f32 %v8383_v28 }
 0x744   : > { %v4065_v57 = vmul.f32 %v8381_v32, %v4064_v14 }
 0x745   : > { %4356 = vmatpush.bf16.msrb.mxu2 %v5674_v34  ;;  %v6113_v34 = vld [vmem:[%s6819_s4 + $0xe0] sm:$0xff] }
 0x746   : > { %v4066_v50 = vmul.f32 0.5, %v4065_v57  ;;  %4714 = vmatpush.bf16.msra.mxu3 %v6090_v2 }
 0x748   : > { %v4067_v29 = vsub.f32 1.5, %v4066_v50 }
 0x749   : > { %v6407_v55 = vpop.eup %6406  ;;  %4769 = vmatpush.bf16.msra.mxu2 %v6116_v0 }
 0x74a   : > { %v4068_v52 = vmul.f32 %v8381_v32, %v4067_v29  ;;  %v4074_v61 = vmul.f32 %v6407_v55, %v8383_v28  ;;  %vm4080_vm4 = vweird.f32 %v6407_v55 }
 0x74b   : > { %vm4081_vm6 = vmor %vm4079_vm5, %vm4080_vm4 }
 0x74c   : > { %v4075_v1 = vmul.f32 %v6407_v55, %v4074_v61  ;;  %v4072_v13 = vsel %vm4071_vm3, %v8381_v32, %v4068_v52  ;;  %v6098_v52 = vld [vmem:[%s6819_s4 + $0x68] sm:$0xff] }
 0x74d   : > { %v4103_v11 = vmul.f32 %v4072_v13, %v8313_v44  ;;  %v6328_v44 = vld [vmem:[%s858_s5] ss:$0 sm:$0xff]  ;;  %v6106_v61 = vld [vmem:[%s6819_s4 + $0xa8] sm:$0xff]  ;;  %4770 = vmatpush.bf16.msra.mxu2 %v6115_v40  ;;  %v8453_v13 = vperm.slane %v990_v59, 2 }
 0x74e   : > { %v4076_v21 = vmul.f32 0.5, %v4075_v1  ;;  %4752 = vmatpush.bf16.msra.mxu1 %v6106_v61  ;;  %v6114_v1 = vld [vmem:[%s6819_s4 + $0xe8] sm:$0xff]  ;;  %v6109_v40 = vld [vmem:[%s6819_s4 + $0xc0] sm:$0xff] }
 0x74f   : > { %v4110_v17 = vmul.f32 %v6327_v37, %v4103_v11  ;;  %v6095_v11 = vld [vmem:[%s6819_s4 + $0x50] sm:$0xff] }
 0x750   : > { %v4077_v5 = vsub.f32 1.5, %v4076_v21  ;;  %v6089_v21 = vld [vmem:[%s6819_s4 + $0x20] sm:$0xff] }
 0x751   : > { %v4117_v10 = vadd.f32 %v6328_v44, %v4110_v17  ;;  %4771 = vmatpush.bf16.msra.mxu2 %v6114_v1  ;;  %4715 = vmatpush.bf16.msra.mxu3 %v6089_v21  ;;  %v6088_v17 = vld [vmem:[%s6819_s4 + $0x18] sm:$0xff] }
 0x752   : > { %v4078_v18 = vmul.f32 %v6407_v55, %v4077_v5  ;;  %4753 = vmatpush.bf16.msra.mxu1 %v6105_v16 }
 0x754   : > { %v4082_v20 = vsel %vm4081_vm6, %v6407_v55, %v4078_v18 }
 0x755   : > { %v4104_v32 = vmul.f32 %v4082_v20, %v8319_v58  ;;  %4772 = vmatpush.bf16.msra.mxu2 %v6113_v34  ;;  %4716 = vmatpush.bf16.msra.mxu3 %v6088_v17 }
 0x756   : > { %4754 = vmatpush.bf16.msra.mxu1 %v6104_v9 }
 0x757   : > { %v4111_v47 = vmul.f32 %v6327_v37, %v4104_v32 }
 0x759   : > { %v4118_v8 = vadd.f32 %v6328_v44, %v4111_v47 }
 0x75b   : > { %v4121_v14 = vpack.c.bf16 %v4118_v8, %v4117_v10  ;;  %v8468_v10 = vperm.slane %v990_v59, 0 }
 0x75d   : > { %4300 = vmatmul.bf16.vlgmr.msrb.gmra.mxu3 %v4121_v14  ;;  %4319 = vmatmul.bf16.vlgmr.msrb.gmra.mxu0 %v4121_v14 }
 0x75e   : > { %4338 = vmatmul.bf16.vlgmr.msrb.gmra.mxu1 %v4121_v14  ;;  %4357 = vmatmul.bf16.vlgmr.msrb.gmra.mxu2 %v4121_v14  ;;  %v8471_v14 = vperm.slane %v990_v59, 3 }
 0x767   : > { %v4052_v28 = vpop.xlane.xlu0 %4051 }
 0x768   : > { %v4057_v23 = vmul.f32 %v4052_v28, %v8948_v26  ;;  %v6094_v28 = vld [vmem:[%s6819_s4 + $0x48] sm:$0xff] }
 0x76a   : > { %v4061_v46 = vadd.f32 1e-05, %v4057_v23  ;;  %v6102_v23 = vld [vmem:[%s6819_s4 + $0x88] sm:$0xff] }
 0x76c   : > { %6408 = vrsqrt.f32 %v4061_v46  ;;  %vm4089_vm8 = vweird.f32 %v4061_v46 }
 0x76f   : > { %v4054_v58 = vpop.xlane.xlu2 %4053 }
 0x770   : > { %v4058_v33 = vmul.f32 %v4054_v58, %v8948_v26 }
 0x772   : > { %v6409_v49 = vpop.eup %6408  ;;  %v4062_v24 = vadd.f32 1e-05, %v4058_v33 }
 0x773   : > { %v4084_v4 = vmul.f32 %v6409_v49, %v4061_v46  ;;  %vm4090_vm7 = vweird.f32 %v6409_v49 }
 0x774   : > { %6410 = vrsqrt.f32 %v4062_v24  ;;  %vm4091_vm9 = vmor %vm4089_vm8, %vm4090_vm7  ;;  %vm4099_vm11 = vweird.f32 %v4062_v24 }
 0x775   : > { %v4085_v57 = vmul.f32 %v6409_v49, %v4084_v4 }
 0x777   : > { %v4086_v7 = vmul.f32 0.5, %v4085_v57 }
 0x779   : > { %v4087_v43 = vsub.f32 1.5, %v4086_v7 }
 0x77a   : > { %v6411_v54 = vpop.eup %6410 }
 0x77b   : > { %v4088_v3 = vmul.f32 %v6409_v49, %v4087_v43  ;;  %v4094_v6 = vmul.f32 %v6411_v54, %v4062_v24  ;;  %vm4100_vm10 = vweird.f32 %v6411_v54  ;;  %v6111_v24 = vld [vmem:[%s6819_s4 + $0xd0] sm:$0xff] }
 0x77c   : > { %vm4101_vm12 = vmor %vm4099_vm11, %vm4100_vm10 }
 0x77d   : > { %v4095_v62 = vmul.f32 %v6411_v54, %v4094_v6  ;;  %v4092_v15 = vsel %vm4091_vm9, %v6409_v49, %v4088_v3  ;;  %v6087_v49 = vld [vmem:[%s6819_s4 + $0x10] sm:$0xff]  ;;  %v6093_v6 = vld [vmem:[%s6819_s4 + $0x40] sm:$0xff] }
 0x77e   : > { %v4105_v26 = vmul.f32 %v4092_v15, %v8325_v51  ;;  %v6100_v51 = vld [vmem:[%s6819_s4 + $0x78] sm:$0xff]  ;;  %4717 = vmatpush.bf16.msra.mxu3 %v6087_v49 }
 0x77f   : > { %v4096_v50 = vmul.f32 0.5, %v4095_v62  ;;  %4731 = vmatpush.bf16.msra.mxu0 %v6100_v51  ;;  %v6101_v62 = vld [vmem:[%s6819_s4 + $0x80] sm:$0xff] }
 0x780   : > { %v4112_v12 = vmul.f32 %v6327_v37, %v4105_v26 }
 0x781   : > { %v4097_v35 = vsub.f32 1.5, %v4096_v50 }
 0x782   : > { %v4119_v38 = vadd.f32 %v6328_v44, %v4112_v12  ;;  %v6086_v12 = vld [vmem:[%s6819_s4 + $0x8] sm:$0xff] }
 0x783   : > { %v4098_v63 = vmul.f32 %v6411_v54, %v4097_v35  ;;  %4718 = vmatpush.bf16.msra.mxu3 %v6086_v12 }
 0x785   : > { %v4102_v42 = vsel %vm4101_vm12, %v6411_v54, %v4098_v63 }
 0x786   : > { %v4106_v53 = vmul.f32 %v4102_v42, %v8331_v48  ;;  %v6099_v48 = vld [vmem:[%s6819_s4 + $0x70] sm:$0xff] }
 0x787   : > { %4732 = vmatpush.bf16.msra.mxu0 %v6099_v48  ;;  %4719 = vmatpush.bf16.msra.mxu3 %v6085_v31 }
 0x788   : > { %v4113_v29 = vmul.f32 %v6327_v37, %v4106_v53  ;;  %v6103_v37 = vld [vmem:[%s6819_s4 + $0x90] sm:$0xff] }
 0x789   : > { %4755 = vmatpush.bf16.msra.mxu1 %v6103_v37 }
 0x78a   : > { %v4120_v55 = vadd.f32 %v6328_v44, %v4113_v29  ;;  %v6112_v44 = vld [vmem:[%s6819_s4 + $0xd8] sm:$0xff]  ;;  %v6110_v29 = vld [vmem:[%s6819_s4 + $0xc8] sm:$0xff]  ;;  %s8956_s4 = sld [smem:[#allocation20_spill]] (!%p5915_p1) }
 0x78b   : > { %4733 = vmatpush.bf16.msra.mxu0 %v6098_v52  ;;  %4773 = vmatpush.bf16.msra.mxu2 %v6112_v44 }
 0x78c   : > { %v4122_v19 = vpack.c.bf16 %v4120_v55, %v4119_v38 }
 0x78d   : > { %4756 = vmatpush.bf16.msra.mxu1 %v6102_v23 }
 0x78e   : > { %4305 = vmatmul.bf16.gmra.mxu3 %v4122_v19  ;;  %4324 = vmatmul.bf16.gmra.mxu0 %v4122_v19 }
 0x78f   : > { %4343 = vmatmul.bf16.gmra.mxu1 %v4122_v19  ;;  %4362 = vmatmul.bf16.gmra.mxu2 %v4122_v19 }
 0x790   : > { %4734 = vmatpush.bf16.msra.mxu0 %v6097_v56  ;;  %4774 = vmatpush.bf16.msra.mxu2 %v6111_v24 }
 0x791   : > { %4757 = vmatpush.bf16.msra.mxu1 %v6101_v62 }
 0x794   : > { %4735 = vmatpush.bf16.msra.mxu0 %v6096_v45  ;;  %4775 = vmatpush.bf16.msra.mxu2 %v6110_v29 }
 0x798   : > { %4736 = vmatpush.bf16.msra.mxu0 %v6095_v11  ;;  %4776 = vmatpush.bf16.msra.mxu2 %v6109_v40 }
 0x79c   : > { %4737 = vmatpush.bf16.msra.mxu0 %v6094_v28 }
 0x7a0   : > { %4738 = vmatpush.bf16.msra.mxu0 %v6093_v6 }
 0x7da   : > { %v4320_v5 = vpop.f32.mrf.mxu0 }
 0x7db   : > { %v8460_v18 = vadd.f32 %v4320_v5, %v8451_v30  ;;  %v4339_v20 = vpop.f32.mrf.mxu1 }
 0x7dc   : > { %v8463_v32 = vadd.f32 %v4339_v20, %v8453_v13 }
 0x7dd   : > { %v4385_v47 = vmul.f32 0.044715, %v8460_v18  ;;  %v4369_v62 = vmul.f32 0.5, %v8460_v18 }
 0x7de   : > { %v4386_v8 = vmul.f32 0.044715, %v8463_v32 }
 0x7df   : > { %v4401_v46 = vmul.f32 %v4385_v47, %v8460_v18 }
 0x7e0   : > { %v4402_v58 = vmul.f32 %v4386_v8, %v8463_v32  ;;  %v4301_v33 = vpop.f32.mrf.mxu3 }
 0x7e1   : > { %v4417_v4 = vmul.f32 %v4401_v46, %v8460_v18  ;;  %v8481_v57 = vadd.f32 %v4301_v33, %v8468_v10  ;;  %v4358_v7 = vpop.f32.mrf.mxu2 }
 0x7e2   : > { %v4418_v43 = vmul.f32 %v4402_v58, %v8463_v32  ;;  %v8485_v54 = vadd.f32 %v4358_v7, %v8471_v14  ;;  %v4322_v3 = vpop.f32.mrf.mxu0 }
 0x7e3   : > { %v4433_v15 = vadd.f32 %v4417_v4, %v8460_v18  ;;  %v4384_v50 = vmul.f32 0.044715, %v8481_v57  ;;  %v8492_v35 = vadd.f32 %v4322_v3, %v8451_v30  ;;  %v4341_v26 = vpop.f32.mrf.mxu1 }
 0x7e4   : > { %v4434_v63 = vadd.f32 %v4418_v43, %v8463_v32  ;;  %v4387_v42 = vmul.f32 0.044715, %v8485_v54  ;;  %v8497_v53 = vadd.f32 %v4341_v26, %v8453_v13 }
 0x7e5   : > { %v4400_v38 = vmul.f32 %v4384_v50, %v8481_v57  ;;  %v4389_v55 = vmul.f32 0.044715, %v8492_v35  ;;  %v4449_v39 = vmul.f32 0.7978846, %v4433_v15  ;;  %v4373_v15 = vmul.f32 0.5, %v8492_v35 }
 0x7e6   : > { %v4403_v19 = vmul.f32 %v4387_v42, %v8485_v54  ;;  %v4390_v51 = vmul.f32 0.044715, %v8497_v53  ;;  %v4450_v60 = vmul.f32 0.7978846, %v4434_v63  ;;  %v4370_v63 = vmul.f32 0.5, %v8463_v32 }
 0x7e7   : > { %v4416_v48 = vmul.f32 %v4400_v38, %v8481_v57  ;;  %v4405_v22 = vmul.f32 %v4389_v55, %v8492_v35  ;;  %6412 = vtanh.f32 %v4449_v39  ;;  %v4374_v42 = vmul.f32 0.5, %v8497_v53 }
 0x7e8   : > { %v4419_v0 = vmul.f32 %v4403_v19, %v8485_v54  ;;  %v4406_v52 = vmul.f32 %v4390_v51, %v8497_v53  ;;  %v4303_v61 = vpop.f32.mrf.mxu3  ;;  %6414 = vtanh.f32 %v4450_v60  ;;  %v4371_v32 = vmul.f32 0.5, %v8485_v54 }
 0x7e9   : > { %v4432_v59 = vadd.f32 %v4416_v48, %v8481_v57  ;;  %v4421_v56 = vmul.f32 %v4405_v22, %v8492_v35  ;;  %v4304_v16 = vadd.f32 %v4303_v61, %v8468_v10  ;;  %v4360_v2 = vpop.f32.mrf.mxu2 }
 0x7ea   : > { %v4435_v1 = vadd.f32 %v4419_v0, %v8485_v54  ;;  %v4422_v45 = vmul.f32 %v4406_v52, %v8497_v53  ;;  %v4361_v9 = vadd.f32 %v4360_v2, %v8471_v14 }
 0x7eb   : > { %v4437_v21 = vadd.f32 %v4421_v56, %v8492_v35  ;;  %v4388_v34 = vmul.f32 0.044715, %v4304_v16  ;;  %v4448_v37 = vmul.f32 0.7978846, %v4432_v59  ;;  %v4368_v35 = vmul.f32 0.5, %v8481_v57 }
 0x7ec   : > { %v4438_v5 = vadd.f32 %v4422_v45, %v8497_v53  ;;  %v4391_v11 = vmul.f32 0.044715, %v4361_v9  ;;  %v4451_v44 = vmul.f32 0.7978846, %v4435_v1  ;;  %v4372_v52 = vmul.f32 0.5, %v4304_v16 }
 0x7ed   : > { %v4453_v20 = vmul.f32 0.7978846, %v4437_v21  ;;  %v4404_v17 = vmul.f32 %v4388_v34, %v4304_v16  ;;  %v6413_v46 = vpop.eup %6412  ;;  %v4375_v53 = vmul.f32 0.5, %v4361_v9 }
 0x7ee   : > { %v4454_v47 = vmul.f32 0.7978846, %v4438_v5  ;;  %v4407_v8 = vmul.f32 %v4391_v11, %v4361_v9  ;;  %v6415_v33 = vpop.eup %6414  ;;  %v4481_v7 = vadd.f32 1.0, %v6413_v46 }
 0x7ef   : > { %v4420_v28 = vmul.f32 %v4404_v17, %v4304_v16  ;;  %6416 = vtanh.f32 %v4453_v20  ;;  %v4482_v3 = vadd.f32 1.0, %v6415_v33 }
 0x7f0   : > { %v4423_v23 = vmul.f32 %v4407_v8, %v4361_v9  ;;  %6418 = vtanh.f32 %v4454_v47  ;;  %v4497_v38 = vmul.f32 %v4481_v7, %v4369_v62 }
 0x7f1   : > { %v4436_v58 = vadd.f32 %v4420_v28, %v4304_v16  ;;  %6420 = vtanh.f32 %v4448_v37  ;;  %v4498_v19 = vmul.f32 %v4482_v3, %v4370_v63 }
 0x7f2   : > { %v4439_v49 = vadd.f32 %v4423_v23, %v4361_v9  ;;  %6422 = vtanh.f32 %v4451_v44 }
 0x7f3   : > { %v4452_v24 = vmul.f32 0.7978846, %v4436_v58 }
 0x7f4   : > { %v4455_v4 = vmul.f32 0.7978846, %v4439_v49 }
 0x7f5   : > { %v6417_v43 = vpop.eup %6416  ;;  %6424 = vtanh.f32 %v4452_v24 }
 0x7f6   : > { %v6419_v6 = vpop.eup %6418  ;;  %v4485_v50 = vadd.f32 1.0, %v6417_v43  ;;  %6426 = vtanh.f32 %v4455_v4 }
 0x7f7   : > { %v6421_v26 = vpop.eup %6420  ;;  %v4486_v12 = vadd.f32 1.0, %v6419_v6 }
 0x7f8   : > { %v6423_v29 = vpop.eup %6422  ;;  %v4501_v55 = vmul.f32 %v4485_v50, %v4373_v15  ;;  %v4480_v48 = vadd.f32 1.0, %v6421_v26 }
 0x7f9   : > { %v4502_v51 = vmul.f32 %v4486_v12, %v4374_v42  ;;  %v4483_v18 = vadd.f32 1.0, %v6423_v29 }
 0x7fa   : > { %v4513_v39 = vpack.c.bf16 %v4501_v55, %v4497_v38  ;;  %v4496_v40 = vmul.f32 %v4480_v48, %v4368_v35 }
 0x7fb   : > { %v6425_v22 = vpop.eup %6424  ;;  %v4514_v60 = vpack.c.bf16 %v4502_v51, %v4498_v19  ;;  %v4499_v56 = vmul.f32 %v4483_v18, %v4371_v32 }
 0x7fc   : > { %v6427_v0 = vpop.eup %6426  ;;  %4739 = vmatmul.bf16.vlgmr.msra.gmra.mxu0 %v4513_v39  ;;  %v4484_v61 = vadd.f32 1.0, %v6425_v22 }
 0x7fd   : > { %4758 = vmatmul.bf16.vlgmr.msra.gmra.mxu1 %v4514_v60  ;;  %v4487_v31 = vadd.f32 1.0, %v6427_v0 }
 0x7fe   : > { %v4500_v59 = vmul.f32 %v4484_v61, %v4372_v52 }
 0x7ff   : > { %v4503_v2 = vmul.f32 %v4487_v31, %v4375_v53 }
 0x800   : > { %v4512_v1 = vpack.c.bf16 %v4500_v59, %v4496_v40 }
 0x801   : > { %v4515_v45 = vpack.c.bf16 %v4503_v2, %v4499_v56 }
 0x802   : > { %4720 = vmatmul.bf16.vlgmr.msra.gmra.mxu3 %v4512_v1 }
 0x803   : > { %4777 = vmatmul.bf16.vlgmr.msra.gmra.mxu2 %v4515_v45 }
 0x80b   : > { %v4325_v21 = vpop.f32.mrf.mxu0 }
 0x80c   : > { %v8526_v34 = vadd.f32 %v4325_v21, %v8451_v30  ;;  %v4344_v57 = vpop.f32.mrf.mxu1 }
 0x80d   : > { %v8529_v16 = vadd.f32 %v4344_v57, %v8453_v13 }
 0x80e   : > { %v4393_v54 = vmul.f32 0.044715, %v8526_v34 }
 0x80f   : > { %v4394_v9 = vmul.f32 0.044715, %v8529_v16 }
 0x810   : > { %v4409_v5 = vmul.f32 %v4393_v54, %v8526_v34  ;;  %v4377_v54 = vmul.f32 0.5, %v8526_v34 }
 0x811   : > { %v4306_v11 = vpop.f32.mrf.mxu3  ;;  %v4410_v37 = vmul.f32 %v4394_v9, %v8529_v16 }
 0x812   : > { %v8536_v20 = vadd.f32 %v4306_v11, %v8468_v10  ;;  %v4363_v17 = vpop.f32.mrf.mxu2  ;;  %v4425_v44 = vmul.f32 %v4409_v5, %v8526_v34 }
 0x813   : > { %v8540_v47 = vadd.f32 %v4363_v17, %v8471_v14  ;;  %v4327_v8 = vpop.f32.mrf.mxu0  ;;  %v4426_v28 = vmul.f32 %v4410_v37, %v8529_v16  ;;  %v4378_v37 = vmul.f32 0.5, %v8529_v16 }
 0x814   : > { %v4392_v23 = vmul.f32 0.044715, %v8536_v20  ;;  %v4328_v46 = vadd.f32 %v4327_v8, %v8451_v30  ;;  %v4346_v58 = vpop.f32.mrf.mxu1  ;;  %v4441_v33 = vadd.f32 %v4425_v44, %v8526_v34  ;;  %v4376_v34 = vmul.f32 0.5, %v8536_v20 }
 0x815   : > { %v4395_v49 = vmul.f32 0.044715, %v8540_v47  ;;  %v4347_v24 = vadd.f32 %v4346_v58, %v8453_v13  ;;  %v4442_v4 = vadd.f32 %v4426_v28, %v8529_v16  ;;  %v4379_v16 = vmul.f32 0.5, %v8540_v47 }
 0x816   : > { %v4397_v7 = vmul.f32 0.044715, %v4328_v46  ;;  %v4408_v43 = vmul.f32 %v4392_v23, %v8536_v20  ;;  %v4457_v15 = vmul.f32 0.7978846, %v4441_v33  ;;  %v4381_v9 = vmul.f32 0.5, %v4328_v46 }
 0x817   : > { %v4398_v3 = vmul.f32 0.044715, %v4347_v24  ;;  %v4411_v6 = vmul.f32 %v4395_v49, %v8540_v47  ;;  %v4458_v63 = vmul.f32 0.7978846, %v4442_v4  ;;  %v4382_v17 = vmul.f32 0.5, %v4347_v24 }
 0x818   : > { %v4413_v62 = vmul.f32 %v4397_v7, %v4328_v46  ;;  %v4424_v50 = vmul.f32 %v4408_v43, %v8536_v20  ;;  %6428 = vtanh.f32 %v4457_v15 }
 0x819   : > { %v4308_v30 = vpop.f32.mrf.mxu3  ;;  %v4414_v26 = vmul.f32 %v4398_v3, %v4347_v24  ;;  %v4427_v42 = vmul.f32 %v4411_v6, %v8540_v47  ;;  %6430 = vtanh.f32 %v4458_v63 }
 0x81a   : > { %v4309_v12 = vadd.f32 %v4308_v30, %v8468_v10  ;;  %v4365_v13 = vpop.f32.mrf.mxu2  ;;  %v4429_v29 = vmul.f32 %v4413_v62, %v4328_v46  ;;  %v4440_v38 = vadd.f32 %v4424_v50, %v8536_v20 }
 0x81b   : > { %v4366_v55 = vadd.f32 %v4365_v13, %v8471_v14  ;;  %v4430_v19 = vmul.f32 %v4414_v26, %v4347_v24  ;;  %v4443_v51 = vadd.f32 %v4427_v42, %v8540_v47  ;;  %v6329_v47 = vld [vmem:[%s875_s13] ss:$0 sm:$0xff]  ;;  %s8951_s13 = sld [smem:[#allocation31_spill]] (!%p5915_p1) }
 0x81c   : > { %v4396_v39 = vmul.f32 0.044715, %v4309_v12  ;;  %v4445_v48 = vadd.f32 %v4429_v29, %v4328_v46  ;;  %v4456_v35 = vmul.f32 0.7978846, %v4440_v38  ;;  %v4380_v46 = vmul.f32 0.5, %v4309_v12 }
 0x81d   : > { %v4399_v22 = vmul.f32 0.044715, %v4366_v55  ;;  %v4446_v60 = vadd.f32 %v4430_v19, %v4347_v24  ;;  %v4459_v61 = vmul.f32 0.7978846, %v4443_v51  ;;  %v4383_v24 = vmul.f32 0.5, %v4366_v55 }
 0x81e   : > { %v4461_v18 = vmul.f32 0.7978846, %v4445_v48  ;;  %v4412_v0 = vmul.f32 %v4396_v39, %v4309_v12  ;;  %v6429_v14 = vpop.eup %6428 }
 0x81f   : > { %v4462_v52 = vmul.f32 0.7978846, %v4446_v60  ;;  %v4415_v10 = vmul.f32 %v4399_v22, %v4366_v55  ;;  %v6431_v40 = vpop.eup %6430  ;;  %v4489_v2 = vadd.f32 1.0, %v6429_v14 }
 0x820   : > { %6432 = vtanh.f32 %v4461_v18  ;;  %v4428_v32 = vmul.f32 %v4412_v0, %v4309_v12  ;;  %v4490_v21 = vadd.f32 1.0, %v6431_v40 }
 0x821   : > { %6434 = vtanh.f32 %v4462_v52  ;;  %v4431_v53 = vmul.f32 %v4415_v10, %v4366_v55  ;;  %v4505_v28 = vmul.f32 %v4489_v2, %v4377_v54 }
 0x822   : > { %v4444_v31 = vadd.f32 %v4428_v32, %v4309_v12  ;;  %6436 = vtanh.f32 %v4456_v35  ;;  %v4506_v58 = vmul.f32 %v4490_v21, %v4378_v37 }
 0x823   : > { %v4447_v59 = vadd.f32 %v4431_v53, %v4366_v55  ;;  %6438 = vtanh.f32 %v4459_v61 }
 0x824   : > { %v4460_v56 = vmul.f32 0.7978846, %v4444_v31 }
 0x825   : > { %v4463_v1 = vmul.f32 0.7978846, %v4447_v59 }
 0x826   : > { %v6433_v45 = vpop.eup %6432  ;;  %6440 = vtanh.f32 %v4460_v56 }
 0x827   : > { %v6435_v57 = vpop.eup %6434  ;;  %v4493_v5 = vadd.f32 1.0, %v6433_v45  ;;  %6442 = vtanh.f32 %v4463_v1 }
 0x828   : > { %v6437_v11 = vpop.eup %6436  ;;  %v4494_v44 = vadd.f32 1.0, %v6435_v57 }
 0x829   : > { %v6439_v8 = vpop.eup %6438  ;;  %v4509_v23 = vmul.f32 %v4493_v5, %v4381_v9  ;;  %v4488_v4 = vadd.f32 1.0, %v6437_v11 }
 0x82a   : > { %v4510_v33 = vmul.f32 %v4494_v44, %v4382_v17  ;;  %v4491_v3 = vadd.f32 1.0, %v6439_v8 }
 0x82b   : > { %v4517_v49 = vpack.c.bf16 %v4509_v23, %v4505_v28  ;;  %v4504_v50 = vmul.f32 %v4488_v4, %v4376_v34 }
 0x82c   : > { %v6441_v7 = vpop.eup %6440  ;;  %v4518_v43 = vpack.c.bf16 %v4510_v33, %v4506_v58  ;;  %v4507_v26 = vmul.f32 %v4491_v3, %v4379_v16 }
 0x82d   : > { %v6443_v6 = vpop.eup %6442  ;;  %4744 = vmatmul.bf16.gmra.mxu0 %v4517_v49  ;;  %v4492_v62 = vadd.f32 1.0, %v6441_v7 }
 0x82e   : > { %4763 = vmatmul.bf16.gmra.mxu1 %v4518_v43  ;;  %v4495_v15 = vadd.f32 1.0, %v6443_v6 }
 0x82f   : > { %v4508_v30 = vmul.f32 %v4492_v62, %v4380_v46 }
 0x830   : > { %v4511_v63 = vmul.f32 %v4495_v15, %v4383_v24 }
 0x831   : > { %v4516_v42 = vpack.c.bf16 %v4508_v30, %v4504_v50 }
 0x832   : > { %v4519_v13 = vpack.c.bf16 %v4511_v63, %v4507_v26 }
 0x833   : > { %4725 = vmatmul.bf16.gmra.mxu3 %v4516_v42 }
 0x834   : > { %4782 = vmatmul.bf16.gmra.mxu2 %v4519_v13 }
 0x879   : > { %v4740_v29 = vpop.f32.mrf.mxu0 }
 0x87a   : > { %v4759_v38 = vpop.f32.mrf.mxu1 }
 0x881   : > { %v4742_v48 = vpop.f32.mrf.mxu0 }
 0x882   : > { %v4761_v0 = vpop.f32.mrf.mxu1 }
 0x885   : > { %v4721_v19 = vpop.f32.mrf.mxu3 }
 0x886   : > { %v4741_v20 = vadd.f32 %v4740_v29, %v4721_v19  ;;  %v4778_v12 = vpop.f32.mrf.mxu2 }
 0x888   : > { %v4760_v51 = vadd.f32 %v4759_v38, %v4741_v20 }
 0x88a   : > { %v4779_v39 = vadd.f32 %v4778_v12, %v4760_v51 }
 0x88c   : > { %v4788_v55 = vadd.f32 %v4779_v39, %v8299_v25 }
 0x88d   : > { %v4723_v22 = vpop.f32.mrf.mxu3 }
 0x88e   : > { %v4795_v60 = vadd.f32 %v6329_v47, %v4788_v55  ;;  %v4743_v18 = vadd.f32 %v4742_v48, %v4723_v22  ;;  %v4780_v52 = vpop.f32.mrf.mxu2 }
 0x890   : > { %4799 = vst [vmem:[#allocation2 + $0x10] sm:$0xff] %v4795_v60  ;;  %v4762_v35 = vadd.f32 %v4761_v0, %v4743_v18 }
 0x892   : > { %v4781_v10 = vadd.f32 %v4780_v52, %v4762_v35 }
 0x894   : > { %v4789_v61 = vadd.f32 %v4781_v10, %v8302_v36 }
 0x896   : > { %v4796_v32 = vadd.f32 %v6329_v47, %v4789_v61 }
 0x898   : > { %4800 = vst [vmem:[#allocation2] sm:$0xff] %v4796_v32 }
 0x8aa   : > { %v4745_v53 = vpop.f32.mrf.mxu0 }
 0x8ab   : > { %v4764_v14 = vpop.f32.mrf.mxu1 }
 0x8b2   : > { %v4747_v1 = vpop.f32.mrf.mxu0 }
 0x8b3   : > { %v4766_v54 = vpop.f32.mrf.mxu1 }
 0x8b6   : > { %v4726_v31 = vpop.f32.mrf.mxu3 }
 0x8b7   : > { %v4746_v40 = vadd.f32 %v4745_v53, %v4726_v31  ;;  %v4783_v59 = vpop.f32.mrf.mxu2 }
 0x8b9   : > { %v4765_v56 = vadd.f32 %v4764_v14, %v4746_v40 }
 0x8bb   : > { %v4784_v25 = vadd.f32 %v4783_v59, %v4765_v56 }
 0x8bd   : > { %v4790_v2 = vadd.f32 %v4784_v25, %v8305_v27 }
 0x8be   : > { %v4728_v45 = vpop.f32.mrf.mxu3 }
 0x8bf   : > { %v4797_v21 = vadd.f32 %v6329_v47, %v4790_v2  ;;  %v4748_v57 = vadd.f32 %v4747_v1, %v4728_v45  ;;  %v4785_v5 = vpop.f32.mrf.mxu2 }
 0x8c1   : > { %4801 = vst [vmem:[#allocation2 + $0x18] sm:$0xff] %v4797_v21  ;;  %v4767_v9 = vadd.f32 %v4766_v54, %v4748_v57 }
 0x8c3   : > { %v4786_v36 = vadd.f32 %v4785_v5, %v4767_v9 }
 0x8c5   : > { %v4791_v11 = vadd.f32 %v4786_v36, %v8308_v41  ;;  %4806 = sbr.rel (%p5915_p1) target bundleno = 2814 (0xafe), region = 104 }
 0x8c7   : > { %v4798_v37 = vadd.f32 %v6329_v47, %v4791_v11 }
 0x8c9   : > { %4802 = vst [vmem:[#allocation2 + $0x8] sm:$0xff] %v4798_v37 }
 0x8ca   : > { %v4809_v17 = vld [vmem:[#allocation2 + $0x18] sm:$0xff]  ;;  %v4807_v44 = vld [vmem:[#allocation2 + $0x10] sm:$0xff]  ;;  %v4808_v8 = vld [vmem:[#allocation2] sm:$0xff]  ;;  %vm5217_vm10 = vcmask 7168  }
 0x8cb   : > { %4817 = vadd.xlane.f32.xlu1 %v4809_v17  ;;  %4813 = vadd.xlane.f32.xlu0 %v4807_v44  ;;  %v8950_v58 = vld [vmem:[#allocation21_spill] sm:$0xff]  ;;  %v6002_v50 = vld [vmem:[%s8951_s13 + $0xa8] sm:$0xf]  ;;  %v6139_v30 = vld [vmem:[%s8951_s13 + $0xb0] sm:$0xf0] }
 0x8cc   : > { %v6138_v26 = vld [vmem:[%s8951_s13 + $0xac] sm:$0xf]  ;;  %v6003_v63 = vor.u32 %v6139_v30, %v6002_v50  ;;  %v6004_v42 = vld [vmem:[%s8951_s13 + $0xb4] sm:$0xf0]  ;;  %v6010_v13 = vld [vmem:[%s8951_s13 + $0xb0] sm:$0xf] }
 0x8cd   : > { %v6140_v29 = vld [vmem:[%s8951_s13 + $0xb8] sm:$0xf0]  ;;  %v6007_v38 = vor.u32 %v6138_v26, %v6004_v42  ;;  %v5990_v20 = vld [vmem:[%s8951_s13 + $0x90] sm:$0xf]  ;;  %v6135_v51 = vld [vmem:[%s8951_s13 + $0x94] sm:$0xf] }
 0x8ce   : > { %v6011_v19 = vor.u32 %v6140_v29, %v6010_v13  ;;  %5077 = vmatpush.bf16.msra.mxu0 %v6003_v63  ;;  %6141 = vmatpush.bf16.msra.mxu3 %v6003_v63  ;;  %v6136_v12 = vld [vmem:[%s8951_s13 + $0x98] sm:$0xf0]  ;;  %v5992_v47 = vld [vmem:[%s8951_s13 + $0x9c] sm:$0xf0]  ;;  %v5998_v55 = vld [vmem:[%s8951_s13 + $0x98] sm:$0xf] }
 0x8cf   : > { %5096 = vmatpush.bf16.msra.mxu1 %v6007_v38  ;;  %v5991_v39 = vor.u32 %v6136_v12, %v5990_v20  ;;  %v6137_v48 = vld [vmem:[%s8951_s13 + $0xa0] sm:$0xf0]  ;;  %v5995_v22 = vor.u32 %v6135_v51, %v5992_v47  ;;  %v5978_v18 = vld [vmem:[%s8951_s13 + $0x78] sm:$0xf]  ;;  %v6132_v35 = vld [vmem:[%s8951_s13 + $0x7c] sm:$0xf] }
 0x8d0   : > { %v4810_v27 = vld [vmem:[#allocation2 + $0x8] sm:$0xff]  ;;  %5115 = vmatpush.bf16.msra.mxu2 %v6011_v19  ;;  %v5999_v60 = vor.u32 %v6137_v48, %v5998_v55  ;;  %v6133_v0 = vld [vmem:[%s8951_s13 + $0x80] sm:$0xf0]  ;;  %v5986_v61 = vld [vmem:[%s8951_s13 + $0x80] sm:$0xf] }
 0x8d1   : > { %v5979_v52 = vor.u32 %v6133_v0, %v5978_v18  ;;  %v5980_v10 = vld [vmem:[%s8951_s13 + $0x84] sm:$0xf0]  ;;  %v6134_v32 = vld [vmem:[%s8951_s13 + $0x88] sm:$0xf0]  ;;  %v5966_v31 = vld [vmem:[%s8951_s13 + $0x60] sm:$0xf] }
 0x8d2   : > { %5078 = vmatpush.bf16.msra.mxu0 %v5991_v39  ;;  %6142 = vmatpush.bf16.msra.mxu3 %v5991_v39  ;;  %v5983_v53 = vor.u32 %v6132_v35, %v5980_v10  ;;  %v5987_v14 = vor.u32 %v6134_v32, %v5986_v61  ;;  %v6130_v40 = vld [vmem:[%s8951_s13 + $0x68] sm:$0xf0]  ;;  %v6129_v59 = vld [vmem:[%s8951_s13 + $0x64] sm:$0xf]  ;;  %v5968_v25 = vld [vmem:[%s8951_s13 + $0x6c] sm:$0xf0] }
 0x8d3   : > { %4819 = vadd.xlane.f32.xlu1 %v4810_v27  ;;  %4815 = vadd.xlane.f32.xlu0 %v4808_v8  ;;  %v5967_v56 = vor.u32 %v6130_v40, %v5966_v31  ;;  %v5974_v2 = vld [vmem:[%s8951_s13 + $0x68] sm:$0xf]  ;;  %v6131_v1 = vld [vmem:[%s8951_s13 + $0x70] sm:$0xf0]  ;;  %v5971_v45 = vor.u32 %v6129_v59, %v5968_v25  ;;  %v6126_v9 = vld [vmem:[%s8951_s13 + $0x4c] sm:$0xf] }
 0x8d4   : > { %5097 = vmatpush.bf16.msra.mxu1 %v5995_v22  ;;  %5116 = vmatpush.bf16.msra.mxu2 %v5999_v60  ;;  %v5975_v21 = vor.u32 %v6131_v1, %v5974_v2  ;;  %v5954_v57 = vld [vmem:[%s8951_s13 + $0x48] sm:$0xf]  ;;  %v6127_v54 = vld [vmem:[%s8951_s13 + $0x50] sm:$0xf0]  ;;  %v5956_v36 = vld [vmem:[%s8951_s13 + $0x54] sm:$0xf0] }
 0x8d5   : > { %v5955_v5 = vor.u32 %v6127_v54, %v5954_v57  ;;  %v5962_v11 = vld [vmem:[%s8951_s13 + $0x50] sm:$0xf]  ;;  %v6128_v37 = vld [vmem:[%s8951_s13 + $0x58] sm:$0xf0]  ;;  %v5938_v50 = vld [vmem:[%s8951_s13 + $0x20] sm:$0xf] }
 0x8d6   : > { %5079 = vmatpush.bf16.msra.mxu0 %v5979_v52  ;;  %6143 = vmatpush.bf16.msra.mxu3 %v5979_v52  ;;  %v6122_v30 = vld [vmem:[%s8951_s13 + $0x28] sm:$0xf0]  ;;  %v5918_v29 = vld [vmem:[%s8951_s13] sm:$0xf]  ;;  %v6117_v19 = vld [vmem:[%s8951_s13 + $0x4] sm:$0xf] }
 0x8d7   : > { %v5939_v13 = vor.u32 %v6122_v30, %v5938_v50  ;;  %v6118_v38 = vld [vmem:[%s8951_s13 + $0x8] sm:$0xf0]  ;;  %v5920_v39 = vld [vmem:[%s8951_s13 + $0xc] sm:$0xf0]  ;;  %v5926_v47 = vld [vmem:[%s8951_s13 + $0x8] sm:$0xf] }
 0x8d8   : > { %5098 = vmatpush.bf16.msra.mxu1 %v5983_v53  ;;  %5117 = vmatpush.bf16.msra.mxu2 %v5987_v14  ;;  %v5919_v51 = vor.u32 %v6118_v38, %v5918_v29  ;;  %v6119_v55 = vld [vmem:[%s8951_s13 + $0x10] sm:$0xf0]  ;;  %v5923_v48 = vor.u32 %v6117_v19, %v5920_v39 }
 0x8d9   : > { %v5927_v22 = vor.u32 %v6119_v55, %v5926_v47  ;;  %v5147_v47 = vld [vmem:[%s6759_s1 + $0x8] sm:$0xff] }
 0x8da   : > { %5080 = vmatpush.bf16.msra.mxu0 %v5967_v56  ;;  %6144 = vmatpush.bf16.msra.mxu3 %v5967_v56 }
 0x8dc   : > { %5099 = vmatpush.bf16.msra.mxu1 %v5971_v45  ;;  %5118 = vmatpush.bf16.msra.mxu2 %v5975_v21 }
 0x8de   : > { %5081 = vmatpush.bf16.msra.mxu0 %v5955_v5  ;;  %6145 = vmatpush.bf16.msra.mxu3 %v5955_v5 }
 0x93e   : > { %v4818_v28 = vpop.xlane.xlu1 %4817  ;;  %v4814_v23 = vpop.xlane.xlu0 %4813 }
 0x93f   : > { %v4823_v33 = vmul.f32 %v4818_v28, %v8950_v58  ;;  %v4821_v49 = vmul.f32 %v4814_v23, %v8950_v58  ;;  %v6123_v28 = vld [vmem:[%s8951_s13 + $0x34] sm:$0xf] }
 0x941   : > { %v8573_v41 = vsub.f32 %v4809_v17, %v4823_v33  ;;  %v8575_v4 = vsub.f32 %v4807_v44, %v4821_v49  ;;  %v5959_v17 = vor.u32 %v6126_v9, %v5956_v36  ;;  %v5963_v44 = vor.u32 %v6128_v37, %v5962_v11  ;;  %v5944_v33 = vld [vmem:[%s8951_s13 + $0x3c] sm:$0xf0]  ;;  %v5950_v49 = vld [vmem:[%s8951_s13 + $0x38] sm:$0xf] }
 0x943   : > { %v4831_v7 = vmul.f32 %v8573_v41, %v8573_v41  ;;  %v4829_v43 = vmul.f32 %v8575_v4, %v8575_v4  ;;  %5100 = vmatpush.bf16.msra.mxu1 %v5959_v17  ;;  %5119 = vmatpush.bf16.msra.mxu2 %v5963_v44 }
 0x945   : > { %4837 = vadd.xlane.f32.xlu0 %v4831_v7  ;;  %4833 = vadd.xlane.f32.xlu2 %v4829_v43  ;;  %v6125_v7 = vld [vmem:[%s8951_s13 + $0x40] sm:$0xf0]  ;;  %v5947_v43 = vor.u32 %v6123_v28, %v5944_v33  ;;  %v6448_v33 = vld [vmem:[%s8952_s3] ss:$0 sm:$0xff] }
 0x946   : > { %v4820_v3 = vpop.xlane.xlu1 %4819  ;;  %v4816_v6 = vpop.xlane.xlu0 %4815 }
 0x947   : > { %v4824_v34 = vmul.f32 %v4820_v3, %v8950_v58  ;;  %v4822_v46 = vmul.f32 %v4816_v6, %v8950_v58  ;;  %v5951_v3 = vor.u32 %v6125_v7, %v5950_v49  ;;  %5101 = vmatpush.bf16.msra.mxu1 %v5947_v43  ;;  %v5930_v6 = vld [vmem:[%s8951_s13 + $0x18] sm:$0xf] }
 0x949   : > { %v8583_v62 = vsub.f32 %v4810_v27, %v4824_v34  ;;  %v8585_v16 = vsub.f32 %v4808_v8, %v4822_v46  ;;  %v5942_v27 = vld [vmem:[%s8951_s13 + $0x30] sm:$0xf]  ;;  %v6124_v8 = vld [vmem:[%s8951_s13 + $0x38] sm:$0xf0]  ;;  %5120 = vmatpush.bf16.msra.mxu2 %v5951_v3  ;;  %v6121_v34 = vld [vmem:[%s8951_s13 + $0x20] sm:$0xf0] }
 0x94a   : > { %v5943_v23 = vor.u32 %v6124_v8, %v5942_v27  ;;  %v6120_v46 = vld [vmem:[%s8951_s13 + $0x1c] sm:$0xf] }
 0x94b   : > { %v4832_v24 = vmul.f32 %v8583_v62, %v8583_v62  ;;  %v4830_v15 = vmul.f32 %v8585_v16, %v8585_v16 }
 0x94c   : > { %5082 = vmatpush.bf16.msra.mxu0 %v5943_v23  ;;  %6146 = vmatpush.bf16.msra.mxu3 %v5943_v23 }
 0x94d   : > { %4839 = vadd.xlane.f32.xlu1 %v4832_v24  ;;  %4835 = vadd.xlane.f32.xlu2 %v4830_v15  ;;  %v5931_v24 = vor.u32 %v6121_v34, %v5930_v6  ;;  %v5932_v15 = vld [vmem:[%s8951_s13 + $0x24] sm:$0xf0] }
 0x94e   : > { %v5935_v42 = vor.u32 %v6120_v46, %v5932_v15  ;;  %5121 = vmatpush.bf16.msra.mxu2 %v5939_v13 }
 0x950   : > { %5083 = vmatpush.bf16.msra.mxu0 %v5931_v24  ;;  %6147 = vmatpush.bf16.msra.mxu3 %v5931_v24 }
 0x951   : > { %5102 = vmatpush.bf16.msra.mxu1 %v5935_v42 }
 0x952   : > { %5122 = vmatpush.bf16.msra.mxu2 %v5927_v22 }
 0x954   : > { %5084 = vmatpush.bf16.msra.mxu0 %v5919_v51  ;;  %6148 = vmatpush.bf16.msra.mxu3 %v5919_v51  ;;  %v5146_v51 = vld [vmem:[%s6759_s1] sm:$0xff] }
 0x955   : > { %5103 = vmatpush.bf16.msra.mxu1 %v5923_v48 }
 0x9b8   : > { %v4834_v26 = vpop.xlane.xlu2 %4833  ;;  %v4838_v63 = vpop.xlane.xlu0 %4837 }
 0x9b9   : > { %v4841_v20 = vmul.f32 %v4834_v26, %v8950_v58  ;;  %v4843_v12 = vmul.f32 %v4838_v63, %v8950_v58 }
 0x9bb   : > { %v4845_v60 = vadd.f32 1e-05, %v4841_v20  ;;  %v4847_v18 = vadd.f32 1e-05, %v4843_v12 }
 0x9bd   : > { %6450 = vrsqrt.f32 %v4845_v60  ;;  %vm4875_vm13 = vweird.f32 %v4847_v18  ;;  %vm4855_vm1 = vweird.f32 %v4845_v60 }
 0x9be   : > { %6452 = vrsqrt.f32 %v4847_v18 }
 0x9c0   : > { %v4840_v0 = vpop.xlane.xlu1 %4839  ;;  %v4836_v35 = vpop.xlane.xlu2 %4835 }
 0x9c1   : > { %v4844_v52 = vmul.f32 %v4840_v0, %v8950_v58  ;;  %v4842_v10 = vmul.f32 %v4836_v35, %v8950_v58  ;;  %v5148_v35 = vld [vmem:[%s6759_s1 + $0x10] sm:$0xff] }
 0x9c3   : > { %v6451_v61 = vpop.eup %6450  ;;  %v4848_v32 = vadd.f32 1e-05, %v4844_v52  ;;  %v4846_v53 = vadd.f32 1e-05, %v4842_v10 }
 0x9c4   : > { %v6453_v14 = vpop.eup %6452  ;;  %v4850_v31 = vmul.f32 %v6451_v61, %v4845_v60  ;;  %vm4856_vm15 = vweird.f32 %v6451_v61 }
 0x9c5   : > { %v4870_v40 = vmul.f32 %v6453_v14, %v4847_v18  ;;  %6454 = vrsqrt.f32 %v4848_v32  ;;  %vm4876_vm14 = vweird.f32 %v6453_v14  ;;  %vm4857_vm2 = vmor %vm4855_vm1, %vm4856_vm15  ;;  %vm4885_vm3 = vweird.f32 %v4848_v32 }
 0x9c6   : > { %v4851_v59 = vmul.f32 %v6451_v61, %v4850_v31  ;;  %6456 = vrsqrt.f32 %v4846_v53  ;;  %vm4877_vm0 = vmor %vm4875_vm13, %vm4876_vm14  ;;  %vm4865_vm7 = vweird.f32 %v4846_v53  ;;  %v5149_v31 = vld [vmem:[%s6759_s1 + $0x18] sm:$0xff] }
 0x9c7   : > { %v4871_v56 = vmul.f32 %v6453_v14, %v4870_v40 }
 0x9c8   : > { %v4852_v25 = vmul.f32 0.5, %v4851_v59  ;;  %v5150_v59 = vld [vmem:[%s6759_s1 + $0x20] sm:$0xff] }
 0x9c9   : > { %v4872_v2 = vmul.f32 0.5, %v4871_v56 }
 0x9ca   : > { %v4853_v1 = vsub.f32 1.5, %v4852_v25 }
 0x9cb   : > { %v6455_v45 = vpop.eup %6454  ;;  %v4873_v21 = vsub.f32 1.5, %v4872_v2 }
 0x9cc   : > { %v6457_v57 = vpop.eup %6456  ;;  %v4880_v54 = vmul.f32 %v6455_v45, %v4848_v32  ;;  %v4854_v58 = vmul.f32 %v6451_v61, %v4853_v1  ;;  %vm4886_vm4 = vweird.f32 %v6455_v45 }
 0x9cd   : > { %v4874_v9 = vmul.f32 %v6453_v14, %v4873_v21  ;;  %v4860_v5 = vmul.f32 %v6457_v57, %v4846_v53  ;;  %vm4887_vm5 = vmor %vm4885_vm3, %vm4886_vm4  ;;  %vm4866_vm6 = vweird.f32 %v6457_v57 }
 0x9ce   : > { %v4881_v36 = vmul.f32 %v6455_v45, %v4880_v54  ;;  %v4858_v44 = vsel %vm4857_vm2, %v6451_v61, %v4854_v58  ;;  %vm4867_vm8 = vmor %vm4865_vm7, %vm4866_vm6 }
 0x9cf   : > { %v4861_v11 = vmul.f32 %v6457_v57, %v4860_v5  ;;  %v4878_v37 = vsel %vm4877_vm0, %v6453_v14, %v4874_v9  ;;  %v4889_v49 = vmul.f32 %v4858_v44, %v8575_v4  ;;  %v5151_v9 = vld [vmem:[%s6759_s1 + $0x28] sm:$0xff]  ;;  %v5153_v44 = vld [vmem:[%s6759_s1 + $0x38] sm:$0xff] }
 0x9d0   : > { %v4882_v17 = vmul.f32 0.5, %v4881_v36  ;;  %v4891_v28 = vmul.f32 %v4878_v37, %v8573_v41  ;;  %v6449_v41 = vld [vmem:[%s8953_s25] ss:$0 sm:$0xff] }
 0x9d1   : > { %v4862_v27 = vmul.f32 0.5, %v4861_v11  ;;  %v4896_v15 = vmul.f32 %v6448_v33, %v4889_v49 }
 0x9d2   : > { %v4883_v8 = vsub.f32 1.5, %v4882_v17  ;;  %v4898_v46 = vmul.f32 %v6448_v33, %v4891_v28 }
 0x9d3   : > { %v4863_v23 = vsub.f32 1.5, %v4862_v27  ;;  %v4903_v63 = vadd.f32 %v6449_v41, %v4896_v15 }
 0x9d4   : > { %v4884_v7 = vmul.f32 %v6455_v45, %v4883_v8  ;;  %v4905_v26 = vadd.f32 %v6449_v41, %v4898_v46  ;;  %v5152_v8 = vld [vmem:[%s6759_s1 + $0x30] sm:$0xff] }
 0x9d5   : > { %v4864_v43 = vmul.f32 %v6457_v57, %v4863_v23 }
 0x9d6   : > { %v4888_v3 = vsel %vm4887_vm5, %v6455_v45, %v4884_v7 }
 0x9d7   : > { %v4892_v6 = vmul.f32 %v4888_v3, %v8583_v62  ;;  %v4868_v34 = vsel %vm4867_vm8, %v6457_v57, %v4864_v43  ;;  %v4941_v62 = vld [vmem:[%s8954_s30] sm:$0x7] }
 0x9d8   : > { %v4890_v24 = vmul.f32 %v4868_v34, %v8585_v16  ;;  %v4943_v16 = vperm.slane %v4941_v62, 0  ;;  %v4944_v38 = vperm.slane %v4941_v62, 1  ;;  %v8756_v22 = vperm.slane %v4941_v62, 2  ;;  %v5154_v3 = vld [vmem:[%s6759_s1 + $0x40] sm:$0xff]  ;;  %v5157_v62 = vld [vmem:[%s6759_s1 + $0x58] sm:$0xff] }
 0x9d9   : > { %v4899_v50 = vmul.f32 %v6448_v33, %v4892_v6 }
 0x9da   : > { %v4897_v30 = vmul.f32 %v6448_v33, %v4890_v24  ;;  %v5156_v24 = vld [vmem:[%s6759_s1 + $0x50] sm:$0xff] }
 0x9db   : > { %v4906_v4 = vadd.f32 %v6449_v41, %v4899_v50 }
 0x9dc   : > { %v4904_v42 = vadd.f32 %v6449_v41, %v4897_v30  ;;  %v5155_v30 = vld [vmem:[%s6759_s1 + $0x48] sm:$0xff] }
 0x9dd   : > { %v4908_v13 = vpack.c.bf16 %v4906_v4, %v4905_v26 }
 0x9de   : > { %v4907_v29 = vpack.c.bf16 %v4904_v42, %v4903_v63 }
 0x9df   : > { %5090 = vmatmul.bf16.vlgmr.msra.gmra.mxu3 %v4908_v13 }
 0x9e0   : > { %5085 = vmatmul.bf16.vlgmr.msra.gmra.mxu0 %v4907_v29  ;;  %5104 = vmatmul.bf16.vlgmr.msra.gmra.mxu1 %v4907_v29 }
 0x9e1   : > { %5123 = vmatmul.bf16.vlgmr.msra.gmra.mxu2 %v4907_v29 }
 0x9f0   : > { %5109 = vmatmul.bf16.gmra.mxu1 %v4908_v13 }
 0x9f1   : > { %5128 = vmatmul.bf16.gmra.mxu2 %v4908_v13 }
 0xa5d   : > { %v5086_v19 = vpop.f32.mrf.mxu0  ;;  %v5105_v20 = vpop.f32.mrf.mxu1 }
 0xa5e   : > { %v5087_v12 = vadd.f32 %v5086_v19, %v4943_v16  ;;  %v5106_v39 = vadd.f32 %v5105_v20, %v4944_v38 }
 0xa60   : > { %5134 = vst [vmem:[%s6825_s26] sm:$0xff] %v5087_v12  ;;  %v5158_v55 = vsub.f32 %v5087_v12, %v5146_v51  ;;  %v5159_v48 = vsub.f32 %v5106_v39, %v5147_v47  ;;  %v6562_v47 = vmov 384.0  }
 0xa61   : > { %5135 = vst [vmem:[%s6825_s26 + $0x8] sm:$0xff] %v5106_v39  ;;  %6458 = vrcp.f32 %v6562_v47 }
 0xa62   : > { %v5091_v60 = vpop.f32.mrf.mxu3  ;;  %v5170_v52 = vmul.f32 %v5158_v55, %v5158_v55  ;;  %v5171_v10 = vmul.f32 %v5159_v48, %v5159_v48 }
 0xa63   : > { %v5092_v18 = vadd.f32 %v5091_v60, %v4943_v16 }
 0xa64   : > { %v5124_v0 = vpop.f32.mrf.mxu2  ;;  %v5182_v45 = vadd.f32 %v5171_v10, %v5170_v52 }
 0xa65   : > { %5140 = vst [vmem:[%s6825_s26 + $0x30] sm:$0xff] %v5092_v18  ;;  %v5125_v61 = vadd.f32 %v5124_v0, %v8756_v22  ;;  %v5088_v32 = vpop.f32.mrf.mxu0  ;;  %v5107_v53 = vpop.f32.mrf.mxu1  ;;  %v5164_v49 = vsub.f32 %v5092_v18, %v5152_v8 }
 0xa66   : > { %v5089_v14 = vadd.f32 %v5088_v32, %v4943_v16  ;;  %v5108_v40 = vadd.f32 %v5107_v53, %v4944_v38  ;;  %v5210_v32 = vld [vmem:[%s8955_s15 + $0x8] sm:$0xff] }
 0xa67   : > { %5136 = vst [vmem:[%s6825_s26 + $0x10] sm:$0xff] %v5125_v61  ;;  %v5160_v56 = vsub.f32 %v5125_v61, %v5148_v35  ;;  %v5176_v15 = vmul.f32 %v5164_v49, %v5164_v49  ;;  %v6459_v55 = vpop.eup %6458  ;;  %v5209_v35 = vld [vmem:[%s8955_s15] sm:$0xff] }
 0xa68   : > { %5137 = vst [vmem:[%s6825_s26 + $0x18] sm:$0xff] %v5089_v14  ;;  %v5161_v2 = vsub.f32 %v5089_v14, %v5149_v31  ;;  %v5162_v1 = vsub.f32 %v5108_v40, %v5150_v59  ;;  %v5199_v48 = vmul.f32 384.0, %v6459_v55  ;;  %vm5203_vm9 = vweird.f32 %v6459_v55 }
 0xa69   : > { %v5172_v25 = vmul.f32 %v5160_v56, %v5160_v56  ;;  %5138 = vst [vmem:[%s6825_s26 + $0x20] sm:$0xff] %v5108_v40  ;;  %v5211_v40 = vld [vmem:[%s8955_s15 + $0x10] sm:$0xff] }
 0xa6a   : > { %v5093_v21 = vpop.f32.mrf.mxu3  ;;  %v5173_v5 = vmul.f32 %v5161_v2, %v5161_v2  ;;  %v5174_v36 = vmul.f32 %v5162_v1, %v5162_v1  ;;  %v5200_v60 = vsub.f32 1.0, %v5199_v48  ;;  %v5212_v2 = vld [vmem:[%s8955_s15 + $0x18] sm:$0xff] }
 0xa6b   : > { %v5094_v57 = vadd.f32 %v5093_v21, %v4943_v16  ;;  %v5183_v54 = vadd.f32 %v5182_v45, %v5172_v25 }
 0xa6c   : > { %v5126_v58 = vpop.f32.mrf.mxu2  ;;  %v5186_v33 = vadd.f32 %v5174_v36, %v5173_v5  ;;  %v5201_v18 = vmul.f32 %v6459_v55, %v5200_v60 }
 0xa6d   : > { %5143 = vst [vmem:[%s6825_s26 + $0x48] sm:$0xff] %v5094_v57  ;;  %v5127_v11 = vadd.f32 %v5126_v58, %v8756_v22  ;;  %5184 = vadd.xlane.f32.xlu2 %v5183_v54  ;;  %v5110_v37 = vpop.f32.mrf.mxu1  ;;  %v5167_v42 = vsub.f32 %v5094_v57, %v5155_v30 }
 0xa6e   : > { %v5111_v17 = vadd.f32 %v5110_v37, %v4944_v38 }
 0xa6f   : > { %5139 = vst [vmem:[%s6825_s26 + $0x28] sm:$0xff] %v5127_v11  ;;  %v5163_v27 = vsub.f32 %v5127_v11, %v5151_v9  ;;  %v5179_v20 = vmul.f32 %v5167_v42, %v5167_v42 }
 0xa70   : > { %5141 = vst [vmem:[%s6825_s26 + $0x38] sm:$0xff] %v5111_v17  ;;  %v5165_v23 = vsub.f32 %v5111_v17, %v5153_v44 }
 0xa71   : > { %v5175_v28 = vmul.f32 %v5163_v27, %v5163_v27 }
 0xa72   : > { %v5177_v6 = vmul.f32 %v5165_v23, %v5165_v23 }
 0xa73   : > { %v5187_v7 = vadd.f32 %v5186_v33, %v5175_v28 }
 0xa74   : > { %v5129_v43 = vpop.f32.mrf.mxu2  ;;  %v5190_v63 = vadd.f32 %v5177_v6, %v5176_v15 }
 0xa75   : > { %v5130_v34 = vadd.f32 %v5129_v43, %v8756_v22  ;;  %5188 = vadd.xlane.f32.xlu0 %v5187_v7  ;;  %v5112_v41 = vpop.f32.mrf.mxu1 }
 0xa76   : > { %v5113_v46 = vadd.f32 %v5112_v41, %v4944_v38 }
 0xa77   : > { %5142 = vst [vmem:[%s6825_s26 + $0x40] sm:$0xff] %v5130_v34  ;;  %v5166_v50 = vsub.f32 %v5130_v34, %v5154_v3 }
 0xa78   : > { %5144 = vst [vmem:[%s6825_s26 + $0x50] sm:$0xff] %v5113_v46  ;;  %v5168_v4 = vsub.f32 %v5113_v46, %v5156_v24 }
 0xa79   : > { %v5178_v26 = vmul.f32 %v5166_v50, %v5166_v50 }
 0xa7a   : > { %v5180_v16 = vmul.f32 %v5168_v4, %v5168_v4 }
 0xa7b   : > { %v5191_v13 = vadd.f32 %v5190_v63, %v5178_v26 }
 0xa7c   : > { %v5131_v29 = vpop.f32.mrf.mxu2  ;;  %v5194_v51 = vadd.f32 %v5180_v16, %v5179_v20 }
 0xa7d   : > { %v5132_v19 = vadd.f32 %v5131_v29, %v8756_v22  ;;  %5192 = vadd.xlane.f32.xlu1 %v5191_v13  ;;  %v5202_v22 = vadd.f32 %v6459_v55, %v5201_v18 }
 0xa7f   : > { %5145 = vst [vmem:[%s6825_s26 + $0x58] sm:$0xff] %v5132_v19  ;;  %v5169_v38 = vsub.f32 %v5132_v19, %v5157_v62  ;;  %v5204_v0 = vsel %vm5203_vm9, %v6459_v55, %v5202_v22 }
 0xa81   : > { %v5181_v12 = vmul.f32 %v5169_v38, %v5169_v38 }
 0xa83   : > { %v5195_v39 = vadd.f32 %v5194_v51, %v5181_v12 }
 0xa85   : > { %5196 = vadd.xlane.f32.xlu2 %v5195_v39 }
 0xae0   : > { %v5185_v52 = vpop.xlane.xlu2 %5184 }
 0xae1   : > { %v5205_v10 = vmul.f32 %v5204_v0, %v5185_v52 }
 0xae3   : > { %v5213_v61 = vmul.f32 %v5209_v35, %v5205_v10 }
 0xae5   : > { %5218 = vst.msk [vmem:[%s8956_s4] sm:$0xff] %vm5217_vm10, %v5213_v61 }
 0xae8   : > { %v5189_v53 = vpop.xlane.xlu0 %5188 }
 0xae9   : > { %v5206_v14 = vmul.f32 %v5204_v0, %v5189_v53 }
 0xaeb   : > { %v5214_v31 = vmul.f32 %v5210_v32, %v5206_v14 }
 0xaed   : > { %5219 = vst.msk [vmem:[%s8956_s4 + $0x8] sm:$0xff] %vm5217_vm10, %v5214_v31 }
 0xaf0   : > { %v5193_v59 = vpop.xlane.xlu1 %5192 }
 0xaf1   : > { %v5207_v56 = vmul.f32 %v5204_v0, %v5193_v59 }
 0xaf3   : > { %v5215_v25 = vmul.f32 %v5211_v40, %v5207_v56 }
 0xaf5   : > { %5220 = vst.msk [vmem:[%s8956_s4 + $0x10] sm:$0xff] %vm5217_vm10, %v5215_v25 }
 0xaf8   : > { %v5197_v1 = vpop.xlane.xlu2 %5196 }
 0xaf9   : > { %v5208_v45 = vmul.f32 %v5204_v0, %v5197_v1 }
 0xafb   : > { %v5216_v21 = vmul.f32 %v5212_v2, %v5208_v45 }
 0xafd   : > { %5221 = vst.msk [vmem:[%s8956_s4 + $0x18] sm:$0xff] %vm5217_vm10, %v5216_v21 }
 0xafe PF: > { %s8957_s1 = sld [smem:[#allocation10_spill]]  ;;  %s5240_s0 = sshll.u32 %s6825_s26, 4  ;;  %s5241_s0 = int_to_ptr.vmem [resolvable:$true] %s5240_s0 }
 0xaff   : > { %s8958_s27 = sld [smem:[#allocation7_spill]] }
 0xb00   : > { %s8960_s18 = sld [smem:[#allocation35_spill]] }
 0xb04   : > { %s6153_s23 = smul.u32 96, %s8957_s1 }
 0xb05   : > { %s8961_s17 = sand.u32 1, %s8958_s27  }
 0xb06   : > { %s5239_s28 = scalar_lea.hbm %s8960_s18, %s6153_s23  ;;  %s5223_s16 = scalar_lea.sflag [#allocation4], %s8961_s17 }
 0xb07   : > { %s5242_s2 = sshll.u32 %s5239_s28, 4  ;;  %s6480_s26 = scalar_lea.hbm %s8960_s18, 192  ;;  %s5243_s2 = int_to_ptr.hbm [resolvable:$true] %s5242_s2 }
 0xb08   : > { %s6474_s22 = sshra.s32 %s5243_s2, 4  ;;  %s6475_s22 = int_to_ptr.hbm [resolvable:$true] %s6474_s22 }
 0xb09   : > { %s6476_s3 = scalar_lea.hbm %s6475_s22, 96  ;;  %p6481_p6 = scmp.lt.s32.totalorder %s6475_s22, %s8960_s18 }
 0xb0a   : > { %p6477_p2 = scmp.ne.s32.totalorder %s6475_s22, %s6476_s3  ;;  %p6482_p7 = scmp.lt.s32.totalorder %s6480_s26, %s6476_s3 }
 0xb0c   : > { %p6478_p4 = pnand %p6477_p2, %p6719_p3  ;;  %p6483_p8 = por %p6482_p7, %p6481_p6 }
 0xb0e   : > { %p6479_p5 = pneg %p6478_p4 }
 0xb10   : > { %p6484_p10 = pnand %p6483_p8, %p6479_p5 }
 0xb12   : > { %6487 = shalt.err (!%p6484_p10)
}
 0xb13   : > { %s6563_s24 = smov 384   ;;  %s6564_s30 = smov 24  }
 0xb14   : > { %6154 = dma.vmem_to_hbm [thread:$0]  (%p6719_p3), %s5241_s0, 1536, %s5243_s2, %s5223_s16, %s6563_s24, %s6563_s24, %s6564_s30  }
 0xb15 PF: > { %s8962_s15 = sld [smem:[#allocation13_spill]] }
 0xb16   : > { %s8963_s4 = sld [smem:[#allocation6_spill]] }
 0xb1b   : > { %p6160_p11 = scmp.ge.s32.totalorder %s8962_s15, 2 }
 0xb1c   : > { %s5260_s27 = sand.u32 1, %s8963_s4  }
 0xb1d   : > { %p6157_p12 = pnand %p6160_p11, %p6729_p9  ;;  %s5261_s23 = scalar_lea.sflag [#allocation4], %s5260_s27 }
 0xb1f   : > { %p6158_p13 = pneg %p6157_p12 }
 0xb21   : > { %6521 = dma.done.wait (%p6158_p13), %s5261_s23, 1536  }
 0xb22   : > { %6523 = vsyncadd (%p6158_p13), %s5261_s23, 4294965760  ;;  %s34_s26 = sadd.s32 1, %s8962_s15   ;;  %s8965_s1 = sld [smem:[#allocation7_spill]] }
 0xb23   : > { %p31_p0 = scmp.ge.s32.totalorder %s34_s26, 6   ;;  %s8966_s22 = sld [smem:[#allocation8_spill]] }
 0xb24   : > { %s8967_s23 = sld [smem:[#allocation18_spill]] }
 0xb25   : > { %s8968_s24 = sld [smem:[#allocation11_spill]]  ;;  %33 = sbr.rel (!%p31_p0) target bundleno = 20 (0x14), region = 193 }
 0xb26   : > { %s8969_s2 = sld [smem:[#allocation12_spill]] }
 0xb27   : > { %s8970_s25 = sld [smem:[#allocation14_spill]] }
 0xb28   : > { %s8971_s3 = sld [smem:[#allocation16_spill]] }
 0xb2a   :  { %5275 = vsyncpa [#allocation4], 1 }
 0xb2b   :  { %5277 = vsyncpa [#allocation4 + $0x1], 1 }

</bundles_post_ra>
